<compile_context>
chip_gen: v6e
topology: v6e:2x2x1
jax: 0.10.0
libtpu: 0.0.40
codegen_flags: <defaults>
</compile_context>

<pallas_src>
import jax
import jax.numpy as jnp
from jax.experimental import pallas as pl
from jax.experimental.pallas import tpu as pltpu


# ----------------------------------------------------------------------------
# Fused kernel: one batch element per grid step.
# ----------------------------------------------------------------------------
def _basic_block_kernel(x_ref, w1_ref, b1_ref, w2_ref, b2_ref,
                        caw1_ref, caw2_ref, saw_ref,
                        o_ref,
                        pad_ref, col_ref, sp_ref):
    # x_ref   : (1, H, W, C)         input (also the residual)
    # w1/w2   : (9*C, C)  bf16       3x3 conv weights, rows (ky, kx, cin)-major,
    #                                BN scale already folded into the columns
    # b1/b2   : (1, C)    f32        folded BatchNorm shift
    # caw1    : (C, C//r) f32        channel-attention MLP weights
    # caw2    : (C//r, C) f32
    # saw_ref : SMEM (98,) f32       7x7x2 spatial-attention conv weights, flat
    # o_ref   : (1, H, W, C)         block output
    # pad_ref : VMEM (H+2, W+2, C)   f32  zero-padded conv-input scratch
    # col_ref : VMEM (H, W, 9*C)     bf16 im2col scratch
    # sp_ref  : VMEM (2, H+6, WP)    f32  padded channel mean/max maps, WP % 128 == 0
    _, h, w, c = x_ref.shape
    hw = h * w
    wp = sp_ref.shape[-1]

    # ------------------------------------------------------- conv halo borders
    # Interior [1:h+1, 1:w+1, :] is fully overwritten before every conv, so only
    # the 1-pixel border needs zeroing (saves ~one feature map of stores/step).
    zrow = jnp.zeros((1, w + 2, c), jnp.float32)
    zcol = jnp.zeros((h, 1, c), jnp.float32)
    pad_ref[0:1, :, :] = zrow
    pad_ref[h + 1:h + 2, :, :] = zrow
    pad_ref[1:h + 1, 0:1, :] = zcol
    pad_ref[1:h + 1, w + 1:w + 2, :] = zcol

    # --------------------------------------------------------------- 3x3 convs
    def conv3x3_bn(w9_ref, shift_ref, relu):
        # Build the (H, W, 9*C) bf16 im2col buffer tap-by-tap as direct
        # ref->ref slab copies (cast at write time), then one K = 9*C matmul
        # (fills the MXU instead of 9 small K=C drains).
        for ky in range(3):
            for kx in range(3):
                k = ky * 3 + kx
                col_ref[:, :, k * c:(k + 1) * c] = (
                    pad_ref[ky:ky + h, kx:kx + w, :].astype(jnp.bfloat16))
        cols = col_ref[...].reshape(hw, 9 * c)              # free leading-dim merge
        acc = jnp.dot(cols, w9_ref[...],
                      preferred_element_type=jnp.float32)   # (H*W, C) f32 acc
        acc = acc + shift_ref[...]                           # BN scale folded into W
        if relu:
            acc = jnp.maximum(acc, 0.0)
        return acc

    pad_ref[1:h + 1, 1:w + 1, :] = x_ref[0]
    h1 = conv3x3_bn(w1_ref, b1_ref, relu=True)               # conv1 + bn1 + relu
    pad_ref[1:h + 1, 1:w + 1, :] = h1.reshape(h, w, c)
    h2 = conv3x3_bn(w2_ref, b2_ref, relu=False)              # conv2 + bn2

    # ------------------------------------------------------- channel attention
    # Stack avg / max pooled vectors -> run the shared MLP once on (2, C).
    g = jnp.concatenate(
        [jnp.mean(h2, axis=0, keepdims=True),
         jnp.max(h2, axis=0, keepdims=True)], axis=0)        # (2, C)
    hid = jnp.maximum(
        jnp.dot(g, caw1_ref[...], preferred_element_type=jnp.float32), 0.0)
    att = jnp.dot(hid, caw2_ref[...], preferred_element_type=jnp.float32)
    ca = jax.nn.sigmoid(att[0:1, :] + att[1:2, :])            # (1, C)
    y = h2 * ca                                               # (H*W, C)
    y_hwc = y.reshape(h, w, c)

    # ------------------------------------------------------- spatial attention
    # Channel-mean / channel-max maps, zero-padded by 3 into a lane-dense
    # (WP = multiple of 128) buffer.  Full zeroing here is cheap: no channel dim.
    sp_ref[...] = jnp.zeros_like(sp_ref)
    sp_ref[0, 3:3 + h, 3:3 + w] = jnp.mean(y_hwc, axis=-1)
    sp_ref[1, 3:3 + h, 3:3 + w] = jnp.max(y_hwc, axis=-1)

    # 7x7 conv: per-ky row slab; the 7 kx taps accumulate over the full padded
    # lane width using pltpu.roll (XLU slot, lane-dense VALU work); only the
    # first W lanes of the accumulator are valid and are sliced at the end.
    s = jnp.zeros((h, wp), jnp.float32)
    for side in range(2):            # 0 = mean map, 1 = max map
        for ky in range(7):
            slab = sp_ref[side, ky:ky + h, :]                 # (H, WP)
            for kx in range(7):
                wgt = saw_ref[(ky * 7 + kx) * 2 + side]
                shifted = slab if kx == 0 else pltpu.roll(slab, shift=wp - kx, axis=1)
                s = s + shifted * wgt
    sa = jax.nn.sigmoid(s[:, 0:w]).reshape(h, w, 1)

    out = sa * y_hwc + x_ref[0]                               # residual add
    o_ref[0] = jnp.maximum(out, 0.0).astype(o_ref.dtype)      # final ReLU


# ----------------------------------------------------------------------------
# Wrapper
# ----------------------------------------------------------------------------
def _round_up(v, m):
    return -(-v // m) * m


def _vmem_limit_bytes(h, w, c):
    lanes = lambda v: _round_up(v, 128)
    fmap = h * w * lanes(c) * 4                               # one (H,W,C) f32 map
    wts = (2 * 9 * c * lanes(c) * 2                           # bf16 conv weights
           + 2 * lanes(c) * 4                                 # shifts
           + 2 * _round_up(c, 8) * 128 * 4)                   # CA MLP weights
    scr = ((h + 2) * (w + 2) * lanes(c) * 4                   # conv halo pad (f32)
           + h * w * lanes(9 * c) * 2                         # im2col (bf16)
           + 2 * (h + 6) * lanes(w + 6) * 4)                  # SA padded maps
    live = 6 * fmap                                           # h1/h2/y + compiler temps
    est = 4 * fmap + 2 * wts + scr + live + (8 << 20)
    return int(min(est, 64 << 20))                            # clamp to v7x physical VMEM


@jax.jit
def basic_block_forward(x_nchw, params):
    # BasicBlock with inplanes == planes, stride=1, downsample=None.
    x = jnp.transpose(x_nchw, (0, 2, 3, 1)).astype(jnp.float32)   # NCHW -> NHWC
    n, h, w, c = x.shape
    cr = params["ca_w1"].shape[-1]
    wp = _round_up(w + 6, 128)                                 # lane-dense SA maps

    # (3,3,Cin,Cout) -> (9*Cin, Cout), rows ordered (ky, kx, cin); fold the BN
    # per-output-channel scale into the weight columns, then cast to bf16.
    w1_9 = (params["conv1_w"].reshape(9 * c, c) * params["bn1_scale"]).astype(jnp.bfloat16)
    w2_9 = (params["conv2_w"].reshape(9 * c, c) * params["bn2_scale"]).astype(jnp.bfloat16)

    out = pl.pallas_call(
        _basic_block_kernel,
        out_shape=jax.ShapeDtypeStruct((n, h, w, c), jnp.float32),
        grid=(n,),
        in_specs=[
            pl.BlockSpec((1, h, w, c), lambda i: (i, 0, 0, 0)),
            pl.BlockSpec((9 * c, c), lambda i: (0, 0)),
            pl.BlockSpec((1, c), lambda i: (0, 0)),
            pl.BlockSpec((9 * c, c), lambda i: (0, 0)),
            pl.BlockSpec((1, c), lambda i: (0, 0)),
            pl.BlockSpec((c, cr), lambda i: (0, 0)),
            pl.BlockSpec((cr, c), lambda i: (0, 0)),
            pl.BlockSpec(memory_space=pltpu.MemorySpace.SMEM),
        ],
        out_specs=pl.BlockSpec((1, h, w, c), lambda i: (i, 0, 0, 0)),
        scratch_shapes=[
            pltpu.VMEM((h + 2, w + 2, c), jnp.float32),        # conv halo pad
            pltpu.VMEM((h, w, 9 * c), jnp.bfloat16),           # im2col (bf16, 3-D)
            pltpu.VMEM((2, h + 6, wp), jnp.float32),           # SA padded maps
        ],
        compiler_params=pltpu.CompilerParams(
            # Batch axis is parallel; on v7x (2 TCs/chip) use N >= 2 per chip so
            # both TensorCores are fed.
            dimension_semantics=("parallel",),
            vmem_limit_bytes=_vmem_limit_bytes(h, w, c),
        ),
    )(x, w1_9, params["bn1_shift"],
      w2_9, params["bn2_shift"],
      params["ca_w1"], params["ca_w2"], params["sa_w_flat"])
    return jnp.transpose(out, (0, 3, 1, 2))                    # NHWC -> NCHW


# ----------------------------------------------------------------------------
# Pure-JAX reference (f32) for correctness checking.
# ----------------------------------------------------------------------------
def _reference_forward(x_nchw, params):
    x = jnp.transpose(x_nchw, (0, 2, 3, 1)).astype(jnp.float32)   # NHWC
    hp = jax.lax.Precision.HIGHEST

    def conv(v, wgt):
        return jax.lax.conv_general_dilated(
            v, wgt, (1, 1), "SAME",
            dimension_numbers=("NHWC", "HWIO", "NHWC"), precision=hp)

    sc1 = params["bn1_scale"].reshape(1, 1, 1, -1)
    sh1 = params["bn1_shift"].reshape(1, 1, 1, -1)
    sc2 = params["bn2_scale"].reshape(1, 1, 1, -1)
    sh2 = params["bn2_shift"].reshape(1, 1, 1, -1)

    h1 = jnp.maximum(conv(x, params["conv1_w"]) * sc1 + sh1, 0.0)
    h2 = conv(h1, params["conv2_w"]) * sc2 + sh2

    # Channel attention.
    avg = jnp.mean(h2, axis=(1, 2))                    # (N, C)
    mx = jnp.max(h2, axis=(1, 2))

    def mlp(v):
        return jnp.maximum(v @ params["ca_w1"], 0.0) @ params["ca_w2"]

    ca = jax.nn.sigmoid(mlp(avg) + mlp(mx))            # (N, C)
    y = h2 * ca[:, None, None, :]

    # Spatial attention.
    sa_in = jnp.stack([jnp.mean(y, axis=-1), jnp.max(y, axis=-1)], axis=-1)  # (N,H,W,2)
    saw = params["sa_w_flat"].reshape(7, 7, 2, 1)      # HWIO
    sa = jax.nn.sigmoid(conv(sa_in, saw))              # (N,H,W,1)

    out = jnp.maximum(sa * y + x, 0.0)
    return jnp.transpose(out, (0, 3, 1, 2))


# ----------------------------------------------------------------------------
# Parameter construction (deterministic, synthetic).
# Note: real PyTorch weights need OIHW -> HWIO transposes, the CA 1x1-conv
# weights transposed to (C, C/r) / (C/r, C), and the SA weight (1,2,7,7) ->
# (7,7,2); synthetic init uses these layouts directly.
# ----------------------------------------------------------------------------
def init_params(key, planes, ratio=16):
    eps = 1e-5
    ks = jax.random.split(key, 10)
    cr = planes // ratio

    def fold_bn(gamma, beta, mean, var):
        scale = gamma / jnp.sqrt(var + eps)
        shift = beta - mean * scale
        return scale.reshape(1, planes), shift.reshape(1, planes)

    params = {}
    params["conv1_w"] = jax.random.normal(ks[0], (3, 3, planes, planes), jnp.float32) * 0.05
    params["conv2_w"] = jax.random.normal(ks[1], (3, 3, planes, planes), jnp.float32) * 0.05
    g1 = 1.0 + 0.1 * jax.random.normal(ks[2], (planes,), jnp.float32)
    b1 = 0.05 * jax.random.normal(ks[3], (planes,), jnp.float32)
    m1 = 0.02 * jax.random.normal(ks[4], (planes,), jnp.float32)
    v1 = 1.0 + jnp.abs(0.1 * jax.random.normal(ks[5], (planes,), jnp.float32))
    params["bn1_scale"], params["bn1_shift"] = fold_bn(g1, b1, m1, v1)
    g2 = 1.0 + 0.1 * jax.random.normal(ks[6], (planes,), jnp.float32)
    b2 = 0.05 * jax.random.normal(ks[7], (planes,), jnp.float32)
    params["bn2_scale"], params["bn2_shift"] = fold_bn(
        g2, b2, jnp.zeros((planes,)), jnp.ones((planes,)))
    # ChannelAttention fc: Conv2d(C, C//r, 1) then Conv2d(C//r, C, 1), no bias.
    params["ca_w1"] = jax.random.normal(ks[8], (planes, cr), jnp.float32) * 0.2
    params["ca_w2"] = jax.random.normal(ks[9], (cr, planes), jnp.float32) * 0.2
    # SpatialAttention Conv2d(2, 1, 7, pad=3, bias=False): (7,7,2) -> flat (98,)
    saw = jax.random.normal(jax.random.PRNGKey(123), (7, 7, 2), jnp.float32) * 0.1
    params["sa_w_flat"] = saw.reshape(-1)
    return params


if __name__ == "__main__":
    # planes must be >= 16 because ChannelAttention uses ratio=16.
    N, C, H, W = 2, 32, 16, 16
    key = jax.random.PRNGKey(0)
    k_x, k_p = jax.random.split(key)
    x = jax.random.normal(k_x, (N, C, H, W), jnp.float32)
    params = init_params(k_p, planes=C)

    out = basic_block_forward(x, params)
    jax.block_until_ready(out)
    assert out.shape == (N, C, H, W)
    assert bool(jnp.all(jnp.isfinite(out)))

    # Relaxed tolerance: conv operands are bf16 inside the kernel.
    ref = _reference_forward(x, params)
    err = float(jnp.max(jnp.abs(out - ref)))
    assert err < 5e-2, f"max abs error vs f32 reference: {err}"
    print("KERNEL_OK")
</pallas_src>

<mosaic_0001>
module attributes {stable_mosaic.version = 11 : i64} {
  func.func @_basic_block_kernel(%arg0: i32, %arg1: memref<1x16x16x32xf32, #tpu.memory_space<vmem>>, %arg2: memref<288x32xbf16, #tpu.memory_space<vmem>>, %arg3: memref<1x32xf32, #tpu.memory_space<vmem>>, %arg4: memref<288x32xbf16, #tpu.memory_space<vmem>>, %arg5: memref<1x32xf32, #tpu.memory_space<vmem>>, %arg6: memref<32x2xf32, #tpu.memory_space<vmem>>, %arg7: memref<2x32xf32, #tpu.memory_space<vmem>>, %arg8: memref<98xf32, #tpu.memory_space<smem>>, %arg9: memref<1x16x16x32xf32, #tpu.memory_space<vmem>>, %arg10: memref<18x18x32xf32, #tpu.memory_space<vmem>>, %arg11: memref<16x16x288xbf16, #tpu.memory_space<vmem>>, %arg12: memref<2x22x128xf32, #tpu.memory_space<vmem>>) attributes {dimension_semantics = [#tpu.dimension_semantics<parallel>], iteration_bounds = array<i64: 2>, scalar_prefetch = 0 : i64, scratch_operands = 3 : i64, tpu.core_type = #tpu.core_type<tc>, window_params = [{transform_indices = @transform_0, window_bounds = array<i64: 1, 16, 16, 32>}, {pipeline_mode = #tpu.pipeline_mode<synchronous>, transform_indices = @transform_1, window_bounds = array<i64: 288, 32>}, {pipeline_mode = #tpu.pipeline_mode<synchronous>, transform_indices = @transform_2, window_bounds = array<i64: 1, 32>}, {pipeline_mode = #tpu.pipeline_mode<synchronous>, transform_indices = @transform_3, window_bounds = array<i64: 288, 32>}, {pipeline_mode = #tpu.pipeline_mode<synchronous>, transform_indices = @transform_4, window_bounds = array<i64: 1, 32>}, {pipeline_mode = #tpu.pipeline_mode<synchronous>, transform_indices = @transform_5, window_bounds = array<i64: 32, 2>}, {pipeline_mode = #tpu.pipeline_mode<synchronous>, transform_indices = @transform_6, window_bounds = array<i64: 2, 32>}, {transform_indices = @transform_7, window_bounds = array<i64: 98>}, {transform_indices = @transform_8, window_bounds = array<i64: 1, 16, 16, 32>}]} {
    %cst = arith.constant 0.000000e+00 : f32
    %0 = vector.broadcast %cst : f32 to vector<1x18x32xf32>
    %cst_0 = arith.constant 0.000000e+00 : f32
    %1 = vector.broadcast %cst_0 : f32 to vector<16x1x32xf32>
    %c0 = arith.constant 0 : index
    %c0_1 = arith.constant 0 : index
    %c0_2 = arith.constant 0 : index
    %2 = vector.load %arg10[%c0, %c0_1, %c0_2] : memref<18x18x32xf32, #tpu.memory_space<vmem>>, vector<1x18x32xf32>
    tpu.vector_store %arg10[%c0, %c0_1, %c0_2], %0 {strides = array<i32>} : memref<18x18x32xf32, #tpu.memory_space<vmem>>, vector<1x18x32xf32>,
    %c17 = arith.constant 17 : index
    %c0_3 = arith.constant 0 : index
    %c0_4 = arith.constant 0 : index
    %3 = vector.load %arg10[%c17, %c0_3, %c0_4] : memref<18x18x32xf32, #tpu.memory_space<vmem>>, vector<1x18x32xf32>
    tpu.vector_store %arg10[%c17, %c0_3, %c0_4], %0 {strides = array<i32>} : memref<18x18x32xf32, #tpu.memory_space<vmem>>, vector<1x18x32xf32>,
    %c1 = arith.constant 1 : index
    %c0_5 = arith.constant 0 : index
    %c0_6 = arith.constant 0 : index
    %4 = vector.load %arg10[%c1, %c0_5, %c0_6] : memref<18x18x32xf32, #tpu.memory_space<vmem>>, vector<16x1x32xf32>
    tpu.vector_store %arg10[%c1, %c0_5, %c0_6], %1 {strides = array<i32>} : memref<18x18x32xf32, #tpu.memory_space<vmem>>, vector<16x1x32xf32>,
    %c1_7 = arith.constant 1 : index
    %c17_8 = arith.constant 17 : index
    %c0_9 = arith.constant 0 : index
    %5 = vector.load %arg10[%c1_7, %c17_8, %c0_9] : memref<18x18x32xf32, #tpu.memory_space<vmem>>, vector<16x1x32xf32>
    tpu.vector_store %arg10[%c1_7, %c17_8, %c0_9], %1 {strides = array<i32>} : memref<18x18x32xf32, #tpu.memory_space<vmem>>, vector<16x1x32xf32>,
    %c0_10 = arith.constant 0 : index
    %c0_11 = arith.constant 0 : index
    %c0_12 = arith.constant 0 : index
    %c0_13 = arith.constant 0 : index
    %6 = vector.load %arg1[%c0_10, %c0_11, %c0_12, %c0_13] : memref<1x16x16x32xf32, #tpu.memory_space<vmem>>, vector<1x16x16x32xf32>
    %7 = vector.shape_cast %6 : vector<1x16x16x32xf32> to vector<16x16x32xf32>
    %c1_14 = arith.constant 1 : index
    %c1_15 = arith.constant 1 : index
    %c0_16 = arith.constant 0 : index
    %8 = vector.load %arg10[%c1_14, %c1_15, %c0_16] : memref<18x18x32xf32, #tpu.memory_space<vmem>>, vector<16x16x32xf32>
    tpu.vector_store %arg10[%c1_14, %c1_15, %c0_16], %7 {strides = array<i32>} : memref<18x18x32xf32, #tpu.memory_space<vmem>>, vector<16x16x32xf32>,
    %c0_17 = arith.constant 0 : index
    %c0_18 = arith.constant 0 : index
    %c0_19 = arith.constant 0 : index
    %9 = vector.load %arg10[%c0_17, %c0_18, %c0_19] : memref<18x18x32xf32, #tpu.memory_space<vmem>>, vector<16x16x32xf32>
    %10 = arith.truncf %9 : vector<16x16x32xf32> to vector<16x16x32xbf16>
    %c0_20 = arith.constant 0 : index
    %c0_21 = arith.constant 0 : index
    %c0_22 = arith.constant 0 : index
    %11 = vector.load %arg11[%c0_20, %c0_21, %c0_22] : memref<16x16x288xbf16, #tpu.memory_space<vmem>>, vector<16x16x32xbf16>
    tpu.vector_store %arg11[%c0_20, %c0_21, %c0_22], %10 {strides = array<i32>} : memref<16x16x288xbf16, #tpu.memory_space<vmem>>, vector<16x16x32xbf16>,
    %c0_23 = arith.constant 0 : index
    %c1_24 = arith.constant 1 : index
    %c0_25 = arith.constant 0 : index
    %12 = vector.load %arg10[%c0_23, %c1_24, %c0_25] : memref<18x18x32xf32, #tpu.memory_space<vmem>>, vector<16x16x32xf32>
    %13 = arith.truncf %12 : vector<16x16x32xf32> to vector<16x16x32xbf16>
    %c0_26 = arith.constant 0 : index
    %c0_27 = arith.constant 0 : index
    %c32 = arith.constant 32 : index
    %14 = vector.load %arg11[%c0_26, %c0_27, %c32] : memref<16x16x288xbf16, #tpu.memory_space<vmem>>, vector<16x16x32xbf16>
    tpu.vector_store %arg11[%c0_26, %c0_27, %c32], %13 {strides = array<i32>} : memref<16x16x288xbf16, #tpu.memory_space<vmem>>, vector<16x16x32xbf16>,
    %c0_28 = arith.constant 0 : index
    %c2 = arith.constant 2 : index
    %c0_29 = arith.constant 0 : index
    %15 = vector.load %arg10[%c0_28, %c2, %c0_29] : memref<18x18x32xf32, #tpu.memory_space<vmem>>, vector<16x16x32xf32>
    %16 = arith.truncf %15 : vector<16x16x32xf32> to vector<16x16x32xbf16>
    %c0_30 = arith.constant 0 : index
    %c0_31 = arith.constant 0 : index
    %c64 = arith.constant 64 : index
    %17 = vector.load %arg11[%c0_30, %c0_31, %c64] : memref<16x16x288xbf16, #tpu.memory_space<vmem>>, vector<16x16x32xbf16>
    tpu.vector_store %arg11[%c0_30, %c0_31, %c64], %16 {strides = array<i32>} : memref<16x16x288xbf16, #tpu.memory_space<vmem>>, vector<16x16x32xbf16>,
    %c1_32 = arith.constant 1 : index
    %c0_33 = arith.constant 0 : index
    %c0_34 = arith.constant 0 : index
    %18 = vector.load %arg10[%c1_32, %c0_33, %c0_34] : memref<18x18x32xf32, #tpu.memory_space<vmem>>, vector<16x16x32xf32>
    %19 = arith.truncf %18 : vector<16x16x32xf32> to vector<16x16x32xbf16>
    %c0_35 = arith.constant 0 : index
    %c0_36 = arith.constant 0 : index
    %c96 = arith.constant 96 : index
    %20 = vector.load %arg11[%c0_35, %c0_36, %c96] : memref<16x16x288xbf16, #tpu.memory_space<vmem>>, vector<16x16x32xbf16>
    tpu.vector_store %arg11[%c0_35, %c0_36, %c96], %19 {strides = array<i32>} : memref<16x16x288xbf16, #tpu.memory_space<vmem>>, vector<16x16x32xbf16>,
    %c1_37 = arith.constant 1 : index
    %c1_38 = arith.constant 1 : index
    %c0_39 = arith.constant 0 : index
    %21 = vector.load %arg10[%c1_37, %c1_38, %c0_39] : memref<18x18x32xf32, #tpu.memory_space<vmem>>, vector<16x16x32xf32>
    %22 = arith.truncf %21 : vector<16x16x32xf32> to vector<16x16x32xbf16>
    %c0_40 = arith.constant 0 : index
    %c0_41 = arith.constant 0 : index
    %c128 = arith.constant 128 : index
    %23 = vector.load %arg11[%c0_40, %c0_41, %c128] : memref<16x16x288xbf16, #tpu.memory_space<vmem>>, vector<16x16x32xbf16>
    tpu.vector_store %arg11[%c0_40, %c0_41, %c128], %22 {strides = array<i32>} : memref<16x16x288xbf16, #tpu.memory_space<vmem>>, vector<16x16x32xbf16>,
    %c1_42 = arith.constant 1 : index
    %c2_43 = arith.constant 2 : index
    %c0_44 = arith.constant 0 : index
    %24 = vector.load %arg10[%c1_42, %c2_43, %c0_44] : memref<18x18x32xf32, #tpu.memory_space<vmem>>, vector<16x16x32xf32>
    %25 = arith.truncf %24 : vector<16x16x32xf32> to vector<16x16x32xbf16>
    %c0_45 = arith.constant 0 : index
    %c0_46 = arith.constant 0 : index
    %c160 = arith.constant 160 : index
    %26 = vector.load %arg11[%c0_45, %c0_46, %c160] : memref<16x16x288xbf16, #tpu.memory_space<vmem>>, vector<16x16x32xbf16>
    tpu.vector_store %arg11[%c0_45, %c0_46, %c160], %25 {strides = array<i32>} : memref<16x16x288xbf16, #tpu.memory_space<vmem>>, vector<16x16x32xbf16>,
    %c2_47 = arith.constant 2 : index
    %c0_48 = arith.constant 0 : index
    %c0_49 = arith.constant 0 : index
    %27 = vector.load %arg10[%c2_47, %c0_48, %c0_49] : memref<18x18x32xf32, #tpu.memory_space<vmem>>, vector<16x16x32xf32>
    %28 = arith.truncf %27 : vector<16x16x32xf32> to vector<16x16x32xbf16>
    %c0_50 = arith.constant 0 : index
    %c0_51 = arith.constant 0 : index
    %c192 = arith.constant 192 : index
    %29 = vector.load %arg11[%c0_50, %c0_51, %c192] : memref<16x16x288xbf16, #tpu.memory_space<vmem>>, vector<16x16x32xbf16>
    tpu.vector_store %arg11[%c0_50, %c0_51, %c192], %28 {strides = array<i32>} : memref<16x16x288xbf16, #tpu.memory_space<vmem>>, vector<16x16x32xbf16>,
    %c2_52 = arith.constant 2 : index
    %c1_53 = arith.constant 1 : index
    %c0_54 = arith.constant 0 : index
    %30 = vector.load %arg10[%c2_52, %c1_53, %c0_54] : memref<18x18x32xf32, #tpu.memory_space<vmem>>, vector<16x16x32xf32>
    %31 = arith.truncf %30 : vector<16x16x32xf32> to vector<16x16x32xbf16>
    %c0_55 = arith.constant 0 : index
    %c0_56 = arith.constant 0 : index
    %c224 = arith.constant 224 : index
    %32 = vector.load %arg11[%c0_55, %c0_56, %c224] : memref<16x16x288xbf16, #tpu.memory_space<vmem>>, vector<16x16x32xbf16>
    tpu.vector_store %arg11[%c0_55, %c0_56, %c224], %31 {strides = array<i32>} : memref<16x16x288xbf16, #tpu.memory_space<vmem>>, vector<16x16x32xbf16>,
    %c2_57 = arith.constant 2 : index
    %c2_58 = arith.constant 2 : index
    %c0_59 = arith.constant 0 : index
    %33 = vector.load %arg10[%c2_57, %c2_58, %c0_59] : memref<18x18x32xf32, #tpu.memory_space<vmem>>, vector<16x16x32xf32>
    %34 = arith.truncf %33 : vector<16x16x32xf32> to vector<16x16x32xbf16>
    %c0_60 = arith.constant 0 : index
    %c0_61 = arith.constant 0 : index
    %c256 = arith.constant 256 : index
    %35 = vector.load %arg11[%c0_60, %c0_61, %c256] : memref<16x16x288xbf16, #tpu.memory_space<vmem>>, vector<16x16x32xbf16>
    tpu.vector_store %arg11[%c0_60, %c0_61, %c256], %34 {strides = array<i32>} : memref<16x16x288xbf16, #tpu.memory_space<vmem>>, vector<16x16x32xbf16>,
    %c0_62 = arith.constant 0 : index
    %c0_63 = arith.constant 0 : index
    %c0_64 = arith.constant 0 : index
    %36 = vector.load %arg11[%c0_62, %c0_63, %c0_64] : memref<16x16x288xbf16, #tpu.memory_space<vmem>>, vector<16x16x288xbf16>
    %37 = vector.shape_cast %36 : vector<16x16x288xbf16> to vector<256x288xbf16>
    %c0_65 = arith.constant 0 : index
    %c0_66 = arith.constant 0 : index
    %38 = vector.load %arg2[%c0_65, %c0_66] : memref<288x32xbf16, #tpu.memory_space<vmem>>, vector<288x32xbf16>
    %cst_67 = arith.constant dense<0.000000e+00> : vector<256x32xf32>
    %39 = tpu.matmul %37, %38, %cst_67 {dimension_numbers = #tpu.dot_dimension_numbers<[1], [0], [0], [1], [0, 0, 1, 1], [], []>} : vector<256x288xbf16>, vector<288x32xbf16>, vector<256x32xf32> -> vector<256x32xf32>
    %c0_68 = arith.constant 0 : index
    %c0_69 = arith.constant 0 : index
    %40 = vector.load %arg3[%c0_68, %c0_69] : memref<1x32xf32, #tpu.memory_space<vmem>>, vector<1x32xf32>
    %41 = vector.broadcast %40 : vector<1x32xf32> to vector<256x32xf32>
    %42 = arith.addf %39, %41 : vector<256x32xf32>
    %cst_70 = arith.constant 0.000000e+00 : f32
    %43 = vector.broadcast %cst_70 : f32 to vector<256x32xf32>
    %44 = arith.maximumf %42, %43 : vector<256x32xf32>
    %45 = vector.shape_cast %44 : vector<256x32xf32> to vector<16x16x32xf32>
    %c1_71 = arith.constant 1 : index
    %c1_72 = arith.constant 1 : index
    %c0_73 = arith.constant 0 : index
    %46 = vector.load %arg10[%c1_71, %c1_72, %c0_73] : memref<18x18x32xf32, #tpu.memory_space<vmem>>, vector<16x16x32xf32>
    tpu.vector_store %arg10[%c1_71, %c1_72, %c0_73], %45 {strides = array<i32>} : memref<18x18x32xf32, #tpu.memory_space<vmem>>, vector<16x16x32xf32>,
    %c0_74 = arith.constant 0 : index
    %c0_75 = arith.constant 0 : index
    %c0_76 = arith.constant 0 : index
    %47 = vector.load %arg10[%c0_74, %c0_75, %c0_76] : memref<18x18x32xf32, #tpu.memory_space<vmem>>, vector<16x16x32xf32>
    %48 = arith.truncf %47 : vector<16x16x32xf32> to vector<16x16x32xbf16>
    %c0_77 = arith.constant 0 : index
    %c0_78 = arith.constant 0 : index
    %c0_79 = arith.constant 0 : index
    %49 = vector.load %arg11[%c0_77, %c0_78, %c0_79] : memref<16x16x288xbf16, #tpu.memory_space<vmem>>, vector<16x16x32xbf16>
    tpu.vector_store %arg11[%c0_77, %c0_78, %c0_79], %48 {strides = array<i32>} : memref<16x16x288xbf16, #tpu.memory_space<vmem>>, vector<16x16x32xbf16>,
    %c0_80 = arith.constant 0 : index
    %c1_81 = arith.constant 1 : index
    %c0_82 = arith.constant 0 : index
    %50 = vector.load %arg10[%c0_80, %c1_81, %c0_82] : memref<18x18x32xf32, #tpu.memory_space<vmem>>, vector<16x16x32xf32>
    %51 = arith.truncf %50 : vector<16x16x32xf32> to vector<16x16x32xbf16>
    %c0_83 = arith.constant 0 : index
    %c0_84 = arith.constant 0 : index
    %c32_85 = arith.constant 32 : index
    %52 = vector.load %arg11[%c0_83, %c0_84, %c32_85] : memref<16x16x288xbf16, #tpu.memory_space<vmem>>, vector<16x16x32xbf16>
    tpu.vector_store %arg11[%c0_83, %c0_84, %c32_85], %51 {strides = array<i32>} : memref<16x16x288xbf16, #tpu.memory_space<vmem>>, vector<16x16x32xbf16>,
    %c0_86 = arith.constant 0 : index
    %c2_87 = arith.constant 2 : index
    %c0_88 = arith.constant 0 : index
    %53 = vector.load %arg10[%c0_86, %c2_87, %c0_88] : memref<18x18x32xf32, #tpu.memory_space<vmem>>, vector<16x16x32xf32>
    %54 = arith.truncf %53 : vector<16x16x32xf32> to vector<16x16x32xbf16>
    %c0_89 = arith.constant 0 : index
    %c0_90 = arith.constant 0 : index
    %c64_91 = arith.constant 64 : index
    %55 = vector.load %arg11[%c0_89, %c0_90, %c64_91] : memref<16x16x288xbf16, #tpu.memory_space<vmem>>, vector<16x16x32xbf16>
    tpu.vector_store %arg11[%c0_89, %c0_90, %c64_91], %54 {strides = array<i32>} : memref<16x16x288xbf16, #tpu.memory_space<vmem>>, vector<16x16x32xbf16>,
    %c1_92 = arith.constant 1 : index
    %c0_93 = arith.constant 0 : index
    %c0_94 = arith.constant 0 : index
    %56 = vector.load %arg10[%c1_92, %c0_93, %c0_94] : memref<18x18x32xf32, #tpu.memory_space<vmem>>, vector<16x16x32xf32>
    %57 = arith.truncf %56 : vector<16x16x32xf32> to vector<16x16x32xbf16>
    %c0_95 = arith.constant 0 : index
    %c0_96 = arith.constant 0 : index
    %c96_97 = arith.constant 96 : index
    %58 = vector.load %arg11[%c0_95, %c0_96, %c96_97] : memref<16x16x288xbf16, #tpu.memory_space<vmem>>, vector<16x16x32xbf16>
    tpu.vector_store %arg11[%c0_95, %c0_96, %c96_97], %57 {strides = array<i32>} : memref<16x16x288xbf16, #tpu.memory_space<vmem>>, vector<16x16x32xbf16>,
    %c1_98 = arith.constant 1 : index
    %c1_99 = arith.constant 1 : index
    %c0_100 = arith.constant 0 : index
    %59 = vector.load %arg10[%c1_98, %c1_99, %c0_100] : memref<18x18x32xf32, #tpu.memory_space<vmem>>, vector<16x16x32xf32>
    %60 = arith.truncf %59 : vector<16x16x32xf32> to vector<16x16x32xbf16>
    %c0_101 = arith.constant 0 : index
    %c0_102 = arith.constant 0 : index
    %c128_103 = arith.constant 128 : index
    %61 = vector.load %arg11[%c0_101, %c0_102, %c128_103] : memref<16x16x288xbf16, #tpu.memory_space<vmem>>, vector<16x16x32xbf16>
    tpu.vector_store %arg11[%c0_101, %c0_102, %c128_103], %60 {strides = array<i32>} : memref<16x16x288xbf16, #tpu.memory_space<vmem>>, vector<16x16x32xbf16>,
    %c1_104 = arith.constant 1 : index
    %c2_105 = arith.constant 2 : index
    %c0_106 = arith.constant 0 : index
    %62 = vector.load %arg10[%c1_104, %c2_105, %c0_106] : memref<18x18x32xf32, #tpu.memory_space<vmem>>, vector<16x16x32xf32>
    %63 = arith.truncf %62 : vector<16x16x32xf32> to vector<16x16x32xbf16>
    %c0_107 = arith.constant 0 : index
    %c0_108 = arith.constant 0 : index
    %c160_109 = arith.constant 160 : index
    %64 = vector.load %arg11[%c0_107, %c0_108, %c160_109] : memref<16x16x288xbf16, #tpu.memory_space<vmem>>, vector<16x16x32xbf16>
    tpu.vector_store %arg11[%c0_107, %c0_108, %c160_109], %63 {strides = array<i32>} : memref<16x16x288xbf16, #tpu.memory_space<vmem>>, vector<16x16x32xbf16>,
    %c2_110 = arith.constant 2 : index
    %c0_111 = arith.constant 0 : index
    %c0_112 = arith.constant 0 : index
    %65 = vector.load %arg10[%c2_110, %c0_111, %c0_112] : memref<18x18x32xf32, #tpu.memory_space<vmem>>, vector<16x16x32xf32>
    %66 = arith.truncf %65 : vector<16x16x32xf32> to vector<16x16x32xbf16>
    %c0_113 = arith.constant 0 : index
    %c0_114 = arith.constant 0 : index
    %c192_115 = arith.constant 192 : index
    %67 = vector.load %arg11[%c0_113, %c0_114, %c192_115] : memref<16x16x288xbf16, #tpu.memory_space<vmem>>, vector<16x16x32xbf16>
    tpu.vector_store %arg11[%c0_113, %c0_114, %c192_115], %66 {strides = array<i32>} : memref<16x16x288xbf16, #tpu.memory_space<vmem>>, vector<16x16x32xbf16>,
    %c2_116 = arith.constant 2 : index
    %c1_117 = arith.constant 1 : index
    %c0_118 = arith.constant 0 : index
    %68 = vector.load %arg10[%c2_116, %c1_117, %c0_118] : memref<18x18x32xf32, #tpu.memory_space<vmem>>, vector<16x16x32xf32>
    %69 = arith.truncf %68 : vector<16x16x32xf32> to vector<16x16x32xbf16>
    %c0_119 = arith.constant 0 : index
    %c0_120 = arith.constant 0 : index
    %c224_121 = arith.constant 224 : index
    %70 = vector.load %arg11[%c0_119, %c0_120, %c224_121] : memref<16x16x288xbf16, #tpu.memory_space<vmem>>, vector<16x16x32xbf16>
    tpu.vector_store %arg11[%c0_119, %c0_120, %c224_121], %69 {strides = array<i32>} : memref<16x16x288xbf16, #tpu.memory_space<vmem>>, vector<16x16x32xbf16>,
    %c2_122 = arith.constant 2 : index
    %c2_123 = arith.constant 2 : index
    %c0_124 = arith.constant 0 : index
    %71 = vector.load %arg10[%c2_122, %c2_123, %c0_124] : memref<18x18x32xf32, #tpu.memory_space<vmem>>, vector<16x16x32xf32>
    %72 = arith.truncf %71 : vector<16x16x32xf32> to vector<16x16x32xbf16>
    %c0_125 = arith.constant 0 : index
    %c0_126 = arith.constant 0 : index
    %c256_127 = arith.constant 256 : index
    %73 = vector.load %arg11[%c0_125, %c0_126, %c256_127] : memref<16x16x288xbf16, #tpu.memory_space<vmem>>, vector<16x16x32xbf16>
    tpu.vector_store %arg11[%c0_125, %c0_126, %c256_127], %72 {strides = array<i32>} : memref<16x16x288xbf16, #tpu.memory_space<vmem>>, vector<16x16x32xbf16>,
    %c0_128 = arith.constant 0 : index
    %c0_129 = arith.constant 0 : index
    %c0_130 = arith.constant 0 : index
    %74 = vector.load %arg11[%c0_128, %c0_129, %c0_130] : memref<16x16x288xbf16, #tpu.memory_space<vmem>>, vector<16x16x288xbf16>
    %75 = vector.shape_cast %74 : vector<16x16x288xbf16> to vector<256x288xbf16>
    %c0_131 = arith.constant 0 : index
    %c0_132 = arith.constant 0 : index
    %76 = vector.load %arg4[%c0_131, %c0_132] : memref<288x32xbf16, #tpu.memory_space<vmem>>, vector<288x32xbf16>
    %cst_133 = arith.constant dense<0.000000e+00> : vector<256x32xf32>
    %77 = tpu.matmul %75, %76, %cst_133 {dimension_numbers = #tpu.dot_dimension_numbers<[1], [0], [0], [1], [0, 0, 1, 1], [], []>} : vector<256x288xbf16>, vector<288x32xbf16>, vector<256x32xf32> -> vector<256x32xf32>
    %c0_134 = arith.constant 0 : index
    %c0_135 = arith.constant 0 : index
    %78 = vector.load %arg5[%c0_134, %c0_135] : memref<1x32xf32, #tpu.memory_space<vmem>>, vector<1x32xf32>
    %79 = vector.broadcast %78 : vector<1x32xf32> to vector<256x32xf32>
    %80 = arith.addf %77, %79 : vector<256x32xf32>
    %cst_136 = arith.constant dense<0.000000e+00> : vector<32xf32>
    %81 = vector.multi_reduction <add>, %80, %cst_136 [0] : vector<256x32xf32> to vector<32xf32>
    %82 = vector.shape_cast %81 : vector<32xf32> to vector<1x32xf32>
    %cst_137 = arith.constant 2.560000e+02 : f32
    %83 = vector.broadcast %cst_137 : f32 to vector<1x32xf32>
    %84 = arith.divf %82, %83 : vector<1x32xf32>
    %cst_138 = arith.constant dense<0xFF800000> : vector<32xf32>
    %85 = vector.multi_reduction <maximumf>, %80, %cst_138 [0] : vector<256x32xf32> to vector<32xf32>
    %86 = vector.shape_cast %85 : vector<32xf32> to vector<1x32xf32>
    %87 = tpu.concatenate %84, %86 in 0 : vector<1x32xf32>, vector<1x32xf32> -> vector<2x32xf32>
    %c0_139 = arith.constant 0 : index
    %c0_140 = arith.constant 0 : index
    %88 = vector.load %arg6[%c0_139, %c0_140] : memref<32x2xf32, #tpu.memory_space<vmem>>, vector<32x2xf32>
    %cst_141 = arith.constant dense<0.000000e+00> : vector<2x2xf32>
    %89 = tpu.matmul %87, %88, %cst_141 {dimension_numbers = #tpu.dot_dimension_numbers<[1], [0], [0], [1], [0, 0, 1, 1], [], []>} : vector<2x32xf32>, vector<32x2xf32>, vector<2x2xf32> -> vector<2x2xf32>
    %cst_142 = arith.constant 0.000000e+00 : f32
    %90 = vector.broadcast %cst_142 : f32 to vector<2x2xf32>
    %91 = arith.maximumf %89, %90 : vector<2x2xf32>
    %c0_143 = arith.constant 0 : index
    %c0_144 = arith.constant 0 : index
    %92 = vector.load %arg7[%c0_143, %c0_144] : memref<2x32xf32, #tpu.memory_space<vmem>>, vector<2x32xf32>
    %cst_145 = arith.constant dense<0.000000e+00> : vector<2x32xf32>
    %93 = tpu.matmul %91, %92, %cst_145 {dimension_numbers = #tpu.dot_dimension_numbers<[1], [0], [0], [1], [0, 0, 1, 1], [], []>} : vector<2x2xf32>, vector<2x32xf32>, vector<2x32xf32> -> vector<2x32xf32>
    %94 = vector.extract_strided_slice %93 {offsets = [0, 0], sizes = [1, 32], strides = [1, 1]} : vector<2x32xf32> to vector<1x32xf32>
    %95 = vector.extract_strided_slice %93 {offsets = [1, 0], sizes = [1, 32], strides = [1, 1]} : vector<2x32xf32> to vector<1x32xf32>
    %96 = arith.addf %94, %95 : vector<1x32xf32>
    %97 = arith.negf %96 : vector<1x32xf32>
    %98 = math.exp %97 : vector<1x32xf32>
    %cst_146 = arith.constant 1.000000e+00 : f32
    %99 = vector.broadcast %cst_146 : f32 to vector<1x32xf32>
    %100 = arith.addf %99, %98 : vector<1x32xf32>
    %101 = arith.divf %99, %100 : vector<1x32xf32>
    %102 = vector.broadcast %101 : vector<1x32xf32> to vector<256x32xf32>
    %103 = arith.mulf %80, %102 : vector<256x32xf32>
    %104 = vector.shape_cast %103 : vector<256x32xf32> to vector<16x16x32xf32>
    %cst_147 = arith.constant 0.000000e+00 : f32
    %105 = vector.broadcast %cst_147 : f32 to vector<2x22x128xf32>
    %c0_148 = arith.constant 0 : index
    %c0_149 = arith.constant 0 : index
    %c0_150 = arith.constant 0 : index
    %106 = vector.load %arg12[%c0_148, %c0_149, %c0_150] : memref<2x22x128xf32, #tpu.memory_space<vmem>>, vector<2x22x128xf32>
    tpu.vector_store %arg12[%c0_148, %c0_149, %c0_150], %105 {strides = array<i32>} : memref<2x22x128xf32, #tpu.memory_space<vmem>>, vector<2x22x128xf32>,
    %cst_151 = arith.constant dense<0.000000e+00> : vector<16x16xf32>
    %107 = vector.multi_reduction <add>, %104, %cst_151 [2] : vector<16x16x32xf32> to vector<16x16xf32>
    %cst_152 = arith.constant 3.200000e+01 : f32
    %108 = vector.broadcast %cst_152 : f32 to vector<16x16xf32>
    %109 = arith.divf %107, %108 : vector<16x16xf32>
    %c0_153 = arith.constant 0 : index
    %c3 = arith.constant 3 : index
    %c3_154 = arith.constant 3 : index
    %110 = vector.load %arg12[%c0_153, %c3, %c3_154] : memref<2x22x128xf32, #tpu.memory_space<vmem>>, vector<1x16x16xf32>
    %111 = vector.shape_cast %110 : vector<1x16x16xf32> to vector<16x16xf32>
    %112 = vector.shape_cast %109 : vector<16x16xf32> to vector<1x16x16xf32>
    tpu.vector_store %arg12[%c0_153, %c3, %c3_154], %112 {strides = array<i32>} : memref<2x22x128xf32, #tpu.memory_space<vmem>>, vector<1x16x16xf32>,
    %cst_155 = arith.constant dense<0xFF800000> : vector<16x16xf32>
    %113 = vector.multi_reduction <maximumf>, %104, %cst_155 [2] : vector<16x16x32xf32> to vector<16x16xf32>
    %c1_156 = arith.constant 1 : index
    %c3_157 = arith.constant 3 : index
    %c3_158 = arith.constant 3 : index
    %114 = vector.load %arg12[%c1_156, %c3_157, %c3_158] : memref<2x22x128xf32, #tpu.memory_space<vmem>>, vector<1x16x16xf32>
    %115 = vector.shape_cast %114 : vector<1x16x16xf32> to vector<16x16xf32>
    %116 = vector.shape_cast %113 : vector<16x16xf32> to vector<1x16x16xf32>
    tpu.vector_store %arg12[%c1_156, %c3_157, %c3_158], %116 {strides = array<i32>} : memref<2x22x128xf32, #tpu.memory_space<vmem>>, vector<1x16x16xf32>,
    %cst_159 = arith.constant 0.000000e+00 : f32
    %117 = vector.broadcast %cst_159 : f32 to vector<16x128xf32>
    %c0_160 = arith.constant 0 : index
    %c0_161 = arith.constant 0 : index
    %c0_162 = arith.constant 0 : index
    %118 = vector.load %arg12[%c0_160, %c0_161, %c0_162] : memref<2x22x128xf32, #tpu.memory_space<vmem>>, vector<1x16x128xf32>
    %119 = vector.shape_cast %118 : vector<1x16x128xf32> to vector<16x128xf32>
    %c0_163 = arith.constant 0 : index
    %120 = memref.load %arg8[%c0_163] : memref<98xf32, #tpu.memory_space<smem>>
    %121 = vector.broadcast %120 : f32 to vector<16x128xf32>
    %122 = arith.mulf %119, %121 : vector<16x128xf32>
    %123 = arith.addf %117, %122 : vector<16x128xf32>
    %c2_164 = arith.constant 2 : index
    %124 = memref.load %arg8[%c2_164] : memref<98xf32, #tpu.memory_space<smem>>
    %c127_i32 = arith.constant 127 : i32
    %125 = tpu.dynamic_rotate %119 by %c127_i32 dim 1 : vector<16x128xf32>, i32 -> vector<16x128xf32>
    %126 = vector.broadcast %124 : f32 to vector<16x128xf32>
    %127 = arith.mulf %125, %126 : vector<16x128xf32>
    %128 = arith.addf %123, %127 : vector<16x128xf32>
    %c4 = arith.constant 4 : index
    %129 = memref.load %arg8[%c4] : memref<98xf32, #tpu.memory_space<smem>>
    %c126_i32 = arith.constant 126 : i32
    %130 = tpu.dynamic_rotate %119 by %c126_i32 dim 1 : vector<16x128xf32>, i32 -> vector<16x128xf32>
    %131 = vector.broadcast %129 : f32 to vector<16x128xf32>
    %132 = arith.mulf %130, %131 : vector<16x128xf32>
    %133 = arith.addf %128, %132 : vector<16x128xf32>
    %c6 = arith.constant 6 : index
    %134 = memref.load %arg8[%c6] : memref<98xf32, #tpu.memory_space<smem>>
    %c125_i32 = arith.constant 125 : i32
    %135 = tpu.dynamic_rotate %119 by %c125_i32 dim 1 : vector<16x128xf32>, i32 -> vector<16x128xf32>
    %136 = vector.broadcast %134 : f32 to vector<16x128xf32>
    %137 = arith.mulf %135, %136 : vector<16x128xf32>
    %138 = arith.addf %133, %137 : vector<16x128xf32>
    %c8 = arith.constant 8 : index
    %139 = memref.load %arg8[%c8] : memref<98xf32, #tpu.memory_space<smem>>
    %c124_i32 = arith.constant 124 : i32
    %140 = tpu.dynamic_rotate %119 by %c124_i32 dim 1 : vector<16x128xf32>, i32 -> vector<16x128xf32>
    %141 = vector.broadcast %139 : f32 to vector<16x128xf32>
    %142 = arith.mulf %140, %141 : vector<16x128xf32>
    %143 = arith.addf %138, %142 : vector<16x128xf32>
    %c10 = arith.constant 10 : index
    %144 = memref.load %arg8[%c10] : memref<98xf32, #tpu.memory_space<smem>>
    %c123_i32 = arith.constant 123 : i32
    %145 = tpu.dynamic_rotate %119 by %c123_i32 dim 1 : vector<16x128xf32>, i32 -> vector<16x128xf32>
    %146 = vector.broadcast %144 : f32 to vector<16x128xf32>
    %147 = arith.mulf %145, %146 : vector<16x128xf32>
    %148 = arith.addf %143, %147 : vector<16x128xf32>
    %c12 = arith.constant 12 : index
    %149 = memref.load %arg8[%c12] : memref<98xf32, #tpu.memory_space<smem>>
    %c122_i32 = arith.constant 122 : i32
    %150 = tpu.dynamic_rotate %119 by %c122_i32 dim 1 : vector<16x128xf32>, i32 -> vector<16x128xf32>
    %151 = vector.broadcast %149 : f32 to vector<16x128xf32>
    %152 = arith.mulf %150, %151 : vector<16x128xf32>
    %153 = arith.addf %148, %152 : vector<16x128xf32>
    %c0_165 = arith.constant 0 : index
    %c1_166 = arith.constant 1 : index
    %c0_167 = arith.constant 0 : index
    %154 = vector.load %arg12[%c0_165, %c1_166, %c0_167] : memref<2x22x128xf32, #tpu.memory_space<vmem>>, vector<1x16x128xf32>
    %155 = vector.shape_cast %154 : vector<1x16x128xf32> to vector<16x128xf32>
    %c14 = arith.constant 14 : index
    %156 = memref.load %arg8[%c14] : memref<98xf32, #tpu.memory_space<smem>>
    %157 = vector.broadcast %156 : f32 to vector<16x128xf32>
    %158 = arith.mulf %155, %157 : vector<16x128xf32>
    %159 = arith.addf %153, %158 : vector<16x128xf32>
    %c16 = arith.constant 16 : index
    %160 = memref.load %arg8[%c16] : memref<98xf32, #tpu.memory_space<smem>>
    %c127_i32_168 = arith.constant 127 : i32
    %161 = tpu.dynamic_rotate %155 by %c127_i32_168 dim 1 : vector<16x128xf32>, i32 -> vector<16x128xf32>
    %162 = vector.broadcast %160 : f32 to vector<16x128xf32>
    %163 = arith.mulf %161, %162 : vector<16x128xf32>
    %164 = arith.addf %159, %163 : vector<16x128xf32>
    %c18 = arith.constant 18 : index
    %165 = memref.load %arg8[%c18] : memref<98xf32, #tpu.memory_space<smem>>
    %c126_i32_169 = arith.constant 126 : i32
    %166 = tpu.dynamic_rotate %155 by %c126_i32_169 dim 1 : vector<16x128xf32>, i32 -> vector<16x128xf32>
    %167 = vector.broadcast %165 : f32 to vector<16x128xf32>
    %168 = arith.mulf %166, %167 : vector<16x128xf32>
    %169 = arith.addf %164, %168 : vector<16x128xf32>
    %c20 = arith.constant 20 : index
    %170 = memref.load %arg8[%c20] : memref<98xf32, #tpu.memory_space<smem>>
    %c125_i32_170 = arith.constant 125 : i32
    %171 = tpu.dynamic_rotate %155 by %c125_i32_170 dim 1 : vector<16x128xf32>, i32 -> vector<16x128xf32>
    %172 = vector.broadcast %170 : f32 to vector<16x128xf32>
    %173 = arith.mulf %171, %172 : vector<16x128xf32>
    %174 = arith.addf %169, %173 : vector<16x128xf32>
    %c22 = arith.constant 22 : index
    %175 = memref.load %arg8[%c22] : memref<98xf32, #tpu.memory_space<smem>>
    %c124_i32_171 = arith.constant 124 : i32
    %176 = tpu.dynamic_rotate %155 by %c124_i32_171 dim 1 : vector<16x128xf32>, i32 -> vector<16x128xf32>
    %177 = vector.broadcast %175 : f32 to vector<16x128xf32>
    %178 = arith.mulf %176, %177 : vector<16x128xf32>
    %179 = arith.addf %174, %178 : vector<16x128xf32>
    %c24 = arith.constant 24 : index
    %180 = memref.load %arg8[%c24] : memref<98xf32, #tpu.memory_space<smem>>
    %c123_i32_172 = arith.constant 123 : i32
    %181 = tpu.dynamic_rotate %155 by %c123_i32_172 dim 1 : vector<16x128xf32>, i32 -> vector<16x128xf32>
    %182 = vector.broadcast %180 : f32 to vector<16x128xf32>
    %183 = arith.mulf %181, %182 : vector<16x128xf32>
    %184 = arith.addf %179, %183 : vector<16x128xf32>
    %c26 = arith.constant 26 : index
    %185 = memref.load %arg8[%c26] : memref<98xf32, #tpu.memory_space<smem>>
    %c122_i32_173 = arith.constant 122 : i32
    %186 = tpu.dynamic_rotate %155 by %c122_i32_173 dim 1 : vector<16x128xf32>, i32 -> vector<16x128xf32>
    %187 = vector.broadcast %185 : f32 to vector<16x128xf32>
    %188 = arith.mulf %186, %187 : vector<16x128xf32>
    %189 = arith.addf %184, %188 : vector<16x128xf32>
    %c0_174 = arith.constant 0 : index
    %c2_175 = arith.constant 2 : index
    %c0_176 = arith.constant 0 : index
    %190 = vector.load %arg12[%c0_174, %c2_175, %c0_176] : memref<2x22x128xf32, #tpu.memory_space<vmem>>, vector<1x16x128xf32>
    %191 = vector.shape_cast %190 : vector<1x16x128xf32> to vector<16x128xf32>
    %c28 = arith.constant 28 : index
    %192 = memref.load %arg8[%c28] : memref<98xf32, #tpu.memory_space<smem>>
    %193 = vector.broadcast %192 : f32 to vector<16x128xf32>
    %194 = arith.mulf %191, %193 : vector<16x128xf32>
    %195 = arith.addf %189, %194 : vector<16x128xf32>
    %c30 = arith.constant 30 : index
    %196 = memref.load %arg8[%c30] : memref<98xf32, #tpu.memory_space<smem>>
    %c127_i32_177 = arith.constant 127 : i32
    %197 = tpu.dynamic_rotate %191 by %c127_i32_177 dim 1 : vector<16x128xf32>, i32 -> vector<16x128xf32>
    %198 = vector.broadcast %196 : f32 to vector<16x128xf32>
    %199 = arith.mulf %197, %198 : vector<16x128xf32>
    %200 = arith.addf %195, %199 : vector<16x128xf32>
    %c32_178 = arith.constant 32 : index
    %201 = memref.load %arg8[%c32_178] : memref<98xf32, #tpu.memory_space<smem>>
    %c126_i32_179 = arith.constant 126 : i32
    %202 = tpu.dynamic_rotate %191 by %c126_i32_179 dim 1 : vector<16x128xf32>, i32 -> vector<16x128xf32>
    %203 = vector.broadcast %201 : f32 to vector<16x128xf32>
    %204 = arith.mulf %202, %203 : vector<16x128xf32>
    %205 = arith.addf %200, %204 : vector<16x128xf32>
    %c34 = arith.constant 34 : index
    %206 = memref.load %arg8[%c34] : memref<98xf32, #tpu.memory_space<smem>>
    %c125_i32_180 = arith.constant 125 : i32
    %207 = tpu.dynamic_rotate %191 by %c125_i32_180 dim 1 : vector<16x128xf32>, i32 -> vector<16x128xf32>
    %208 = vector.broadcast %206 : f32 to vector<16x128xf32>
    %209 = arith.mulf %207, %208 : vector<16x128xf32>
    %210 = arith.addf %205, %209 : vector<16x128xf32>
    %c36 = arith.constant 36 : index
    %211 = memref.load %arg8[%c36] : memref<98xf32, #tpu.memory_space<smem>>
    %c124_i32_181 = arith.constant 124 : i32
    %212 = tpu.dynamic_rotate %191 by %c124_i32_181 dim 1 : vector<16x128xf32>, i32 -> vector<16x128xf32>
    %213 = vector.broadcast %211 : f32 to vector<16x128xf32>
    %214 = arith.mulf %212, %213 : vector<16x128xf32>
    %215 = arith.addf %210, %214 : vector<16x128xf32>
    %c38 = arith.constant 38 : index
    %216 = memref.load %arg8[%c38] : memref<98xf32, #tpu.memory_space<smem>>
    %c123_i32_182 = arith.constant 123 : i32
    %217 = tpu.dynamic_rotate %191 by %c123_i32_182 dim 1 : vector<16x128xf32>, i32 -> vector<16x128xf32>
    %218 = vector.broadcast %216 : f32 to vector<16x128xf32>
    %219 = arith.mulf %217, %218 : vector<16x128xf32>
    %220 = arith.addf %215, %219 : vector<16x128xf32>
    %c40 = arith.constant 40 : index
    %221 = memref.load %arg8[%c40] : memref<98xf32, #tpu.memory_space<smem>>
    %c122_i32_183 = arith.constant 122 : i32
    %222 = tpu.dynamic_rotate %191 by %c122_i32_183 dim 1 : vector<16x128xf32>, i32 -> vector<16x128xf32>
    %223 = vector.broadcast %221 : f32 to vector<16x128xf32>
    %224 = arith.mulf %222, %223 : vector<16x128xf32>
    %225 = arith.addf %220, %224 : vector<16x128xf32>
    %c0_184 = arith.constant 0 : index
    %c3_185 = arith.constant 3 : index
    %c0_186 = arith.constant 0 : index
    %226 = vector.load %arg12[%c0_184, %c3_185, %c0_186] : memref<2x22x128xf32, #tpu.memory_space<vmem>>, vector<1x16x128xf32>
    %227 = vector.shape_cast %226 : vector<1x16x128xf32> to vector<16x128xf32>
    %c42 = arith.constant 42 : index
    %228 = memref.load %arg8[%c42] : memref<98xf32, #tpu.memory_space<smem>>
    %229 = vector.broadcast %228 : f32 to vector<16x128xf32>
    %230 = arith.mulf %227, %229 : vector<16x128xf32>
    %231 = arith.addf %225, %230 : vector<16x128xf32>
    %c44 = arith.constant 44 : index
    %232 = memref.load %arg8[%c44] : memref<98xf32, #tpu.memory_space<smem>>
    %c127_i32_187 = arith.constant 127 : i32
    %233 = tpu.dynamic_rotate %227 by %c127_i32_187 dim 1 : vector<16x128xf32>, i32 -> vector<16x128xf32>
    %234 = vector.broadcast %232 : f32 to vector<16x128xf32>
    %235 = arith.mulf %233, %234 : vector<16x128xf32>
    %236 = arith.addf %231, %235 : vector<16x128xf32>
    %c46 = arith.constant 46 : index
    %237 = memref.load %arg8[%c46] : memref<98xf32, #tpu.memory_space<smem>>
    %c126_i32_188 = arith.constant 126 : i32
    %238 = tpu.dynamic_rotate %227 by %c126_i32_188 dim 1 : vector<16x128xf32>, i32 -> vector<16x128xf32>
    %239 = vector.broadcast %237 : f32 to vector<16x128xf32>
    %240 = arith.mulf %238, %239 : vector<16x128xf32>
    %241 = arith.addf %236, %240 : vector<16x128xf32>
    %c48 = arith.constant 48 : index
    %242 = memref.load %arg8[%c48] : memref<98xf32, #tpu.memory_space<smem>>
    %c125_i32_189 = arith.constant 125 : i32
    %243 = tpu.dynamic_rotate %227 by %c125_i32_189 dim 1 : vector<16x128xf32>, i32 -> vector<16x128xf32>
    %244 = vector.broadcast %242 : f32 to vector<16x128xf32>
    %245 = arith.mulf %243, %244 : vector<16x128xf32>
    %246 = arith.addf %241, %245 : vector<16x128xf32>
    %c50 = arith.constant 50 : index
    %247 = memref.load %arg8[%c50] : memref<98xf32, #tpu.memory_space<smem>>
    %c124_i32_190 = arith.constant 124 : i32
    %248 = tpu.dynamic_rotate %227 by %c124_i32_190 dim 1 : vector<16x128xf32>, i32 -> vector<16x128xf32>
    %249 = vector.broadcast %247 : f32 to vector<16x128xf32>
    %250 = arith.mulf %248, %249 : vector<16x128xf32>
    %251 = arith.addf %246, %250 : vector<16x128xf32>
    %c52 = arith.constant 52 : index
    %252 = memref.load %arg8[%c52] : memref<98xf32, #tpu.memory_space<smem>>
    %c123_i32_191 = arith.constant 123 : i32
    %253 = tpu.dynamic_rotate %227 by %c123_i32_191 dim 1 : vector<16x128xf32>, i32 -> vector<16x128xf32>
    %254 = vector.broadcast %252 : f32 to vector<16x128xf32>
    %255 = arith.mulf %253, %254 : vector<16x128xf32>
    %256 = arith.addf %251, %255 : vector<16x128xf32>
    %c54 = arith.constant 54 : index
    %257 = memref.load %arg8[%c54] : memref<98xf32, #tpu.memory_space<smem>>
    %c122_i32_192 = arith.constant 122 : i32
    %258 = tpu.dynamic_rotate %227 by %c122_i32_192 dim 1 : vector<16x128xf32>, i32 -> vector<16x128xf32>
    %259 = vector.broadcast %257 : f32 to vector<16x128xf32>
    %260 = arith.mulf %258, %259 : vector<16x128xf32>
    %261 = arith.addf %256, %260 : vector<16x128xf32>
    %c0_193 = arith.constant 0 : index
    %c4_194 = arith.constant 4 : index
    %c0_195 = arith.constant 0 : index
    %262 = vector.load %arg12[%c0_193, %c4_194, %c0_195] : memref<2x22x128xf32, #tpu.memory_space<vmem>>, vector<1x16x128xf32>
    %263 = vector.shape_cast %262 : vector<1x16x128xf32> to vector<16x128xf32>
    %c56 = arith.constant 56 : index
    %264 = memref.load %arg8[%c56] : memref<98xf32, #tpu.memory_space<smem>>
    %265 = vector.broadcast %264 : f32 to vector<16x128xf32>
    %266 = arith.mulf %263, %265 : vector<16x128xf32>
    %267 = arith.addf %261, %266 : vector<16x128xf32>
    %c58 = arith.constant 58 : index
    %268 = memref.load %arg8[%c58] : memref<98xf32, #tpu.memory_space<smem>>
    %c127_i32_196 = arith.constant 127 : i32
    %269 = tpu.dynamic_rotate %263 by %c127_i32_196 dim 1 : vector<16x128xf32>, i32 -> vector<16x128xf32>
    %270 = vector.broadcast %268 : f32 to vector<16x128xf32>
    %271 = arith.mulf %269, %270 : vector<16x128xf32>
    %272 = arith.addf %267, %271 : vector<16x128xf32>
    %c60 = arith.constant 60 : index
    %273 = memref.load %arg8[%c60] : memref<98xf32, #tpu.memory_space<smem>>
    %c126_i32_197 = arith.constant 126 : i32
    %274 = tpu.dynamic_rotate %263 by %c126_i32_197 dim 1 : vector<16x128xf32>, i32 -> vector<16x128xf32>
    %275 = vector.broadcast %273 : f32 to vector<16x128xf32>
    %276 = arith.mulf %274, %275 : vector<16x128xf32>
    %277 = arith.addf %272, %276 : vector<16x128xf32>
    %c62 = arith.constant 62 : index
    %278 = memref.load %arg8[%c62] : memref<98xf32, #tpu.memory_space<smem>>
    %c125_i32_198 = arith.constant 125 : i32
    %279 = tpu.dynamic_rotate %263 by %c125_i32_198 dim 1 : vector<16x128xf32>, i32 -> vector<16x128xf32>
    %280 = vector.broadcast %278 : f32 to vector<16x128xf32>
    %281 = arith.mulf %279, %280 : vector<16x128xf32>
    %282 = arith.addf %277, %281 : vector<16x128xf32>
    %c64_199 = arith.constant 64 : index
    %283 = memref.load %arg8[%c64_199] : memref<98xf32, #tpu.memory_space<smem>>
    %c124_i32_200 = arith.constant 124 : i32
    %284 = tpu.dynamic_rotate %263 by %c124_i32_200 dim 1 : vector<16x128xf32>, i32 -> vector<16x128xf32>
    %285 = vector.broadcast %283 : f32 to vector<16x128xf32>
    %286 = arith.mulf %284, %285 : vector<16x128xf32>
    %287 = arith.addf %282, %286 : vector<16x128xf32>
    %c66 = arith.constant 66 : index
    %288 = memref.load %arg8[%c66] : memref<98xf32, #tpu.memory_space<smem>>
    %c123_i32_201 = arith.constant 123 : i32
    %289 = tpu.dynamic_rotate %263 by %c123_i32_201 dim 1 : vector<16x128xf32>, i32 -> vector<16x128xf32>
    %290 = vector.broadcast %288 : f32 to vector<16x128xf32>
    %291 = arith.mulf %289, %290 : vector<16x128xf32>
    %292 = arith.addf %287, %291 : vector<16x128xf32>
    %c68 = arith.constant 68 : index
    %293 = memref.load %arg8[%c68] : memref<98xf32, #tpu.memory_space<smem>>
    %c122_i32_202 = arith.constant 122 : i32
    %294 = tpu.dynamic_rotate %263 by %c122_i32_202 dim 1 : vector<16x128xf32>, i32 -> vector<16x128xf32>
    %295 = vector.broadcast %293 : f32 to vector<16x128xf32>
    %296 = arith.mulf %294, %295 : vector<16x128xf32>
    %297 = arith.addf %292, %296 : vector<16x128xf32>
    %c0_203 = arith.constant 0 : index
    %c5 = arith.constant 5 : index
    %c0_204 = arith.constant 0 : index
    %298 = vector.load %arg12[%c0_203, %c5, %c0_204] : memref<2x22x128xf32, #tpu.memory_space<vmem>>, vector<1x16x128xf32>
    %299 = vector.shape_cast %298 : vector<1x16x128xf32> to vector<16x128xf32>
    %c70 = arith.constant 70 : index
    %300 = memref.load %arg8[%c70] : memref<98xf32, #tpu.memory_space<smem>>
    %301 = vector.broadcast %300 : f32 to vector<16x128xf32>
    %302 = arith.mulf %299, %301 : vector<16x128xf32>
    %303 = arith.addf %297, %302 : vector<16x128xf32>
    %c72 = arith.constant 72 : index
    %304 = memref.load %arg8[%c72] : memref<98xf32, #tpu.memory_space<smem>>
    %c127_i32_205 = arith.constant 127 : i32
    %305 = tpu.dynamic_rotate %299 by %c127_i32_205 dim 1 : vector<16x128xf32>, i32 -> vector<16x128xf32>
    %306 = vector.broadcast %304 : f32 to vector<16x128xf32>
    %307 = arith.mulf %305, %306 : vector<16x128xf32>
    %308 = arith.addf %303, %307 : vector<16x128xf32>
    %c74 = arith.constant 74 : index
    %309 = memref.load %arg8[%c74] : memref<98xf32, #tpu.memory_space<smem>>
    %c126_i32_206 = arith.constant 126 : i32
    %310 = tpu.dynamic_rotate %299 by %c126_i32_206 dim 1 : vector<16x128xf32>, i32 -> vector<16x128xf32>
    %311 = vector.broadcast %309 : f32 to vector<16x128xf32>
    %312 = arith.mulf %310, %311 : vector<16x128xf32>
    %313 = arith.addf %308, %312 : vector<16x128xf32>
    %c76 = arith.constant 76 : index
    %314 = memref.load %arg8[%c76] : memref<98xf32, #tpu.memory_space<smem>>
    %c125_i32_207 = arith.constant 125 : i32
    %315 = tpu.dynamic_rotate %299 by %c125_i32_207 dim 1 : vector<16x128xf32>, i32 -> vector<16x128xf32>
    %316 = vector.broadcast %314 : f32 to vector<16x128xf32>
    %317 = arith.mulf %315, %316 : vector<16x128xf32>
    %318 = arith.addf %313, %317 : vector<16x128xf32>
    %c78 = arith.constant 78 : index
    %319 = memref.load %arg8[%c78] : memref<98xf32, #tpu.memory_space<smem>>
    %c124_i32_208 = arith.constant 124 : i32
    %320 = tpu.dynamic_rotate %299 by %c124_i32_208 dim 1 : vector<16x128xf32>, i32 -> vector<16x128xf32>
    %321 = vector.broadcast %319 : f32 to vector<16x128xf32>
    %322 = arith.mulf %320, %321 : vector<16x128xf32>
    %323 = arith.addf %318, %322 : vector<16x128xf32>
    %c80 = arith.constant 80 : index
    %324 = memref.load %arg8[%c80] : memref<98xf32, #tpu.memory_space<smem>>
    %c123_i32_209 = arith.constant 123 : i32
    %325 = tpu.dynamic_rotate %299 by %c123_i32_209 dim 1 : vector<16x128xf32>, i32 -> vector<16x128xf32>
    %326 = vector.broadcast %324 : f32 to vector<16x128xf32>
    %327 = arith.mulf %325, %326 : vector<16x128xf32>
    %328 = arith.addf %323, %327 : vector<16x128xf32>
    %c82 = arith.constant 82 : index
    %329 = memref.load %arg8[%c82] : memref<98xf32, #tpu.memory_space<smem>>
    %c122_i32_210 = arith.constant 122 : i32
    %330 = tpu.dynamic_rotate %299 by %c122_i32_210 dim 1 : vector<16x128xf32>, i32 -> vector<16x128xf32>
    %331 = vector.broadcast %329 : f32 to vector<16x128xf32>
    %332 = arith.mulf %330, %331 : vector<16x128xf32>
    %333 = arith.addf %328, %332 : vector<16x128xf32>
    %c0_211 = arith.constant 0 : index
    %c6_212 = arith.constant 6 : index
    %c0_213 = arith.constant 0 : index
    %334 = vector.load %arg12[%c0_211, %c6_212, %c0_213] : memref<2x22x128xf32, #tpu.memory_space<vmem>>, vector<1x16x128xf32>
    %335 = vector.shape_cast %334 : vector<1x16x128xf32> to vector<16x128xf32>
    %c84 = arith.constant 84 : index
    %336 = memref.load %arg8[%c84] : memref<98xf32, #tpu.memory_space<smem>>
    %337 = vector.broadcast %336 : f32 to vector<16x128xf32>
    %338 = arith.mulf %335, %337 : vector<16x128xf32>
    %339 = arith.addf %333, %338 : vector<16x128xf32>
    %c86 = arith.constant 86 : index
    %340 = memref.load %arg8[%c86] : memref<98xf32, #tpu.memory_space<smem>>
    %c127_i32_214 = arith.constant 127 : i32
    %341 = tpu.dynamic_rotate %335 by %c127_i32_214 dim 1 : vector<16x128xf32>, i32 -> vector<16x128xf32>
    %342 = vector.broadcast %340 : f32 to vector<16x128xf32>
    %343 = arith.mulf %341, %342 : vector<16x128xf32>
    %344 = arith.addf %339, %343 : vector<16x128xf32>
    %c88 = arith.constant 88 : index
    %345 = memref.load %arg8[%c88] : memref<98xf32, #tpu.memory_space<smem>>
    %c126_i32_215 = arith.constant 126 : i32
    %346 = tpu.dynamic_rotate %335 by %c126_i32_215 dim 1 : vector<16x128xf32>, i32 -> vector<16x128xf32>
    %347 = vector.broadcast %345 : f32 to vector<16x128xf32>
    %348 = arith.mulf %346, %347 : vector<16x128xf32>
    %349 = arith.addf %344, %348 : vector<16x128xf32>
    %c90 = arith.constant 90 : index
    %350 = memref.load %arg8[%c90] : memref<98xf32, #tpu.memory_space<smem>>
    %c125_i32_216 = arith.constant 125 : i32
    %351 = tpu.dynamic_rotate %335 by %c125_i32_216 dim 1 : vector<16x128xf32>, i32 -> vector<16x128xf32>
    %352 = vector.broadcast %350 : f32 to vector<16x128xf32>
    %353 = arith.mulf %351, %352 : vector<16x128xf32>
    %354 = arith.addf %349, %353 : vector<16x128xf32>
    %c92 = arith.constant 92 : index
    %355 = memref.load %arg8[%c92] : memref<98xf32, #tpu.memory_space<smem>>
    %c124_i32_217 = arith.constant 124 : i32
    %356 = tpu.dynamic_rotate %335 by %c124_i32_217 dim 1 : vector<16x128xf32>, i32 -> vector<16x128xf32>
    %357 = vector.broadcast %355 : f32 to vector<16x128xf32>
    %358 = arith.mulf %356, %357 : vector<16x128xf32>
    %359 = arith.addf %354, %358 : vector<16x128xf32>
    %c94 = arith.constant 94 : index
    %360 = memref.load %arg8[%c94] : memref<98xf32, #tpu.memory_space<smem>>
    %c123_i32_218 = arith.constant 123 : i32
    %361 = tpu.dynamic_rotate %335 by %c123_i32_218 dim 1 : vector<16x128xf32>, i32 -> vector<16x128xf32>
    %362 = vector.broadcast %360 : f32 to vector<16x128xf32>
    %363 = arith.mulf %361, %362 : vector<16x128xf32>
    %364 = arith.addf %359, %363 : vector<16x128xf32>
    %c96_219 = arith.constant 96 : index
    %365 = memref.load %arg8[%c96_219] : memref<98xf32, #tpu.memory_space<smem>>
    %c122_i32_220 = arith.constant 122 : i32
    %366 = tpu.dynamic_rotate %335 by %c122_i32_220 dim 1 : vector<16x128xf32>, i32 -> vector<16x128xf32>
    %367 = vector.broadcast %365 : f32 to vector<16x128xf32>
    %368 = arith.mulf %366, %367 : vector<16x128xf32>
    %369 = arith.addf %364, %368 : vector<16x128xf32>
    %c1_221 = arith.constant 1 : index
    %c0_222 = arith.constant 0 : index
    %c0_223 = arith.constant 0 : index
    %370 = vector.load %arg12[%c1_221, %c0_222, %c0_223] : memref<2x22x128xf32, #tpu.memory_space<vmem>>, vector<1x16x128xf32>
    %371 = vector.shape_cast %370 : vector<1x16x128xf32> to vector<16x128xf32>
    %c1_224 = arith.constant 1 : index
    %372 = memref.load %arg8[%c1_224] : memref<98xf32, #tpu.memory_space<smem>>
    %373 = vector.broadcast %372 : f32 to vector<16x128xf32>
    %374 = arith.mulf %371, %373 : vector<16x128xf32>
    %375 = arith.addf %369, %374 : vector<16x128xf32>
    %c3_225 = arith.constant 3 : index
    %376 = memref.load %arg8[%c3_225] : memref<98xf32, #tpu.memory_space<smem>>
    %c127_i32_226 = arith.constant 127 : i32
    %377 = tpu.dynamic_rotate %371 by %c127_i32_226 dim 1 : vector<16x128xf32>, i32 -> vector<16x128xf32>
    %378 = vector.broadcast %376 : f32 to vector<16x128xf32>
    %379 = arith.mulf %377, %378 : vector<16x128xf32>
    %380 = arith.addf %375, %379 : vector<16x128xf32>
    %c5_227 = arith.constant 5 : index
    %381 = memref.load %arg8[%c5_227] : memref<98xf32, #tpu.memory_space<smem>>
    %c126_i32_228 = arith.constant 126 : i32
    %382 = tpu.dynamic_rotate %371 by %c126_i32_228 dim 1 : vector<16x128xf32>, i32 -> vector<16x128xf32>
    %383 = vector.broadcast %381 : f32 to vector<16x128xf32>
    %384 = arith.mulf %382, %383 : vector<16x128xf32>
    %385 = arith.addf %380, %384 : vector<16x128xf32>
    %c7 = arith.constant 7 : index
    %386 = memref.load %arg8[%c7] : memref<98xf32, #tpu.memory_space<smem>>
    %c125_i32_229 = arith.constant 125 : i32
    %387 = tpu.dynamic_rotate %371 by %c125_i32_229 dim 1 : vector<16x128xf32>, i32 -> vector<16x128xf32>
    %388 = vector.broadcast %386 : f32 to vector<16x128xf32>
    %389 = arith.mulf %387, %388 : vector<16x128xf32>
    %390 = arith.addf %385, %389 : vector<16x128xf32>
    %c9 = arith.constant 9 : index
    %391 = memref.load %arg8[%c9] : memref<98xf32, #tpu.memory_space<smem>>
    %c124_i32_230 = arith.constant 124 : i32
    %392 = tpu.dynamic_rotate %371 by %c124_i32_230 dim 1 : vector<16x128xf32>, i32 -> vector<16x128xf32>
    %393 = vector.broadcast %391 : f32 to vector<16x128xf32>
    %394 = arith.mulf %392, %393 : vector<16x128xf32>
    %395 = arith.addf %390, %394 : vector<16x128xf32>
    %c11 = arith.constant 11 : index
    %396 = memref.load %arg8[%c11] : memref<98xf32, #tpu.memory_space<smem>>
    %c123_i32_231 = arith.constant 123 : i32
    %397 = tpu.dynamic_rotate %371 by %c123_i32_231 dim 1 : vector<16x128xf32>, i32 -> vector<16x128xf32>
    %398 = vector.broadcast %396 : f32 to vector<16x128xf32>
    %399 = arith.mulf %397, %398 : vector<16x128xf32>
    %400 = arith.addf %395, %399 : vector<16x128xf32>
    %c13 = arith.constant 13 : index
    %401 = memref.load %arg8[%c13] : memref<98xf32, #tpu.memory_space<smem>>
    %c122_i32_232 = arith.constant 122 : i32
    %402 = tpu.dynamic_rotate %371 by %c122_i32_232 dim 1 : vector<16x128xf32>, i32 -> vector<16x128xf32>
    %403 = vector.broadcast %401 : f32 to vector<16x128xf32>
    %404 = arith.mulf %402, %403 : vector<16x128xf32>
    %405 = arith.addf %400, %404 : vector<16x128xf32>
    %c1_233 = arith.constant 1 : index
    %c1_234 = arith.constant 1 : index
    %c0_235 = arith.constant 0 : index
    %406 = vector.load %arg12[%c1_233, %c1_234, %c0_235] : memref<2x22x128xf32, #tpu.memory_space<vmem>>, vector<1x16x128xf32>
    %407 = vector.shape_cast %406 : vector<1x16x128xf32> to vector<16x128xf32>
    %c15 = arith.constant 15 : index
    %408 = memref.load %arg8[%c15] : memref<98xf32, #tpu.memory_space<smem>>
    %409 = vector.broadcast %408 : f32 to vector<16x128xf32>
    %410 = arith.mulf %407, %409 : vector<16x128xf32>
    %411 = arith.addf %405, %410 : vector<16x128xf32>
    %c17_236 = arith.constant 17 : index
    %412 = memref.load %arg8[%c17_236] : memref<98xf32, #tpu.memory_space<smem>>
    %c127_i32_237 = arith.constant 127 : i32
    %413 = tpu.dynamic_rotate %407 by %c127_i32_237 dim 1 : vector<16x128xf32>, i32 -> vector<16x128xf32>
    %414 = vector.broadcast %412 : f32 to vector<16x128xf32>
    %415 = arith.mulf %413, %414 : vector<16x128xf32>
    %416 = arith.addf %411, %415 : vector<16x128xf32>
    %c19 = arith.constant 19 : index
    %417 = memref.load %arg8[%c19] : memref<98xf32, #tpu.memory_space<smem>>
    %c126_i32_238 = arith.constant 126 : i32
    %418 = tpu.dynamic_rotate %407 by %c126_i32_238 dim 1 : vector<16x128xf32>, i32 -> vector<16x128xf32>
    %419 = vector.broadcast %417 : f32 to vector<16x128xf32>
    %420 = arith.mulf %418, %419 : vector<16x128xf32>
    %421 = arith.addf %416, %420 : vector<16x128xf32>
    %c21 = arith.constant 21 : index
    %422 = memref.load %arg8[%c21] : memref<98xf32, #tpu.memory_space<smem>>
    %c125_i32_239 = arith.constant 125 : i32
    %423 = tpu.dynamic_rotate %407 by %c125_i32_239 dim 1 : vector<16x128xf32>, i32 -> vector<16x128xf32>
    %424 = vector.broadcast %422 : f32 to vector<16x128xf32>
    %425 = arith.mulf %423, %424 : vector<16x128xf32>
    %426 = arith.addf %421, %425 : vector<16x128xf32>
    %c23 = arith.constant 23 : index
    %427 = memref.load %arg8[%c23] : memref<98xf32, #tpu.memory_space<smem>>
    %c124_i32_240 = arith.constant 124 : i32
    %428 = tpu.dynamic_rotate %407 by %c124_i32_240 dim 1 : vector<16x128xf32>, i32 -> vector<16x128xf32>
    %429 = vector.broadcast %427 : f32 to vector<16x128xf32>
    %430 = arith.mulf %428, %429 : vector<16x128xf32>
    %431 = arith.addf %426, %430 : vector<16x128xf32>
    %c25 = arith.constant 25 : index
    %432 = memref.load %arg8[%c25] : memref<98xf32, #tpu.memory_space<smem>>
    %c123_i32_241 = arith.constant 123 : i32
    %433 = tpu.dynamic_rotate %407 by %c123_i32_241 dim 1 : vector<16x128xf32>, i32 -> vector<16x128xf32>
    %434 = vector.broadcast %432 : f32 to vector<16x128xf32>
    %435 = arith.mulf %433, %434 : vector<16x128xf32>
    %436 = arith.addf %431, %435 : vector<16x128xf32>
    %c27 = arith.constant 27 : index
    %437 = memref.load %arg8[%c27] : memref<98xf32, #tpu.memory_space<smem>>
    %c122_i32_242 = arith.constant 122 : i32
    %438 = tpu.dynamic_rotate %407 by %c122_i32_242 dim 1 : vector<16x128xf32>, i32 -> vector<16x128xf32>
    %439 = vector.broadcast %437 : f32 to vector<16x128xf32>
    %440 = arith.mulf %438, %439 : vector<16x128xf32>
    %441 = arith.addf %436, %440 : vector<16x128xf32>
    %c1_243 = arith.constant 1 : index
    %c2_244 = arith.constant 2 : index
    %c0_245 = arith.constant 0 : index
    %442 = vector.load %arg12[%c1_243, %c2_244, %c0_245] : memref<2x22x128xf32, #tpu.memory_space<vmem>>, vector<1x16x128xf32>
    %443 = vector.shape_cast %442 : vector<1x16x128xf32> to vector<16x128xf32>
    %c29 = arith.constant 29 : index
    %444 = memref.load %arg8[%c29] : memref<98xf32, #tpu.memory_space<smem>>
    %445 = vector.broadcast %444 : f32 to vector<16x128xf32>
    %446 = arith.mulf %443, %445 : vector<16x128xf32>
    %447 = arith.addf %441, %446 : vector<16x128xf32>
    %c31 = arith.constant 31 : index
    %448 = memref.load %arg8[%c31] : memref<98xf32, #tpu.memory_space<smem>>
    %c127_i32_246 = arith.constant 127 : i32
    %449 = tpu.dynamic_rotate %443 by %c127_i32_246 dim 1 : vector<16x128xf32>, i32 -> vector<16x128xf32>
    %450 = vector.broadcast %448 : f32 to vector<16x128xf32>
    %451 = arith.mulf %449, %450 : vector<16x128xf32>
    %452 = arith.addf %447, %451 : vector<16x128xf32>
    %c33 = arith.constant 33 : index
    %453 = memref.load %arg8[%c33] : memref<98xf32, #tpu.memory_space<smem>>
    %c126_i32_247 = arith.constant 126 : i32
    %454 = tpu.dynamic_rotate %443 by %c126_i32_247 dim 1 : vector<16x128xf32>, i32 -> vector<16x128xf32>
    %455 = vector.broadcast %453 : f32 to vector<16x128xf32>
    %456 = arith.mulf %454, %455 : vector<16x128xf32>
    %457 = arith.addf %452, %456 : vector<16x128xf32>
    %c35 = arith.constant 35 : index
    %458 = memref.load %arg8[%c35] : memref<98xf32, #tpu.memory_space<smem>>
    %c125_i32_248 = arith.constant 125 : i32
    %459 = tpu.dynamic_rotate %443 by %c125_i32_248 dim 1 : vector<16x128xf32>, i32 -> vector<16x128xf32>
    %460 = vector.broadcast %458 : f32 to vector<16x128xf32>
    %461 = arith.mulf %459, %460 : vector<16x128xf32>
    %462 = arith.addf %457, %461 : vector<16x128xf32>
    %c37 = arith.constant 37 : index
    %463 = memref.load %arg8[%c37] : memref<98xf32, #tpu.memory_space<smem>>
    %c124_i32_249 = arith.constant 124 : i32
    %464 = tpu.dynamic_rotate %443 by %c124_i32_249 dim 1 : vector<16x128xf32>, i32 -> vector<16x128xf32>
    %465 = vector.broadcast %463 : f32 to vector<16x128xf32>
    %466 = arith.mulf %464, %465 : vector<16x128xf32>
    %467 = arith.addf %462, %466 : vector<16x128xf32>
    %c39 = arith.constant 39 : index
    %468 = memref.load %arg8[%c39] : memref<98xf32, #tpu.memory_space<smem>>
    %c123_i32_250 = arith.constant 123 : i32
    %469 = tpu.dynamic_rotate %443 by %c123_i32_250 dim 1 : vector<16x128xf32>, i32 -> vector<16x128xf32>
    %470 = vector.broadcast %468 : f32 to vector<16x128xf32>
    %471 = arith.mulf %469, %470 : vector<16x128xf32>
    %472 = arith.addf %467, %471 : vector<16x128xf32>
    %c41 = arith.constant 41 : index
    %473 = memref.load %arg8[%c41] : memref<98xf32, #tpu.memory_space<smem>>
    %c122_i32_251 = arith.constant 122 : i32
    %474 = tpu.dynamic_rotate %443 by %c122_i32_251 dim 1 : vector<16x128xf32>, i32 -> vector<16x128xf32>
    %475 = vector.broadcast %473 : f32 to vector<16x128xf32>
    %476 = arith.mulf %474, %475 : vector<16x128xf32>
    %477 = arith.addf %472, %476 : vector<16x128xf32>
    %c1_252 = arith.constant 1 : index
    %c3_253 = arith.constant 3 : index
    %c0_254 = arith.constant 0 : index
    %478 = vector.load %arg12[%c1_252, %c3_253, %c0_254] : memref<2x22x128xf32, #tpu.memory_space<vmem>>, vector<1x16x128xf32>
    %479 = vector.shape_cast %478 : vector<1x16x128xf32> to vector<16x128xf32>
    %c43 = arith.constant 43 : index
    %480 = memref.load %arg8[%c43] : memref<98xf32, #tpu.memory_space<smem>>
    %481 = vector.broadcast %480 : f32 to vector<16x128xf32>
    %482 = arith.mulf %479, %481 : vector<16x128xf32>
    %483 = arith.addf %477, %482 : vector<16x128xf32>
    %c45 = arith.constant 45 : index
    %484 = memref.load %arg8[%c45] : memref<98xf32, #tpu.memory_space<smem>>
    %c127_i32_255 = arith.constant 127 : i32
    %485 = tpu.dynamic_rotate %479 by %c127_i32_255 dim 1 : vector<16x128xf32>, i32 -> vector<16x128xf32>
    %486 = vector.broadcast %484 : f32 to vector<16x128xf32>
    %487 = arith.mulf %485, %486 : vector<16x128xf32>
    %488 = arith.addf %483, %487 : vector<16x128xf32>
    %c47 = arith.constant 47 : index
    %489 = memref.load %arg8[%c47] : memref<98xf32, #tpu.memory_space<smem>>
    %c126_i32_256 = arith.constant 126 : i32
    %490 = tpu.dynamic_rotate %479 by %c126_i32_256 dim 1 : vector<16x128xf32>, i32 -> vector<16x128xf32>
    %491 = vector.broadcast %489 : f32 to vector<16x128xf32>
    %492 = arith.mulf %490, %491 : vector<16x128xf32>
    %493 = arith.addf %488, %492 : vector<16x128xf32>
    %c49 = arith.constant 49 : index
    %494 = memref.load %arg8[%c49] : memref<98xf32, #tpu.memory_space<smem>>
    %c125_i32_257 = arith.constant 125 : i32
    %495 = tpu.dynamic_rotate %479 by %c125_i32_257 dim 1 : vector<16x128xf32>, i32 -> vector<16x128xf32>
    %496 = vector.broadcast %494 : f32 to vector<16x128xf32>
    %497 = arith.mulf %495, %496 : vector<16x128xf32>
    %498 = arith.addf %493, %497 : vector<16x128xf32>
    %c51 = arith.constant 51 : index
    %499 = memref.load %arg8[%c51] : memref<98xf32, #tpu.memory_space<smem>>
    %c124_i32_258 = arith.constant 124 : i32
    %500 = tpu.dynamic_rotate %479 by %c124_i32_258 dim 1 : vector<16x128xf32>, i32 -> vector<16x128xf32>
    %501 = vector.broadcast %499 : f32 to vector<16x128xf32>
    %502 = arith.mulf %500, %501 : vector<16x128xf32>
    %503 = arith.addf %498, %502 : vector<16x128xf32>
    %c53 = arith.constant 53 : index
    %504 = memref.load %arg8[%c53] : memref<98xf32, #tpu.memory_space<smem>>
    %c123_i32_259 = arith.constant 123 : i32
    %505 = tpu.dynamic_rotate %479 by %c123_i32_259 dim 1 : vector<16x128xf32>, i32 -> vector<16x128xf32>
    %506 = vector.broadcast %504 : f32 to vector<16x128xf32>
    %507 = arith.mulf %505, %506 : vector<16x128xf32>
    %508 = arith.addf %503, %507 : vector<16x128xf32>
    %c55 = arith.constant 55 : index
    %509 = memref.load %arg8[%c55] : memref<98xf32, #tpu.memory_space<smem>>
    %c122_i32_260 = arith.constant 122 : i32
    %510 = tpu.dynamic_rotate %479 by %c122_i32_260 dim 1 : vector<16x128xf32>, i32 -> vector<16x128xf32>
    %511 = vector.broadcast %509 : f32 to vector<16x128xf32>
    %512 = arith.mulf %510, %511 : vector<16x128xf32>
    %513 = arith.addf %508, %512 : vector<16x128xf32>
    %c1_261 = arith.constant 1 : index
    %c4_262 = arith.constant 4 : index
    %c0_263 = arith.constant 0 : index
    %514 = vector.load %arg12[%c1_261, %c4_262, %c0_263] : memref<2x22x128xf32, #tpu.memory_space<vmem>>, vector<1x16x128xf32>
    %515 = vector.shape_cast %514 : vector<1x16x128xf32> to vector<16x128xf32>
    %c57 = arith.constant 57 : index
    %516 = memref.load %arg8[%c57] : memref<98xf32, #tpu.memory_space<smem>>
    %517 = vector.broadcast %516 : f32 to vector<16x128xf32>
    %518 = arith.mulf %515, %517 : vector<16x128xf32>
    %519 = arith.addf %513, %518 : vector<16x128xf32>
    %c59 = arith.constant 59 : index
    %520 = memref.load %arg8[%c59] : memref<98xf32, #tpu.memory_space<smem>>
    %c127_i32_264 = arith.constant 127 : i32
    %521 = tpu.dynamic_rotate %515 by %c127_i32_264 dim 1 : vector<16x128xf32>, i32 -> vector<16x128xf32>
    %522 = vector.broadcast %520 : f32 to vector<16x128xf32>
    %523 = arith.mulf %521, %522 : vector<16x128xf32>
    %524 = arith.addf %519, %523 : vector<16x128xf32>
    %c61 = arith.constant 61 : index
    %525 = memref.load %arg8[%c61] : memref<98xf32, #tpu.memory_space<smem>>
    %c126_i32_265 = arith.constant 126 : i32
    %526 = tpu.dynamic_rotate %515 by %c126_i32_265 dim 1 : vector<16x128xf32>, i32 -> vector<16x128xf32>
    %527 = vector.broadcast %525 : f32 to vector<16x128xf32>
    %528 = arith.mulf %526, %527 : vector<16x128xf32>
    %529 = arith.addf %524, %528 : vector<16x128xf32>
    %c63 = arith.constant 63 : index
    %530 = memref.load %arg8[%c63] : memref<98xf32, #tpu.memory_space<smem>>
    %c125_i32_266 = arith.constant 125 : i32
    %531 = tpu.dynamic_rotate %515 by %c125_i32_266 dim 1 : vector<16x128xf32>, i32 -> vector<16x128xf32>
    %532 = vector.broadcast %530 : f32 to vector<16x128xf32>
    %533 = arith.mulf %531, %532 : vector<16x128xf32>
    %534 = arith.addf %529, %533 : vector<16x128xf32>
    %c65 = arith.constant 65 : index
    %535 = memref.load %arg8[%c65] : memref<98xf32, #tpu.memory_space<smem>>
    %c124_i32_267 = arith.constant 124 : i32
    %536 = tpu.dynamic_rotate %515 by %c124_i32_267 dim 1 : vector<16x128xf32>, i32 -> vector<16x128xf32>
    %537 = vector.broadcast %535 : f32 to vector<16x128xf32>
    %538 = arith.mulf %536, %537 : vector<16x128xf32>
    %539 = arith.addf %534, %538 : vector<16x128xf32>
    %c67 = arith.constant 67 : index
    %540 = memref.load %arg8[%c67] : memref<98xf32, #tpu.memory_space<smem>>
    %c123_i32_268 = arith.constant 123 : i32
    %541 = tpu.dynamic_rotate %515 by %c123_i32_268 dim 1 : vector<16x128xf32>, i32 -> vector<16x128xf32>
    %542 = vector.broadcast %540 : f32 to vector<16x128xf32>
    %543 = arith.mulf %541, %542 : vector<16x128xf32>
    %544 = arith.addf %539, %543 : vector<16x128xf32>
    %c69 = arith.constant 69 : index
    %545 = memref.load %arg8[%c69] : memref<98xf32, #tpu.memory_space<smem>>
    %c122_i32_269 = arith.constant 122 : i32
    %546 = tpu.dynamic_rotate %515 by %c122_i32_269 dim 1 : vector<16x128xf32>, i32 -> vector<16x128xf32>
    %547 = vector.broadcast %545 : f32 to vector<16x128xf32>
    %548 = arith.mulf %546, %547 : vector<16x128xf32>
    %549 = arith.addf %544, %548 : vector<16x128xf32>
    %c1_270 = arith.constant 1 : index
    %c5_271 = arith.constant 5 : index
    %c0_272 = arith.constant 0 : index
    %550 = vector.load %arg12[%c1_270, %c5_271, %c0_272] : memref<2x22x128xf32, #tpu.memory_space<vmem>>, vector<1x16x128xf32>
    %551 = vector.shape_cast %550 : vector<1x16x128xf32> to vector<16x128xf32>
    %c71 = arith.constant 71 : index
    %552 = memref.load %arg8[%c71] : memref<98xf32, #tpu.memory_space<smem>>
    %553 = vector.broadcast %552 : f32 to vector<16x128xf32>
    %554 = arith.mulf %551, %553 : vector<16x128xf32>
    %555 = arith.addf %549, %554 : vector<16x128xf32>
    %c73 = arith.constant 73 : index
    %556 = memref.load %arg8[%c73] : memref<98xf32, #tpu.memory_space<smem>>
    %c127_i32_273 = arith.constant 127 : i32
    %557 = tpu.dynamic_rotate %551 by %c127_i32_273 dim 1 : vector<16x128xf32>, i32 -> vector<16x128xf32>
    %558 = vector.broadcast %556 : f32 to vector<16x128xf32>
    %559 = arith.mulf %557, %558 : vector<16x128xf32>
    %560 = arith.addf %555, %559 : vector<16x128xf32>
    %c75 = arith.constant 75 : index
    %561 = memref.load %arg8[%c75] : memref<98xf32, #tpu.memory_space<smem>>
    %c126_i32_274 = arith.constant 126 : i32
    %562 = tpu.dynamic_rotate %551 by %c126_i32_274 dim 1 : vector<16x128xf32>, i32 -> vector<16x128xf32>
    %563 = vector.broadcast %561 : f32 to vector<16x128xf32>
    %564 = arith.mulf %562, %563 : vector<16x128xf32>
    %565 = arith.addf %560, %564 : vector<16x128xf32>
    %c77 = arith.constant 77 : index
    %566 = memref.load %arg8[%c77] : memref<98xf32, #tpu.memory_space<smem>>
    %c125_i32_275 = arith.constant 125 : i32
    %567 = tpu.dynamic_rotate %551 by %c125_i32_275 dim 1 : vector<16x128xf32>, i32 -> vector<16x128xf32>
    %568 = vector.broadcast %566 : f32 to vector<16x128xf32>
    %569 = arith.mulf %567, %568 : vector<16x128xf32>
    %570 = arith.addf %565, %569 : vector<16x128xf32>
    %c79 = arith.constant 79 : index
    %571 = memref.load %arg8[%c79] : memref<98xf32, #tpu.memory_space<smem>>
    %c124_i32_276 = arith.constant 124 : i32
    %572 = tpu.dynamic_rotate %551 by %c124_i32_276 dim 1 : vector<16x128xf32>, i32 -> vector<16x128xf32>
    %573 = vector.broadcast %571 : f32 to vector<16x128xf32>
    %574 = arith.mulf %572, %573 : vector<16x128xf32>
    %575 = arith.addf %570, %574 : vector<16x128xf32>
    %c81 = arith.constant 81 : index
    %576 = memref.load %arg8[%c81] : memref<98xf32, #tpu.memory_space<smem>>
    %c123_i32_277 = arith.constant 123 : i32
    %577 = tpu.dynamic_rotate %551 by %c123_i32_277 dim 1 : vector<16x128xf32>, i32 -> vector<16x128xf32>
    %578 = vector.broadcast %576 : f32 to vector<16x128xf32>
    %579 = arith.mulf %577, %578 : vector<16x128xf32>
    %580 = arith.addf %575, %579 : vector<16x128xf32>
    %c83 = arith.constant 83 : index
    %581 = memref.load %arg8[%c83] : memref<98xf32, #tpu.memory_space<smem>>
    %c122_i32_278 = arith.constant 122 : i32
    %582 = tpu.dynamic_rotate %551 by %c122_i32_278 dim 1 : vector<16x128xf32>, i32 -> vector<16x128xf32>
    %583 = vector.broadcast %581 : f32 to vector<16x128xf32>
    %584 = arith.mulf %582, %583 : vector<16x128xf32>
    %585 = arith.addf %580, %584 : vector<16x128xf32>
    %c1_279 = arith.constant 1 : index
    %c6_280 = arith.constant 6 : index
    %c0_281 = arith.constant 0 : index
    %586 = vector.load %arg12[%c1_279, %c6_280, %c0_281] : memref<2x22x128xf32, #tpu.memory_space<vmem>>, vector<1x16x128xf32>
    %587 = vector.shape_cast %586 : vector<1x16x128xf32> to vector<16x128xf32>
    %c85 = arith.constant 85 : index
    %588 = memref.load %arg8[%c85] : memref<98xf32, #tpu.memory_space<smem>>
    %589 = vector.broadcast %588 : f32 to vector<16x128xf32>
    %590 = arith.mulf %587, %589 : vector<16x128xf32>
    %591 = arith.addf %585, %590 : vector<16x128xf32>
    %c87 = arith.constant 87 : index
    %592 = memref.load %arg8[%c87] : memref<98xf32, #tpu.memory_space<smem>>
    %c127_i32_282 = arith.constant 127 : i32
    %593 = tpu.dynamic_rotate %587 by %c127_i32_282 dim 1 : vector<16x128xf32>, i32 -> vector<16x128xf32>
    %594 = vector.broadcast %592 : f32 to vector<16x128xf32>
    %595 = arith.mulf %593, %594 : vector<16x128xf32>
    %596 = arith.addf %591, %595 : vector<16x128xf32>
    %c89 = arith.constant 89 : index
    %597 = memref.load %arg8[%c89] : memref<98xf32, #tpu.memory_space<smem>>
    %c126_i32_283 = arith.constant 126 : i32
    %598 = tpu.dynamic_rotate %587 by %c126_i32_283 dim 1 : vector<16x128xf32>, i32 -> vector<16x128xf32>
    %599 = vector.broadcast %597 : f32 to vector<16x128xf32>
    %600 = arith.mulf %598, %599 : vector<16x128xf32>
    %601 = arith.addf %596, %600 : vector<16x128xf32>
    %c91 = arith.constant 91 : index
    %602 = memref.load %arg8[%c91] : memref<98xf32, #tpu.memory_space<smem>>
    %c125_i32_284 = arith.constant 125 : i32
    %603 = tpu.dynamic_rotate %587 by %c125_i32_284 dim 1 : vector<16x128xf32>, i32 -> vector<16x128xf32>
    %604 = vector.broadcast %602 : f32 to vector<16x128xf32>
    %605 = arith.mulf %603, %604 : vector<16x128xf32>
    %606 = arith.addf %601, %605 : vector<16x128xf32>
    %c93 = arith.constant 93 : index
    %607 = memref.load %arg8[%c93] : memref<98xf32, #tpu.memory_space<smem>>
    %c124_i32_285 = arith.constant 124 : i32
    %608 = tpu.dynamic_rotate %587 by %c124_i32_285 dim 1 : vector<16x128xf32>, i32 -> vector<16x128xf32>
    %609 = vector.broadcast %607 : f32 to vector<16x128xf32>
    %610 = arith.mulf %608, %609 : vector<16x128xf32>
    %611 = arith.addf %606, %610 : vector<16x128xf32>
    %c95 = arith.constant 95 : index
    %612 = memref.load %arg8[%c95] : memref<98xf32, #tpu.memory_space<smem>>
    %c123_i32_286 = arith.constant 123 : i32
    %613 = tpu.dynamic_rotate %587 by %c123_i32_286 dim 1 : vector<16x128xf32>, i32 -> vector<16x128xf32>
    %614 = vector.broadcast %612 : f32 to vector<16x128xf32>
    %615 = arith.mulf %613, %614 : vector<16x128xf32>
    %616 = arith.addf %611, %615 : vector<16x128xf32>
    %c97 = arith.constant 97 : index
    %617 = memref.load %arg8[%c97] : memref<98xf32, #tpu.memory_space<smem>>
    %c122_i32_287 = arith.constant 122 : i32
    %618 = tpu.dynamic_rotate %587 by %c122_i32_287 dim 1 : vector<16x128xf32>, i32 -> vector<16x128xf32>
    %619 = vector.broadcast %617 : f32 to vector<16x128xf32>
    %620 = arith.mulf %618, %619 : vector<16x128xf32>
    %621 = arith.addf %616, %620 : vector<16x128xf32>
    %622 = vector.extract_strided_slice %621 {offsets = [0, 0], sizes = [16, 16], strides = [1, 1]} : vector<16x128xf32> to vector<16x16xf32>
    %623 = arith.negf %622 : vector<16x16xf32>
    %624 = math.exp %623 : vector<16x16xf32>
    %cst_288 = arith.constant 1.000000e+00 : f32
    %625 = vector.broadcast %cst_288 : f32 to vector<16x16xf32>
    %626 = arith.addf %625, %624 : vector<16x16xf32>
    %627 = arith.divf %625, %626 : vector<16x16xf32>
    %628 = vector.shape_cast %627 : vector<16x16xf32> to vector<16x16x1xf32>
    %629 = vector.broadcast %628 : vector<16x16x1xf32> to vector<16x16x32xf32>
    %630 = arith.mulf %629, %104 : vector<16x16x32xf32>
    %c0_289 = arith.constant 0 : index
    %c0_290 = arith.constant 0 : index
    %c0_291 = arith.constant 0 : index
    %c0_292 = arith.constant 0 : index
    %631 = vector.load %arg1[%c0_289, %c0_290, %c0_291, %c0_292] : memref<1x16x16x32xf32, #tpu.memory_space<vmem>>, vector<1x16x16x32xf32>
    %632 = vector.shape_cast %631 : vector<1x16x16x32xf32> to vector<16x16x32xf32>
    %633 = arith.addf %630, %632 : vector<16x16x32xf32>
    %cst_293 = arith.constant 0.000000e+00 : f32
    %634 = vector.broadcast %cst_293 : f32 to vector<16x16x32xf32>
    %635 = arith.maximumf %633, %634 : vector<16x16x32xf32>
    %c0_294 = arith.constant 0 : index
    %c0_295 = arith.constant 0 : index
    %c0_296 = arith.constant 0 : index
    %c0_297 = arith.constant 0 : index
    %636 = vector.load %arg9[%c0_294, %c0_295, %c0_296, %c0_297] : memref<1x16x16x32xf32, #tpu.memory_space<vmem>>, vector<1x16x16x32xf32>
    %637 = vector.shape_cast %636 : vector<1x16x16x32xf32> to vector<16x16x32xf32>
    %638 = vector.shape_cast %635 : vector<16x16x32xf32> to vector<1x16x16x32xf32>
    tpu.vector_store %arg9[%c0_294, %c0_295, %c0_296, %c0_297], %638 {strides = array<i32>} : memref<1x16x16x32xf32, #tpu.memory_space<vmem>>, vector<1x16x16x32xf32>,
    return
  }
  func.func @transform_0(%arg0: i32) -> (i32, i32, i32, i32) {
    %c0_i32 = arith.constant 0 : i32
    %c0_i32_0 = arith.constant 0 : i32
    %c0_i32_1 = arith.constant 0 : i32
    %c0_i32_2 = arith.constant 0 : i32
    return %arg0, %c0_i32, %c0_i32_0, %c0_i32_1 : i32, i32, i32, i32
  }
  func.func @transform_1(%arg0: i32) -> (i32, i32) {
    %c0_i32 = arith.constant 0 : i32
    %c0_i32_0 = arith.constant 0 : i32
    %c0_i32_1 = arith.constant 0 : i32
    return %c0_i32, %c0_i32_0 : i32, i32
  }
  func.func @transform_2(%arg0: i32) -> (i32, i32) {
    %c0_i32 = arith.constant 0 : i32
    %c0_i32_0 = arith.constant 0 : i32
    %c0_i32_1 = arith.constant 0 : i32
    return %c0_i32, %c0_i32_0 : i32, i32
  }
  func.func @transform_3(%arg0: i32) -> (i32, i32) {
    %c0_i32 = arith.constant 0 : i32
    %c0_i32_0 = arith.constant 0 : i32
    %c0_i32_1 = arith.constant 0 : i32
    return %c0_i32, %c0_i32_0 : i32, i32
  }
  func.func @transform_4(%arg0: i32) -> (i32, i32) {
    %c0_i32 = arith.constant 0 : i32
    %c0_i32_0 = arith.constant 0 : i32
    %c0_i32_1 = arith.constant 0 : i32
    return %c0_i32, %c0_i32_0 : i32, i32
  }
  func.func @transform_5(%arg0: i32) -> (i32, i32) {
    %c0_i32 = arith.constant 0 : i32
    %c0_i32_0 = arith.constant 0 : i32
    %c0_i32_1 = arith.constant 0 : i32
    return %c0_i32, %c0_i32_0 : i32, i32
  }
  func.func @transform_6(%arg0: i32) -> (i32, i32) {
    %c0_i32 = arith.constant 0 : i32
    %c0_i32_0 = arith.constant 0 : i32
    %c0_i32_1 = arith.constant 0 : i32
    return %c0_i32, %c0_i32_0 : i32, i32
  }
  func.func @transform_7(%arg0: i32) -> i32 {
    %c0_i32 = arith.constant 0 : i32
    %c0_i32_0 = arith.constant 0 : i32
    return %c0_i32 : i32
  }
  func.func @transform_8(%arg0: i32) -> (i32, i32, i32, i32) {
    %c0_i32 = arith.constant 0 : i32
    %c0_i32_0 = arith.constant 0 : i32
    %c0_i32_1 = arith.constant 0 : i32
    %c0_i32_2 = arith.constant 0 : i32
    return %arg0, %c0_i32, %c0_i32_0, %c0_i32_1 : i32, i32, i32, i32
  }
}

</mosaic_0001>

<bundles_post_ra>
// kernel: basic_block_forward.1
= control target key start
LH: loop header
LB: loop body
LE: loop exit
PB: predicated region body
PF: predicated region fallthrough
CT: control target
= control target key end

     0   :  { %s15496_s0 = inlined_call_operand.vmem [shape: f32[2,16,16,32], index: 0, kind: input, shape index: {}]   ;;  %s15497_s1 = inlined_call_operand.vmem [shape: bf16[288,32], index: 1, kind: input, shape index: {}]   ;;  %s15498_s2 = inlined_call_operand.vmem [shape: f32[1,32], index: 2, kind: input, shape index: {}]   ;;  %s15499_s3 = inlined_call_operand.vmem [shape: bf16[288,32], index: 3, kind: input, shape index: {}]   ;;  %s15500_s4 = inlined_call_operand.vmem [shape: f32[1,32], index: 4, kind: input, shape index: {}]   ;;  %s15501_s5 = inlined_call_operand.vmem [shape: f32[32,2], index: 5, kind: input, shape index: {}]   ;;  %s15502_s6 = inlined_call_operand.vmem [shape: f32[2,32], index: 6, kind: input, shape index: {}]   ;;  %s15503_s7 = inlined_call_operand.vmem [shape: f32[98], index: 7, kind: input, shape index: {}]   ;;  %s15504_s8 = inlined_call_operand.hbm [shape: f32[2,16,16,32], index: 8, kind: output, shape index: {}]  }
   0x1   :  { %15595 = sst [smem:[#allocation69_spill]] %s15496_s0 }
   0x2   :  { %15596 = sst [smem:[#allocation70_spill]] %s15497_s1 }
   0x3   :  { %15597 = sst [smem:[#allocation71_spill]] %s15498_s2 }
   0x4   :  { %15598 = sst [smem:[#allocation72_spill]] %s15499_s3 }
   0x5   :  { %15599 = sst [smem:[#allocation73_spill]] %s15500_s4 }
   0x6   :  { %15600 = sst [smem:[#allocation74_spill]] %s15501_s5 }
   0x7   :  { %15601 = sst [smem:[#allocation75_spill]] %s15502_s6 }
   0x8   :  { %15602 = sst [smem:[#allocation76_spill]] %s15503_s7 }
   0x9   :  { %15603 = sst [smem:[#allocation77_spill]] %s15504_s8 }
   0xa   :  { %13 = vsyncpa [#allocation7], 0 }
   0xb   :  { %14 = vsyncpa [#allocation6], 0 }
   0xc   :  { %16 = vsyncpa [#allocation6 + $0x1], 0  ;;  %s10894_s27 = smov 0   ;;  %s10896_s28 = smov 0  }
   0xd   :  { %s10898_s29 = smov 0   ;;  %s10900_s30 = smov 0  }
   0xe LB: > { %15604 = sst [smem:[#allocation11_spill]] %s10820_s27  ;;  %s10915_s9 = sadd.s32 4294967295, %s10832_s30   ;;  %s10832_s30 = sphi %s10900_s30, %s15778_s30   ;;  %s10828_s29 = sphi %s10898_s29, %s15780_s29   ;;  %s10824_s28 = sphi %s10896_s28, %s15782_s28   ;;  %s10820_s27 = sphi %s10894_s27, %s15781_s27  }
   0xf   : > { %15605 = sst [smem:[#allocation12_spill]] %s10828_s29  ;;  %s8735_s10 = sadd.s32 4294967294, %s10832_s30  }
  0x10   : > { %15606 = sst [smem:[#allocation13_spill]] %s10832_s30  ;;  %s10919_s11 = sadd.s32 1, %s10832_s30  }
  0x11   : > { %15607 = sst [smem:[#allocation14_spill]] %s10915_s9  ;;  %s202_s12 = sadd.s32 1, %s10828_s29 }
  0x12   : > { %15608 = sst [smem:[#allocation15_spill]] %s10919_s11  ;;  %s199_s13 = ssub.s32 %s10832_s30, %s10919_s11 }
  0x13   : > { %p212_p0 = scmp.ne.s32.totalorder %s10828_s29, %s10824_s28  ;;  %p200_p1 = scmp.eq.s32.totalorder %s199_s13, 0 }
  0x14   : > { %p213_p2 = scmp.eq.s32.totalorder %s10915_s9, 1  ;;  %p218_p3 = scmp.ne.s32.totalorder %s10824_s28, %s10820_s27 }
  0x15   : > { %p219_p4 = scmp.eq.s32.totalorder %s8735_s10, 1  ;;  %p8736_p7 = scmp.ge.s32.totalorder %s10832_s30, 1 }
  0x16   : > { %s10930_s14 = scalar_select %p200_p1, %s10828_s29, %s202_s12  }
  0x17   : > { %p10932_p5 = por %p213_p2, %p212_p0  ;;  %p10936_p6 = por %p219_p4, %p218_p3 }
  0x18   : > { %15609 = sst [smem:[#allocation16_spill]] %s10930_s14  ;;  %p226_p8 = scmp.lt.s32.totalorder %s10832_s30, 3 }
  0x19   : > { %s15610_s15 = scalar_select %p10932_p5, 1, 0 }
  0x1a   : > { %s15612_s16 = scalar_select %p10936_p6, 1, 0 }
  0x1b   : > { %15611 = sst [smem:[#allocation17_spill]] %s15610_s15  ;;  %p10545_p9 = scmp.eq.s32.totalorder %s10915_s9, 0 }
  0x1c   : > { %15613 = sst [smem:[#allocation18_spill]] %s15612_s16  ;;  %p10943_p10 = pnand %p8736_p7, %p226_p8 }
  0x1d   : > { %s15615_s7 = sld [smem:[#allocation76_spill]] }
  0x1e   : > { %p10537_p11 = pneg %p10943_p10 }
  0x20   : > { %p10538_p12 = pnand %p10545_p9, %p10537_p11 }
  0x22   : > { %p10755_p0 = pneg %p10538_p12 }
  0x23   : > { %s257_s20 = sshll.u32 %s15615_s7, 4  ;;  %s258_s20 = int_to_ptr.vmem [resolvable:$true] %s257_s20 }
  0x24   : > { %s10753_s21 = scalar_lea.vmem %s258_s20, 16  ;;  %p10761_p3 = scmp.lt.s32.totalorder %s258_s20, %s258_s20 }
  0x25   : > { %p10754_p13 = scmp.ne.s32.totalorder %s258_s20, %s10753_s21  ;;  %p10762_p4 = scmp.lt.s32.totalorder %s10753_s21, %s10753_s21 }
  0x27   : > { %p10756_p1 = pnand %p10755_p0, %p10754_p13  ;;  %p10763_p7 = por %p10762_p4, %p10761_p3 }
  0x29   : > { %p10757_p2 = pneg %p10756_p1 }
  0x2b   : > { %p10764_p8 = pnand %p10763_p7, %p10757_p2 }
  0x2d   : > { %10767 = shalt.err (!%p10764_p8)
}
  0x2e   : > { %s10834_s22 = smov [#allocation5]   ;;  %278 = sbr.rel (%p10943_p10) target bundleno = 2561 (0xa01), region = 52 }
  0x2f   : > { %10540 = dma.vmem_to_smem (!%p10538_p12), %s258_s20, 16, %s10834_s22, [#allocation7]  }
  0x33   : > { %10811 = dma.done.wait (%p10545_p9), [#allocation7], 16  }
  0x34   : > { %10813 = vsyncadd (%p10545_p9), [#allocation7], 4294967280 }
  0x35   : > { %284 = sfence }
  0x36   : > { %vm319_vm0 = vcmask 261120   ;;  %vm322_vm1 = vcmask 254976   ;;  %vm329_vm2 = vcmask 253952   ;;  %v10835_v0 = vmov 0.0   ;;  %p313_p9 = scmp.lt.s32.totalorder %s10915_s9, 1  ;;  %s15616_s1 = sld [smem:[#allocation70_spill]] }
  0x37   : > { %320 = vst.msk [vmem:[#allocation2] sm:$0xff] %vm319_vm0, %v10835_v0  ;;  %321 = vst.msk [vmem:[#allocation2 + $0x8] sm:$0xff] %vm319_vm0, %v10835_v0  ;;  %s15617_s0 = sld [smem:[#allocation69_spill]]  ;;  %s10837_s26 = smov 64   ;;  %vm586_vm3 = vcmask 257024   ;;  %vm843_vm4 = vcmask 519424  }
  0x38   : > { %325 = vst.msk [vmem:[#allocation2 + $0x198] sm:$0xff] %vm319_vm0, %v10835_v0  ;;  %326 = vst.msk [vmem:[#allocation2 + $0x1a0] sm:$0xff] %vm319_vm0, %v10835_v0  ;;  %s314_s25 = scalar_select %p313_p9, %s10915_s9, 1  ;;  %vm1100_vm5 = vcmask 781824   ;;  %vm1357_vm6 = vcmask 1044224   ;;  %vm10839_vm7 = vmmov 0  }
  0x39   : > { %6714 = vst [vmem:[#allocation4] sm:$0xff] %v10835_v0  ;;  %6715 = vst [vmem:[#allocation4 + $0x8] sm:$0xff] %v10835_v0  ;;  %s10838_s18 = smov 96   ;;  %s15619_s2 = sld [smem:[#allocation71_spill]]  ;;  %vm6509_vm8 = vcmask 1040384   ;;  %vm6594_vm9 = vcmask 1041408  }
  0x3a   : > { %6716 = vst [vmem:[#allocation4 + $0x10] sm:$0x3f] %v10835_v0  ;;  %6717 = vst [vmem:[#allocation4 + $0x18] sm:$0xff] %v10835_v0  ;;  %s9594_s17 = sshll.u32 %s314_s25, 8  ;;  %s10836_s25 = smov 32   ;;  %vm6590_vm10 = vcmask 15360  }
  0x3b   : > { %6718 = vst [vmem:[#allocation4 + $0x20] sm:$0xff] %v10835_v0  ;;  %6719 = vst [vmem:[#allocation4 + $0x28] sm:$0x3f] %v10835_v0  ;;  %s15620_s3 = sld [smem:[#allocation72_spill]]  ;;  %vm6893_vm11 = vcmask 154712   ;;  %vm7030_vm12 = vcmask 1041409  }
  0x3c   : > { %323 = vst.msk [vmem:[#allocation2 + $0x10] sm:$0x3] %vm322_vm1, %v10835_v0  ;;  %327 = vst.msk [vmem:[#allocation2 + $0x1a8] sm:$0x3] %vm322_vm1, %v10835_v0  ;;  %v10594_v1 = vld [vmem:[%s15616_s1 + $0x78] sm:$0xff]   ;;  %v10596_v3 = vld [vmem:[%s15616_s1 + $0x70] sm:$0xff]  }
  0x3d   : > { %346 = vst.msk [vmem:[#allocation2 + $0x29] sm:$0x1] %vm329_vm2, %v10835_v0  ;;  %330 = vst.msk [vmem:[#allocation2 + $0x18] sm:$0x1] %vm329_vm2, %v10835_v0  ;;  %v10595_v2 = vld [vmem:[%s15616_s1 + $0x38] sm:$0xff]   ;;  %10172 = vmatprep.subr.bf16.mxu0 %v10594_v1  ;;  %v10597_v4 = vld [vmem:[%s15616_s1 + $0x30] sm:$0xff]   ;;  %s11015_s22 = scalar_lea.vmem %s15617_s0, %s9594_s17 }
  0x3e   : > { %331 = vst.msk [vmem:[#allocation2 + $0x30] sm:$0x1] %vm329_vm2, %v10835_v0  ;;  %332 = vst.msk [vmem:[#allocation2 + $0x48] sm:$0x1] %vm329_vm2, %v10835_v0  ;;  %10173 = vmatpush3.bf16.msra.mxu0 %v10595_v2  ;;  %15618 = sst [smem:[#allocation19_spill]] %s11015_s22  ;;  %v10598_v5 = vld [vmem:[%s15616_s1 + $0x68] sm:$0xff]  }
  0x3f   : > { %333 = vst.msk [vmem:[#allocation2 + $0x60] sm:$0x1] %vm329_vm2, %v10835_v0  ;;  %334 = vst.msk [vmem:[#allocation2 + $0x78] sm:$0x1] %vm329_vm2, %v10835_v0  ;;  %10174 = vmatprep.subr.bf16.mxu0 %v10596_v3  ;;  %v362_v6 = vld [vmem:[%s11015_s22] sm:$0xff]  ;;  %v363_v7 = vld [vmem:[%s11015_s22 + $0x8] sm:$0xff] }
  0x40   : > { %335 = vst.msk [vmem:[#allocation2 + $0x90] sm:$0x1] %vm329_vm2, %v10835_v0  ;;  %336 = vst.msk [vmem:[#allocation2 + $0xa8] sm:$0x1] %vm329_vm2, %v10835_v0  ;;  %v364_v8 = vld [vmem:[%s11015_s22 + $0x10] sm:$0xff]  ;;  %v619_v9 = vld [vmem:[#allocation2 + $0x1] sm:$0xff] }
  0x41   : > { %337 = vst.msk [vmem:[#allocation2 + $0xc0] sm:$0x1] %vm329_vm2, %v10835_v0  ;;  %338 = vst.msk [vmem:[#allocation2 + $0xd8] sm:$0x1] %vm329_vm2, %v10835_v0  ;;  %v9627_v12 = vpack.c.bf16 %v619_v9, %v619_v9  ;;  %v365_v14 = vld [vmem:[%s11015_s22 + $0x18] sm:$0xff]  ;;  %v366_v15 = vld [vmem:[%s11015_s22 + $0x20] sm:$0xff] }
  0x42   : > { %339 = vst.msk [vmem:[#allocation2 + $0xf0] sm:$0x1] %vm329_vm2, %v10835_v0  ;;  %340 = vst.msk [vmem:[#allocation2 + $0x108] sm:$0x1] %vm329_vm2, %v10835_v0  ;;  %10175 = vmatpush3.bf16.msra.mxu0 %v10597_v4  ;;  %v876_v16 = vld [vmem:[#allocation2 + $0x2] sm:$0xff]  ;;  %v368_v18 = vld [vmem:[%s11015_s22 + $0x30] sm:$0xff] }
  0x43   : > { %341 = vst.msk [vmem:[#allocation2 + $0x120] sm:$0x1] %vm329_vm2, %v10835_v0  ;;  %342 = vst.msk [vmem:[#allocation2 + $0x138] sm:$0x1] %vm329_vm2, %v10835_v0  ;;  %v877_v10 = vld [vmem:[#allocation2 + $0xa] sm:$0xff]  ;;  %v369_v19 = vld [vmem:[%s11015_s22 + $0x38] sm:$0xff]  ;;  %10176 = vmatprep.subr.bf16.mxu0 %v10598_v5  ;;  %747 = vrot.lane.b32.xlu0 %v9627_v12, %s10836_s25  ;;  %v9659_v32 = vpack.c.bf16 %v876_v16, %v876_v16 }
  0x44   : > { %343 = vst.msk [vmem:[#allocation2 + $0x150] sm:$0x1] %vm329_vm2, %v10835_v0  ;;  %344 = vst.msk [vmem:[#allocation2 + $0x168] sm:$0x1] %vm329_vm2, %v10835_v0  ;;  %v620_v11 = vld [vmem:[#allocation2 + $0x9] sm:$0xff]  ;;  %v9660_v13 = vpack.c.bf16 %v877_v10, %v877_v10  ;;  %v370_v21 = vld [vmem:[%s11015_s22 + $0x40] sm:$0xff] }
  0x45   : > { %345 = vst.msk [vmem:[#allocation2 + $0x180] sm:$0x1] %vm329_vm2, %v10835_v0  ;;  %347 = vst.msk [vmem:[#allocation2 + $0x41] sm:$0x1] %vm329_vm2, %v10835_v0  ;;  %v367_v17 = vld [vmem:[%s11015_s22 + $0x28] sm:$0xff]  ;;  %v9628_v20 = vpack.c.bf16 %v620_v11, %v620_v11  ;;  %v426_v23 = vld [vmem:[#allocation2] sm:$0xff] }
  0x46   : > { %348 = vst.msk [vmem:[#allocation2 + $0x59] sm:$0x1] %vm329_vm2, %v10835_v0  ;;  %349 = vst.msk [vmem:[#allocation2 + $0x71] sm:$0x1] %vm329_vm2, %v10835_v0  ;;  %1006 = vrot.lane.b32.xlu1 %v9660_v13, %s10837_s26  ;;  %v371_v22 = vld [vmem:[%s11015_s22 + $0x48] sm:$0xff]  ;;  %v372_v24 = vld [vmem:[%s11015_s22 + $0x50] sm:$0xff]  ;;  %v9595_v26 = vpack.c.bf16 %v426_v23, %v426_v23 }
  0x47   : > { %350 = vst.msk [vmem:[#allocation2 + $0x89] sm:$0x1] %vm329_vm2, %v10835_v0  ;;  %351 = vst.msk [vmem:[#allocation2 + $0xa1] sm:$0x1] %vm329_vm2, %v10835_v0  ;;  %v373_v25 = vld [vmem:[%s11015_s22 + $0x58] sm:$0xff]  ;;  %v427_v27 = vld [vmem:[#allocation2 + $0x8] sm:$0xff]  ;;  %749 = vrot.lane.b32.xlu0 %v9628_v20, %s10836_s25 }
  0x48   : > { %352 = vst.msk [vmem:[#allocation2 + $0xb9] sm:$0x1] %vm329_vm2, %v10835_v0  ;;  %353 = vst.msk [vmem:[#allocation2 + $0xd1] sm:$0x1] %vm329_vm2, %v10835_v0  ;;  %v9596_v28 = vpack.c.bf16 %v427_v27, %v427_v27  ;;  %v10599_v29 = vld [vmem:[%s15616_s1 + $0x28] sm:$0xff]   ;;  %v10600_v30 = vld [vmem:[%s15616_s1 + $0x60] sm:$0xff]  }
  0x49   : > { %354 = vst.msk [vmem:[#allocation2 + $0xe9] sm:$0x1] %vm329_vm2, %v10835_v0  ;;  %355 = vst.msk [vmem:[#allocation2 + $0x101] sm:$0x1] %vm329_vm2, %v10835_v0  ;;  %10177 = vmatpush3.bf16.msra.mxu0 %v10599_v29  ;;  %v10602_v23 = vld [vmem:[%s15616_s1 + $0x58] sm:$0xff]   ;;  %v10604_v27 = vld [vmem:[%s15616_s1 + $0x50] sm:$0xff]  }
  0x4a   : > { %356 = vst.msk [vmem:[#allocation2 + $0x119] sm:$0x1] %vm329_vm2, %v10835_v0  ;;  %357 = vst.msk [vmem:[#allocation2 + $0x131] sm:$0x1] %vm329_vm2, %v10835_v0  ;;  %10178 = vmatprep.subr.bf16.mxu0 %v10600_v30  ;;  %v10606_v29 = vld [vmem:[%s15616_s1 + $0x48] sm:$0xff]   ;;  %s15621_s5 = sld [smem:[#allocation74_spill]] }
  0x4b   : > { %358 = vst.msk [vmem:[#allocation2 + $0x149] sm:$0x1] %vm329_vm2, %v10835_v0  ;;  %359 = vst.msk [vmem:[#allocation2 + $0x161] sm:$0x1] %vm329_vm2, %v10835_v0  ;;  %1004 = vrot.lane.b32.xlu0 %v9659_v32, %s10837_s26  ;;  %s15625_s4 = sld [smem:[#allocation73_spill]]  ;;  %vm7032_vm13 = vcmask 1042434  }
  0x4c   : > { %360 = vst.msk [vmem:[#allocation2 + $0x179] sm:$0x1] %vm329_vm2, %v10835_v0  ;;  %361 = vst.msk [vmem:[#allocation2 + $0x191] sm:$0x1] %vm329_vm2, %v10835_v0  ;;  %s15632_s6 = sld [smem:[#allocation75_spill]]  ;;  %vm7034_vm14 = vcmask 1043459  }
  0x4d   : > { %394 = vst.msk [vmem:[#allocation2 + $0x19] sm:$0xff] %vm319_vm0, %v362_v6  ;;  %395 = vst.msk [vmem:[#allocation2 + $0x21] sm:$0xff] %vm319_vm0, %v363_v7  ;;  %vm7036_vm15 = vcmask 1044484   ;;  %vm7038_vm1 = vcmask 1045509   ;;  %vm7040_vm2 = vcmask 1046534   ;;  %s15554_s10 = smov 124  }
  0x4e   : > { %396 = vst.msk [vmem:[#allocation2 + $0x31] sm:$0xff] %vm319_vm0, %v364_v8  ;;  %397 = vst.msk [vmem:[#allocation2 + $0x39] sm:$0xff] %vm319_vm0, %v365_v14  ;;  %s15549_s12 = smov 123   ;;  %s15556_s13 = smov 122  }
  0x4f   : > { %398 = vst.msk [vmem:[#allocation2 + $0x49] sm:$0xff] %vm319_vm0, %v366_v15  ;;  %399 = vst.msk [vmem:[#allocation2 + $0x51] sm:$0xff] %vm319_vm0, %v367_v17  ;;  %s14231_s17 = sld [smem:[#allocation5]]  ;;  %s15687_s0 = smov 123  }
  0x50   : > { %400 = vst.msk [vmem:[#allocation2 + $0x61] sm:$0xff] %vm319_vm0, %v368_v18  ;;  %401 = vst.msk [vmem:[#allocation2 + $0x69] sm:$0xff] %vm319_vm0, %v369_v19  ;;  %s14233_s19 = sld [smem:[#allocation5 + $0x2]]  ;;  %s15690_s7 = smov 125  }
  0x51   : > { %402 = vst.msk [vmem:[#allocation2 + $0x79] sm:$0xff] %vm319_vm0, %v370_v21  ;;  %403 = vst.msk [vmem:[#allocation2 + $0x81] sm:$0xff] %vm319_vm0, %v371_v22  ;;  %v10601_v22 = vld [vmem:[%s15616_s1 + $0x20] sm:$0xff]   ;;  %s14245_s20 = sld [smem:[#allocation5 + $0x4]]  ;;  %s15691_s11 = smov 124  }
  0x52   : > { %404 = vst.msk [vmem:[#allocation2 + $0x91] sm:$0xff] %vm319_vm0, %v372_v24  ;;  %405 = vst.msk [vmem:[#allocation2 + $0x99] sm:$0xff] %vm319_vm0, %v373_v25  ;;  %v374_v24 = vld [vmem:[%s11015_s22 + $0x60] sm:$0xff]  ;;  %10179 = vmatpush3.bf16.msra.mxu0 %v10601_v22  ;;  %v10603_v25 = vld [vmem:[%s15616_s1 + $0x18] sm:$0xff]   ;;  %s14247_s21 = sld [smem:[#allocation5 + $0x6]] }
  0x53   : > { %587 = vst.msk [vmem:[#allocation3] sm:$0xf] %vm586_vm3, %v9595_v26  ;;  %588 = vst.msk [vmem:[#allocation3 + $0xc] sm:$0xf] %vm586_vm3, %v9596_v28  ;;  %10180 = vmatprep.subr.bf16.mxu0 %v10602_v23  ;;  %v375_v26 = vld [vmem:[%s11015_s22 + $0x68] sm:$0xff]  ;;  %v10605_v28 = vld [vmem:[%s15616_s1 + $0x10] sm:$0xff]  }
  0x54   : > { %v1582_v31 = vld [vmem:[#allocation2 + $0x1a] sm:$0xff]  ;;  %v1583_v33 = vld [vmem:[#allocation2 + $0x22] sm:$0xff]  ;;  %406 = vst.msk [vmem:[#allocation2 + $0xa9] sm:$0xff] %vm319_vm0, %v374_v24  ;;  %407 = vst.msk [vmem:[#allocation2 + $0xb1] sm:$0xff] %vm319_vm0, %v375_v26  ;;  %s14253_s23 = sld [smem:[#allocation5 + $0x8]] }
  0x55   : > { %v1839_v34 = vld [vmem:[#allocation2 + $0x30] sm:$0xff]  ;;  %v11055_v35 = vpack.c.bf16 %v1582_v31, %v1582_v31  ;;  %v1133_v37 = vld [vmem:[#allocation2 + $0x18] sm:$0xff]  ;;  %v1134_v38 = vld [vmem:[#allocation2 + $0x20] sm:$0xff]  ;;  %v11067_v46 = vpack.c.bf16 %v1583_v33, %v1583_v33  ;;  %s14261_s24 = sld [smem:[#allocation5 + $0xa]] }
  0x56   : > { %v11057_v36 = vpack.c.bf16 %v1839_v34, %v1839_v34  ;;  %v2095_v39 = vld [vmem:[#allocation2 + $0x31] sm:$0xff]  ;;  %v11059_v41 = vpack.c.bf16 %v1133_v37, %v1133_v37  ;;  %v11061_v42 = vpack.c.bf16 %v1134_v38, %v1134_v38  ;;  %v2096_v44 = vld [vmem:[#allocation2 + $0x39] sm:$0xff]  ;;  %v622_v50 = vld [vmem:[#allocation2 + $0x21] sm:$0xff]  ;;  %10181 = vmatpush3.bf16.msra.mxu0 %v10603_v25  ;;  %s14347_s14 = sld [smem:[#allocation5 + $0x1e]] }
  0x57   : > { %v1840_v40 = vld [vmem:[#allocation2 + $0x38] sm:$0xff]  ;;  %v11063_v43 = vpack.c.bf16 %v2095_v39, %v2095_v39  ;;  %1710 = vrot.lane.b32.xlu1 %v11055_v35, %s10836_s25  ;;  %v11071_v48 = vpack.c.bf16 %v2096_v44, %v2096_v44  ;;  %v11078_v53 = vpack.c.bf16 %v622_v50, %v622_v50  ;;  %v1841_v56 = vld [vmem:[#allocation2 + $0x48] sm:$0xff]  ;;  %v1842_v57 = vld [vmem:[#allocation2 + $0x50] sm:$0xff]  ;;  %10182 = vmatprep.subr.bf16.mxu0 %v10604_v27  ;;  %s14357_s29 = sld [smem:[#allocation5 + $0x20]] }
  0x58   : > { %v621_v45 = vld [vmem:[#allocation2 + $0x19] sm:$0xff]  ;;  %v11069_v47 = vpack.c.bf16 %v1840_v40, %v1840_v40  ;;  %591 = vst.msk [vmem:[#allocation3 + $0x30] sm:$0xf] %vm586_vm3, %v11057_v36  ;;  %v2097_v58 = vld [vmem:[#allocation2 + $0x49] sm:$0xff]  ;;  %589 = vst.msk [vmem:[#allocation3 + $0x18] sm:$0xf] %vm586_vm3, %v11059_v41  ;;  %v11090_v59 = vpack.c.bf16 %v1841_v56, %v1841_v56  ;;  %v11092_v60 = vpack.c.bf16 %v1842_v57, %v1842_v57  ;;  %1967 = vrot.lane.b32.xlu0 %v11057_v36, %s10837_s26 }
  0x59   : > { %v11073_v49 = vpack.c.bf16 %v621_v45, %v621_v45  ;;  %v1584_v51 = vld [vmem:[#allocation2 + $0x32] sm:$0xff]  ;;  %v1585_v52 = vld [vmem:[#allocation2 + $0x3a] sm:$0xff]  ;;  %590 = vst.msk [vmem:[#allocation3 + $0x24] sm:$0xf] %vm586_vm3, %v11061_v42  ;;  %1552 = vst.msk [vmem:[#allocation3 + $0x1c] sm:$0xf] %vm586_vm3, %v11063_v43  ;;  %v11094_v61 = vpack.c.bf16 %v2097_v58, %v2097_v58 }
  0x5a   : > { %v11080_v54 = vpack.c.bf16 %v1584_v51, %v1584_v51  ;;  %v11082_v55 = vpack.c.bf16 %v1585_v52, %v1585_v52  ;;  %v2098_v62 = vld [vmem:[#allocation2 + $0x51] sm:$0xff]  ;;  %1553 = vst.msk [vmem:[#allocation3 + $0x28] sm:$0xf] %vm586_vm3, %v11071_v48  ;;  %592 = vst.msk [vmem:[#allocation3 + $0x3c] sm:$0xf] %vm586_vm3, %v11069_v47  ;;  %v2099_v4 = vld [vmem:[#allocation2 + $0x61] sm:$0xff]  ;;  %10183 = vmatpush3.bf16.msra.mxu0 %v10605_v28 }
  0x5b   : > { %v1586_v63 = vld [vmem:[#allocation2 + $0x4a] sm:$0xff]  ;;  %v1587_v0 = vld [vmem:[#allocation2 + $0x52] sm:$0xff]  ;;  %1550 = vst.msk [vmem:[#allocation3 + $0x4] sm:$0xf] %vm586_vm3, %v11073_v49  ;;  %v11102_v1 = vpack.c.bf16 %v2098_v62, %v2098_v62  ;;  %1551 = vst.msk [vmem:[#allocation3 + $0x10] sm:$0xf] %vm586_vm3, %v11078_v53  ;;  %1712 = vrot.lane.b32.xlu1 %v11067_v46, %s10836_s25  ;;  %v11116_v5 = vpack.c.bf16 %v2099_v4, %v2099_v4  ;;  %10184 = vmatprep.subr.bf16.mxu0 %v10606_v29 }
  0x5c   : > { %v11104_v2 = vpack.c.bf16 %v1586_v63, %v1586_v63  ;;  %v11106_v3 = vpack.c.bf16 %v1587_v0, %v1587_v0  ;;  %2511 = vst.msk [vmem:[#allocation3 + $0x8] sm:$0xf] %vm586_vm3, %v11080_v54  ;;  %2512 = vst.msk [vmem:[#allocation3 + $0x14] sm:$0xf] %vm586_vm3, %v11082_v55  ;;  %v2100_v6 = vld [vmem:[#allocation2 + $0x69] sm:$0xff]  ;;  %v2101_v12 = vld [vmem:[#allocation2 + $0x79] sm:$0xff]  ;;  %1261 = vrot.lane.b32.xlu0 %v11059_v41, %s10838_s18 }
  0x5d   : > { %v1588_v7 = vld [vmem:[#allocation2 + $0x62] sm:$0xff]  ;;  %v1589_v8 = vld [vmem:[#allocation2 + $0x6a] sm:$0xff]  ;;  %1554 = vst.msk [vmem:[#allocation3 + $0x34] sm:$0xf] %vm586_vm3, %v11094_v61  ;;  %593 = vst.msk [vmem:[#allocation3 + $0x48] sm:$0xf] %vm586_vm3, %v11090_v59  ;;  %v11126_v9 = vpack.c.bf16 %v2100_v6, %v2100_v6  ;;  %v11138_v13 = vpack.c.bf16 %v2101_v12, %v2101_v12 }
  0x5e   : > { %594 = vst.msk [vmem:[#allocation3 + $0x54] sm:$0xf] %vm586_vm3, %v11092_v60  ;;  %v11128_v10 = vpack.c.bf16 %v1588_v7, %v1588_v7  ;;  %v11130_v11 = vpack.c.bf16 %v1589_v8, %v1589_v8  ;;  %2513 = vst.msk [vmem:[#allocation3 + $0x20] sm:$0xf] %vm586_vm3, %v11104_v2  ;;  %v2102_v14 = vld [vmem:[#allocation2 + $0x81] sm:$0xff]  ;;  %v2105_v30 = vld [vmem:[#allocation2 + $0xa9] sm:$0xff] }
  0x5f   : > { %2514 = vst.msk [vmem:[#allocation3 + $0x2c] sm:$0xf] %vm586_vm3, %v11106_v3  ;;  %1555 = vst.msk [vmem:[#allocation3 + $0x40] sm:$0xf] %vm586_vm3, %v11102_v1  ;;  %v1590_v15 = vld [vmem:[#allocation2 + $0x7a] sm:$0xff]  ;;  %v1591_v16 = vld [vmem:[#allocation2 + $0x82] sm:$0xff]  ;;  %v11142_v17 = vpack.c.bf16 %v2102_v14, %v2102_v14  ;;  %1969 = vrot.lane.b32.xlu1 %v11069_v47, %s10837_s26  ;;  %v11203_v32 = vpack.c.bf16 %v2105_v30, %v2105_v30 }
  0x60   : > { %1556 = vst.msk [vmem:[#allocation3 + $0x4c] sm:$0xf] %vm586_vm3, %v11116_v5  ;;  %v11144_v18 = vpack.c.bf16 %v1590_v15, %v1590_v15  ;;  %v11146_v19 = vpack.c.bf16 %v1591_v16, %v1591_v16  ;;  %1557 = vst.msk [vmem:[#allocation3 + $0x58] sm:$0xf] %vm586_vm3, %v11126_v9  ;;  %v1593_v20 = vld [vmem:[#allocation2 + $0x9a] sm:$0xff]  ;;  %2223 = vrot.lane.b32.xlu0 %v11063_v43, %s10838_s18  ;;  %v10609_v31 = vld [vmem:[%s15616_s1 + $0x88] sm:$0xff]  }
  0x61   : > { %2515 = vst.msk [vmem:[#allocation3 + $0x38] sm:$0xf] %vm586_vm3, %v11128_v10  ;;  %2516 = vst.msk [vmem:[#allocation3 + $0x44] sm:$0xf] %vm586_vm3, %v11130_v11  ;;  %v11160_v21 = vpack.c.bf16 %v1593_v20, %v1593_v20  ;;  %v10607_v33 = vld [vmem:[%s15616_s1 + $0x8] sm:$0xff]   ;;  %v2106_v34 = vld [vmem:[#allocation2 + $0xb1] sm:$0xff]  ;;  %10439 = vmatprep.subr.bf16.mxu1 %v10609_v31 }
  0x62   : > { %1558 = vst.msk [vmem:[#allocation3 + $0x64] sm:$0xf] %vm586_vm3, %v11138_v13  ;;  %2517 = vst.msk [vmem:[#allocation3 + $0x50] sm:$0xf] %vm586_vm3, %v11144_v18  ;;  %v10608_v37 = vld [vmem:[%s15616_s1 + $0x40] sm:$0xff]   ;;  %v11215_v38 = vpack.c.bf16 %v2106_v34, %v2106_v34  ;;  %v1594_v41 = vld [vmem:[#allocation2 + $0xaa] sm:$0xff]  ;;  %10440 = vmatpush3.bf16.msra.mxu1 %v10609_v31  ;;  %10185 = vmatpush3.bf16.msra.mxu0 %v10607_v33 }
  0x63   : > { %2518 = vst.msk [vmem:[#allocation3 + $0x5c] sm:$0xf] %vm586_vm3, %v11146_v19  ;;  %1559 = vst.msk [vmem:[#allocation3 + $0x70] sm:$0xf] %vm586_vm3, %v11142_v17  ;;  %1263 = vrot.lane.b32.xlu1 %v11061_v42, %s10838_s18  ;;  %v10610_v39 = vld [vmem:[%s15616_s1] sm:$0xff]   ;;  %v11225_v42 = vpack.c.bf16 %v1594_v41, %v1594_v41  ;;  %v1595_v44 = vld [vmem:[#allocation2 + $0xb2] sm:$0xff]  ;;  %10186 = vmatprep.subr.bf16.mxu0 %v10608_v37 }
  0x64   : > { %2520 = vst.msk [vmem:[#allocation3 + $0x74] sm:$0xf] %vm586_vm3, %v11160_v21  ;;  %751 = vrot.lane.b32.xlu0 %v11073_v49, %s10836_s25  ;;  %v10613_v40 = vld [vmem:[%s15616_s1 + $0x80] sm:$0xff]   ;;  %1562 = vst.msk [vmem:[#allocation3 + $0x94] sm:$0xf] %vm586_vm3, %v11203_v32  ;;  %v11227_v45 = vpack.c.bf16 %v1595_v44, %v1595_v44  ;;  %v376_v51 = vld [vmem:[%s11015_s22 + $0x70] sm:$0xff] }
  0x65   : > { %10441 = vmatprep.subr.bf16.mxu1 %v10613_v40  ;;  %v10614_v49 = vld [vmem:[#allocation3 + $0x8] ss:$12 sps:$4 sm:$0xff]   ;;  %1563 = vst.msk [vmem:[#allocation3 + $0xa0] sm:$0xf] %vm586_vm3, %v11215_v38  ;;  %2521 = vst.msk [vmem:[#allocation3 + $0x80] sm:$0xf] %vm586_vm3, %v11225_v42 }
  0x66   : > { %v10615_v50 = vld [vmem:[#allocation3 + $0x20] ss:$12 sps:$4 sm:$0xff]   ;;  %10443 = vmatprep.mubr.msk.bf16.mxu1 %vm319_vm0, %v10614_v49  ;;  %408 = vst.msk [vmem:[#allocation2 + $0xc1] sm:$0xff] %vm319_vm0, %v376_v51  ;;  %10442 = vmatpush3.bf16.msra.mxu1 %v10613_v40  ;;  %v379_v63 = vld [vmem:[%s11015_s22 + $0x88] sm:$0xff]  ;;  %v1846_v24 = vld [vmem:[#allocation2 + $0x80] sm:$0xff]  ;;  %s14312_s1 = sld [smem:[#allocation5 + $0x16]] }
  0x67   : > { %2225 = vrot.lane.b32.xlu1 %v11071_v48, %s10838_s18  ;;  %v377_v52 = vld [vmem:[%s11015_s22 + $0x78] sm:$0xff]  ;;  %2522 = vst.msk [vmem:[#allocation3 + $0x8c] sm:$0xf] %vm586_vm3, %v11227_v45  ;;  %10187 = vmatpush3.bf16.msra.mxu0 %v10610_v39  ;;  %v1844_v6 = vld [vmem:[#allocation2 + $0x68] sm:$0xff]  ;;  %v434_v25 = vld [vmem:[#allocation2 + $0x60] sm:$0xff]  ;;  %s14373_s16 = sld [smem:[#allocation5 + $0x22]] }
  0x68   : > { %1714 = vrot.lane.b32.xlu0 %v11080_v54, %s10836_s25  ;;  %409 = vst.msk [vmem:[#allocation2 + $0xc9] sm:$0xff] %vm319_vm0, %v377_v52  ;;  %411 = vst.msk [vmem:[#allocation2 + $0xe1] sm:$0xff] %vm319_vm0, %v379_v63  ;;  %v381_v16 = vld [vmem:[%s11015_s22 + $0x98] sm:$0xff]  ;;  %v10620_v22 = vld [vmem:[#allocation3 + $0x38] ss:$12 sps:$4 sm:$0xff]   ;;  %v9603_v27 = vpack.c.bf16 %v434_v25, %v434_v25  ;;  %s14388_s27 = sld [smem:[#allocation5 + $0x24]] }
  0x69   : > { %10444 = vmatmul.mubr.msk.bf16.vlgmr.msra.gmra.mxu1 %vm319_vm0, %v10615_v50  ;;  %413 = vst.msk [vmem:[#allocation2 + $0xf9] sm:$0xff] %vm319_vm0, %v381_v16  ;;  %v382_v31 = vld [vmem:[%s11015_s22 + $0xa0] sm:$0xff]  ;;  %v383_v37 = vld [vmem:[%s11015_s22 + $0xa8] sm:$0xff]  ;;  %v1847_v40 = vld [vmem:[#allocation2 + $0x90] sm:$0xff]  ;;  %s14403_s30 = sld [smem:[#allocation5 + $0x26]] }
  0x6a   : > { %10447 = vmatprep.mubr.msk.bf16.mxu1 %vm319_vm0, %v10620_v22  ;;  %595 = vst.msk [vmem:[#allocation3 + $0x60] sm:$0xf] %vm586_vm3, %v9603_v27  ;;  %v11381_v41 = vpack.c.bf16 %v1847_v40, %v1847_v40  ;;  %v1848_v44 = vld [vmem:[#allocation2 + $0x98] sm:$0xff]  ;;  %v437_v50 = vld [vmem:[#allocation2 + $0x80] sm:$0xff]  ;;  %s14414_s8 = sld [smem:[#allocation5 + $0x28]] }
  0x6b   : > { %753 = vrot.lane.b32.xlu1 %v11078_v53, %s10836_s25  ;;  %414 = vst.msk [vmem:[#allocation2 + $0x109] sm:$0xff] %vm319_vm0, %v382_v31  ;;  %415 = vst.msk [vmem:[#allocation2 + $0x111] sm:$0xff] %vm319_vm0, %v383_v37  ;;  %v436_v49 = vld [vmem:[#allocation2 + $0x78] sm:$0xff]  ;;  %v9606_v52 = vpack.c.bf16 %v437_v50, %v437_v50  ;;  %v438_v37 = vld [vmem:[#allocation2 + $0x90] sm:$0xff]  ;;  %s14425_s15 = sld [smem:[#allocation5 + $0x2a]] }
  0x6c   : > { %1008 = vrot.lane.b32.xlu0 %v11055_v35, %s10837_s26  ;;  %v1401_v63 = vld [vmem:[#allocation2 + $0x99] sm:$0xff]  ;;  %v9607_v50 = vpack.c.bf16 %v438_v37, %v438_v37  ;;  %s14438_s9 = sld [smem:[#allocation5 + $0x2c]] }
  0x6d   : > { %v2107_v35 = vld [vmem:[#allocation2 + $0xc1] sm:$0xff]  ;;  %598 = vst.msk [vmem:[#allocation3 + $0x84] sm:$0xf] %vm586_vm3, %v9606_v52  ;;  %v439_v40 = vld [vmem:[#allocation2 + $0x98] sm:$0xff] }
  0x6e   : > { %v11253_v53 = vpack.c.bf16 %v2107_v35, %v2107_v35  ;;  %599 = vst.msk [vmem:[#allocation3 + $0x90] sm:$0xf] %vm586_vm3, %v9607_v50 }
  0x6f   : > { %1716 = vrot.lane.b32.xlu1 %v11082_v55, %s10836_s25  ;;  %v2108_v56 = vld [vmem:[#allocation2 + $0xc9] sm:$0xff]  ;;  %v2110_v8 = vld [vmem:[#allocation2 + $0xe1] sm:$0xff] }
  0x70   : > { %1971 = vrot.lane.b32.xlu0 %v11090_v59, %s10837_s26  ;;  %v11255_v57 = vpack.c.bf16 %v2108_v56, %v2108_v56  ;;  %v1596_v58 = vld [vmem:[#allocation2 + $0xc2] sm:$0xff]  ;;  %1564 = vst.msk [vmem:[#allocation3 + $0xac] sm:$0xf] %vm586_vm3, %v11253_v53  ;;  %v11294_v12 = vpack.c.bf16 %v2110_v8, %v2110_v8  ;;  %v1601_v34 = vld [vmem:[#allocation2 + $0xfa] sm:$0xff]  ;;  %v2359_v56 = vld [vmem:[#allocation2 + $0x92] sm:$0xff] }
  0x71   : > { %v11262_v62 = vpack.c.bf16 %v1596_v58, %v1596_v58  ;;  %v1599_v15 = vld [vmem:[#allocation2 + $0xe2] sm:$0xff]  ;;  %v11362_v39 = vpack.c.bf16 %v1601_v34, %v1601_v34  ;;  %v9859_v58 = vpack.c.bf16 %v2359_v56, %v2359_v56 }
  0x72   : > { %1565 = vst.msk [vmem:[#allocation3 + $0xb8] sm:$0xf] %vm586_vm3, %v11255_v57  ;;  %1567 = vst.msk [vmem:[#allocation3 + $0xd0] sm:$0xf] %vm586_vm3, %v11294_v12  ;;  %v11312_v20 = vpack.c.bf16 %v1599_v15, %v1599_v15  ;;  %v2113_v51 = vld [vmem:[#allocation2 + $0x109] sm:$0xff]  ;;  %v1603_v22 = vld [vmem:[#allocation2 + $0x112] sm:$0xff] }
  0x73   : > { %1010 = vrot.lane.b32.xlu1 %v11067_v46, %s10837_s26  ;;  %v378_v46 = vld [vmem:[%s11015_s22 + $0x80] sm:$0xff]  ;;  %2523 = vst.msk [vmem:[#allocation3 + $0x98] sm:$0xf] %vm586_vm3, %v11262_v62  ;;  %2528 = vst.msk [vmem:[#allocation3 + $0xd4] sm:$0xf] %vm586_vm3, %v11362_v39  ;;  %v11387_v35 = vpack.c.bf16 %v2113_v51, %v2113_v51  ;;  %v1602_v8 = vld [vmem:[#allocation2 + $0x10a] sm:$0xff] }
  0x74   : > { %1265 = vrot.lane.b32.xlu0 %v11057_v36, %s10838_s18  ;;  %410 = vst.msk [vmem:[#allocation2 + $0xd9] sm:$0xff] %vm319_vm0, %v378_v46  ;;  %v1597_v36 = vld [vmem:[#allocation2 + $0xca] sm:$0xff]  ;;  %v11414_v16 = vpack.c.bf16 %v1602_v8, %v1602_v8 }
  0x75   : > { %v11270_v0 = vpack.c.bf16 %v1597_v36, %v1597_v36  ;;  %2526 = vst.msk [vmem:[#allocation3 + $0xbc] sm:$0xf] %vm586_vm3, %v11312_v20  ;;  %v2103_v46 = vld [vmem:[#allocation2 + $0x91] sm:$0xff]  ;;  %1570 = vst.msk [vmem:[#allocation3 + $0xf4] sm:$0xf] %vm586_vm3, %v11387_v35 }
  0x76   : > { %2519 = vst.msk [vmem:[#allocation3 + $0x68] sm:$0xf] %vm586_vm3, %v9859_v58  ;;  %2529 = vst.msk [vmem:[#allocation3 + $0xe0] sm:$0xf] %vm586_vm3, %v11414_v16 }
  0x77   : > { %1973 = vrot.lane.b32.xlu1 %v11092_v60, %s10837_s26  ;;  %2524 = vst.msk [vmem:[#allocation3 + $0xa4] sm:$0xf] %vm586_vm3, %v11270_v0 }
  0x78   : > { %2227 = vrot.lane.b32.xlu0 %v11094_v61, %s10838_s18 }
  0x7b   : > { %1267 = vrot.lane.b32.xlu1 %v11069_v47, %s10838_s18  ;;  %v1843_v47 = vld [vmem:[#allocation2 + $0x60] sm:$0xff] }
  0x7c   : > { %755 = vrot.lane.b32.xlu0 %v11063_v43, %s10836_s25  ;;  %v9791_v4 = vpack.c.bf16 %v1843_v47, %v1843_v47  ;;  %v2109_v7 = vld [vmem:[#allocation2 + $0xd9] sm:$0xff]  ;;  %v9792_v43 = vpack.c.bf16 %v1844_v6, %v1844_v6  ;;  %v11404_v6 = vpack.c.bf16 %v2103_v46, %v2103_v46 }
  0x7f   : > { %2229 = vrot.lane.b32.xlu1 %v11102_v1, %s10838_s18 }
  0x80   : > { %1718 = vrot.lane.b32.xlu0 %v11104_v2, %s10836_s25 }
  0x83   : > { %757 = vrot.lane.b32.xlu1 %v11071_v48, %s10836_s25  ;;  %v11291_v48 = vpack.c.bf16 %v2109_v7, %v2109_v7  ;;  %v2104_v7 = vld [vmem:[#allocation2 + $0x99] sm:$0xff] }
  0x84   : > { %1012 = vrot.lane.b32.xlu0 %v11080_v54, %s10837_s26  ;;  %v1598_v54 = vld [vmem:[#allocation2 + $0xda] sm:$0xff]  ;;  %v11412_v15 = vpack.c.bf16 %v2104_v7, %v2104_v7 }
  0x85   : > { %1566 = vst.msk [vmem:[#allocation3 + $0xc4] sm:$0xf] %vm586_vm3, %v11291_v48  ;;  %v11306_v14 = vpack.c.bf16 %v1598_v54, %v1598_v54  ;;  %v384_v54 = vld [vmem:[%s11015_s22 + $0xb0] sm:$0xff] }
  0x86   : > { %416 = vst.msk [vmem:[#allocation2 + $0x121] sm:$0xff] %vm319_vm0, %v384_v54 }
  0x87   : > { %1720 = vrot.lane.b32.xlu1 %v11106_v3, %s10836_s25  ;;  %2525 = vst.msk [vmem:[#allocation3 + $0xb0] sm:$0xf] %vm586_vm3, %v11306_v14 }
  0x88   : > { %1975 = vrot.lane.b32.xlu0 %v9791_v4, %s10837_s26 }
  0x8b   : > { %1014 = vrot.lane.b32.xlu1 %v11082_v55, %s10837_s26  ;;  %v380_v55 = vld [vmem:[%s11015_s22 + $0x90] sm:$0xff] }
  0x8c   : > { %1269 = vrot.lane.b32.xlu0 %v11090_v59, %s10838_s18  ;;  %412 = vst.msk [vmem:[#allocation2 + $0xf1] sm:$0xff] %vm319_vm0, %v380_v55  ;;  %v10621_v59 = vld [vmem:[#allocation3 + $0x50] ss:$12 sps:$4 sm:$0xff]  }
  0x8d   : > { %10448 = vmatmul.mubr.msk.bf16.gmra.mxu1 %vm319_vm0, %v10621_v59  ;;  %v385_v59 = vld [vmem:[%s11015_s22 + $0xb8] sm:$0xff] }
  0x8e   : > { %417 = vst.msk [vmem:[#allocation2 + $0x129] sm:$0xff] %vm319_vm0, %v385_v59 }
  0x8f   : > { %1977 = vrot.lane.b32.xlu1 %v9792_v43, %s10837_s26 }
  0x90   : > { %2231 = vrot.lane.b32.xlu0 %v11116_v5, %s10838_s18 }
  0x93   : > { %1271 = vrot.lane.b32.xlu1 %v11092_v60, %s10838_s18  ;;  %v1845_v60 = vld [vmem:[#allocation2 + $0x78] sm:$0xff] }
  0x94   : > { %759 = vrot.lane.b32.xlu0 %v11094_v61, %s10836_s25  ;;  %v11333_v23 = vpack.c.bf16 %v1845_v60, %v1845_v60  ;;  %v435_v61 = vld [vmem:[#allocation2 + $0x68] sm:$0xff]  ;;  %v2111_v26 = vld [vmem:[#allocation2 + $0xf1] sm:$0xff] }
  0x95   : > { %v9604_v28 = vpack.c.bf16 %v435_v61, %v435_v61  ;;  %v11339_v29 = vpack.c.bf16 %v2111_v26, %v2111_v26  ;;  %v1592_v60 = vld [vmem:[#allocation2 + $0x92] sm:$0xff]  ;;  %v1604_v46 = vld [vmem:[#allocation2 + $0x122] sm:$0xff] }
  0x96   : > { %v10627_v61 = vld [vmem:[#allocation3 + $0x80] ss:$12 sps:$4 sm:$0xff]   ;;  %v11434_v26 = vpack.c.bf16 %v1592_v60, %v1592_v60 }
  0x97   : > { %2233 = vrot.lane.b32.xlu1 %v11126_v9, %s10838_s18  ;;  %596 = vst.msk [vmem:[#allocation3 + $0x6c] sm:$0xf] %vm586_vm3, %v9604_v28  ;;  %1568 = vst.msk [vmem:[#allocation3 + $0xdc] sm:$0xf] %vm586_vm3, %v11339_v29 }
  0x98   : > { %1722 = vrot.lane.b32.xlu0 %v11128_v10, %s10836_s25 }
  0x9b   : > { %761 = vrot.lane.b32.xlu1 %v11102_v1, %s10836_s25  ;;  %v11337_v1 = vpack.c.bf16 %v1846_v24, %v1846_v24  ;;  %v10626_v24 = vld [vmem:[#allocation3 + $0x68] ss:$12 sps:$4 sm:$0xff]  }
  0x9c   : > { %1016 = vrot.lane.b32.xlu0 %v11104_v2, %s10837_s26  ;;  %v2112_v2 = vld [vmem:[#allocation2 + $0xf9] sm:$0xff]  ;;  %10451 = vmatprep.mubr.msk.bf16.mxu1 %vm319_vm0, %v10626_v24 }
  0x9d   : > { %v11345_v30 = vpack.c.bf16 %v2112_v2, %v2112_v2  ;;  %10452 = vmatmul.mubr.msk.bf16.gmra.mxu1 %vm319_vm0, %v10627_v61 }
  0x9f   : > { %1724 = vrot.lane.b32.xlu1 %v11130_v11, %s10836_s25  ;;  %1569 = vst.msk [vmem:[#allocation3 + $0xe8] sm:$0xf] %vm586_vm3, %v11345_v30 }
  0xa0   : > { %1979 = vrot.lane.b32.xlu0 %v11333_v23, %s10837_s26 }
  0xa3   : > { %1018 = vrot.lane.b32.xlu1 %v11106_v3, %s10837_s26  ;;  %v1600_v3 = vld [vmem:[#allocation2 + $0xf2] sm:$0xff] }
  0xa4   : > { %1273 = vrot.lane.b32.xlu0 %v9791_v4, %s10838_s18  ;;  %v11356_v33 = vpack.c.bf16 %v1600_v3, %v1600_v3  ;;  %v9734_v4 = vpack.c.bf16 %v1401_v63, %v1401_v63  ;;  %v11480_v63 = vpack.c.bf16 %v1604_v46, %v1604_v46 }
  0xa6   : > { %2527 = vst.msk [vmem:[#allocation3 + $0xc8] sm:$0xf] %vm586_vm3, %v11356_v33  ;;  %1561 = vst.msk [vmem:[#allocation3 + $0x88] sm:$0xf] %vm586_vm3, %v9734_v4 }
  0xa7   : > { %1981 = vrot.lane.b32.xlu1 %v11337_v1, %s10837_s26  ;;  %2531 = vst.msk [vmem:[#allocation3 + $0xf8] sm:$0xf] %vm586_vm3, %v11480_v63 }
  0xa8   : > { %2235 = vrot.lane.b32.xlu0 %v11138_v13, %s10838_s18 }
  0xab   : > { %1275 = vrot.lane.b32.xlu1 %v9792_v43, %s10838_s18 }
  0xac   : > { %763 = vrot.lane.b32.xlu0 %v11116_v5, %s10836_s25  ;;  %v11385_v5 = vpack.c.bf16 %v1848_v44, %v1848_v44  ;;  %v2115_v44 = vld [vmem:[#allocation2 + $0x121] sm:$0xff] }
  0xad   : > { %v11457_v51 = vpack.c.bf16 %v2115_v44, %v2115_v44 }
  0xaf   : > { %2237 = vrot.lane.b32.xlu1 %v11142_v17, %s10838_s18  ;;  %1572 = vst.msk [vmem:[#allocation3 + $0x10c] sm:$0xf] %vm586_vm3, %v11457_v51 }
  0xb0   : > { %1726 = vrot.lane.b32.xlu0 %v11144_v18, %s10836_s25 }
  0xb3   : > { %765 = vrot.lane.b32.xlu1 %v11126_v9, %s10836_s25  ;;  %v9605_v9 = vpack.c.bf16 %v436_v49, %v436_v49 }
  0xb4   : > { %1020 = vrot.lane.b32.xlu0 %v11128_v10, %s10837_s26  ;;  %v2114_v10 = vld [vmem:[#allocation2 + $0x111] sm:$0xff] }
  0xb5   : > { %597 = vst.msk [vmem:[#allocation3 + $0x78] sm:$0xf] %vm586_vm3, %v9605_v9  ;;  %v11393_v36 = vpack.c.bf16 %v2114_v10, %v2114_v10  ;;  %v748_v43 = vpop.permute.xlu0 %747  ;;  %v2116_v9 = vld [vmem:[#allocation2 + $0x129] sm:$0xff] }
  0xb6   : > { %844 = vst.msk [vmem:[#allocation3] sm:$0xf] %vm843_vm4, %v748_v43  ;;  %v11463_v56 = vpack.c.bf16 %v2116_v9, %v2116_v9 }
  0xb7   : > { %1728 = vrot.lane.b32.xlu1 %v11146_v19, %s10836_s25  ;;  %1571 = vst.msk [vmem:[#allocation3 + $0x100] sm:$0xf] %vm586_vm3, %v11393_v36 }
  0xb8   : > { %1983 = vrot.lane.b32.xlu0 %v11381_v41, %s10837_s26  ;;  %v1007_v55 = vpop.permute.xlu1 %1006  ;;  %1573 = vst.msk [vmem:[#allocation3 + $0x118] sm:$0xf] %vm586_vm3, %v11463_v56 }
  0xb9   : > { %v750_v25 = vpop.permute.xlu0 %749 }
  0xba   : > { %845 = vst.msk [vmem:[#allocation3 + $0xc] sm:$0xf] %vm843_vm4, %v750_v25  ;;  %v1852_v25 = vld [vmem:[#allocation2 + $0xc8] sm:$0xff] }
  0xbb   : > { %1022 = vrot.lane.b32.xlu1 %v11130_v11, %s10837_s26  ;;  %v1400_v11 = vld [vmem:[#allocation2 + $0x91] sm:$0xff]  ;;  %1102 = vst.msk [vmem:[#allocation3 + $0xc] sm:$0xf] %vm1100_vm5, %v1007_v55 }
  0xbc   : > { %v9733_v47 = vpack.c.bf16 %v1400_v11, %v1400_v11  ;;  %1277 = vrot.lane.b32.xlu0 %v11333_v23, %s10838_s18  ;;  %v11420_v23 = vpack.c.bf16 %v1603_v22, %v1603_v22  ;;  %v386_v11 = vld [vmem:[%s11015_s22 + $0xc0] sm:$0xff] }
  0xbd   : > { %v1005_v27 = vpop.permute.xlu0 %1004  ;;  %418 = vst.msk [vmem:[#allocation2 + $0x139] sm:$0xff] %vm319_vm0, %v386_v11 }
  0xbe   : > { %1560 = vst.msk [vmem:[#allocation3 + $0x7c] sm:$0xf] %vm586_vm3, %v9733_v47  ;;  %2530 = vst.msk [vmem:[#allocation3 + $0xec] sm:$0xf] %vm586_vm3, %v11420_v23  ;;  %v1605_v47 = vld [vmem:[#allocation2 + $0x12a] sm:$0xff] }
  0xbf   : > { %1985 = vrot.lane.b32.xlu1 %v11385_v5, %s10837_s26  ;;  %1101 = vst.msk [vmem:[#allocation3] sm:$0xf] %vm1100_vm5, %v1005_v27  ;;  %v11486_v7 = vpack.c.bf16 %v1605_v47, %v1605_v47  ;;  %v440_v27 = vld [vmem:[#allocation2 + $0xa8] sm:$0xff] }
  0xc0   : > { %2239 = vrot.lane.b32.xlu0 %v11404_v6, %s10838_s18 }
  0xc1   : > { %2532 = vst.msk [vmem:[#allocation3 + $0x104] sm:$0xf] %vm586_vm3, %v11486_v7 }
  0xc3   : > { %1279 = vrot.lane.b32.xlu1 %v11337_v1, %s10838_s18 }
  0xc4   : > { %767 = vrot.lane.b32.xlu0 %v11138_v13, %s10836_s25  ;;  %v1849_v13 = vld [vmem:[#allocation2 + $0xa8] sm:$0xff] }
  0xc5   : > { %v11449_v3 = vpack.c.bf16 %v1849_v13, %v1849_v13  ;;  %v11517_v13 = vpack.c.bf16 %v1852_v25, %v1852_v25 }
  0xc7   : > { %2241 = vrot.lane.b32.xlu1 %v11412_v15, %s10838_s18 }
  0xc8   : > { %1730 = vrot.lane.b32.xlu0 %v11434_v26, %s10836_s25 }
  0xc9   : > { %v1711_v1 = vpop.permute.xlu1 %1710 }
  0xca   : > { %1806 = vst.msk [vmem:[#allocation3 + $0x4] sm:$0xf] %vm843_vm4, %v1711_v1  ;;  %v1968_v2 = vpop.permute.xlu0 %1967 }
  0xcb   : > { %769 = vrot.lane.b32.xlu1 %v11142_v17, %s10836_s25  ;;  %2063 = vst.msk [vmem:[#allocation3 + $0x4] sm:$0xf] %vm1100_vm5, %v1968_v2  ;;  %v1850_v17 = vld [vmem:[#allocation2 + $0xb0] sm:$0xff]  ;;  %v9609_v2 = vpack.c.bf16 %v440_v27, %v440_v27 }
  0xcc   : > { %1024 = vrot.lane.b32.xlu0 %v11144_v18, %s10837_s26  ;;  %v11455_v49 = vpack.c.bf16 %v1850_v17, %v1850_v17  ;;  %v9608_v18 = vpack.c.bf16 %v439_v40, %v439_v40  ;;  %v388_v40 = vld [vmem:[%s11015_s22 + $0xd0] sm:$0xff] }
  0xcd   : > { %v1713_v28 = vpop.permute.xlu1 %1712  ;;  %601 = vst.msk [vmem:[#allocation3 + $0xa8] sm:$0xf] %vm586_vm3, %v9609_v2  ;;  %v390_v2 = vld [vmem:[%s11015_s22 + $0xe0] sm:$0xff] }
  0xce   : > { %1807 = vst.msk [vmem:[#allocation3 + $0x10] sm:$0xf] %vm843_vm4, %v1713_v28  ;;  %v1262_v34 = vpop.permute.xlu0 %1261  ;;  %v441_v28 = vld [vmem:[#allocation2 + $0xb0] sm:$0xff] }
  0xcf   : > { %1732 = vrot.lane.b32.xlu1 %v11160_v21, %s10836_s25  ;;  %1358 = vst.msk [vmem:[#allocation3] sm:$0xf] %vm1357_vm6, %v1262_v34  ;;  %v9610_v17 = vpack.c.bf16 %v441_v28, %v441_v28 }
  0xd0   : > { %1987 = vrot.lane.b32.xlu0 %v11449_v3, %s10837_s26  ;;  %600 = vst.msk [vmem:[#allocation3 + $0x9c] sm:$0xf] %vm586_vm3, %v9608_v18 }
  0xd1   : > { %v1970_v31 = vpop.permute.xlu1 %1969  ;;  %602 = vst.msk [vmem:[#allocation3 + $0xb4] sm:$0xf] %vm586_vm3, %v9610_v17  ;;  %v391_v17 = vld [vmem:[%s11015_s22 + $0xe8] sm:$0xff] }
  0xd2   : > { %2064 = vst.msk [vmem:[#allocation3 + $0x10] sm:$0xf] %vm1100_vm5, %v1970_v31 }
  0xd3   : > { %1026 = vrot.lane.b32.xlu1 %v11146_v19, %s10837_s26  ;;  %v2224_v19 = vpop.permute.xlu0 %2223  ;;  %420 = vst.msk [vmem:[#allocation2 + $0x151] sm:$0xff] %vm319_vm0, %v388_v40  ;;  %422 = vst.msk [vmem:[#allocation2 + $0x169] sm:$0xff] %vm319_vm0, %v390_v2  ;;  %v1858_v2 = vld [vmem:[#allocation2 + $0x110] sm:$0xff] }
  0xd4   : > { %2319 = vst.msk [vmem:[#allocation3 + $0x4] sm:$0xf] %vm1357_vm6, %v2224_v19  ;;  %1281 = vrot.lane.b32.xlu0 %v11381_v41, %s10838_s18  ;;  %v387_v41 = vld [vmem:[%s11015_s22 + $0xc8] sm:$0xff] }
  0xd5   : > { %v1264_v52 = vpop.permute.xlu1 %1263  ;;  %419 = vst.msk [vmem:[#allocation2 + $0x141] sm:$0xff] %vm319_vm0, %v387_v41  ;;  %v10633_v19 = vld [vmem:[#allocation3 + $0xb0] ss:$12 sps:$4 sm:$0xff]   ;;  %423 = vst.msk [vmem:[#allocation2 + $0x171] sm:$0xff] %vm319_vm0, %v391_v17 }
  0xd6   : > { %1359 = vst.msk [vmem:[#allocation3 + $0xc] sm:$0xf] %vm1357_vm6, %v1264_v52  ;;  %v10632_v52 = vld [vmem:[#allocation3 + $0x98] ss:$12 sps:$4 sm:$0xff]  }
  0xd7   : > { %1989 = vrot.lane.b32.xlu1 %v11455_v49, %s10837_s26  ;;  %v752_v58 = vpop.permute.xlu0 %751  ;;  %10455 = vmatprep.mubr.msk.bf16.mxu1 %vm319_vm0, %v10632_v52 }
  0xd8   : > { %846 = vst.msk [vmem:[#allocation3 + $0x18] sm:$0xf] %vm843_vm4, %v752_v58  ;;  %2243 = vrot.lane.b32.xlu0 %v11203_v32, %s10838_s18  ;;  %10456 = vmatmul.mubr.msk.bf16.gmra.mxu1 %vm319_vm0, %v10633_v19  ;;  %v444_v19 = vld [vmem:[#allocation2 + $0xd8] sm:$0xff] }
  0xd9   : > { %v2226_v10 = vpop.permute.xlu1 %2225 }
  0xda   : > { %2320 = vst.msk [vmem:[#allocation3 + $0x10] sm:$0xf] %vm1357_vm6, %v2226_v10 }
  0xdb   : > { %1283 = vrot.lane.b32.xlu1 %v11385_v5, %s10838_s18  ;;  %v1715_v5 = vpop.permute.xlu0 %1714  ;;  %v2543_v8 = vld [vmem:[#allocation3] sm:$0xff] }
  0xdc   : > { %1808 = vst.msk [vmem:[#allocation3 + $0x1c] sm:$0xf] %vm843_vm4, %v1715_v5  ;;  %771 = vrot.lane.b32.xlu0 %v11404_v6, %s10836_s25  ;;  %v1851_v6 = vld [vmem:[#allocation2 + $0xc0] sm:$0xff] }
  0xdd   : > { %v754_v4 = vpop.permute.xlu1 %753  ;;  %v1606_v37 = vld [vmem:[#allocation2 + $0x13a] sm:$0xff]  ;;  %v1607_v50 = vld [vmem:[#allocation2 + $0x142] sm:$0xff] }
  0xde   : > { %847 = vst.msk [vmem:[#allocation3 + $0x24] sm:$0xf] %vm843_vm4, %v754_v4  ;;  %v11534_v44 = vpack.c.bf16 %v1606_v37, %v1606_v37  ;;  %v11540_v9 = vpack.c.bf16 %v1607_v50, %v1607_v50  ;;  %v1853_v4 = vld [vmem:[#allocation2 + $0xd8] sm:$0xff] }
  0xdf   : > { %2245 = vrot.lane.b32.xlu1 %v11215_v38, %s10838_s18  ;;  %v1009_v22 = vpop.permute.xlu0 %1008 }
  0xe0   : > { %1103 = vst.msk [vmem:[#allocation3 + $0x18] sm:$0xf] %vm1100_vm5, %v1009_v22  ;;  %1734 = vrot.lane.b32.xlu0 %v11225_v42, %s10836_s25  ;;  %v443_v22 = vld [vmem:[#allocation2 + $0xc8] sm:$0xff] }
  0xe1   : > { %v1717_v43 = vpop.permute.xlu1 %1716  ;;  %v2545_v54 = vld [vmem:[#allocation3 + $0xc] sm:$0xff]  ;;  %2533 = vst.msk [vmem:[#allocation3 + $0x110] sm:$0xf] %vm586_vm3, %v11534_v44  ;;  %2534 = vst.msk [vmem:[#allocation3 + $0x11c] sm:$0xf] %vm586_vm3, %v11540_v9 }
  0xe2   : > { %v10611_v55 = vld [vmem:[#allocation3 + $0x4] ss:$12 sps:$4 sm:$0xff]   ;;  %1809 = vst.msk [vmem:[#allocation3 + $0x28] sm:$0xf] %vm843_vm4, %v1717_v43  ;;  %v9033_v59 = vcombine.low %v2543_v8, %v2545_v54 }
  0xe3   : > { %773 = vrot.lane.b32.xlu1 %v11412_v15, %s10836_s25  ;;  %3078 = vmatprep.mubr.bf16.mxu0 %v10611_v55  ;;  %v1972_v24 = vpop.permute.xlu0 %1971  ;;  %v11511_v15 = vpack.c.bf16 %v1851_v6, %v1851_v6  ;;  %v1854_v43 = vld [vmem:[#allocation2 + $0xe0] sm:$0xff] }
  0xe4   : > { %3079 = vmatmul.mubr.bf16.vlgmr.msra.gmra.mxu0 %v9033_v59  ;;  %2065 = vst.msk [vmem:[#allocation3 + $0x1c] sm:$0xf] %vm1100_vm5, %v1972_v24  ;;  %1028 = vrot.lane.b32.xlu0 %v11434_v26, %s10837_s26  ;;  %v442_v55 = vld [vmem:[#allocation2 + $0xc0] sm:$0xff]  ;;  %v2119_v59 = vld [vmem:[#allocation2 + $0x151] sm:$0xff]  ;;  %v9612_v24 = vpack.c.bf16 %v443_v22, %v443_v22 }
  0xe5   : > { %v1011_v60 = vpop.permute.xlu1 %1010  ;;  %v9611_v6 = vpack.c.bf16 %v442_v55, %v442_v55  ;;  %v10638_v55 = vld [vmem:[#allocation3 + $0xc8] ss:$12 sps:$4 sm:$0xff]  }
  0xe6   : > { %1104 = vst.msk [vmem:[#allocation3 + $0x24] sm:$0xf] %vm1100_vm5, %v1011_v60  ;;  %v11573_v60 = vpack.c.bf16 %v1854_v43, %v1854_v43  ;;  %v1611_v43 = vld [vmem:[#allocation2 + $0x172] sm:$0xff]  ;;  %10459 = vmatprep.mubr.msk.bf16.mxu1 %vm319_vm0, %v10638_v55 }
  0xe7   : > { %1736 = vrot.lane.b32.xlu1 %v11227_v45, %s10836_s25  ;;  %v1266_v1 = vpop.permute.xlu0 %1265  ;;  %603 = vst.msk [vmem:[#allocation3 + $0xc0] sm:$0xf] %vm586_vm3, %v9611_v6  ;;  %604 = vst.msk [vmem:[#allocation3 + $0xcc] sm:$0xf] %vm586_vm3, %v9612_v24 }
  0xe8   : > { %1360 = vst.msk [vmem:[#allocation3 + $0x18] sm:$0xf] %vm1357_vm6, %v1266_v1  ;;  %1991 = vrot.lane.b32.xlu0 %v11511_v15, %s10837_s26 }
  0xe9   : > { %v1974_v61 = vpop.permute.xlu1 %1973 }
  0xea   : > { %2066 = vst.msk [vmem:[#allocation3 + $0x28] sm:$0xf] %vm1100_vm5, %v1974_v61 }
  0xeb   : > { %1030 = vrot.lane.b32.xlu1 %v11160_v21, %s10837_s26  ;;  %v2228_v31 = vpop.permute.xlu0 %2227 }
  0xec   : > { %2321 = vst.msk [vmem:[#allocation3 + $0x1c] sm:$0xf] %vm1357_vm6, %v2228_v31  ;;  %1285 = vrot.lane.b32.xlu0 %v11449_v3, %s10838_s18  ;;  %v389_v3 = vld [vmem:[%s11015_s22 + $0xd8] sm:$0xff] }
  0xed   : > { %v1268_v26 = vpop.permute.xlu1 %1267  ;;  %421 = vst.msk [vmem:[#allocation2 + $0x159] sm:$0xff] %vm319_vm0, %v389_v3 }
  0xee   : > { %1361 = vst.msk [vmem:[#allocation3 + $0x24] sm:$0xf] %vm1357_vm6, %v1268_v26 }
  0xef   : > { %1993 = vrot.lane.b32.xlu1 %v11517_v13, %s10837_s26  ;;  %v756_v34 = vpop.permute.xlu0 %755 }
  0xf0   : > { %848 = vst.msk [vmem:[#allocation3 + $0x30] sm:$0xf] %vm843_vm4, %v756_v34  ;;  %2247 = vrot.lane.b32.xlu0 %v11253_v53, %s10838_s18 }
  0xf1   : > { %v2230_v21 = vpop.permute.xlu1 %2229 }
  0xf2   : > { %2322 = vst.msk [vmem:[#allocation3 + $0x28] sm:$0xf] %vm1357_vm6, %v2230_v21 }
  0xf3   : > { %1287 = vrot.lane.b32.xlu1 %v11455_v49, %s10838_s18  ;;  %v1719_v49 = vpop.permute.xlu0 %1718  ;;  %v2547_v58 = vld [vmem:[#allocation3 + $0x18] sm:$0xff] }
  0xf4   : > { %1810 = vst.msk [vmem:[#allocation3 + $0x34] sm:$0xf] %vm843_vm4, %v1719_v49  ;;  %775 = vrot.lane.b32.xlu0 %v11203_v32, %s10836_s25  ;;  %v2120_v25 = vld [vmem:[#allocation2 + $0x159] sm:$0xff] }
  0xf5   : > { %v758_v18 = vpop.permute.xlu1 %757  ;;  %v11581_v1 = vpack.c.bf16 %v2120_v25, %v2120_v25 }
  0xf6   : > { %849 = vst.msk [vmem:[#allocation3 + $0x3c] sm:$0xf] %vm843_vm4, %v758_v18  ;;  %v1856_v18 = vld [vmem:[#allocation2 + $0xf8] sm:$0xff] }
  0xf7   : > { %2249 = vrot.lane.b32.xlu1 %v11255_v57, %s10838_s18  ;;  %v1013_v47 = vpop.permute.xlu0 %1012  ;;  %1577 = vst.msk [vmem:[#allocation3 + $0x148] sm:$0xf] %vm586_vm3, %v11581_v1 }
  0xf8   : > { %1105 = vst.msk [vmem:[#allocation3 + $0x30] sm:$0xf] %vm1100_vm5, %v1013_v47  ;;  %1738 = vrot.lane.b32.xlu0 %v11262_v62, %s10836_s25 }
  0xf9   : > { %v1721_v10 = vpop.permute.xlu1 %1720  ;;  %v2549_v46 = vld [vmem:[#allocation3 + $0x24] sm:$0xff] }
  0xfa   : > { %v10616_v11 = vld [vmem:[#allocation3 + $0x1c] ss:$12 sps:$4 sm:$0xff]   ;;  %1811 = vst.msk [vmem:[#allocation3 + $0x40] sm:$0xf] %vm843_vm4, %v1721_v10  ;;  %v9036_v41 = vcombine.low %v2547_v58, %v2549_v46  ;;  %v445_v10 = vld [vmem:[#allocation2 + $0xe0] sm:$0xff]  ;;  %v11627_v58 = vpack.c.bf16 %v1856_v18, %v1856_v18  ;;  %v9613_v46 = vpack.c.bf16 %v444_v19, %v444_v19 }
  0xfb   : > { %777 = vrot.lane.b32.xlu1 %v11215_v38, %s10836_s25  ;;  %3086 = vmatprep.mubr.bf16.mxu0 %v10616_v11  ;;  %v1976_v5 = vpop.permute.xlu0 %1975  ;;  %v11567_v38 = vpack.c.bf16 %v1853_v4, %v1853_v4  ;;  %v9614_v11 = vpack.c.bf16 %v445_v10, %v445_v10  ;;  %v392_v4 = vld [vmem:[%s11015_s22 + $0xf0] sm:$0xff] }
  0xfc   : > { %3087 = vmatmul.mubr.bf16.gmra.mxu0 %v9036_v41  ;;  %2067 = vst.msk [vmem:[#allocation3 + $0x34] sm:$0xf] %vm1100_vm5, %v1976_v5  ;;  %1032 = vrot.lane.b32.xlu0 %v11225_v42, %s10837_s26  ;;  %v11575_v42 = vpack.c.bf16 %v2119_v59, %v2119_v59  ;;  %v10639_v59 = vld [vmem:[#allocation3 + $0xe0] ss:$12 sps:$4 sm:$0xff]  }
  0xfd   : > { %v1015_v32 = vpop.permute.xlu1 %1014  ;;  %605 = vst.msk [vmem:[#allocation3 + $0xd8] sm:$0xf] %vm586_vm3, %v9613_v46  ;;  %606 = vst.msk [vmem:[#allocation3 + $0xe4] sm:$0xf] %vm586_vm3, %v9614_v11  ;;  %10460 = vmatmul.mubr.msk.bf16.gmra.mxu1 %vm319_vm0, %v10639_v59  ;;  %v10644_v59 = vld [vmem:[#allocation3 + $0xf8] ss:$12 sps:$4 sm:$0xff]  }
  0xfe   : > { %1106 = vst.msk [vmem:[#allocation3 + $0x3c] sm:$0xf] %vm1100_vm5, %v1015_v32  ;;  %v1610_v32 = vld [vmem:[#allocation2 + $0x16a] sm:$0xff]  ;;  %10463 = vmatprep.mubr.msk.bf16.mxu1 %vm319_vm0, %v10644_v59 }
  0xff   : > { %1740 = vrot.lane.b32.xlu1 %v11270_v0, %s10836_s25  ;;  %v1270_v54 = vpop.permute.xlu0 %1269  ;;  %1576 = vst.msk [vmem:[#allocation3 + $0x13c] sm:$0xf] %vm586_vm3, %v11575_v42  ;;  %v11644_v5 = vpack.c.bf16 %v1610_v32, %v1610_v32  ;;  %v449_v32 = vld [vmem:[#allocation2 + $0x110] sm:$0xff] }
 0x100   : > { %1362 = vst.msk [vmem:[#allocation3 + $0x30] sm:$0xf] %vm1357_vm6, %v1270_v54  ;;  %1995 = vrot.lane.b32.xlu0 %v11567_v38, %s10837_s26  ;;  %v11650_v54 = vpack.c.bf16 %v1611_v43, %v1611_v43 }
 0x101   : > { %v1978_v8 = vpop.permute.xlu1 %1977  ;;  %424 = vst.msk [vmem:[#allocation2 + $0x181] sm:$0xff] %vm319_vm0, %v392_v4 }
 0x102   : > { %2068 = vst.msk [vmem:[#allocation3 + $0x40] sm:$0xf] %vm1100_vm5, %v1978_v8 }
 0x103   : > { %1034 = vrot.lane.b32.xlu1 %v11227_v45, %s10837_s26  ;;  %v2232_v45 = vpop.permute.xlu0 %2231  ;;  %2537 = vst.msk [vmem:[#allocation3 + $0x140] sm:$0xf] %vm586_vm3, %v11644_v5  ;;  %2538 = vst.msk [vmem:[#allocation3 + $0x14c] sm:$0xf] %vm586_vm3, %v11650_v54 }
 0x104   : > { %2323 = vst.msk [vmem:[#allocation3 + $0x34] sm:$0xf] %vm1357_vm6, %v2232_v45  ;;  %1289 = vrot.lane.b32.xlu0 %v11511_v15, %s10838_s18 }
 0x105   : > { %v1272_v61 = vpop.permute.xlu1 %1271 }
 0x106   : > { %1363 = vst.msk [vmem:[#allocation3 + $0x3c] sm:$0xf] %vm1357_vm6, %v1272_v61 }
 0x107   : > { %1997 = vrot.lane.b32.xlu1 %v11573_v60, %s10837_s26  ;;  %v760_v28 = vpop.permute.xlu0 %759 }
 0x108   : > { %850 = vst.msk [vmem:[#allocation3 + $0x48] sm:$0xf] %vm843_vm4, %v760_v28  ;;  %2251 = vrot.lane.b32.xlu0 %v11291_v48, %s10838_s18 }
 0x109   : > { %v2234_v27 = vpop.permute.xlu1 %2233 }
 0x10a   : > { %2324 = vst.msk [vmem:[#allocation3 + $0x40] sm:$0xf] %vm1357_vm6, %v2234_v27  ;;  %v1857_v27 = vld [vmem:[#allocation2 + $0x108] sm:$0xff] }
 0x10b   : > { %1291 = vrot.lane.b32.xlu1 %v11517_v13, %s10838_s18  ;;  %v1723_v15 = vpop.permute.xlu0 %1722  ;;  %v2551_v31 = vld [vmem:[#allocation3 + $0x30] sm:$0xff] }
 0x10c   : > { %1812 = vst.msk [vmem:[#allocation3 + $0x4c] sm:$0xf] %vm843_vm4, %v1723_v15  ;;  %779 = vrot.lane.b32.xlu0 %v11253_v53, %s10836_s25  ;;  %v1855_v53 = vld [vmem:[#allocation2 + $0xf0] sm:$0xff] }
 0x10d   : > { %v762_v26 = vpop.permute.xlu1 %761  ;;  %v446_v15 = vld [vmem:[#allocation2 + $0xf0] sm:$0xff] }
 0x10e   : > { %851 = vst.msk [vmem:[#allocation3 + $0x54] sm:$0xf] %vm843_vm4, %v762_v26 }
 0x10f   : > { %2253 = vrot.lane.b32.xlu1 %v11294_v12, %s10838_s18  ;;  %v1017_v37 = vpop.permute.xlu0 %1016 }
 0x110   : > { %1107 = vst.msk [vmem:[#allocation3 + $0x48] sm:$0xf] %vm1100_vm5, %v1017_v37  ;;  %1742 = vrot.lane.b32.xlu0 %v11306_v14, %s10836_s25 }
 0x111   : > { %v1725_v13 = vpop.permute.xlu1 %1724  ;;  %v2553_v21 = vld [vmem:[#allocation3 + $0x3c] sm:$0xff] }
 0x112   : > { %v10618_v34 = vld [vmem:[#allocation3 + $0x34] ss:$12 sps:$4 sm:$0xff]   ;;  %1813 = vst.msk [vmem:[#allocation3 + $0x58] sm:$0xf] %vm843_vm4, %v1725_v13  ;;  %v9039_v40 = vcombine.low %v2551_v31, %v2553_v21  ;;  %v447_v13 = vld [vmem:[#allocation2 + $0xf8] sm:$0xff]  ;;  %v11683_v21 = vpack.c.bf16 %v1858_v2, %v1858_v2 }
 0x113   : > { %781 = vrot.lane.b32.xlu1 %v11255_v57, %s10836_s25  ;;  %3094 = vmatprep.mubr.bf16.mxu0 %v10618_v34  ;;  %v1980_v3 = vpop.permute.xlu0 %1979  ;;  %v11621_v57 = vpack.c.bf16 %v1855_v53, %v1855_v53  ;;  %v2123_v31 = vld [vmem:[#allocation2 + $0x181] sm:$0xff]  ;;  %v9615_v34 = vpack.c.bf16 %v446_v15, %v446_v15  ;;  %v9616_v37 = vpack.c.bf16 %v447_v13, %v447_v13 }
 0x114   : > { %3095 = vmatmul.mubr.bf16.gmra.mxu0 %v9039_v40  ;;  %2069 = vst.msk [vmem:[#allocation3 + $0x4c] sm:$0xf] %vm1100_vm5, %v1980_v3  ;;  %1036 = vrot.lane.b32.xlu0 %v11262_v62, %s10837_s26  ;;  %v1862_v2 = vld [vmem:[#allocation2 + $0x140] sm:$0xff]  ;;  %v451_v13 = vld [vmem:[#allocation2 + $0x128] sm:$0xff] }
 0x115   : > { %v1019_v50 = vpop.permute.xlu1 %1018  ;;  %607 = vst.msk [vmem:[#allocation3 + $0xf0] sm:$0xf] %vm586_vm3, %v9615_v34  ;;  %608 = vst.msk [vmem:[#allocation3 + $0xfc] sm:$0xf] %vm586_vm3, %v9616_v37  ;;  %v450_v15 = vld [vmem:[#allocation2 + $0x120] sm:$0xff]  ;;  %v9620_v34 = vpack.c.bf16 %v451_v13, %v451_v13  ;;  %v1865_v13 = vld [vmem:[#allocation2 + $0x168] sm:$0xff] }
 0x116   : > { %1108 = vst.msk [vmem:[#allocation3 + $0x54] sm:$0xf] %vm1100_vm5, %v1019_v50  ;;  %v2117_v37 = vld [vmem:[#allocation2 + $0x139] sm:$0xff] }
 0x117   : > { %1744 = vrot.lane.b32.xlu1 %v11312_v20, %s10836_s25  ;;  %v1274_v49 = vpop.permute.xlu0 %1273  ;;  %612 = vst.msk [vmem:[#allocation3 + $0x12c] sm:$0xf] %vm586_vm3, %v9620_v34  ;;  %v1866_v34 = vld [vmem:[#allocation2 + $0x170] sm:$0xff] }
 0x118   : > { %1364 = vst.msk [vmem:[#allocation3 + $0x48] sm:$0xf] %vm1357_vm6, %v1274_v49  ;;  %1999 = vrot.lane.b32.xlu0 %v11621_v57, %s10837_s26 }
 0x119   : > { %v1982_v52 = vpop.permute.xlu1 %1981 }
 0x11a   : > { %2070 = vst.msk [vmem:[#allocation3 + $0x58] sm:$0xf] %vm1100_vm5, %v1982_v52 }
 0x11b   : > { %1038 = vrot.lane.b32.xlu1 %v11270_v0, %s10837_s26  ;;  %v2236_v47 = vpop.permute.xlu0 %2235 }
 0x11c   : > { %2325 = vst.msk [vmem:[#allocation3 + $0x4c] sm:$0xf] %vm1357_vm6, %v2236_v47  ;;  %1293 = vrot.lane.b32.xlu0 %v11567_v38, %s10838_s18  ;;  %v393_v38 = vld [vmem:[%s11015_s22 + $0xf8] sm:$0xff]  ;;  %s14452_s22 = sld [smem:[#allocation5 + $0x2e]] }
 0x11d   : > { %v1276_v62 = vpop.permute.xlu1 %1275  ;;  %425 = vst.msk [vmem:[#allocation2 + $0x189] sm:$0xff] %vm319_vm0, %v393_v38  ;;  %v9618_v38 = vpack.c.bf16 %v449_v32, %v449_v32 }
 0x11e   : > { %1365 = vst.msk [vmem:[#allocation3 + $0x54] sm:$0xf] %vm1357_vm6, %v1276_v62  ;;  %v1860_v62 = vld [vmem:[#allocation2 + $0x128] sm:$0xff] }
 0x11f   : > { %2001 = vrot.lane.b32.xlu1 %v11627_v58, %s10837_s26  ;;  %v764_v41 = vpop.permute.xlu0 %763  ;;  %v11729_v4 = vpack.c.bf16 %v1860_v62, %v1860_v62  ;;  %610 = vst.msk [vmem:[#allocation3 + $0x114] sm:$0xf] %vm586_vm3, %v9618_v38  ;;  %v452_v38 = vld [vmem:[#allocation2 + $0x138] sm:$0xff] }
 0x120   : > { %852 = vst.msk [vmem:[#allocation3 + $0x60] sm:$0xf] %vm843_vm4, %v764_v41  ;;  %2255 = vrot.lane.b32.xlu0 %v11339_v29, %s10838_s18  ;;  %v448_v41 = vld [vmem:[#allocation2 + $0x108] sm:$0xff] }
 0x121   : > { %v2238_v0 = vpop.permute.xlu1 %2237  ;;  %v9617_v43 = vpack.c.bf16 %v448_v41, %v448_v41  ;;  %v1864_v41 = vld [vmem:[#allocation2 + $0x158] sm:$0xff] }
 0x122   : > { %2326 = vst.msk [vmem:[#allocation3 + $0x58] sm:$0xf] %vm1357_vm6, %v2238_v0 }
 0x123   : > { %1295 = vrot.lane.b32.xlu1 %v11573_v60, %s10838_s18  ;;  %v1727_v22 = vpop.permute.xlu0 %1726  ;;  %v2555_v6 = vld [vmem:[#allocation3 + $0x48] sm:$0xff]  ;;  %609 = vst.msk [vmem:[#allocation3 + $0x108] sm:$0xf] %vm586_vm3, %v9617_v43  ;;  %v11821_v43 = vpack.c.bf16 %v1864_v41, %v1864_v41 }
 0x124   : > { %1814 = vst.msk [vmem:[#allocation3 + $0x64] sm:$0xf] %vm843_vm4, %v1727_v22  ;;  %783 = vrot.lane.b32.xlu0 %v11291_v48, %s10836_s25 }
 0x125   : > { %v766_v8 = vpop.permute.xlu1 %765 }
 0x126   : > { %853 = vst.msk [vmem:[#allocation3 + $0x6c] sm:$0xf] %vm843_vm4, %v766_v8 }
 0x127   : > { %2257 = vrot.lane.b32.xlu1 %v11345_v30, %s10838_s18  ;;  %v1021_v61 = vpop.permute.xlu0 %1020 }
 0x128   : > { %1109 = vst.msk [vmem:[#allocation3 + $0x60] sm:$0xf] %vm1100_vm5, %v1021_v61  ;;  %1746 = vrot.lane.b32.xlu0 %v11356_v33, %s10836_s25 }
 0x129   : > { %v1729_v60 = vpop.permute.xlu1 %1728  ;;  %v2557_v24 = vld [vmem:[#allocation3 + $0x54] sm:$0xff] }
 0x12a   : > { %v10622_v25 = vld [vmem:[#allocation3 + $0x4c] ss:$12 sps:$4 sm:$0xff]   ;;  %1815 = vst.msk [vmem:[#allocation3 + $0x70] sm:$0xf] %vm843_vm4, %v1729_v60  ;;  %v9042_v45 = vcombine.low %v2555_v6, %v2557_v24  ;;  %v10645_v6 = vld [vmem:[#allocation3 + $0x110] ss:$12 sps:$4 sm:$0xff]  }
 0x12b   : > { %785 = vrot.lane.b32.xlu1 %v11294_v12, %s10836_s25  ;;  %3102 = vmatprep.mubr.bf16.mxu0 %v10622_v25  ;;  %v1984_v28 = vpop.permute.xlu0 %1983  ;;  %v11677_v12 = vpack.c.bf16 %v1857_v27, %v1857_v27 }
 0x12c   : > { %3103 = vmatmul.mubr.bf16.gmra.mxu0 %v9042_v45  ;;  %2071 = vst.msk [vmem:[#allocation3 + $0x64] sm:$0xf] %vm1100_vm5, %v1984_v28  ;;  %1040 = vrot.lane.b32.xlu0 %v11306_v14, %s10837_s26  ;;  %v11685_v14 = vpack.c.bf16 %v2123_v31, %v2123_v31  ;;  %v1861_v28 = vld [vmem:[#allocation2 + $0x138] sm:$0xff]  ;;  %v11773_v31 = vpack.c.bf16 %v1862_v2, %v1862_v2 }
 0x12d   : > { %v1023_v48 = vpop.permute.xlu1 %1022  ;;  %10464 = vmatmul.mubr.msk.bf16.gmra.mxu1 %vm319_vm0, %v10645_v6 }
 0x12e   : > { %1110 = vst.msk [vmem:[#allocation3 + $0x6c] sm:$0xf] %vm1100_vm5, %v1023_v48 }
 0x12f   : > { %1748 = vrot.lane.b32.xlu1 %v11362_v39, %s10836_s25  ;;  %v1278_v26 = vpop.permute.xlu0 %1277  ;;  %1580 = vst.msk [vmem:[#allocation3 + $0x16c] sm:$0xf] %vm586_vm3, %v11685_v14 }
 0x130   : > { %1366 = vst.msk [vmem:[#allocation3 + $0x60] sm:$0xf] %vm1357_vm6, %v1278_v26  ;;  %2003 = vrot.lane.b32.xlu0 %v11677_v12, %s10837_s26 }
 0x131   : > { %v1986_v17 = vpop.permute.xlu1 %1985 }
 0x132   : > { %2072 = vst.msk [vmem:[#allocation3 + $0x70] sm:$0xf] %vm1100_vm5, %v1986_v17 }
 0x133   : > { %1042 = vrot.lane.b32.xlu1 %v11312_v20, %s10837_s26  ;;  %v2240_v20 = vpop.permute.xlu0 %2239 }
 0x134   : > { %2327 = vst.msk [vmem:[#allocation3 + $0x64] sm:$0xf] %vm1357_vm6, %v2240_v20  ;;  %1297 = vrot.lane.b32.xlu0 %v11621_v57, %s10838_s18  ;;  %v1414_v20 = vld [vmem:[#allocation2 + $0x139] sm:$0xff] }
 0x135   : > { %v1280_v40 = vpop.permute.xlu1 %1279 }
 0x136   : > { %1367 = vst.msk [vmem:[#allocation3 + $0x6c] sm:$0xf] %vm1357_vm6, %v1280_v40 }
 0x137   : > { %2005 = vrot.lane.b32.xlu1 %v11683_v21, %s10837_s26  ;;  %v768_v53 = vpop.permute.xlu0 %767 }
 0x138   : > { %854 = vst.msk [vmem:[#allocation3 + $0x78] sm:$0xf] %vm843_vm4, %v768_v53  ;;  %2259 = vrot.lane.b32.xlu0 %v11387_v35, %s10838_s18 }
 0x139   : > { %v2242_v50 = vpop.permute.xlu1 %2241 }
 0x13a   : > { %2328 = vst.msk [vmem:[#allocation3 + $0x70] sm:$0xf] %vm1357_vm6, %v2242_v50  ;;  %v9747_v50 = vpack.c.bf16 %v1414_v20, %v1414_v20  ;;  %v454_v20 = vld [vmem:[#allocation2 + $0x150] sm:$0xff] }
 0x13b   : > { %1299 = vrot.lane.b32.xlu1 %v11627_v58, %s10838_s18  ;;  %v1731_v18 = vpop.permute.xlu0 %1730  ;;  %v2559_v52 = vld [vmem:[#allocation3 + $0x60] sm:$0xff] }
 0x13c   : > { %1816 = vst.msk [vmem:[#allocation3 + $0x7c] sm:$0xf] %vm843_vm4, %v1731_v18  ;;  %787 = vrot.lane.b32.xlu0 %v11339_v29, %s10836_s25  ;;  %v1859_v29 = vld [vmem:[#allocation2 + $0x120] sm:$0xff] }
 0x13d   : > { %v770_v3 = vpop.permute.xlu1 %769  ;;  %v2118_v18 = vld [vmem:[#allocation2 + $0x141] sm:$0xff]  ;;  %1574 = vst.msk [vmem:[#allocation3 + $0x124] sm:$0xf] %vm586_vm3, %v9747_v50 }
 0x13e   : > { %855 = vst.msk [vmem:[#allocation3 + $0x84] sm:$0xf] %vm843_vm4, %v770_v3  ;;  %v11785_v3 = vpack.c.bf16 %v2117_v37, %v2117_v37 }
 0x13f   : > { %2261 = vrot.lane.b32.xlu1 %v11393_v36, %s10838_s18  ;;  %v1025_v10 = vpop.permute.xlu0 %1024 }
 0x140   : > { %1111 = vst.msk [vmem:[#allocation3 + $0x78] sm:$0xf] %vm1100_vm5, %v1025_v10  ;;  %1750 = vrot.lane.b32.xlu0 %v11414_v16, %s10836_s25 }
 0x141   : > { %v1733_v57 = vpop.permute.xlu1 %1732  ;;  %v2561_v49 = vld [vmem:[#allocation3 + $0x6c] sm:$0xff] }
 0x142   : > { %v10624_v19 = vld [vmem:[#allocation3 + $0x64] ss:$12 sps:$4 sm:$0xff]   ;;  %1817 = vst.msk [vmem:[#allocation3 + $0x88] sm:$0xf] %vm843_vm4, %v1733_v57  ;;  %v9045_v58 = vcombine.low %v2559_v52, %v2561_v49  ;;  %v11793_v49 = vpack.c.bf16 %v2118_v18, %v2118_v18 }
 0x143   : > { %789 = vrot.lane.b32.xlu1 %v11345_v30, %s10836_s25  ;;  %3110 = vmatprep.mubr.bf16.mxu0 %v10624_v19  ;;  %v1988_v11 = vpop.permute.xlu0 %1987  ;;  %v11723_v30 = vpack.c.bf16 %v1859_v29, %v1859_v29 }
 0x144   : > { %3111 = vmatmul.mubr.bf16.gmra.mxu0 %v9045_v58  ;;  %2073 = vst.msk [vmem:[#allocation3 + $0x7c] sm:$0xf] %vm1100_vm5, %v1988_v11  ;;  %1044 = vrot.lane.b32.xlu0 %v11356_v33, %s10837_s26 }
 0x145   : > { %v1027_v46 = vpop.permute.xlu1 %1026 }
 0x146   : > { %1112 = vst.msk [vmem:[#allocation3 + $0x84] sm:$0xf] %vm1100_vm5, %v1027_v46 }
 0x147   : > { %1752 = vrot.lane.b32.xlu1 %v11420_v23, %s10836_s25  ;;  %v1282_v0 = vpop.permute.xlu0 %1281 }
 0x148   : > { %1368 = vst.msk [vmem:[#allocation3 + $0x78] sm:$0xf] %vm1357_vm6, %v1282_v0  ;;  %2007 = vrot.lane.b32.xlu0 %v11723_v30, %s10837_s26 }
 0x149   : > { %v1990_v47 = vpop.permute.xlu1 %1989 }
 0x14a   : > { %2074 = vst.msk [vmem:[#allocation3 + $0x88] sm:$0xf] %vm1100_vm5, %v1990_v47 }
 0x14b   : > { %1046 = vrot.lane.b32.xlu1 %v11362_v39, %s10837_s26  ;;  %v2244_v8 = vpop.permute.xlu0 %2243 }
 0x14c   : > { %2329 = vst.msk [vmem:[#allocation3 + $0x7c] sm:$0xf] %vm1357_vm6, %v2244_v8  ;;  %1301 = vrot.lane.b32.xlu0 %v11677_v12, %s10838_s18  ;;  %v9621_v8 = vpack.c.bf16 %v452_v38, %v452_v38  ;;  %v1867_v38 = vld [vmem:[#allocation2 + $0x180] sm:$0xff] }
 0x14d   : > { %v1284_v33 = vpop.permute.xlu1 %1283 }
 0x14e   : > { %1369 = vst.msk [vmem:[#allocation3 + $0x84] sm:$0xf] %vm1357_vm6, %v1284_v33  ;;  %v453_v33 = vld [vmem:[#allocation2 + $0x140] sm:$0xff] }
 0x14f   : > { %2009 = vrot.lane.b32.xlu1 %v11729_v4, %s10837_s26  ;;  %v772_v55 = vpop.permute.xlu0 %771  ;;  %613 = vst.msk [vmem:[#allocation3 + $0x138] sm:$0xf] %vm586_vm3, %v9621_v8  ;;  %v11914_v8 = vld [vmem:[%s15619_s2] ss:$0 sm:$0xff] }
 0x150   : > { %856 = vst.msk [vmem:[#allocation3 + $0x90] sm:$0xf] %vm843_vm4, %v772_v55  ;;  %2263 = vrot.lane.b32.xlu0 %v11457_v51, %s10838_s18  ;;  %v2375_v55 = vld [vmem:[#allocation2 + $0x152] sm:$0xff] }
 0x151   : > { %v2246_v39 = vpop.permute.xlu1 %2245  ;;  %v9875_v59 = vpack.c.bf16 %v2375_v55, %v2375_v55 }
 0x152   : > { %2330 = vst.msk [vmem:[#allocation3 + $0x88] sm:$0xf] %vm1357_vm6, %v2246_v39  ;;  %v9622_v39 = vpack.c.bf16 %v453_v33, %v453_v33 }
 0x153   : > { %1303 = vrot.lane.b32.xlu1 %v11683_v21, %s10838_s18  ;;  %v1735_v60 = vpop.permute.xlu0 %1734  ;;  %v2563_v25 = vld [vmem:[#allocation3 + $0x78] sm:$0xff]  ;;  %v9619_v21 = vpack.c.bf16 %v450_v15, %v450_v15  ;;  %2535 = vst.msk [vmem:[#allocation3 + $0x128] sm:$0xf] %vm586_vm3, %v9875_v59 }
 0x154   : > { %1818 = vst.msk [vmem:[#allocation3 + $0x94] sm:$0xf] %vm843_vm4, %v1735_v60  ;;  %791 = vrot.lane.b32.xlu0 %v11387_v35, %s10836_s25  ;;  %v1868_v59 = vld [vmem:[#allocation2 + $0x188] sm:$0xff] }
 0x155   : > { %v774_v22 = vpop.permute.xlu1 %773  ;;  %611 = vst.msk [vmem:[#allocation3 + $0x120] sm:$0xf] %vm586_vm3, %v9619_v21  ;;  %614 = vst.msk [vmem:[#allocation3 + $0x144] sm:$0xf] %vm586_vm3, %v9622_v39  ;;  %v11866_v21 = vpack.c.bf16 %v1865_v13, %v1865_v13 }
 0x156   : > { %857 = vst.msk [vmem:[#allocation3 + $0x9c] sm:$0xf] %vm843_vm4, %v774_v22 }
 0x157   : > { %2265 = vrot.lane.b32.xlu1 %v11463_v56, %s10838_s18  ;;  %v1029_v48 = vpop.permute.xlu0 %1028 }
 0x158   : > { %1113 = vst.msk [vmem:[#allocation3 + $0x90] sm:$0xf] %vm1100_vm5, %v1029_v48  ;;  %1754 = vrot.lane.b32.xlu0 %v11480_v63, %s10836_s25 }
 0x159   : > { %v1737_v24 = vpop.permute.xlu1 %1736  ;;  %v2565_v61 = vld [vmem:[#allocation3 + $0x84] sm:$0xff] }
 0x15a   : > { %v10628_v45 = vld [vmem:[#allocation3 + $0x7c] ss:$12 sps:$4 sm:$0xff]   ;;  %1819 = vst.msk [vmem:[#allocation3 + $0xa0] sm:$0xf] %vm843_vm4, %v1737_v24  ;;  %v9048_v27 = vcombine.low %v2563_v25, %v2565_v61 }
 0x15b   : > { %793 = vrot.lane.b32.xlu1 %v11393_v36, %s10836_s25  ;;  %3118 = vmatprep.mubr.bf16.mxu0 %v10628_v45  ;;  %v1992_v12 = vpop.permute.xlu0 %1991  ;;  %v11767_v36 = vpack.c.bf16 %v1861_v28, %v1861_v28  ;;  %v1608_v61 = vld [vmem:[#allocation2 + $0x152] sm:$0xff] }
 0x15c   : > { %3119 = vmatmul.mubr.bf16.gmra.mxu0 %v9048_v27  ;;  %2075 = vst.msk [vmem:[#allocation3 + $0x94] sm:$0xf] %vm1100_vm5, %v1992_v12  ;;  %1048 = vrot.lane.b32.xlu0 %v11414_v16, %s10837_s26  ;;  %v10651_v27 = vld [vmem:[#allocation3 + $0x140] ss:$12 sps:$4 sm:$0xff]  }
 0x15d   : > { %v1031_v35 = vpop.permute.xlu1 %1030 }
 0x15e   : > { %1114 = vst.msk [vmem:[#allocation3 + $0x9c] sm:$0xf] %vm1100_vm5, %v1031_v35  ;;  %v11850_v35 = vpack.c.bf16 %v1608_v61, %v1608_v61 }
 0x15f   : > { %1756 = vrot.lane.b32.xlu1 %v11486_v7, %s10836_s25  ;;  %v1286_v26 = vpop.permute.xlu0 %1285 }
 0x160   : > { %1370 = vst.msk [vmem:[#allocation3 + $0x90] sm:$0xf] %vm1357_vm6, %v1286_v26  ;;  %2011 = vrot.lane.b32.xlu0 %v11767_v36, %s10837_s26 }
 0x161   : > { %v1994_v17 = vpop.permute.xlu1 %1993 }
 0x162   : > { %2076 = vst.msk [vmem:[#allocation3 + $0xa0] sm:$0xf] %vm1100_vm5, %v1994_v17 }
 0x163   : > { %1050 = vrot.lane.b32.xlu1 %v11420_v23, %s10837_s26  ;;  %v2248_v40 = vpop.permute.xlu0 %2247  ;;  %v1415_v23 = vld [vmem:[#allocation2 + $0x141] sm:$0xff] }
 0x164   : > { %2331 = vst.msk [vmem:[#allocation3 + $0x94] sm:$0xf] %vm1357_vm6, %v2248_v40  ;;  %v9748_v53 = vpack.c.bf16 %v1415_v23, %v1415_v23  ;;  %1305 = vrot.lane.b32.xlu0 %v11723_v30, %s10838_s18  ;;  %v11872_v40 = vpack.c.bf16 %v1866_v34, %v1866_v34  ;;  %v455_v23 = vld [vmem:[#allocation2 + $0x158] sm:$0xff] }
 0x165   : > { %v1288_v16 = vpop.permute.xlu1 %1287  ;;  %v9624_v50 = vpack.c.bf16 %v455_v23, %v455_v23  ;;  %v2381_v34 = vld [vmem:[#allocation2 + $0x19a] sm:$0xff] }
 0x166   : > { %1371 = vst.msk [vmem:[#allocation3 + $0x9c] sm:$0xf] %vm1357_vm6, %v1288_v16 }
 0x167   : > { %2013 = vrot.lane.b32.xlu1 %v11773_v31, %s10837_s26  ;;  %1575 = vst.msk [vmem:[#allocation3 + $0x130] sm:$0xf] %vm586_vm3, %v9748_v53  ;;  %v776_v52 = vpop.permute.xlu0 %775  ;;  %616 = vst.msk [vmem:[#allocation3 + $0x15c] sm:$0xf] %vm586_vm3, %v9624_v50  ;;  %v1421_v50 = vld [vmem:[#allocation2 + $0x189] sm:$0xff] }
 0x168   : > { %858 = vst.msk [vmem:[#allocation3 + $0xa8] sm:$0xf] %vm843_vm4, %v776_v52  ;;  %2267 = vrot.lane.b32.xlu0 %v11785_v3, %s10838_s18  ;;  %v1419_v52 = vld [vmem:[#allocation2 + $0x171] sm:$0xff] }
 0x169   : > { %v2250_v57 = vpop.permute.xlu1 %2249 }
 0x16a   : > { %2332 = vst.msk [vmem:[#allocation3 + $0xa0] sm:$0xf] %vm1357_vm6, %v2250_v57 }
 0x16b   : > { %1307 = vrot.lane.b32.xlu1 %v11729_v4, %s10838_s18  ;;  %v1739_v10 = vpop.permute.xlu0 %1738  ;;  %v2567_v46 = vld [vmem:[#allocation3 + $0x90] sm:$0xff] }
 0x16c   : > { %1820 = vst.msk [vmem:[#allocation3 + $0xac] sm:$0xf] %vm843_vm4, %v1739_v10  ;;  %795 = vrot.lane.b32.xlu0 %v11457_v51, %s10836_s25  ;;  %v1863_v51 = vld [vmem:[#allocation2 + $0x150] sm:$0xff]  ;;  %v9752_v10 = vpack.c.bf16 %v1419_v52, %v1419_v52 }
 0x16d   : > { %v778_v19 = vpop.permute.xlu1 %777 }
 0x16e   : > { %859 = vst.msk [vmem:[#allocation3 + $0xb4] sm:$0xf] %vm843_vm4, %v778_v19  ;;  %v2122_v19 = vld [vmem:[#allocation2 + $0x171] sm:$0xff] }
 0x16f   : > { %2269 = vrot.lane.b32.xlu1 %v11793_v49, %s10838_s18  ;;  %v1033_v30 = vpop.permute.xlu0 %1032  ;;  %1579 = vst.msk [vmem:[#allocation3 + $0x160] sm:$0xf] %vm586_vm3, %v9752_v10 }
 0x170   : > { %1115 = vst.msk [vmem:[#allocation3 + $0xa8] sm:$0xf] %vm1100_vm5, %v1033_v30  ;;  %1758 = vrot.lane.b32.xlu0 %v11534_v44, %s10836_s25 }
 0x171   : > { %v1741_v58 = vpop.permute.xlu1 %1740  ;;  %v2569_v29 = vld [vmem:[#allocation3 + $0x9c] sm:$0xff] }
 0x172   : > { %v10630_v11 = vld [vmem:[#allocation3 + $0x94] ss:$12 sps:$4 sm:$0xff]   ;;  %1821 = vst.msk [vmem:[#allocation3 + $0xb8] sm:$0xf] %vm843_vm4, %v1741_v58  ;;  %v9051_v62 = vcombine.low %v2567_v46, %v2569_v29  ;;  %v11892_v29 = vpack.c.bf16 %v2122_v19, %v2122_v19 }
 0x173   : > { %797 = vrot.lane.b32.xlu1 %v11463_v56, %s10836_s25  ;;  %3126 = vmatprep.mubr.bf16.mxu0 %v10630_v11  ;;  %v1996_v0 = vpop.permute.xlu0 %1995  ;;  %v11815_v56 = vpack.c.bf16 %v1863_v51, %v1863_v51  ;;  %v1612_v19 = vld [vmem:[#allocation2 + $0x182] sm:$0xff] }
 0x174   : > { %3127 = vmatmul.mubr.bf16.gmra.mxu0 %v9051_v62  ;;  %2077 = vst.msk [vmem:[#allocation3 + $0xac] sm:$0xf] %vm1100_vm5, %v1996_v0  ;;  %1052 = vrot.lane.b32.xlu0 %v11480_v63, %s10837_s26  ;;  %v1609_v63 = vld [vmem:[#allocation2 + $0x15a] sm:$0xff]  ;;  %v11902_v62 = vpop.f32.mrf.mxu1 }
 0x175   : > { %v1035_v47 = vpop.permute.xlu1 %1034  ;;  %v11825_v60 = vpack.c.bf16 %v1609_v63, %v1609_v63 }
 0x176   : > { %1116 = vst.msk [vmem:[#allocation3 + $0xb4] sm:$0xf] %vm1100_vm5, %v1035_v47 }
 0x177   : > { %1760 = vrot.lane.b32.xlu1 %v11540_v9, %s10836_s25  ;;  %v1290_v4 = vpop.permute.xlu0 %1289  ;;  %2536 = vst.msk [vmem:[#allocation3 + $0x134] sm:$0xf] %vm586_vm3, %v11825_v60 }
 0x178   : > { %1372 = vst.msk [vmem:[#allocation3 + $0xa8] sm:$0xf] %vm1357_vm6, %v1290_v4  ;;  %2015 = vrot.lane.b32.xlu0 %v11815_v56, %s10837_s26 }
 0x179   : > { %v1998_v32 = vpop.permute.xlu1 %1997 }
 0x17a   : > { %2078 = vst.msk [vmem:[#allocation3 + $0xb8] sm:$0xf] %vm1100_vm5, %v1998_v32 }
 0x17b   : > { %1054 = vrot.lane.b32.xlu1 %v11486_v7, %s10837_s26  ;;  %v2252_v7 = vpop.permute.xlu0 %2251 }
 0x17c   : > { %2333 = vst.msk [vmem:[#allocation3 + $0xac] sm:$0xf] %vm1357_vm6, %v2252_v7  ;;  %1309 = vrot.lane.b32.xlu0 %v11767_v36, %s10838_s18 }
 0x17d   : > { %v1292_v22 = vpop.permute.xlu1 %1291 }
 0x17e   : > { %1373 = vst.msk [vmem:[#allocation3 + $0xb4] sm:$0xf] %vm1357_vm6, %v1292_v22  ;;  %v10650_v48 = vld [vmem:[#allocation3 + $0x128] ss:$12 sps:$4 sm:$0xff]   ;;  %v11923_v22 = vpack.c.bf16 %v1867_v38, %v1867_v38 }
 0x17f   : > { %2017 = vrot.lane.b32.xlu1 %v11821_v43, %s10837_s26  ;;  %v780_v24 = vpop.permute.xlu0 %779  ;;  %10467 = vmatprep.mubr.msk.bf16.mxu1 %vm319_vm0, %v10650_v48  ;;  %v11930_v48 = vpack.c.bf16 %v1868_v59, %v1868_v59  ;;  %v1869_v59 = vld [vmem:[#allocation2 + $0x198] sm:$0xff] }
 0x180   : > { %860 = vst.msk [vmem:[#allocation3 + $0xc0] sm:$0xf] %vm843_vm4, %v780_v24  ;;  %2271 = vrot.lane.b32.xlu0 %v11575_v42, %s10838_s18  ;;  %10468 = vmatmul.mubr.msk.bf16.gmra.mxu1 %vm319_vm0, %v10651_v27  ;;  %v456_v27 = vld [vmem:[#allocation2 + $0x168] sm:$0xff] }
 0x181   : > { %v2254_v6 = vpop.permute.xlu1 %2253 }
 0x182   : > { %2334 = vst.msk [vmem:[#allocation3 + $0xb8] sm:$0xf] %vm1357_vm6, %v2254_v6 }
 0x183   : > { %1311 = vrot.lane.b32.xlu1 %v11773_v31, %s10838_s18  ;;  %v1743_v45 = vpop.permute.xlu0 %1742  ;;  %v2571_v12 = vld [vmem:[#allocation3 + $0xa8] sm:$0xff] }
 0x184   : > { %1822 = vst.msk [vmem:[#allocation3 + $0xc4] sm:$0xf] %vm843_vm4, %v1743_v45  ;;  %799 = vrot.lane.b32.xlu0 %v11785_v3, %s10836_s25  ;;  %v2121_v3 = vld [vmem:[#allocation2 + $0x169] sm:$0xff] }
 0x185   : > { %v782_v25 = vpop.permute.xlu1 %781 }
 0x186   : > { %861 = vst.msk [vmem:[#allocation3 + $0xcc] sm:$0xf] %vm843_vm4, %v782_v25 }
 0x187   : > { %2273 = vrot.lane.b32.xlu1 %v11581_v1, %s10838_s18  ;;  %v1037_v17 = vpop.permute.xlu0 %1036 }
 0x188   : > { %1117 = vst.msk [vmem:[#allocation3 + $0xc0] sm:$0xf] %vm1100_vm5, %v1037_v17  ;;  %1762 = vrot.lane.b32.xlu0 %v11850_v35, %s10836_s25  ;;  %v2380_v17 = vld [vmem:[#allocation2 + $0x18a] sm:$0xff] }
 0x189   : > { %v1745_v28 = vpop.permute.xlu1 %1744  ;;  %v2573_v36 = vld [vmem:[#allocation3 + $0xb4] sm:$0xff] }
 0x18a   : > { %v10634_v2 = vld [vmem:[#allocation3 + $0xac] ss:$12 sps:$4 sm:$0xff]   ;;  %1823 = vst.msk [vmem:[#allocation3 + $0xd0] sm:$0xf] %vm843_vm4, %v1745_v28  ;;  %v9054_v26 = vcombine.low %v2571_v12, %v2573_v36  ;;  %v9625_v12 = vpack.c.bf16 %v456_v27, %v456_v27 }
 0x18b   : > { %801 = vrot.lane.b32.xlu1 %v11793_v49, %s10836_s25  ;;  %3134 = vmatprep.mubr.bf16.mxu0 %v10634_v2  ;;  %v2000_v31 = vpop.permute.xlu0 %1999  ;;  %v11884_v49 = vpack.c.bf16 %v2121_v3, %v2121_v3  ;;  %v2379_v2 = vld [vmem:[#allocation2 + $0x182] sm:$0xff]  ;;  %v9754_v3 = vpack.c.bf16 %v1421_v50, %v1421_v50  ;;  %v10661_v50 = vld [vmem:[%s15620_s3 + $0x30] sm:$0xff]  }
 0x18c   : > { %3135 = vmatmul.mubr.bf16.gmra.mxu0 %v9054_v26  ;;  %2079 = vst.msk [vmem:[#allocation3 + $0xc4] sm:$0xf] %vm1100_vm5, %v2000_v31  ;;  %1056 = vrot.lane.b32.xlu0 %v11534_v44, %s10837_s26  ;;  %v9623_v44 = vpack.c.bf16 %v454_v20, %v454_v20  ;;  %v9880_v31 = vpack.c.bf16 %v2380_v17, %v2380_v17  ;;  %v10658_v17 = vld [vmem:[%s15620_s3 + $0x78] sm:$0xff]  }
 0x18d   : > { %v1039_v15 = vpop.permute.xlu1 %1038  ;;  %617 = vst.msk [vmem:[#allocation3 + $0x168] sm:$0xf] %vm586_vm3, %v9625_v12  ;;  %v9881_v20 = vpack.c.bf16 %v2381_v34, %v2381_v34  ;;  %1581 = vst.msk [vmem:[#allocation3 + $0x178] sm:$0xf] %vm586_vm3, %v9754_v3  ;;  %v2125_v34 = vld [vmem:[#allocation2 + $0x199] sm:$0xff]  ;;  %10302 = vmatprep.subr.bf16.mxu1 %v10658_v17 }
 0x18e   : > { %1118 = vst.msk [vmem:[#allocation3 + $0xcc] sm:$0xf] %vm1100_vm5, %v1039_v15 }
 0x18f   : > { %1764 = vrot.lane.b32.xlu1 %v11825_v60, %s10836_s25  ;;  %v1294_v37 = vpop.permute.xlu0 %1293  ;;  %615 = vst.msk [vmem:[#allocation3 + $0x150] sm:$0xf] %vm586_vm3, %v9623_v44  ;;  %2540 = vst.msk [vmem:[#allocation3 + $0x164] sm:$0xf] %vm586_vm3, %v9880_v31 }
 0x190   : > { %1374 = vst.msk [vmem:[#allocation3 + $0xc0] sm:$0xf] %vm1357_vm6, %v1294_v37  ;;  %2019 = vrot.lane.b32.xlu0 %v11866_v21, %s10837_s26 }
 0x191   : > { %v2002_v16 = vpop.permute.xlu1 %2001  ;;  %2541 = vst.msk [vmem:[#allocation3 + $0x170] sm:$0xf] %vm586_vm3, %v9881_v20 }
 0x192   : > { %2080 = vst.msk [vmem:[#allocation3 + $0xd0] sm:$0xf] %vm1100_vm5, %v2002_v16  ;;  %v2382_v16 = vld [vmem:[#allocation2 + $0x1a2] sm:$0xff] }
 0x193   : > { %1058 = vrot.lane.b32.xlu1 %v11540_v9, %s10837_s26  ;;  %v2256_v18 = vpop.permute.xlu0 %2255  ;;  %v1418_v9 = vld [vmem:[#allocation2 + $0x169] sm:$0xff]  ;;  %v9882_v23 = vpack.c.bf16 %v2382_v16, %v2382_v16 }
 0x194   : > { %2335 = vst.msk [vmem:[#allocation3 + $0xc4] sm:$0xf] %vm1357_vm6, %v2256_v18  ;;  %v9751_v57 = vpack.c.bf16 %v1418_v9, %v1418_v9  ;;  %1313 = vrot.lane.b32.xlu0 %v11815_v56, %s10838_s18 }
 0x195   : > { %v1296_v53 = vpop.permute.xlu1 %1295  ;;  %2542 = vst.msk [vmem:[#allocation3 + $0x17c] sm:$0xf] %vm586_vm3, %v9882_v23 }
 0x196   : > { %1375 = vst.msk [vmem:[#allocation3 + $0xcc] sm:$0xf] %vm1357_vm6, %v1296_v53  ;;  %v2124_v53 = vld [vmem:[#allocation2 + $0x189] sm:$0xff] }
 0x197   : > { %2021 = vrot.lane.b32.xlu1 %v11872_v40, %s10837_s26  ;;  %1578 = vst.msk [vmem:[#allocation3 + $0x154] sm:$0xf] %vm586_vm3, %v9751_v57  ;;  %v784_v46 = vpop.permute.xlu0 %783 }
 0x198   : > { %862 = vst.msk [vmem:[#allocation3 + $0xd8] sm:$0xf] %vm843_vm4, %v784_v46  ;;  %2275 = vrot.lane.b32.xlu0 %v11884_v49, %s10838_s18 }
 0x199   : > { %v2258_v58 = vpop.permute.xlu1 %2257 }
 0x19a   : > { %2336 = vst.msk [vmem:[#allocation3 + $0xd0] sm:$0xf] %vm1357_vm6, %v2258_v58  ;;  %v1613_v58 = vld [vmem:[#allocation2 + $0x18a] sm:$0xff] }
 0x19b   : > { %1315 = vrot.lane.b32.xlu1 %v11821_v43, %s10838_s18  ;;  %v1747_v30 = vpop.permute.xlu0 %1746  ;;  %v2575_v51 = vld [vmem:[#allocation3 + $0xc0] sm:$0xff] }
 0x19c   : > { %1824 = vst.msk [vmem:[#allocation3 + $0xdc] sm:$0xf] %vm843_vm4, %v1747_v30  ;;  %803 = vrot.lane.b32.xlu0 %v11575_v42, %s10836_s25  ;;  %v3241_v42 = vpop.f32.mrf.mxu1 }
 0x19d   : > { %v786_v11 = vpop.permute.xlu1 %785 }
 0x19e   : > { %863 = vst.msk [vmem:[#allocation3 + $0xe4] sm:$0xf] %vm843_vm4, %v786_v11  ;;  %v11921_v55 = vpop.f32.mrf.mxu1 }
 0x19f   : > { %2277 = vrot.lane.b32.xlu1 %v11892_v29, %s10838_s18  ;;  %v1041_v41 = vpop.permute.xlu0 %1040 }
 0x1a0   : > { %1119 = vst.msk [vmem:[#allocation3 + $0xd8] sm:$0xf] %vm1100_vm5, %v1041_v41  ;;  %1766 = vrot.lane.b32.xlu0 %v11644_v5, %s10836_s25  ;;  %v3244_v28 = vpop.f32.mrf.mxu1 }
 0x1a1   : > { %v1749_v47 = vpop.permute.xlu1 %1748  ;;  %v2577_v0 = vld [vmem:[#allocation3 + $0xcc] sm:$0xff] }
 0x1a2   : > { %v10636_v56 = vld [vmem:[#allocation3 + $0xc4] ss:$12 sps:$4 sm:$0xff]   ;;  %1825 = vst.msk [vmem:[#allocation3 + $0xe8] sm:$0xf] %vm843_vm4, %v1749_v47  ;;  %v9057_v32 = vcombine.low %v2575_v51, %v2577_v0  ;;  %v9785_v47 = vpack.c.bf16 %v1612_v19, %v1612_v19 }
 0x1a3   : > { %805 = vrot.lane.b32.xlu1 %v11581_v1, %s10836_s25  ;;  %3142 = vmatprep.mubr.bf16.mxu0 %v10636_v56  ;;  %v2004_v63 = vpop.permute.xlu0 %2003 }
 0x1a4   : > { %v10188_v4 = vpop.f32.mrf.mxu0  ;;  %3143 = vmatmul.mubr.bf16.gmra.mxu0 %v9057_v32  ;;  %2081 = vst.msk [vmem:[#allocation3 + $0xdc] sm:$0xf] %vm1100_vm5, %v2004_v63  ;;  %1060 = vrot.lane.b32.xlu0 %v11850_v35, %s10837_s26  ;;  %v457_v35 = vld [vmem:[#allocation2 + $0x170] sm:$0xff] }
 0x1a5   : > { %v1043_v43 = vpop.permute.xlu1 %1042  ;;  %v9626_v36 = vpack.c.bf16 %v457_v35, %v457_v35 }
 0x1a6   : > { %1120 = vst.msk [vmem:[#allocation3 + $0xe4] sm:$0xf] %vm1100_vm5, %v1043_v43  ;;  %v10189_v33 = vpop.f32.mrf.mxu0 }
 0x1a7   : > { %1768 = vrot.lane.b32.xlu1 %v11650_v54, %s10836_s25  ;;  %v10190_v1 = vadd.f32 %v10189_v33, %v10188_v4  ;;  %v1298_v25 = vpop.permute.xlu0 %1297  ;;  %618 = vst.msk [vmem:[#allocation3 + $0x174] sm:$0xf] %vm586_vm3, %v9626_v36 }
 0x1a8   : > { %v10191_v39 = vpop.f32.mrf.mxu0  ;;  %1376 = vst.msk [vmem:[#allocation3 + $0xd8] sm:$0xf] %vm1357_vm6, %v1298_v25  ;;  %2023 = vrot.lane.b32.xlu0 %v11923_v22, %s10837_s26  ;;  %v9817_v25 = vpack.c.bf16 %v1869_v59, %v1869_v59 }
 0x1a9   : > { %v2006_v7 = vpop.permute.xlu1 %2005  ;;  %v3081_v6 = vadd.f32 %v10190_v1, %v11914_v8 }
 0x1aa   : > { %2082 = vst.msk [vmem:[#allocation3 + $0xe8] sm:$0xf] %vm1100_vm5, %v2006_v7  ;;  %v10192_v24 = vpop.f32.mrf.mxu0 }
 0x1ab   : > { %v3242_v61 = vadd.f32 %v3241_v42, %v3081_v6  ;;  %1062 = vrot.lane.b32.xlu1 %v11825_v60, %s10837_s26  ;;  %v10193_v45 = vadd.f32 %v10192_v24, %v10191_v39  ;;  %v9879_v60 = vpack.c.bf16 %v2379_v2, %v2379_v2  ;;  %v2260_v37 = vpop.permute.xlu0 %2259  ;;  %v9786_v42 = vpack.c.bf16 %v1613_v58, %v1613_v58 }
 0x1ac   : > { %2337 = vst.msk [vmem:[#allocation3 + $0xdc] sm:$0xf] %vm1357_vm6, %v2260_v37  ;;  %1317 = vrot.lane.b32.xlu0 %v11866_v21, %s10838_s18  ;;  %v9848_v21 = vpack.c.bf16 %v2124_v53, %v2124_v53 }
 0x1ad   : > { %v3368_v26 = vmax.f32 %v3242_v61, 0.0  ;;  %v1300_v15 = vpop.permute.xlu1 %1299  ;;  %v3084_v13 = vadd.f32 %v10193_v45, %v11914_v8  ;;  %2539 = vst.msk [vmem:[#allocation3 + $0x158] sm:$0xf] %vm586_vm3, %v9879_v60  ;;  %v1870_v61 = vld [vmem:[#allocation2 + $0x1a0] sm:$0xff] }
 0x1ae   : > { %1377 = vst.msk [vmem:[#allocation3 + $0xe4] sm:$0xf] %vm1357_vm6, %v1300_v15  ;;  %v9818_v2 = vpack.c.bf16 %v1870_v61, %v1870_v61 }
 0x1af   : > { %3400 = vst.msk [vmem:[#allocation2 + $0x19] sm:$0xff] %vm319_vm0, %v3368_v26  ;;  %v3245_v44 = vadd.f32 %v3244_v28, %v3084_v13  ;;  %2025 = vrot.lane.b32.xlu1 %v11930_v48, %s10837_s26  ;;  %v788_v57 = vpop.permute.xlu0 %787  ;;  %v3433_v26 = vld [vmem:[#allocation2 + $0x8] sm:$0xff] }
 0x1b0   : > { %864 = vst.msk [vmem:[#allocation3 + $0xf0] sm:$0xf] %vm843_vm4, %v788_v57  ;;  %2279 = vrot.lane.b32.xlu0 %v11685_v14, %s10838_s18  ;;  %v10657_v14 = vld [vmem:[#allocation3 + $0x170] ss:$12 sps:$4 sm:$0xff]   ;;  %v9884_v13 = vpack.c.bf16 %v3433_v26, %v3433_v26 }
 0x1b1   : > { %v3369_v18 = vmax.f32 %v3245_v44, 0.0  ;;  %v2262_v9 = vpop.permute.xlu1 %2261  ;;  %5542 = vst.msk [vmem:[#allocation3 + $0x170] sm:$0xf] %vm586_vm3, %v9881_v20  ;;  %5543 = vst.msk [vmem:[#allocation3 + $0x17c] sm:$0xf] %vm586_vm3, %v9882_v23  ;;  %v10660_v20 = vld [vmem:[%s15620_s3 + $0x70] sm:$0xff]   ;;  %v9849_v23 = vpack.c.bf16 %v2125_v34, %v2125_v34 }
 0x1b2   : > { %2338 = vst.msk [vmem:[#allocation3 + $0xe8] sm:$0xf] %vm1357_vm6, %v2262_v9  ;;  %v2126_v44 = vld [vmem:[#allocation2 + $0x1a1] sm:$0xff] }
 0x1b3   : > { %3401 = vst.msk [vmem:[#allocation2 + $0x21] sm:$0xff] %vm319_vm0, %v3369_v18  ;;  %1319 = vrot.lane.b32.xlu1 %v11872_v40, %s10838_s18  ;;  %v1751_v10 = vpop.permute.xlu0 %1750  ;;  %v2579_v11 = vld [vmem:[#allocation3 + $0xd8] sm:$0xff] }
 0x1b4   : > { %1826 = vst.msk [vmem:[#allocation3 + $0xf4] sm:$0xf] %vm843_vm4, %v1751_v10  ;;  %v10656_v40 = vld [vmem:[#allocation3 + $0x158] ss:$12 sps:$4 sm:$0xff]   ;;  %807 = vrot.lane.b32.xlu0 %v11884_v49, %s10836_s25 }
 0x1b5   : > { %v790_v52 = vpop.permute.xlu1 %789  ;;  %10471 = vmatprep.mubr.msk.bf16.mxu1 %vm319_vm0, %v10656_v40  ;;  %3593 = vst.msk [vmem:[#allocation3 + $0xc] sm:$0xf] %vm586_vm3, %v9884_v13  ;;  %v10664_v9 = vld [vmem:[%s15620_s3 + $0x68] sm:$0xff]   ;;  %v10669_v40 = vld [vmem:[%s15620_s3 + $0x80] sm:$0xff]  }
 0x1b6   : > { %865 = vst.msk [vmem:[#allocation3 + $0xfc] sm:$0xf] %vm843_vm4, %v790_v52  ;;  %v3626_v46 = vld [vmem:[#allocation2 + $0x19] sm:$0xff]  ;;  %10472 = vmatmul.mubr.msk.bf16.gmra.mxu1 %vm319_vm0, %v10657_v14  ;;  %v12025_v57 = vld [vmem:[%s15620_s3 + $0x88] sm:$0xff]   ;;  %v12043_v14 = vpop.f32.mrf.mxu1 }
 0x1b7   : > { %2281 = vrot.lane.b32.xlu1 %v9848_v21, %s10838_s18  ;;  %v11959_v30 = vpack.c.bf16 %v3626_v46, %v3626_v46  ;;  %v3434_v41 = vld [vmem:[#allocation2 + $0x18] sm:$0xff]  ;;  %v1045_v32 = vpop.permute.xlu0 %1044  ;;  %v3625_v52 = vld [vmem:[#allocation2 + $0x9] sm:$0xff]  ;;  %10475 = vmatprep.subr.bf16.mxu0 %v12025_v57 }
 0x1b8   : > { %v9885_v49 = vpack.c.bf16 %v3434_v41, %v3434_v41  ;;  %1121 = vst.msk [vmem:[#allocation3 + $0xf0] sm:$0xf] %vm1100_vm5, %v1045_v32  ;;  %1770 = vrot.lane.b32.xlu0 %v9785_v47, %s10836_s25  ;;  %10476 = vmatpush3.bf16.msra.mxu0 %v12025_v57  ;;  %v9916_v46 = vpack.c.bf16 %v3625_v52, %v3625_v52 }
 0x1b9   : > { %v1753_v51 = vpop.permute.xlu1 %1752  ;;  %v2581_v0 = vld [vmem:[#allocation3 + $0xe4] sm:$0xff]  ;;  %4552 = vst.msk [vmem:[#allocation3 + $0x4] sm:$0xf] %vm586_vm3, %v11959_v30  ;;  %10477 = vmatprep.subr.bf16.mxu0 %v10669_v40 }
 0x1ba   : > { %v10640_v56 = vld [vmem:[#allocation3 + $0xdc] ss:$12 sps:$4 sm:$0xff]   ;;  %1827 = vst.msk [vmem:[#allocation3 + $0x100] sm:$0xf] %vm843_vm4, %v1753_v51  ;;  %v9060_v4 = vcombine.low %v2579_v11, %v2581_v0  ;;  %v3627_v43 = vld [vmem:[#allocation2 + $0x21] sm:$0xff] }
 0x1bb   : > { %809 = vrot.lane.b32.xlu1 %v11892_v29, %s10836_s25  ;;  %3150 = vmatprep.mubr.bf16.mxu0 %v10640_v56  ;;  %v3435_v38 = vld [vmem:[#allocation2 + $0x20] sm:$0xff]  ;;  %v11974_v63 = vpack.c.bf16 %v3627_v43, %v3627_v43  ;;  %3594 = vst.msk [vmem:[#allocation3 + $0x18] sm:$0xf] %vm586_vm3, %v9885_v49  ;;  %v2008_v29 = vpop.permute.xlu0 %2007 }
 0x1bc   : > { %v10194_v33 = vpop.f32.mrf.mxu0  ;;  %3151 = vmatmul.mubr.bf16.gmra.mxu0 %v9060_v4  ;;  %v9886_v1 = vpack.c.bf16 %v3435_v38, %v3435_v38  ;;  %2083 = vst.msk [vmem:[#allocation3 + $0xf4] sm:$0xf] %vm1100_vm5, %v2008_v29  ;;  %1064 = vrot.lane.b32.xlu0 %v11644_v5, %s10837_s26  ;;  %v3432_v5 = vld [vmem:[#allocation2] sm:$0xff] }
 0x1bd   : > { %v1047_v39 = vpop.permute.xlu1 %1046  ;;  %4553 = vst.msk [vmem:[#allocation3 + $0x10] sm:$0xf] %vm586_vm3, %v11974_v63  ;;  %v9883_v15 = vpack.c.bf16 %v3432_v5, %v3432_v5  ;;  %v4584_v58 = vld [vmem:[#allocation2 + $0x1a] sm:$0xff]  ;;  %v3880_v51 = vld [vmem:[#allocation2 + $0x2] sm:$0xff]  ;;  %10478 = vmatpush3.bf16.msra.mxu0 %v10669_v40 }
 0x1be   : > { %1122 = vst.msk [vmem:[#allocation3 + $0xfc] sm:$0xf] %vm1100_vm5, %v1047_v39  ;;  %v10195_v7 = vpop.f32.mrf.mxu0  ;;  %v10668_v11 = vld [vmem:[%s15620_s3 + $0x60] sm:$0xff]   ;;  %v9947_v61 = vpack.c.bf16 %v3880_v51, %v3880_v51 }
 0x1bf   : > { %3595 = vst.msk [vmem:[#allocation3 + $0x24] sm:$0xf] %vm586_vm3, %v9886_v1  ;;  %1772 = vrot.lane.b32.xlu1 %v9786_v42, %s10836_s25  ;;  %v10196_v6 = vadd.f32 %v10195_v7, %v10194_v33  ;;  %v1302_v35 = vpop.permute.xlu0 %1301  ;;  %3592 = vst.msk [vmem:[#allocation3] sm:$0xf] %vm586_vm3, %v9883_v15  ;;  %v10670_v0 = vld [vmem:[%s15620_s3 + $0x20] sm:$0xff]   ;;  %v12049_v33 = vpack.c.bf16 %v4584_v58, %v4584_v58 }
 0x1c0   : > { %v10197_v24 = vpop.f32.mrf.mxu0  ;;  %1378 = vst.msk [vmem:[#allocation3 + $0xf0] sm:$0xf] %vm1357_vm6, %v1302_v35  ;;  %2027 = vrot.lane.b32.xlu0 %v9817_v25, %s10837_s26  ;;  %v4585_v39 = vld [vmem:[#allocation2 + $0x22] sm:$0xff] }
 0x1c1   : > { %v3089_v45 = vadd.f32 %v10196_v6, %v11914_v8  ;;  %v2010_v27 = vpop.permute.xlu1 %2009  ;;  %v10671_v6 = vld [vmem:[%s15620_s3 + $0x58] sm:$0xff]   ;;  %v12067_v5 = vpack.c.bf16 %v4585_v39, %v4585_v39  ;;  %v10681_v51 = vld [vmem:[%s15620_s3 + $0x40] sm:$0xff]  }
 0x1c2   : > { %2084 = vst.msk [vmem:[#allocation3 + $0x100] sm:$0xf] %vm1100_vm5, %v2010_v27  ;;  %v10198_v28 = vpop.f32.mrf.mxu0  ;;  %v3881_v27 = vld [vmem:[#allocation2 + $0xa] sm:$0xff] }
 0x1c3   : > { %v3250_v12 = vadd.f32 %v11902_v62, %v3089_v45  ;;  %1066 = vrot.lane.b32.xlu1 %v11650_v54, %s10837_s26  ;;  %v10199_v36 = vadd.f32 %v10198_v28, %v10197_v24  ;;  %v10659_v62 = vld [vmem:[%s15620_s3 + $0x38] sm:$0xff]   ;;  %v2264_v16 = vpop.permute.xlu0 %2263  ;;  %v3257_v45 = vpop.f32.mrf.mxu1 }
 0x1c4   : > { %10303 = vmatpush3.bf16.msra.mxu1 %v10659_v62  ;;  %2339 = vst.msk [vmem:[#allocation3 + $0xf4] sm:$0xf] %vm1357_vm6, %v2264_v16  ;;  %1321 = vrot.lane.b32.xlu0 %v11923_v22, %s10838_s18  ;;  %v9850_v22 = vpack.c.bf16 %v2126_v44, %v2126_v44  ;;  %v10673_v28 = vld [vmem:[%s15620_s3 + $0x18] sm:$0xff]   ;;  %v9948_v62 = vpack.c.bf16 %v3881_v27, %v3881_v27  ;;  %v10676_v16 = vld [vmem:[%s15620_s3 + $0x10] sm:$0xff]  }
 0x1c5   : > { %v3370_v60 = vmax.f32 %v3250_v12, 0.0  ;;  %v3092_v54 = vadd.f32 %v10199_v36, %v11914_v8  ;;  %v1304_v31 = vpop.permute.xlu1 %1303  ;;  %10304 = vmatprep.subr.bf16.mxu1 %v10660_v20  ;;  %v12083_v34 = vpop.f32.mrf.mxu1 }
 0x1c6   : > { %1379 = vst.msk [vmem:[#allocation3 + $0xfc] sm:$0xf] %vm1357_vm6, %v1304_v31 }
 0x1c7   : > { %3402 = vst.msk [vmem:[#allocation2 + $0x31] sm:$0xff] %vm319_vm0, %v3370_v60  ;;  %v3253_v37 = vadd.f32 %v11921_v55, %v3092_v54  ;;  %2029 = vrot.lane.b32.xlu1 %v9818_v2, %s10837_s26  ;;  %v3624_v55 = vld [vmem:[#allocation2 + $0x1] sm:$0xff]  ;;  %v792_v18 = vpop.permute.xlu0 %791  ;;  %v10675_v54 = vld [vmem:[%s15620_s3 + $0x50] sm:$0xff]  }
 0x1c8   : > { %10305 = vmatpush3.bf16.msra.mxu1 %v10661_v50  ;;  %866 = vst.msk [vmem:[#allocation3 + $0x108] sm:$0xf] %vm843_vm4, %v792_v18  ;;  %2283 = vrot.lane.b32.xlu0 %v9849_v23, %s10838_s18  ;;  %v9915_v21 = vpack.c.bf16 %v3624_v55, %v3624_v55  ;;  %v4136_v18 = vld [vmem:[#allocation2 + $0x18] sm:$0xff] }
 0x1c9   : > { %v3371_v53 = vmax.f32 %v3253_v37, 0.0  ;;  %v2266_v3 = vpop.permute.xlu1 %2265  ;;  %10306 = vmatprep.subr.bf16.mxu1 %v10664_v9  ;;  %v3260_v9 = vpop.f32.mrf.mxu1  ;;  %v9979_v58 = vpack.c.bf16 %v4136_v18, %v4136_v18 }
 0x1ca   : > { %2340 = vst.msk [vmem:[#allocation3 + $0x100] sm:$0xf] %vm1357_vm6, %v2266_v3 }
 0x1cb   : > { %3403 = vst.msk [vmem:[#allocation2 + $0x39] sm:$0xff] %vm319_vm0, %v3371_v53  ;;  %1323 = vrot.lane.b32.xlu1 %v11930_v48, %s10838_s18  ;;  %v10666_v48 = vld [vmem:[%s15620_s3 + $0x28] sm:$0xff]   ;;  %v1755_v10 = vpop.permute.xlu0 %1754  ;;  %v2583_v4 = vld [vmem:[#allocation3 + $0xf0] sm:$0xff] }
 0x1cc   : > { %10307 = vmatpush3.bf16.msra.mxu1 %v10666_v48  ;;  %1828 = vst.msk [vmem:[#allocation3 + $0x10c] sm:$0xf] %vm843_vm4, %v1755_v10  ;;  %3752 = vrot.lane.b32.xlu0 %v9915_v21, %s10836_s25 }
 0x1cd   : > { %v794_v19 = vpop.permute.xlu1 %793  ;;  %10308 = vmatprep.subr.bf16.mxu1 %v10668_v11  ;;  %v10679_v11 = vld [vmem:[%s15620_s3 + $0x8] sm:$0xff]  }
 0x1ce   : > { %867 = vst.msk [vmem:[#allocation3 + $0x114] sm:$0xf] %vm843_vm4, %v794_v19  ;;  %v4394_v47 = vld [vmem:[#allocation2 + $0x31] sm:$0xff] }
 0x1cf   : > { %2285 = vrot.lane.b32.xlu1 %v9850_v22, %s10838_s18  ;;  %v10013_v56 = vpack.c.bf16 %v4394_v47, %v4394_v47  ;;  %v3436_v41 = vld [vmem:[#allocation2 + $0x30] sm:$0xff]  ;;  %v1049_v38 = vpop.permute.xlu0 %1048  ;;  %v10677_v22 = vld [vmem:[%s15620_s3 + $0x48] sm:$0xff]  }
 0x1d0   : > { %v9887_v43 = vpack.c.bf16 %v3436_v41, %v3436_v41  ;;  %10309 = vmatpush3.bf16.msra.mxu1 %v10670_v0  ;;  %1123 = vst.msk [vmem:[#allocation3 + $0x108] sm:$0xf] %vm1100_vm5, %v1049_v38  ;;  %4712 = vrot.lane.b32.xlu0 %v12049_v33, %s10836_s25  ;;  %v4840_v60 = vld [vmem:[#allocation2 + $0x30] sm:$0xff] }
 0x1d1   : > { %v1757_v32 = vpop.permute.xlu1 %1756  ;;  %v2585_v49 = vld [vmem:[#allocation3 + $0xfc] sm:$0xff]  ;;  %4554 = vst.msk [vmem:[#allocation3 + $0x1c] sm:$0xf] %vm586_vm3, %v10013_v56  ;;  %10310 = vmatprep.subr.bf16.mxu1 %v10671_v6  ;;  %v12090_v50 = vpack.c.bf16 %v4840_v60, %v4840_v60 }
 0x1d2   : > { %v10642_v42 = vld [vmem:[#allocation3 + $0xf4] ss:$12 sps:$4 sm:$0xff]   ;;  %1829 = vst.msk [vmem:[#allocation3 + $0x118] sm:$0xf] %vm843_vm4, %v1757_v32  ;;  %v9063_v1 = vcombine.low %v2583_v4, %v2585_v49  ;;  %v4587_v7 = vld [vmem:[#allocation2 + $0x3a] sm:$0xff] }
 0x1d3   : > { %v4586_v59 = vld [vmem:[#allocation2 + $0x32] sm:$0xff]  ;;  %3754 = vrot.lane.b32.xlu1 %v9916_v46, %s10836_s25  ;;  %3158 = vmatprep.mubr.bf16.mxu0 %v10642_v42  ;;  %3596 = vst.msk [vmem:[#allocation3 + $0x30] sm:$0xf] %vm586_vm3, %v9887_v43  ;;  %v12062_v35 = vpack.c.bf16 %v4587_v7, %v4587_v7  ;;  %v2012_v26 = vpop.permute.xlu0 %2011  ;;  %v4137_v46 = vld [vmem:[#allocation2 + $0x20] sm:$0xff] }
 0x1d4   : > { %v12054_v29 = vpack.c.bf16 %v4586_v59, %v4586_v59  ;;  %v4395_v24 = vld [vmem:[#allocation2 + $0x39] sm:$0xff]  ;;  %v10200_v25 = vpop.f32.mrf.mxu0  ;;  %3159 = vmatmul.mubr.bf16.gmra.mxu0 %v9063_v1  ;;  %10311 = vmatpush3.bf16.msra.mxu1 %v10673_v28  ;;  %2085 = vst.msk [vmem:[#allocation3 + $0x10c] sm:$0xf] %vm1100_vm5, %v2012_v26  ;;  %v5096_v47 = vld [vmem:[#allocation2 + $0x31] sm:$0xff]  ;;  %v9980_v41 = vpack.c.bf16 %v4137_v46, %v4137_v46 }
 0x1d5   : > { %v10014_v12 = vpack.c.bf16 %v4395_v24, %v4395_v24  ;;  %v3437_v36 = vld [vmem:[#allocation2 + $0x38] sm:$0xff]  ;;  %v1051_v2 = vpop.permute.xlu1 %1050  ;;  %5513 = vst.msk [vmem:[#allocation3 + $0x14] sm:$0xf] %vm586_vm3, %v12062_v35  ;;  %4008 = vrot.lane.b32.xlu0 %v9947_v61, %s10837_s26  ;;  %10312 = vmatprep.subr.bf16.mxu1 %v10675_v54  ;;  %v12115_v4 = vpack.c.bf16 %v5096_v47, %v5096_v47  ;;  %v10682_v42 = vld [vmem:[%s15620_s3] sm:$0xff]  }
 0x1d6   : > { %5512 = vst.msk [vmem:[#allocation3 + $0x8] sm:$0xf] %vm586_vm3, %v12054_v29  ;;  %v9888_v17 = vpack.c.bf16 %v3437_v36, %v3437_v36  ;;  %v10201_v15 = vpop.f32.mrf.mxu0  ;;  %v4841_v53 = vld [vmem:[#allocation2 + $0x38] sm:$0xff] }
 0x1d7   : > { %1124 = vst.msk [vmem:[#allocation3 + $0x114] sm:$0xf] %vm1100_vm5, %v1051_v2  ;;  %4714 = vrot.lane.b32.xlu1 %v12067_v5, %s10836_s25  ;;  %v10202_v13 = vadd.f32 %v10201_v15, %v10200_v25  ;;  %v1306_v23 = vpop.permute.xlu0 %1305  ;;  %v12100_v19 = vpack.c.bf16 %v4841_v53, %v4841_v53  ;;  %v5097_v49 = vld [vmem:[#allocation2 + $0x39] sm:$0xff] }
 0x1d8   : > { %4555 = vst.msk [vmem:[#allocation3 + $0x28] sm:$0xf] %vm586_vm3, %v10014_v12  ;;  %3597 = vst.msk [vmem:[#allocation3 + $0x3c] sm:$0xf] %vm586_vm3, %v9888_v17  ;;  %v10203_v31 = vpop.f32.mrf.mxu0  ;;  %10313 = vmatpush3.bf16.msra.mxu1 %v10676_v16  ;;  %v12125_v38 = vpack.c.bf16 %v5097_v49, %v5097_v49 }
 0x1d9   : > { %v2014_v37 = vpop.permute.xlu1 %2013  ;;  %v3097_v20 = vadd.f32 %v10202_v13, %v11914_v8  ;;  %1380 = vst.msk [vmem:[#allocation3 + $0x108] sm:$0xf] %vm1357_vm6, %v1306_v23  ;;  %4968 = vrot.lane.b32.xlu0 %v12090_v50, %s10837_s26  ;;  %10314 = vmatprep.subr.bf16.mxu1 %v10677_v22 }
 0x1da   : > { %2086 = vst.msk [vmem:[#allocation3 + $0x118] sm:$0xf] %vm1100_vm5, %v2014_v37  ;;  %v10204_v44 = vpop.f32.mrf.mxu0 }
 0x1db   : > { %v3258_v3 = vadd.f32 %v3257_v45, %v3097_v20  ;;  %4010 = vrot.lane.b32.xlu1 %v9948_v62, %s10837_s26  ;;  %v10205_v55 = vadd.f32 %v10204_v44, %v10203_v31  ;;  %v2268_v10 = vpop.permute.xlu0 %2267 }
 0x1dc   : > { %2341 = vst.msk [vmem:[#allocation3 + $0x10c] sm:$0xf] %vm1357_vm6, %v2268_v10  ;;  %10315 = vmatpush3.bf16.msra.mxu1 %v10679_v11 }
 0x1dd   : > { %v3372_v21 = vmax.f32 %v3258_v3, 0.0  ;;  %v1308_v52 = vpop.permute.xlu1 %1307  ;;  %v3100_v48 = vadd.f32 %v10205_v55, %v11914_v8  ;;  %4264 = vrot.lane.b32.xlu0 %v9979_v58, %s10838_s18  ;;  %10316 = vmatprep.subr.bf16.mxu1 %v10681_v51 }
 0x1de   : > { %1381 = vst.msk [vmem:[#allocation3 + $0x114] sm:$0xf] %vm1357_vm6, %v1308_v52 }
 0x1df   : > { %3404 = vst.msk [vmem:[#allocation2 + $0x49] sm:$0xff] %vm319_vm0, %v3372_v21  ;;  %v3261_v40 = vadd.f32 %v3260_v9, %v3100_v48  ;;  %4970 = vrot.lane.b32.xlu1 %v12100_v19, %s10837_s26  ;;  %v796_v32 = vpop.permute.xlu0 %795 }
 0x1e0   : > { %868 = vst.msk [vmem:[#allocation3 + $0x120] sm:$0xf] %vm843_vm4, %v796_v32  ;;  %10317 = vmatpush3.bf16.msra.mxu1 %v10682_v42 }
 0x1e1   : > { %v3373_v0 = vmax.f32 %v3261_v40, 0.0  ;;  %v2270_v56 = vpop.permute.xlu1 %2269  ;;  %5224 = vrot.lane.b32.xlu0 %v12115_v4, %s10838_s18  ;;  %10527 = vmatprep.subr.bf16.mxu1 %v12025_v57 }
 0x1e2   : > { %2342 = vst.msk [vmem:[#allocation3 + $0x118] sm:$0xf] %vm1357_vm6, %v2270_v56 }
 0x1e3   : > { %3405 = vst.msk [vmem:[#allocation2 + $0x51] sm:$0xff] %vm319_vm0, %v3373_v0  ;;  %4266 = vrot.lane.b32.xlu1 %v9980_v41, %s10838_s18  ;;  %v1759_v1 = vpop.permute.xlu0 %1758  ;;  %v2587_v25 = vld [vmem:[#allocation3 + $0x108] sm:$0xff] }
 0x1e4   : > { %1830 = vst.msk [vmem:[#allocation3 + $0x124] sm:$0xf] %vm843_vm4, %v1759_v1 }
 0x1e5   : > { %v798_v43 = vpop.permute.xlu1 %797  ;;  %3756 = vrot.lane.b32.xlu0 %v11959_v30, %s10836_s25 }
 0x1e6   : > { %869 = vst.msk [vmem:[#allocation3 + $0x12c] sm:$0xf] %vm843_vm4, %v798_v43  ;;  %v4396_v39 = vld [vmem:[#allocation2 + $0x49] sm:$0xff] }
 0x1e7   : > { %5226 = vrot.lane.b32.xlu1 %v12125_v38, %s10838_s18  ;;  %v3438_v59 = vld [vmem:[#allocation2 + $0x48] sm:$0xff]  ;;  %v10015_v7 = vpack.c.bf16 %v4396_v39, %v4396_v39  ;;  %v1053_v57 = vpop.permute.xlu0 %1052 }
 0x1e8   : > { %v9889_v6 = vpack.c.bf16 %v3438_v59, %v3438_v59  ;;  %1125 = vst.msk [vmem:[#allocation3 + $0x120] sm:$0xf] %vm1100_vm5, %v1053_v57  ;;  %v4842_v31 = vld [vmem:[#allocation2 + $0x48] sm:$0xff] }
 0x1e9   : > { %v1761_v24 = vpop.permute.xlu1 %1760  ;;  %v2589_v61 = vld [vmem:[#allocation3 + $0x114] sm:$0xff]  ;;  %4556 = vst.msk [vmem:[#allocation3 + $0x34] sm:$0xf] %vm586_vm3, %v10015_v7  ;;  %4716 = vrot.lane.b32.xlu0 %v12054_v29, %s10836_s25  ;;  %v12160_v53 = vpack.c.bf16 %v4842_v31, %v4842_v31 }
 0x1ea   : > { %v10646_v45 = vld [vmem:[#allocation3 + $0x10c] ss:$12 sps:$4 sm:$0xff]   ;;  %1831 = vst.msk [vmem:[#allocation3 + $0x130] sm:$0xf] %vm843_vm4, %v1761_v24  ;;  %v9066_v27 = vcombine.low %v2587_v25, %v2589_v61  ;;  %v4589_v12 = vld [vmem:[#allocation2 + $0x52] sm:$0xff] }
 0x1eb   : > { %v4588_v28 = vld [vmem:[#allocation2 + $0x4a] sm:$0xff]  ;;  %3598 = vst.msk [vmem:[#allocation3 + $0x48] sm:$0xf] %vm586_vm3, %v9889_v6  ;;  %3758 = vrot.lane.b32.xlu1 %v11974_v63, %s10836_s25  ;;  %3166 = vmatprep.mubr.bf16.mxu0 %v10646_v45  ;;  %v12144_v26 = vpack.c.bf16 %v4589_v12, %v4589_v12  ;;  %v2016_v63 = vpop.permute.xlu0 %2015 }
 0x1ec   : > { %v12140_v30 = vpack.c.bf16 %v4588_v28, %v4588_v28  ;;  %v4397_v36 = vld [vmem:[#allocation2 + $0x51] sm:$0xff]  ;;  %v10206_v17 = vpop.f32.mrf.mxu0  ;;  %3167 = vmatmul.mubr.bf16.gmra.mxu0 %v9066_v27  ;;  %2087 = vst.msk [vmem:[#allocation3 + $0x124] sm:$0xf] %vm1100_vm5, %v2016_v63 }
 0x1ed   : > { %v3439_v2 = vld [vmem:[#allocation2 + $0x50] sm:$0xff]  ;;  %v10016_v15 = vpack.c.bf16 %v4397_v36, %v4397_v36  ;;  %v1055_v62 = vpop.permute.xlu1 %1054  ;;  %5515 = vst.msk [vmem:[#allocation3 + $0x2c] sm:$0xf] %vm586_vm3, %v12144_v26  ;;  %4012 = vrot.lane.b32.xlu0 %v12049_v33, %s10837_s26 }
 0x1ee   : > { %v9890_v13 = vpack.c.bf16 %v3439_v2, %v3439_v2  ;;  %5514 = vst.msk [vmem:[#allocation3 + $0x20] sm:$0xf] %vm586_vm3, %v12140_v30  ;;  %v10207_v60 = vpop.f32.mrf.mxu0  ;;  %v4843_v3 = vld [vmem:[#allocation2 + $0x50] sm:$0xff] }
 0x1ef   : > { %1126 = vst.msk [vmem:[#allocation3 + $0x12c] sm:$0xf] %vm1100_vm5, %v1055_v62  ;;  %v10208_v54 = vadd.f32 %v10207_v60, %v10206_v17  ;;  %4718 = vrot.lane.b32.xlu1 %v12062_v35, %s10836_s25  ;;  %v1310_v23 = vpop.permute.xlu0 %1309  ;;  %v12169_v21 = vpack.c.bf16 %v4843_v3, %v4843_v3  ;;  %v5099_v11 = vld [vmem:[#allocation2 + $0x51] sm:$0xff] }
 0x1f0   : > { %4557 = vst.msk [vmem:[#allocation3 + $0x40] sm:$0xf] %vm586_vm3, %v10016_v15  ;;  %3599 = vst.msk [vmem:[#allocation3 + $0x54] sm:$0xf] %vm586_vm3, %v9890_v13  ;;  %v10209_v16 = vpop.f32.mrf.mxu0 }
 0x1f1   : > { %v3105_v37 = vadd.f32 %v10208_v54, %v11914_v8  ;;  %v2018_v20 = vpop.permute.xlu1 %2017  ;;  %1382 = vst.msk [vmem:[#allocation3 + $0x120] sm:$0xf] %vm1357_vm6, %v1310_v23  ;;  %4972 = vrot.lane.b32.xlu0 %v12160_v53, %s10837_s26 }
 0x1f2   : > { %2088 = vst.msk [vmem:[#allocation3 + $0x130] sm:$0xf] %vm1100_vm5, %v2018_v20  ;;  %v10210_v44 = vpop.f32.mrf.mxu0 }
 0x1f3   : > { %v3266_v55 = vadd.f32 %v12043_v14, %v3105_v37  ;;  %v10211_v18 = vadd.f32 %v10210_v44, %v10209_v16  ;;  %4014 = vrot.lane.b32.xlu1 %v12067_v5, %s10837_s26  ;;  %v2272_v52 = vpop.permute.xlu0 %2271  ;;  %v5098_v5 = vld [vmem:[#allocation2 + $0x49] sm:$0xff] }
 0x1f4   : > { %2343 = vst.msk [vmem:[#allocation3 + $0x124] sm:$0xf] %vm1357_vm6, %v2272_v52  ;;  %v12180_v46 = vpack.c.bf16 %v5098_v5, %v5098_v5 }
 0x1f5   : > { %v3374_v33 = vmax.f32 %v3266_v55, 0.0  ;;  %v3108_v22 = vadd.f32 %v10211_v18, %v11914_v8  ;;  %v1312_v9 = vpop.permute.xlu1 %1311  ;;  %4268 = vrot.lane.b32.xlu0 %v12090_v50, %s10838_s18  ;;  %v12188_v50 = vpack.c.bf16 %v5099_v11, %v5099_v11 }
 0x1f6   : > { %1383 = vst.msk [vmem:[#allocation3 + $0x12c] sm:$0xf] %vm1357_vm6, %v1312_v9 }
 0x1f7   : > { %3406 = vst.msk [vmem:[#allocation2 + $0x61] sm:$0xff] %vm319_vm0, %v3374_v33  ;;  %v3269_v14 = vadd.f32 %v12083_v34, %v3108_v22  ;;  %4974 = vrot.lane.b32.xlu1 %v12169_v21, %s10837_s26  ;;  %v800_v58 = vpop.permute.xlu0 %799 }
 0x1f8   : > { %870 = vst.msk [vmem:[#allocation3 + $0x138] sm:$0xf] %vm843_vm4, %v800_v58 }
 0x1f9   : > { %v3375_v48 = vmax.f32 %v3269_v14, 0.0  ;;  %v2274_v10 = vpop.permute.xlu1 %2273  ;;  %5228 = vrot.lane.b32.xlu0 %v12180_v46, %s10838_s18 }
 0x1fa   : > { %2344 = vst.msk [vmem:[#allocation3 + $0x130] sm:$0xf] %vm1357_vm6, %v2274_v10 }
 0x1fb   : > { %3407 = vst.msk [vmem:[#allocation2 + $0x69] sm:$0xff] %vm319_vm0, %v3375_v48  ;;  %4270 = vrot.lane.b32.xlu1 %v12100_v19, %s10838_s18  ;;  %v1763_v40 = vpop.permute.xlu0 %1762  ;;  %v12196_v19 = vpop.f32.mrf.mxu1  ;;  %v2591_v32 = vld [vmem:[#allocation3 + $0x120] sm:$0xff] }
 0x1fc   : > { %1832 = vst.msk [vmem:[#allocation3 + $0x13c] sm:$0xf] %vm843_vm4, %v1763_v40 }
 0x1fd   : > { %v802_v34 = vpop.permute.xlu1 %801  ;;  %3760 = vrot.lane.b32.xlu0 %v12115_v4, %s10836_s25  ;;  %v3273_v25 = vpop.f32.mrf.mxu1 }
 0x1fe   : > { %871 = vst.msk [vmem:[#allocation3 + $0x144] sm:$0xf] %vm843_vm4, %v802_v34  ;;  %v4398_v47 = vld [vmem:[#allocation2 + $0x61] sm:$0xff] }
 0x1ff   : > { %5230 = vrot.lane.b32.xlu1 %v12188_v50, %s10838_s18  ;;  %v3440_v51 = vld [vmem:[#allocation2 + $0x60] sm:$0xff]  ;;  %v10017_v0 = vpack.c.bf16 %v4398_v47, %v4398_v47  ;;  %v1057_v43 = vpop.permute.xlu0 %1056  ;;  %v12222_v17 = vpop.f32.mrf.mxu1 }
 0x200   : > { %v9891_v56 = vpack.c.bf16 %v3440_v51, %v3440_v51  ;;  %1127 = vst.msk [vmem:[#allocation3 + $0x138] sm:$0xf] %vm1100_vm5, %v1057_v43  ;;  %v4844_v36 = vld [vmem:[#allocation2 + $0x60] sm:$0xff] }
 0x201   : > { %v1765_v41 = vpop.permute.xlu1 %1764  ;;  %v2593_v49 = vld [vmem:[#allocation3 + $0x12c] sm:$0xff]  ;;  %4558 = vst.msk [vmem:[#allocation3 + $0x4c] sm:$0xf] %vm586_vm3, %v10017_v0  ;;  %4720 = vrot.lane.b32.xlu0 %v12140_v30, %s10836_s25  ;;  %v12226_v60 = vpack.c.bf16 %v4844_v36, %v4844_v36 }
 0x202   : > { %v10648_v42 = vld [vmem:[#allocation3 + $0x124] ss:$12 sps:$4 sm:$0xff]   ;;  %1833 = vst.msk [vmem:[#allocation3 + $0x148] sm:$0xf] %vm843_vm4, %v1765_v41  ;;  %v9069_v1 = vcombine.low %v2591_v32, %v2593_v49  ;;  %v4591_v59 = vld [vmem:[#allocation2 + $0x6a] sm:$0xff] }
 0x203   : > { %v4590_v39 = vld [vmem:[#allocation2 + $0x62] sm:$0xff]  ;;  %3600 = vst.msk [vmem:[#allocation3 + $0x60] sm:$0xf] %vm586_vm3, %v9891_v56  ;;  %3762 = vrot.lane.b32.xlu1 %v12125_v38, %s10836_s25  ;;  %3174 = vmatprep.mubr.bf16.mxu0 %v10648_v42  ;;  %v12208_v61 = vpack.c.bf16 %v4591_v59, %v4591_v59  ;;  %v2020_v38 = vpop.permute.xlu0 %2019 }
 0x204   : > { %v12204_v4 = vpack.c.bf16 %v4590_v39, %v4590_v39  ;;  %v4399_v7 = vld [vmem:[#allocation2 + $0x69] sm:$0xff]  ;;  %v10212_v24 = vpop.f32.mrf.mxu0  ;;  %3175 = vmatmul.mubr.bf16.gmra.mxu0 %v9069_v1  ;;  %2089 = vst.msk [vmem:[#allocation3 + $0x13c] sm:$0xf] %vm1100_vm5, %v2020_v38 }
 0x205   : > { %v3441_v6 = vld [vmem:[#allocation2 + $0x68] sm:$0xff]  ;;  %v10018_v45 = vpack.c.bf16 %v4399_v7, %v4399_v7  ;;  %v1059_v27 = vpop.permute.xlu1 %1058  ;;  %5517 = vst.msk [vmem:[#allocation3 + $0x44] sm:$0xf] %vm586_vm3, %v12208_v61  ;;  %4016 = vrot.lane.b32.xlu0 %v12054_v29, %s10837_s26  ;;  %v3276_v29 = vpop.f32.mrf.mxu1 }
 0x206   : > { %v9892_v57 = vpack.c.bf16 %v3441_v6, %v3441_v6  ;;  %5516 = vst.msk [vmem:[#allocation3 + $0x38] sm:$0xf] %vm586_vm3, %v12204_v4  ;;  %v10213_v28 = vpop.f32.mrf.mxu0  ;;  %v4845_v54 = vld [vmem:[#allocation2 + $0x68] sm:$0xff] }
 0x207   : > { %1128 = vst.msk [vmem:[#allocation3 + $0x144] sm:$0xf] %vm1100_vm5, %v1059_v27  ;;  %v10214_v12 = vadd.f32 %v10213_v28, %v10212_v24  ;;  %4722 = vrot.lane.b32.xlu1 %v12144_v26, %s10836_s25  ;;  %v1314_v62 = vpop.permute.xlu0 %1313  ;;  %v12234_v44 = vpack.c.bf16 %v4845_v54, %v4845_v54  ;;  %v5101_v9 = vld [vmem:[#allocation2 + $0x69] sm:$0xff] }
 0x208   : > { %4559 = vst.msk [vmem:[#allocation3 + $0x58] sm:$0xf] %vm586_vm3, %v10018_v45  ;;  %3601 = vst.msk [vmem:[#allocation3 + $0x6c] sm:$0xf] %vm586_vm3, %v9892_v57  ;;  %v10215_v2 = vpop.f32.mrf.mxu0 }
 0x209   : > { %v2022_v15 = vpop.permute.xlu1 %2021  ;;  %v3113_v13 = vadd.f32 %v10214_v12, %v11914_v8  ;;  %1384 = vst.msk [vmem:[#allocation3 + $0x138] sm:$0xf] %vm1357_vm6, %v1314_v62  ;;  %4976 = vrot.lane.b32.xlu0 %v12226_v60, %s10837_s26 }
 0x20a   : > { %2090 = vst.msk [vmem:[#allocation3 + $0x148] sm:$0xf] %vm1100_vm5, %v2022_v15  ;;  %v10216_v63 = vpop.f32.mrf.mxu0 }
 0x20b   : > { %v3274_v31 = vadd.f32 %v3273_v25, %v3113_v13  ;;  %v10217_v16 = vadd.f32 %v10216_v63, %v10215_v2  ;;  %4018 = vrot.lane.b32.xlu1 %v12062_v35, %s10837_s26  ;;  %v2276_v3 = vpop.permute.xlu0 %2275  ;;  %v5100_v35 = vld [vmem:[#allocation2 + $0x61] sm:$0xff]  ;;  %v12287_v25 = vld [vmem:[%s15619_s2] ss:$0 sm:$0xff] }
 0x20c   : > { %2345 = vst.msk [vmem:[#allocation3 + $0x13c] sm:$0xf] %vm1357_vm6, %v2276_v3  ;;  %v12244_v22 = vpack.c.bf16 %v5100_v35, %v5100_v35 }
 0x20d   : > { %v3376_v37 = vmax.f32 %v3274_v31, 0.0  ;;  %v1316_v20 = vpop.permute.xlu1 %1315  ;;  %v3116_v23 = vadd.f32 %v10217_v16, %v11914_v8  ;;  %4272 = vrot.lane.b32.xlu0 %v12160_v53, %s10838_s18  ;;  %v12252_v53 = vpack.c.bf16 %v5101_v9, %v5101_v9 }
 0x20e   : > { %1385 = vst.msk [vmem:[#allocation3 + $0x144] sm:$0xf] %vm1357_vm6, %v1316_v20 }
 0x20f   : > { %3408 = vst.msk [vmem:[#allocation2 + $0x79] sm:$0xff] %vm319_vm0, %v3376_v37  ;;  %v3277_v55 = vadd.f32 %v3276_v29, %v3116_v23  ;;  %4978 = vrot.lane.b32.xlu1 %v12234_v44, %s10837_s26  ;;  %v804_v8 = vpop.permute.xlu0 %803 }
 0x210   : > { %872 = vst.msk [vmem:[#allocation3 + $0x150] sm:$0xf] %vm843_vm4, %v804_v8 }
 0x211   : > { %v3377_v18 = vmax.f32 %v3277_v55, 0.0  ;;  %v2278_v33 = vpop.permute.xlu1 %2277  ;;  %5232 = vrot.lane.b32.xlu0 %v12244_v22, %s10838_s18 }
 0x212   : > { %2346 = vst.msk [vmem:[#allocation3 + $0x148] sm:$0xf] %vm1357_vm6, %v2278_v33 }
 0x213   : > { %3409 = vst.msk [vmem:[#allocation2 + $0x81] sm:$0xff] %vm319_vm0, %v3377_v18  ;;  %4274 = vrot.lane.b32.xlu1 %v12169_v21, %s10838_s18  ;;  %v1767_v14 = vpop.permute.xlu0 %1766  ;;  %v2595_v11 = vld [vmem:[#allocation3 + $0x138] sm:$0xff] }
 0x214   : > { %1834 = vst.msk [vmem:[#allocation3 + $0x154] sm:$0xf] %vm843_vm4, %v1767_v14 }
 0x215   : > { %v806_v52 = vpop.permute.xlu1 %805  ;;  %3764 = vrot.lane.b32.xlu0 %v12180_v46, %s10836_s25 }
 0x216   : > { %873 = vst.msk [vmem:[#allocation3 + $0x15c] sm:$0xf] %vm843_vm4, %v806_v52  ;;  %v4400_v5 = vld [vmem:[#allocation2 + $0x79] sm:$0xff] }
 0x217   : > { %5234 = vrot.lane.b32.xlu1 %v12252_v53, %s10838_s18  ;;  %v3442_v48 = vld [vmem:[#allocation2 + $0x78] sm:$0xff]  ;;  %v10019_v21 = vpack.c.bf16 %v4400_v5, %v4400_v5  ;;  %v1061_v47 = vpop.permute.xlu0 %1060 }
 0x218   : > { %v9893_v10 = vpack.c.bf16 %v3442_v48, %v3442_v48  ;;  %1129 = vst.msk [vmem:[#allocation3 + $0x150] sm:$0xf] %vm1100_vm5, %v1061_v47  ;;  %v4846_v6 = vld [vmem:[#allocation2 + $0x78] sm:$0xff] }
 0x219   : > { %v1769_v58 = vpop.permute.xlu1 %1768  ;;  %v2597_v34 = vld [vmem:[#allocation3 + $0x144] sm:$0xff]  ;;  %4560 = vst.msk [vmem:[#allocation3 + $0x64] sm:$0xf] %vm586_vm3, %v10019_v21  ;;  %4724 = vrot.lane.b32.xlu0 %v12204_v4, %s10836_s25  ;;  %v12291_v28 = vpack.c.bf16 %v4846_v6, %v4846_v6 }
 0x21a   : > { %v10652_v40 = vld [vmem:[#allocation3 + $0x13c] ss:$12 sps:$4 sm:$0xff]   ;;  %1835 = vst.msk [vmem:[#allocation3 + $0x160] sm:$0xf] %vm843_vm4, %v1769_v58  ;;  %v9072_v51 = vcombine.low %v2595_v11, %v2597_v34  ;;  %v4593_v56 = vld [vmem:[#allocation2 + $0x82] sm:$0xff] }
 0x21b   : > { %v4592_v0 = vld [vmem:[#allocation2 + $0x7a] sm:$0xff]  ;;  %3602 = vst.msk [vmem:[#allocation3 + $0x78] sm:$0xf] %vm586_vm3, %v9893_v10  ;;  %3766 = vrot.lane.b32.xlu1 %v12188_v50, %s10836_s25  ;;  %3182 = vmatprep.mubr.bf16.mxu0 %v10652_v40  ;;  %v12270_v42 = vpack.c.bf16 %v4593_v56, %v4593_v56  ;;  %v2024_v50 = vpop.permute.xlu0 %2023 }
 0x21c   : > { %v12266_v46 = vpack.c.bf16 %v4592_v0, %v4592_v0  ;;  %v4401_v41 = vld [vmem:[#allocation2 + $0x81] sm:$0xff]  ;;  %v10218_v49 = vpop.f32.mrf.mxu0  ;;  %3183 = vmatmul.mubr.bf16.gmra.mxu0 %v9072_v51  ;;  %2091 = vst.msk [vmem:[#allocation3 + $0x154] sm:$0xf] %vm1100_vm5, %v2024_v50 }
 0x21d   : > { %v3443_v32 = vld [vmem:[#allocation2 + $0x80] sm:$0xff]  ;;  %v10020_v43 = vpack.c.bf16 %v4401_v41, %v4401_v41  ;;  %v1063_v39 = vpop.permute.xlu1 %1062  ;;  %5519 = vst.msk [vmem:[#allocation3 + $0x5c] sm:$0xf] %vm586_vm3, %v12270_v42  ;;  %4020 = vrot.lane.b32.xlu0 %v12140_v30, %s10837_s26 }
 0x21e   : > { %v9894_v1 = vpack.c.bf16 %v3443_v32, %v3443_v32  ;;  %5518 = vst.msk [vmem:[#allocation3 + $0x50] sm:$0xf] %vm586_vm3, %v12266_v46  ;;  %v10219_v59 = vpop.f32.mrf.mxu0  ;;  %v4847_v12 = vld [vmem:[#allocation2 + $0x80] sm:$0xff] }
 0x21f   : > { %1130 = vst.msk [vmem:[#allocation3 + $0x15c] sm:$0xf] %vm1100_vm5, %v1063_v39  ;;  %v10220_v7 = vadd.f32 %v10219_v59, %v10218_v49  ;;  %4726 = vrot.lane.b32.xlu1 %v12208_v61, %s10836_s25  ;;  %v1318_v27 = vpop.permute.xlu0 %1317  ;;  %v12300_v62 = vpack.c.bf16 %v4847_v12, %v4847_v12  ;;  %v5103_v37 = vld [vmem:[#allocation2 + $0x81] sm:$0xff] }
 0x220   : > { %4561 = vst.msk [vmem:[#allocation3 + $0x70] sm:$0xf] %vm586_vm3, %v10020_v43  ;;  %3603 = vst.msk [vmem:[#allocation3 + $0x84] sm:$0xf] %vm586_vm3, %v9894_v1  ;;  %v10221_v24 = vpop.f32.mrf.mxu0 }
 0x221   : > { %v3121_v45 = vadd.f32 %v12287_v25, %v10220_v7  ;;  %v2026_v57 = vpop.permute.xlu1 %2025  ;;  %1386 = vst.msk [vmem:[#allocation3 + $0x150] sm:$0xf] %vm1357_vm6, %v1318_v27  ;;  %4980 = vrot.lane.b32.xlu0 %v12291_v28, %s10837_s26 }
 0x222   : > { %2092 = vst.msk [vmem:[#allocation3 + $0x160] sm:$0xf] %vm1100_vm5, %v2026_v57  ;;  %v10222_v38 = vpop.f32.mrf.mxu0 }
 0x223   : > { %v3282_v36 = vadd.f32 %v12196_v19, %v3121_v45  ;;  %v10223_v30 = vadd.f32 %v10222_v38, %v10221_v24  ;;  %4022 = vrot.lane.b32.xlu1 %v12144_v26, %s10837_s26  ;;  %v2280_v63 = vpop.permute.xlu0 %2279  ;;  %v5102_v26 = vld [vmem:[#allocation2 + $0x79] sm:$0xff] }
 0x224   : > { %2347 = vst.msk [vmem:[#allocation3 + $0x154] sm:$0xf] %vm1357_vm6, %v2280_v63  ;;  %v12311_v29 = vpack.c.bf16 %v5102_v26, %v5102_v26 }
 0x225   : > { %v3378_v2 = vmax.f32 %v3282_v36, 0.0  ;;  %v3124_v15 = vadd.f32 %v12287_v25, %v10223_v30  ;;  %v1320_v13 = vpop.permute.xlu1 %1319  ;;  %4276 = vrot.lane.b32.xlu0 %v12226_v60, %s10838_s18  ;;  %v12319_v60 = vpack.c.bf16 %v5103_v37, %v5103_v37 }
 0x226   : > { %1387 = vst.msk [vmem:[#allocation3 + $0x15c] sm:$0xf] %vm1357_vm6, %v1320_v13 }
 0x227   : > { %3410 = vst.msk [vmem:[#allocation2 + $0x91] sm:$0xff] %vm319_vm0, %v3378_v2  ;;  %v3285_v19 = vadd.f32 %v12222_v17, %v3124_v15  ;;  %4982 = vrot.lane.b32.xlu1 %v12300_v62, %s10837_s26  ;;  %v808_v16 = vpop.permute.xlu0 %807 }
 0x228   : > { %874 = vst.msk [vmem:[#allocation3 + $0x168] sm:$0xf] %vm843_vm4, %v808_v16 }
 0x229   : > { %v3379_v54 = vmax.f32 %v3285_v19, 0.0  ;;  %v2282_v31 = vpop.permute.xlu1 %2281  ;;  %5236 = vrot.lane.b32.xlu0 %v12311_v29, %s10838_s18 }
 0x22a   : > { %2348 = vst.msk [vmem:[#allocation3 + $0x160] sm:$0xf] %vm1357_vm6, %v2282_v31 }
 0x22b   : > { %3411 = vst.msk [vmem:[#allocation2 + $0x99] sm:$0xff] %vm319_vm0, %v3379_v54  ;;  %4278 = vrot.lane.b32.xlu1 %v12234_v44, %s10838_s18  ;;  %v1771_v20 = vpop.permute.xlu0 %1770  ;;  %v12327_v44 = vpop.f32.mrf.mxu1  ;;  %v2599_v33 = vld [vmem:[#allocation3 + $0x150] sm:$0xff] }
 0x22c   : > { %1836 = vst.msk [vmem:[#allocation3 + $0x16c] sm:$0xf] %vm843_vm4, %v1771_v20 }
 0x22d   : > { %v810_v17 = vpop.permute.xlu1 %809  ;;  %3768 = vrot.lane.b32.xlu0 %v12244_v22, %s10836_s25  ;;  %v3289_v11 = vpop.f32.mrf.mxu1 }
 0x22e   : > { %875 = vst.msk [vmem:[#allocation3 + $0x174] sm:$0xf] %vm843_vm4, %v810_v17  ;;  %v4402_v23 = vld [vmem:[#allocation2 + $0x91] sm:$0xff] }
 0x22f   : > { %5238 = vrot.lane.b32.xlu1 %v12319_v60, %s10838_s18  ;;  %v3444_v3 = vld [vmem:[#allocation2 + $0x90] sm:$0xff]  ;;  %v10021_v55 = vpack.c.bf16 %v4402_v23, %v4402_v23  ;;  %v1065_v52 = vpop.permute.xlu0 %1064  ;;  %v12353_v49 = vpop.f32.mrf.mxu1 }
 0x230   : > { %v9895_v35 = vpack.c.bf16 %v3444_v3, %v3444_v3  ;;  %1131 = vst.msk [vmem:[#allocation3 + $0x168] sm:$0xf] %vm1100_vm5, %v1065_v52  ;;  %v4848_v41 = vld [vmem:[#allocation2 + $0x90] sm:$0xff] }
 0x231   : > { %v1773_v18 = vpop.permute.xlu1 %1772  ;;  %v2601_v8 = vld [vmem:[#allocation3 + $0x15c] sm:$0xff]  ;;  %4562 = vst.msk [vmem:[#allocation3 + $0x7c] sm:$0xf] %vm586_vm3, %v10021_v55  ;;  %4728 = vrot.lane.b32.xlu0 %v12266_v46, %s10836_s25  ;;  %v12357_v59 = vpack.c.bf16 %v4848_v41, %v4848_v41 }
 0x232   : > { %v10654_v9 = vld [vmem:[#allocation3 + $0x154] ss:$12 sps:$4 sm:$0xff]   ;;  %1837 = vst.msk [vmem:[#allocation3 + $0x178] sm:$0xf] %vm843_vm4, %v1773_v18  ;;  %v9075_v14 = vcombine.low %v2599_v33, %v2601_v8  ;;  %v4595_v48 = vld [vmem:[#allocation2 + $0x9a] sm:$0xff] }
 0x233   : > { %v4594_v5 = vld [vmem:[#allocation2 + $0x92] sm:$0xff]  ;;  %3604 = vst.msk [vmem:[#allocation3 + $0x90] sm:$0xf] %vm586_vm3, %v9895_v35  ;;  %3770 = vrot.lane.b32.xlu1 %v12252_v53, %s10836_s25  ;;  %3190 = vmatprep.mubr.bf16.mxu0 %v10654_v9  ;;  %v12339_v34 = vpack.c.bf16 %v4595_v48, %v4595_v48  ;;  %v2028_v53 = vpop.permute.xlu0 %2027 }
 0x234   : > { %v12335_v22 = vpack.c.bf16 %v4594_v5, %v4594_v5  ;;  %v4403_v21 = vld [vmem:[#allocation2 + $0x99] sm:$0xff]  ;;  %v10224_v58 = vpop.f32.mrf.mxu0  ;;  %3191 = vmatmul.mubr.bf16.gmra.mxu0 %v9075_v14  ;;  %2093 = vst.msk [vmem:[#allocation3 + $0x16c] sm:$0xf] %vm1100_vm5, %v2028_v53 }
 0x235   : > { %v3445_v10 = vld [vmem:[#allocation2 + $0x98] sm:$0xff]  ;;  %v10022_v40 = vpack.c.bf16 %v4403_v21, %v4403_v21  ;;  %v1067_v51 = vpop.permute.xlu1 %1066  ;;  %5521 = vst.msk [vmem:[#allocation3 + $0x74] sm:$0xf] %vm586_vm3, %v12339_v34  ;;  %4024 = vrot.lane.b32.xlu0 %v12204_v4, %s10837_s26  ;;  %v3292_v4 = vpop.f32.mrf.mxu1 }
 0x236   : > { %v9896_v47 = vpack.c.bf16 %v3445_v10, %v3445_v10  ;;  %5520 = vst.msk [vmem:[#allocation3 + $0x68] sm:$0xf] %vm586_vm3, %v12335_v22  ;;  %v10225_v0 = vpop.f32.mrf.mxu0  ;;  %v4849_v7 = vld [vmem:[#allocation2 + $0x98] sm:$0xff] }
 0x237   : > { %1132 = vst.msk [vmem:[#allocation3 + $0x174] sm:$0xf] %vm1100_vm5, %v1067_v51  ;;  %v10226_v56 = vadd.f32 %v10225_v0, %v10224_v58  ;;  %4730 = vrot.lane.b32.xlu1 %v12270_v42, %s10836_s25  ;;  %v1322_v39 = vpop.permute.xlu0 %1321  ;;  %v12365_v38 = vpack.c.bf16 %v4849_v7, %v4849_v7  ;;  %v5105_v63 = vld [vmem:[#allocation2 + $0x99] sm:$0xff] }
 0x238   : > { %4563 = vst.msk [vmem:[#allocation3 + $0x88] sm:$0xf] %vm586_vm3, %v10022_v40  ;;  %3605 = vst.msk [vmem:[#allocation3 + $0x9c] sm:$0xf] %vm586_vm3, %v9896_v47  ;;  %v10227_v32 = vpop.f32.mrf.mxu0  ;;  %v10667_v35 = vld [vmem:[#allocation3 + $0x8] ss:$12 sps:$4 sm:$0xff]  }
 0x239   : > { %v2030_v43 = vpop.permute.xlu1 %2029  ;;  %v3129_v1 = vadd.f32 %v12287_v25, %v10226_v56  ;;  %1388 = vst.msk [vmem:[#allocation3 + $0x168] sm:$0xf] %vm1357_vm6, %v1322_v39  ;;  %4984 = vrot.lane.b32.xlu0 %v12357_v59, %s10837_s26  ;;  %v10672_v56 = vld [vmem:[#allocation3 + $0x20] ss:$12 sps:$4 sm:$0xff]  }
 0x23a   : > { %2094 = vst.msk [vmem:[#allocation3 + $0x178] sm:$0xf] %vm1100_vm5, %v2030_v43  ;;  %v10228_v50 = vpop.f32.mrf.mxu0 }
 0x23b   : > { %v3290_v6 = vadd.f32 %v3289_v11, %v3129_v1  ;;  %v10229_v24 = vadd.f32 %v10228_v50, %v10227_v32  ;;  %4026 = vrot.lane.b32.xlu1 %v12208_v61, %s10837_s26  ;;  %v2284_v12 = vpop.permute.xlu0 %2283  ;;  %v5104_v61 = vld [vmem:[#allocation2 + $0x91] sm:$0xff] }
 0x23c   : > { %2349 = vst.msk [vmem:[#allocation3 + $0x16c] sm:$0xf] %vm1357_vm6, %v2284_v12  ;;  %v12375_v13 = vpack.c.bf16 %v5104_v61, %v5104_v61 }
 0x23d   : > { %v3380_v45 = vmax.f32 %v3290_v6, 0.0  ;;  %v1324_v57 = vpop.permute.xlu1 %1323  ;;  %v3132_v27 = vadd.f32 %v12287_v25, %v10229_v24  ;;  %4280 = vrot.lane.b32.xlu0 %v12291_v28, %s10838_s18  ;;  %v12383_v28 = vpack.c.bf16 %v5105_v63, %v5105_v63 }
 0x23e   : > { %1389 = vst.msk [vmem:[#allocation3 + $0x174] sm:$0xf] %vm1357_vm6, %v1324_v57 }
 0x23f   : > { %3412 = vst.msk [vmem:[#allocation2 + $0xa9] sm:$0xff] %vm319_vm0, %v3380_v45  ;;  %v3293_v36 = vadd.f32 %v3292_v4, %v3132_v27  ;;  %4986 = vrot.lane.b32.xlu1 %v12365_v38, %s10837_s26  ;;  %v3753_v15 = vpop.permute.xlu0 %3752  ;;  %v10678_v27 = vld [vmem:[#allocation3 + $0x50] ss:$12 sps:$4 sm:$0xff]  }
 0x240   : > { %3848 = vst.msk [vmem:[#allocation3] sm:$0xf] %vm843_vm4, %v3753_v15  ;;  %v12458_v15 = vpop.f32.mrf.mxu1 }
 0x241   : > { %v3381_v30 = vmax.f32 %v3293_v36, 0.0  ;;  %v2286_v2 = vpop.permute.xlu1 %2285  ;;  %5240 = vrot.lane.b32.xlu0 %v12375_v13, %s10838_s18 }
 0x242   : > { %2350 = vst.msk [vmem:[#allocation3 + $0x178] sm:$0xf] %vm1357_vm6, %v2286_v2 }
 0x243   : > { %3413 = vst.msk [vmem:[#allocation2 + $0xb1] sm:$0xff] %vm319_vm0, %v3381_v30  ;;  %4282 = vrot.lane.b32.xlu1 %v12300_v62, %s10838_s18  ;;  %v4713_v26 = vpop.permute.xlu0 %4712  ;;  %v2603_v17 = vld [vmem:[#allocation3 + $0x168] sm:$0xff] }
 0x244   : > { %4808 = vst.msk [vmem:[#allocation3 + $0x4] sm:$0xf] %vm843_vm4, %v4713_v26 }
 0x245   : > { %v3755_v19 = vpop.permute.xlu1 %3754  ;;  %3772 = vrot.lane.b32.xlu0 %v12311_v29, %s10836_s25 }
 0x246   : > { %3849 = vst.msk [vmem:[#allocation3 + $0xc] sm:$0xf] %vm843_vm4, %v3755_v19  ;;  %v4404_v54 = vld [vmem:[#allocation2 + $0xa9] sm:$0xff] }
 0x247   : > { %5242 = vrot.lane.b32.xlu1 %v12383_v28, %s10838_s18  ;;  %v3446_v31 = vld [vmem:[#allocation2 + $0xa8] sm:$0xff]  ;;  %v10023_v62 = vpack.c.bf16 %v4404_v54, %v4404_v54  ;;  %v4009_v3 = vpop.permute.xlu0 %4008 }
 0x248   : > { %v9897_v16 = vpack.c.bf16 %v3446_v31, %v3446_v31  ;;  %4104 = vst.msk [vmem:[#allocation3] sm:$0xf] %vm1100_vm5, %v4009_v3  ;;  %v4850_v11 = vld [vmem:[#allocation2 + $0xa8] sm:$0xff] }
 0x249   : > { %v4715_v37 = vpop.permute.xlu1 %4714  ;;  %v2605_v20 = vld [vmem:[#allocation3 + $0x174] sm:$0xff]  ;;  %4564 = vst.msk [vmem:[#allocation3 + $0x94] sm:$0xf] %vm586_vm3, %v10023_v62  ;;  %4732 = vrot.lane.b32.xlu0 %v12335_v22, %s10836_s25  ;;  %v12418_v41 = vpack.c.bf16 %v4850_v11, %v4850_v11 }
 0x24a   : > { %v10662_v23 = vld [vmem:[#allocation3 + $0x16c] ss:$12 sps:$4 sm:$0xff]   ;;  %4809 = vst.msk [vmem:[#allocation3 + $0x10] sm:$0xf] %vm843_vm4, %v4715_v37  ;;  %v9078_v55 = vcombine.low %v2603_v17, %v2605_v20  ;;  %v5363_v29 = vld [vmem:[#allocation2 + $0xb2] sm:$0xff] }
 0x24b   : > { %v5362_v18 = vld [vmem:[#allocation2 + $0xaa] sm:$0xff]  ;;  %3606 = vst.msk [vmem:[#allocation3 + $0xa8] sm:$0xf] %vm586_vm3, %v9897_v16  ;;  %3774 = vrot.lane.b32.xlu1 %v12319_v60, %s10836_s25  ;;  %3198 = vmatprep.mubr.bf16.mxu0 %v10662_v23  ;;  %v12401_v14 = vpack.c.bf16 %v5363_v29, %v5363_v29  ;;  %v4969_v10 = vpop.permute.xlu0 %4968 }
 0x24c   : > { %v12397_v33 = vpack.c.bf16 %v5362_v18, %v5362_v18  ;;  %v4405_v8 = vld [vmem:[#allocation2 + $0xb1] sm:$0xff]  ;;  %v10230_v52 = vpop.f32.mrf.mxu0  ;;  %3199 = vmatmul.mubr.bf16.gmra.mxu0 %v9078_v55  ;;  %5064 = vst.msk [vmem:[#allocation3 + $0x4] sm:$0xf] %vm1100_vm5, %v4969_v10  ;;  %v5106_v24 = vld [vmem:[#allocation2 + $0xa9] sm:$0xff] }
 0x24d   : > { %v3447_v9 = vld [vmem:[#allocation2 + $0xb0] sm:$0xff]  ;;  %v10024_v5 = vpack.c.bf16 %v4405_v8, %v4405_v8  ;;  %v4011_v21 = vpop.permute.xlu1 %4010  ;;  %10479 = vmatprep.mubr.msk.bf16.mxu0 %vm319_vm0, %v10667_v35  ;;  %5523 = vst.msk [vmem:[#allocation3 + $0x8c] sm:$0xf] %vm586_vm3, %v12401_v14  ;;  %4028 = vrot.lane.b32.xlu0 %v12266_v46, %s10837_s26  ;;  %v12440_v12 = vpack.c.bf16 %v5106_v24, %v5106_v24  ;;  %v3305_v35 = vpop.f32.mrf.mxu1 }
 0x24e   : > { %v9898_v48 = vpack.c.bf16 %v3447_v9, %v3447_v9  ;;  %5522 = vst.msk [vmem:[#allocation3 + $0x80] sm:$0xf] %vm586_vm3, %v12397_v33  ;;  %v10231_v60 = vpop.f32.mrf.mxu0  ;;  %v4851_v32 = vld [vmem:[#allocation2 + $0xb0] sm:$0xff] }
 0x24f   : > { %4105 = vst.msk [vmem:[#allocation3 + $0xc] sm:$0xf] %vm1100_vm5, %v4011_v21  ;;  %v10232_v58 = vadd.f32 %v10231_v60, %v10230_v52  ;;  %4734 = vrot.lane.b32.xlu1 %v12339_v34, %s10836_s25  ;;  %v4265_v0 = vpop.permute.xlu0 %4264  ;;  %v10674_v46 = vld [vmem:[#allocation3 + $0x38] ss:$12 sps:$4 sm:$0xff]   ;;  %v12429_v6 = vpack.c.bf16 %v4851_v32, %v4851_v32  ;;  %v12489_v60 = vpop.f32.mrf.mxu1 }
 0x250   : > { %4565 = vst.msk [vmem:[#allocation3 + $0xa0] sm:$0xf] %vm586_vm3, %v10024_v5  ;;  %3607 = vst.msk [vmem:[#allocation3 + $0xb4] sm:$0xf] %vm586_vm3, %v9898_v48  ;;  %v10233_v40 = vpop.f32.mrf.mxu0  ;;  %v5107_v36 = vld [vmem:[#allocation2 + $0xb1] sm:$0xff]  ;;  %v10742_v5 = vld [vmem:[%s15620_s3 + $0x80] sm:$0xff]  }
 0x251   : > { %v3137_v47 = vadd.f32 %v12287_v25, %v10232_v58  ;;  %v4971_v51 = vpop.permute.xlu1 %4970  ;;  %4360 = vst.msk [vmem:[#allocation3] sm:$0xf] %vm1357_vm6, %v4265_v0  ;;  %4988 = vrot.lane.b32.xlu0 %v12418_v41, %s10837_s26  ;;  %v12450_v61 = vpack.c.bf16 %v5107_v36, %v5107_v36 }
 0x252   : > { %5065 = vst.msk [vmem:[#allocation3 + $0x10] sm:$0xf] %vm1100_vm5, %v4971_v51  ;;  %v10234_v53 = vpop.f32.mrf.mxu0 }
 0x253   : > { %v3298_v43 = vadd.f32 %v12327_v44, %v3137_v47  ;;  %v10235_v1 = vadd.f32 %v10234_v53, %v10233_v40  ;;  %4030 = vrot.lane.b32.xlu1 %v12270_v42, %s10837_s26  ;;  %v5225_v44 = vpop.permute.xlu0 %5224  ;;  %v10743_v53 = vld [vmem:[#allocation4] sm:$0xff] }
 0x254   : > { %10480 = vmatmul.mubr.msk.bf16.vlgmr.msra.gmra.mxu0 %vm319_vm0, %v10672_v56  ;;  %5320 = vst.msk [vmem:[#allocation3 + $0x4] sm:$0xf] %vm1357_vm6, %v5225_v44 }
 0x255   : > { %v3382_v39 = vmax.f32 %v3298_v43, 0.0  ;;  %v3140_v50 = vadd.f32 %v12287_v25, %v10235_v1  ;;  %v4267_v7 = vpop.permute.xlu1 %4266  ;;  %10483 = vmatprep.mubr.msk.bf16.mxu0 %vm319_vm0, %v10674_v46  ;;  %4284 = vrot.lane.b32.xlu0 %v12357_v59, %s10838_s18  ;;  %v10686_v16 = vld [vmem:[#allocation3 + $0x80] ss:$12 sps:$4 sm:$0xff]  }
 0x256   : > { %4361 = vst.msk [vmem:[#allocation3 + $0xc] sm:$0xf] %vm1357_vm6, %v4267_v7 }
 0x257   : > { %3414 = vst.msk [vmem:[#allocation2 + $0xc1] sm:$0xff] %vm319_vm0, %v3382_v39  ;;  %v3301_v42 = vadd.f32 %v12353_v49, %v3140_v50  ;;  %4990 = vrot.lane.b32.xlu1 %v12429_v6, %s10837_s26  ;;  %v3757_v57 = vpop.permute.xlu0 %3756  ;;  %v10680_v49 = vld [vmem:[#allocation3 + $0x68] ss:$12 sps:$4 sm:$0xff]  }
 0x258   : > { %3850 = vst.msk [vmem:[#allocation3 + $0x18] sm:$0xf] %vm843_vm4, %v3757_v57 }
 0x259   : > { %v3383_v4 = vmax.f32 %v3301_v42, 0.0  ;;  %v5227_v45 = vpop.permute.xlu1 %5226  ;;  %5244 = vrot.lane.b32.xlu0 %v12440_v12, %s10838_s18 }
 0x25a   : > { %5321 = vst.msk [vmem:[#allocation3 + $0x10] sm:$0xf] %vm1357_vm6, %v5227_v45 }
 0x25b   : > { %3415 = vst.msk [vmem:[#allocation2 + $0xc9] sm:$0xff] %vm319_vm0, %v3383_v4  ;;  %4286 = vrot.lane.b32.xlu1 %v12365_v38, %s10838_s18  ;;  %v4717_v30 = vpop.permute.xlu0 %4716 }
 0x25c   : > { %10484 = vmatmul.mubr.msk.bf16.gmra.mxu0 %vm319_vm0, %v10678_v27  ;;  %4810 = vst.msk [vmem:[#allocation3 + $0x1c] sm:$0xf] %vm843_vm4, %v4717_v30 }
 0x25d   : > { %v3759_v59 = vpop.permute.xlu1 %3758  ;;  %10487 = vmatprep.mubr.msk.bf16.mxu0 %vm319_vm0, %v10680_v49  ;;  %3776 = vrot.lane.b32.xlu0 %v12375_v13, %s10836_s25  ;;  %v10683_v54 = vld [vmem:[#allocation3] ss:$12 sps:$4 sm:$0xff]  }
 0x25e   : > { %3851 = vst.msk [vmem:[#allocation3 + $0x24] sm:$0xf] %vm843_vm4, %v3759_v59  ;;  %v4406_v38 = vld [vmem:[#allocation2 + $0xc1] sm:$0xff] }
 0x25f   : > { %5246 = vrot.lane.b32.xlu1 %v12450_v61, %s10838_s18  ;;  %v3448_v2 = vld [vmem:[#allocation2 + $0xc0] sm:$0xff]  ;;  %v10025_v63 = vpack.c.bf16 %v4406_v38, %v4406_v38  ;;  %v4013_v62 = vpop.permute.xlu0 %4012 }
 0x260   : > { %v9899_v19 = vpack.c.bf16 %v3448_v2, %v3448_v2  ;;  %4106 = vst.msk [vmem:[#allocation3 + $0x18] sm:$0xf] %vm1100_vm5, %v4013_v62  ;;  %v4852_v10 = vld [vmem:[#allocation2 + $0xc0] sm:$0xff] }
 0x261   : > { %v4719_v26 = vpop.permute.xlu1 %4718  ;;  %v10685_v31 = vld [vmem:[#allocation3 + $0x4] ss:$12 sps:$4 sm:$0xff]   ;;  %4566 = vst.msk [vmem:[#allocation3 + $0xac] sm:$0xf] %vm586_vm3, %v10025_v63  ;;  %4736 = vrot.lane.b32.xlu0 %v12397_v33, %s10836_s25  ;;  %v12498_v32 = vpack.c.bf16 %v4852_v10, %v4852_v10 }
 0x262   : > { %4811 = vst.msk [vmem:[#allocation3 + $0x28] sm:$0xf] %vm843_vm4, %v4719_v26  ;;  %v5364_v37 = vld [vmem:[#allocation2 + $0xc2] sm:$0xff]  ;;  %v5365_v17 = vld [vmem:[#allocation2 + $0xca] sm:$0xff]  ;;  %6079 = vmatprep.mubr.bf16.mxu1 %v10685_v31 }
 0x263   : > { %3608 = vst.msk [vmem:[#allocation3 + $0xc0] sm:$0xf] %vm586_vm3, %v9899_v19  ;;  %3778 = vrot.lane.b32.xlu1 %v12383_v28, %s10836_s25  ;;  %v12466_v13 = vpack.c.bf16 %v5364_v37, %v5364_v37  ;;  %v12468_v20 = vpack.c.bf16 %v5365_v17, %v5365_v17  ;;  %v4407_v23 = vld [vmem:[#allocation2 + $0xc9] sm:$0xff]  ;;  %6080 = vmatmul.mubr.bf16.vlgmr.msra.gmra.mxu1 %v10683_v54  ;;  %v4973_v52 = vpop.permute.xlu0 %4972  ;;  %v5108_v44 = vld [vmem:[#allocation2 + $0xc1] sm:$0xff] }
 0x264   : > { %v3449_v3 = vld [vmem:[#allocation2 + $0xc8] sm:$0xff]  ;;  %v10236_v55 = vpop.f32.mrf.mxu0  ;;  %10488 = vmatmul.mubr.msk.bf16.gmra.mxu0 %vm319_vm0, %v10686_v16  ;;  %v10026_v18 = vpack.c.bf16 %v4407_v23, %v4407_v23  ;;  %5066 = vst.msk [vmem:[#allocation3 + $0x1c] sm:$0xf] %vm1100_vm5, %v4973_v52  ;;  %v12518_v57 = vpack.c.bf16 %v5108_v44, %v5108_v44 }
 0x265   : > { %v9900_v29 = vpack.c.bf16 %v3449_v3, %v3449_v3  ;;  %v4015_v8 = vpop.permute.xlu1 %4014  ;;  %5524 = vst.msk [vmem:[#allocation3 + $0x98] sm:$0xf] %vm586_vm3, %v12466_v13  ;;  %5525 = vst.msk [vmem:[#allocation3 + $0xa4] sm:$0xf] %vm586_vm3, %v12468_v20  ;;  %v10741_v28 = vld [vmem:[%s15620_s3 + $0x88] sm:$0xff]   ;;  %4032 = vrot.lane.b32.xlu0 %v12335_v22, %s10837_s26  ;;  %v3308_v22 = vpop.f32.mrf.mxu1  ;;  %s15688_s3 = smov 126  }
 0x266   : > { %10529 = vmatpush3.bf16.msra.mxu1 %v10741_v28  ;;  %4107 = vst.msk [vmem:[#allocation3 + $0x24] sm:$0xf] %vm1100_vm5, %v4015_v8  ;;  %v10237_v9 = vpop.f32.mrf.mxu0  ;;  %v4853_v51 = vld [vmem:[#allocation2 + $0xc8] sm:$0xff] }
 0x267   : > { %4567 = vst.msk [vmem:[#allocation3 + $0xb8] sm:$0xf] %vm586_vm3, %v10026_v18  ;;  %3609 = vst.msk [vmem:[#allocation3 + $0xcc] sm:$0xf] %vm586_vm3, %v9900_v29  ;;  %10528 = vmatprep.subr.bf16.mxu1 %v10742_v5  ;;  %v10238_v48 = vadd.f32 %v10237_v9, %v10236_v55  ;;  %4738 = vrot.lane.b32.xlu1 %v12401_v14, %s10836_s25  ;;  %v4269_v47 = vpop.permute.xlu0 %4268  ;;  %v12503_v50 = vpack.c.bf16 %v4853_v51, %v4853_v51  ;;  %v5109_v45 = vld [vmem:[#allocation2 + $0xc9] sm:$0xff] }
 0x268   : > { %v10239_v21 = vpop.f32.mrf.mxu0  ;;  %4362 = vst.msk [vmem:[#allocation3 + $0x18] sm:$0xf] %vm1357_vm6, %v4269_v47  ;;  %v12522_v36 = vpack.c.bf16 %v5109_v45, %v5109_v45 }
 0x269   : > { %v4975_v58 = vpop.permute.xlu1 %4974  ;;  %v3145_v11 = vadd.f32 %v12287_v25, %v10238_v48  ;;  %4992 = vrot.lane.b32.xlu0 %v12498_v32, %s10837_s26 }
 0x26a   : > { %10530 = vmatpush3.bf16.msra.mxu1 %v10742_v5  ;;  %5067 = vst.msk [vmem:[#allocation3 + $0x28] sm:$0xf] %vm1100_vm5, %v4975_v58  ;;  %v10240_v40 = vpop.f32.mrf.mxu0 }
 0x26b   : > { %10511 = vmatprep.subr.mxu1 %v10743_v53  ;;  %v10241_v0 = vadd.f32 %v10240_v40, %v10239_v21  ;;  %v3306_v56 = vadd.f32 %v3305_v35, %v3145_v11  ;;  %4034 = vrot.lane.b32.xlu1 %v12339_v34, %s10837_s26  ;;  %v5229_v7 = vpop.permute.xlu0 %5228 }
 0x26c   : > { %v10687_v43 = vld [vmem:[#allocation3 + $0x98] ss:$12 sps:$4 sm:$0xff]   ;;  %5322 = vst.msk [vmem:[#allocation3 + $0x1c] sm:$0xf] %vm1357_vm6, %v5229_v7 }
 0x26d   : > { %v3384_v1 = vmax.f32 %v3306_v56, 0.0  ;;  %v4271_v46 = vpop.permute.xlu1 %4270  ;;  %v3148_v39 = vadd.f32 %v12287_v25, %v10241_v0  ;;  %10491 = vmatprep.mubr.msk.bf16.mxu0 %vm319_vm0, %v10687_v43  ;;  %4288 = vrot.lane.b32.xlu0 %v12418_v41, %s10838_s18 }
 0x26e   : > { %4363 = vst.msk [vmem:[#allocation3 + $0x24] sm:$0xf] %vm1357_vm6, %v4271_v46 }
 0x26f   : > { %3416 = vst.msk [vmem:[#allocation2 + $0xd9] sm:$0xff] %vm319_vm0, %v3384_v1  ;;  %v3309_v34 = vadd.f32 %v3308_v22, %v3148_v39  ;;  %4994 = vrot.lane.b32.xlu1 %v12503_v50, %s10837_s26  ;;  %v3761_v4 = vpop.permute.xlu0 %3760 }
 0x270   : > { %3852 = vst.msk [vmem:[#allocation3 + $0x30] sm:$0xf] %vm843_vm4, %v3761_v4 }
 0x271   : > { %v3385_v42 = vmax.f32 %v3309_v34, 0.0  ;;  %v5231_v24 = vpop.permute.xlu1 %5230  ;;  %5248 = vrot.lane.b32.xlu0 %v12518_v57, %s10838_s18  ;;  %v12591_v34 = vpop.f32.mrf.mxu1 }
 0x272   : > { %5323 = vst.msk [vmem:[#allocation3 + $0x28] sm:$0xf] %vm1357_vm6, %v5231_v24 }
 0x273   : > { %3417 = vst.msk [vmem:[#allocation2 + $0xe1] sm:$0xff] %vm319_vm0, %v3385_v42  ;;  %4290 = vrot.lane.b32.xlu1 %v12429_v6, %s10838_s18  ;;  %v4721_v41 = vpop.permute.xlu0 %4720  ;;  %v5548_v2 = vld [vmem:[#allocation3 + $0x18] sm:$0xff] }
 0x274   : > { %4812 = vst.msk [vmem:[#allocation3 + $0x34] sm:$0xf] %vm843_vm4, %v4721_v41 }
 0x275   : > { %v3763_v27 = vpop.permute.xlu1 %3762  ;;  %3780 = vrot.lane.b32.xlu0 %v12440_v12, %s10836_s25 }
 0x276   : > { %3853 = vst.msk [vmem:[#allocation3 + $0x3c] sm:$0xf] %vm843_vm4, %v3763_v27  ;;  %v4408_v49 = vld [vmem:[#allocation2 + $0xd9] sm:$0xff] }
 0x277   : > { %5250 = vrot.lane.b32.xlu1 %v12522_v36, %s10838_s18  ;;  %v3450_v6 = vld [vmem:[#allocation2 + $0xd8] sm:$0xff]  ;;  %v10027_v59 = vpack.c.bf16 %v4408_v49, %v4408_v49  ;;  %v4017_v26 = vpop.permute.xlu0 %4016 }
 0x278   : > { %v9901_v30 = vpack.c.bf16 %v3450_v6, %v3450_v6  ;;  %4108 = vst.msk [vmem:[#allocation3 + $0x30] sm:$0xf] %vm1100_vm5, %v4017_v26  ;;  %v4854_v28 = vld [vmem:[#allocation2 + $0xd8] sm:$0xff] }
 0x279   : > { %v4723_v38 = vpop.permute.xlu1 %4722  ;;  %v5550_v63 = vld [vmem:[#allocation3 + $0x24] sm:$0xff]  ;;  %4568 = vst.msk [vmem:[#allocation3 + $0xc4] sm:$0xf] %vm586_vm3, %v10027_v59  ;;  %4740 = vrot.lane.b32.xlu0 %v12466_v13, %s10836_s25  ;;  %v12560_v11 = vpack.c.bf16 %v4854_v28, %v4854_v28 }
 0x27a   : > { %v10688_v19 = vld [vmem:[#allocation3 + $0x1c] ss:$12 sps:$4 sm:$0xff]   ;;  %4813 = vst.msk [vmem:[#allocation3 + $0x40] sm:$0xf] %vm843_vm4, %v4723_v38  ;;  %v9407_v54 = vcombine.low %v5548_v2, %v5550_v63  ;;  %v5367_v62 = vld [vmem:[#allocation2 + $0xe2] sm:$0xff] }
 0x27b   : > { %v5366_v31 = vld [vmem:[#allocation2 + $0xda] sm:$0xff]  ;;  %3610 = vst.msk [vmem:[#allocation3 + $0xd8] sm:$0xf] %vm586_vm3, %v9901_v30  ;;  %3782 = vrot.lane.b32.xlu1 %v12450_v61, %s10836_s25  ;;  %6087 = vmatprep.mubr.bf16.mxu1 %v10688_v19  ;;  %v12538_v16 = vpack.c.bf16 %v5367_v62, %v5367_v62  ;;  %v4977_v18 = vpop.permute.xlu0 %4976  ;;  %v3321_v19 = vpop.f32.mrf.mxu1 }
 0x27c   : > { %v12536_v12 = vpack.c.bf16 %v5366_v31, %v5366_v31  ;;  %v4409_v37 = vld [vmem:[#allocation2 + $0xe1] sm:$0xff]  ;;  %v10242_v23 = vpop.f32.mrf.mxu0  ;;  %6088 = vmatmul.mubr.bf16.gmra.mxu1 %v9407_v54  ;;  %5068 = vst.msk [vmem:[#allocation3 + $0x34] sm:$0xf] %vm1100_vm5, %v4977_v18  ;;  %v5110_v0 = vld [vmem:[#allocation2 + $0xd9] sm:$0xff] }
 0x27d   : > { %v3451_v17 = vld [vmem:[#allocation2 + $0xe0] sm:$0xff]  ;;  %v10028_v3 = vpack.c.bf16 %v4409_v37, %v4409_v37  ;;  %v4019_v35 = vpop.permute.xlu1 %4018  ;;  %5527 = vst.msk [vmem:[#allocation3 + $0xbc] sm:$0xf] %vm586_vm3, %v12538_v16  ;;  %4036 = vrot.lane.b32.xlu0 %v12397_v33, %s10837_s26 }
 0x27e   : > { %v9902_v55 = vpack.c.bf16 %v3451_v17, %v3451_v17  ;;  %5526 = vst.msk [vmem:[#allocation3 + $0xb0] sm:$0xf] %vm586_vm3, %v12536_v12  ;;  %v10243_v61 = vpop.f32.mrf.mxu0  ;;  %v4855_v21 = vld [vmem:[#allocation2 + $0xe0] sm:$0xff] }
 0x27f   : > { %4109 = vst.msk [vmem:[#allocation3 + $0x3c] sm:$0xf] %vm1100_vm5, %v4019_v35  ;;  %v10244_v29 = vadd.f32 %v10243_v61, %v10242_v23  ;;  %4742 = vrot.lane.b32.xlu1 %v12468_v20, %s10836_s25  ;;  %v4273_v48 = vpop.permute.xlu0 %4272  ;;  %v12565_v53 = vpack.c.bf16 %v4855_v21, %v4855_v21  ;;  %v5111_v1 = vld [vmem:[#allocation2 + $0xe1] sm:$0xff]  ;;  %v12617_v23 = vpop.f32.mrf.mxu1 }
 0x280   : > { %4569 = vst.msk [vmem:[#allocation3 + $0xd0] sm:$0xf] %vm586_vm3, %v10028_v3  ;;  %3611 = vst.msk [vmem:[#allocation3 + $0xe4] sm:$0xf] %vm586_vm3, %v9902_v55  ;;  %v10245_v8 = vpop.f32.mrf.mxu0  ;;  %v12585_v39 = vpack.c.bf16 %v5111_v1, %v5111_v1 }
 0x281   : > { %v3153_v9 = vadd.f32 %v12287_v25, %v10244_v29  ;;  %v4979_v52 = vpop.permute.xlu1 %4978  ;;  %4364 = vst.msk [vmem:[#allocation3 + $0x30] sm:$0xf] %vm1357_vm6, %v4273_v48  ;;  %4996 = vrot.lane.b32.xlu0 %v12560_v11, %s10837_s26 }
 0x282   : > { %5069 = vst.msk [vmem:[#allocation3 + $0x40] sm:$0xf] %vm1100_vm5, %v4979_v52  ;;  %v10246_v5 = vpop.f32.mrf.mxu0  ;;  %v3324_v52 = vpop.f32.mrf.mxu1 }
 0x283   : > { %v3314_v10 = vadd.f32 %v12458_v15, %v3153_v9  ;;  %v10247_v58 = vadd.f32 %v10246_v5, %v10245_v8  ;;  %4038 = vrot.lane.b32.xlu1 %v12401_v14, %s10837_s26  ;;  %v5233_v15 = vpop.permute.xlu0 %5232 }
 0x284   : > { %5324 = vst.msk [vmem:[#allocation3 + $0x34] sm:$0xf] %vm1357_vm6, %v5233_v15 }
 0x285   : > { %v10690_v40 = vld [vmem:[#allocation3 + $0xb0] ss:$12 sps:$4 sm:$0xff]   ;;  %v3386_v47 = vmax.f32 %v3314_v10, 0.0  ;;  %v3156_v51 = vadd.f32 %v12287_v25, %v10247_v58  ;;  %v4275_v33 = vpop.permute.xlu1 %4274  ;;  %4292 = vrot.lane.b32.xlu0 %v12498_v32, %s10838_s18 }
 0x286   : > { %4365 = vst.msk [vmem:[#allocation3 + $0x3c] sm:$0xf] %vm1357_vm6, %v4275_v33  ;;  %10492 = vmatmul.mubr.msk.bf16.gmra.mxu0 %vm319_vm0, %v10690_v40 }
 0x287   : > { %3418 = vst.msk [vmem:[#allocation2 + $0xf1] sm:$0xff] %vm319_vm0, %v3386_v47  ;;  %v3317_v14 = vadd.f32 %v12489_v60, %v3156_v51  ;;  %4998 = vrot.lane.b32.xlu1 %v12565_v53, %s10837_s26  ;;  %v3765_v43 = vpop.permute.xlu0 %3764  ;;  %v12581_v60 = vpack.c.bf16 %v5110_v0, %v5110_v0 }
 0x288   : > { %3854 = vst.msk [vmem:[#allocation3 + $0x48] sm:$0xf] %vm843_vm4, %v3765_v43 }
 0x289   : > { %v3387_v56 = vmax.f32 %v3317_v14, 0.0  ;;  %v5235_v22 = vpop.permute.xlu1 %5234  ;;  %5252 = vrot.lane.b32.xlu0 %v12581_v60, %s10838_s18 }
 0x28a   : > { %5325 = vst.msk [vmem:[#allocation3 + $0x40] sm:$0xf] %vm1357_vm6, %v5235_v22 }
 0x28b   : > { %3419 = vst.msk [vmem:[#allocation2 + $0xf9] sm:$0xff] %vm319_vm0, %v3387_v56  ;;  %4294 = vrot.lane.b32.xlu1 %v12503_v50, %s10838_s18  ;;  %v4725_v32 = vpop.permute.xlu0 %4724  ;;  %v5552_v4 = vld [vmem:[#allocation3 + $0x30] sm:$0xff] }
 0x28c   : > { %4814 = vst.msk [vmem:[#allocation3 + $0x4c] sm:$0xf] %vm843_vm4, %v4725_v32 }
 0x28d   : > { %v3767_v46 = vpop.permute.xlu1 %3766  ;;  %3784 = vrot.lane.b32.xlu0 %v12518_v57, %s10836_s25 }
 0x28e   : > { %3855 = vst.msk [vmem:[#allocation3 + $0x54] sm:$0xf] %vm843_vm4, %v3767_v46  ;;  %v4410_v7 = vld [vmem:[#allocation2 + $0xf1] sm:$0xff] }
 0x28f   : > { %5254 = vrot.lane.b32.xlu1 %v12585_v39, %s10838_s18  ;;  %v3452_v50 = vld [vmem:[#allocation2 + $0xf0] sm:$0xff]  ;;  %v10029_v44 = vpack.c.bf16 %v4410_v7, %v4410_v7  ;;  %v4021_v41 = vpop.permute.xlu0 %4020 }
 0x290   : > { %v9903_v42 = vpack.c.bf16 %v3452_v50, %v3452_v50  ;;  %4110 = vst.msk [vmem:[#allocation3 + $0x48] sm:$0xf] %vm1100_vm5, %v4021_v41  ;;  %v4856_v3 = vld [vmem:[#allocation2 + $0xf0] sm:$0xff] }
 0x291   : > { %v4727_v24 = vpop.permute.xlu1 %4726  ;;  %v5554_v45 = vld [vmem:[#allocation3 + $0x3c] sm:$0xff]  ;;  %4570 = vst.msk [vmem:[#allocation3 + $0xdc] sm:$0xf] %vm586_vm3, %v10029_v44  ;;  %4744 = vrot.lane.b32.xlu0 %v12536_v12, %s10836_s25  ;;  %v12626_v9 = vpack.c.bf16 %v4856_v3, %v4856_v3 }
 0x292   : > { %v10691_v27 = vld [vmem:[#allocation3 + $0x34] ss:$12 sps:$4 sm:$0xff]   ;;  %4815 = vst.msk [vmem:[#allocation3 + $0x58] sm:$0xf] %vm843_vm4, %v4727_v24  ;;  %v9410_v49 = vcombine.low %v5552_v4, %v5554_v45  ;;  %v5369_v59 = vld [vmem:[#allocation2 + $0xfa] sm:$0xff] }
 0x293   : > { %v5368_v6 = vld [vmem:[#allocation2 + $0xf2] sm:$0xff]  ;;  %3612 = vst.msk [vmem:[#allocation3 + $0xf0] sm:$0xf] %vm586_vm3, %v9903_v42  ;;  %3786 = vrot.lane.b32.xlu1 %v12522_v36, %s10836_s25  ;;  %6095 = vmatprep.mubr.bf16.mxu1 %v10691_v27  ;;  %v12603_v30 = vpack.c.bf16 %v5369_v59, %v5369_v59  ;;  %v4981_v62 = vpop.permute.xlu0 %4980 }
 0x294   : > { %v12601_v57 = vpack.c.bf16 %v5368_v6, %v5368_v6  ;;  %v4411_v38 = vld [vmem:[#allocation2 + $0xf9] sm:$0xff]  ;;  %v10248_v63 = vpop.f32.mrf.mxu0  ;;  %6096 = vmatmul.mubr.bf16.gmra.mxu1 %v9410_v49  ;;  %5070 = vst.msk [vmem:[#allocation3 + $0x4c] sm:$0xf] %vm1100_vm5, %v4981_v62  ;;  %v5112_v40 = vld [vmem:[#allocation2 + $0xf1] sm:$0xff] }
 0x295   : > { %v3453_v2 = vld [vmem:[#allocation2 + $0xf8] sm:$0xff]  ;;  %v10030_v26 = vpack.c.bf16 %v4411_v38, %v4411_v38  ;;  %v4023_v31 = vpop.permute.xlu1 %4022  ;;  %5529 = vst.msk [vmem:[#allocation3 + $0xd4] sm:$0xf] %vm586_vm3, %v12603_v30  ;;  %4040 = vrot.lane.b32.xlu0 %v12466_v13, %s10837_s26  ;;  %v12646_v15 = vpack.c.bf16 %v5112_v40, %v5112_v40 }
 0x296   : > { %v9904_v54 = vpack.c.bf16 %v3453_v2, %v3453_v2  ;;  %5528 = vst.msk [vmem:[#allocation3 + $0xc8] sm:$0xf] %vm586_vm3, %v12601_v57  ;;  %v10249_v36 = vpop.f32.mrf.mxu0  ;;  %v4857_v29 = vld [vmem:[#allocation2 + $0xf8] sm:$0xff] }
 0x297   : > { %4111 = vst.msk [vmem:[#allocation3 + $0x54] sm:$0xf] %vm1100_vm5, %v4023_v31  ;;  %v10250_v37 = vadd.f32 %v10249_v36, %v10248_v63  ;;  %4746 = vrot.lane.b32.xlu1 %v12538_v16, %s10836_s25  ;;  %v4277_v18 = vpop.permute.xlu0 %4276  ;;  %v12631_v10 = vpack.c.bf16 %v4857_v29, %v4857_v29  ;;  %v5113_v33 = vld [vmem:[#allocation2 + $0xf9] sm:$0xff] }
 0x298   : > { %4571 = vst.msk [vmem:[#allocation3 + $0xe8] sm:$0xf] %vm586_vm3, %v10030_v26  ;;  %3613 = vst.msk [vmem:[#allocation3 + $0xfc] sm:$0xf] %vm586_vm3, %v9904_v54  ;;  %v10251_v17 = vpop.f32.mrf.mxu0  ;;  %v12650_v0 = vpack.c.bf16 %v5113_v33, %v5113_v33  ;;  %v12683_v26 = vld [vmem:[%s15619_s2] ss:$0 sm:$0xff] }
 0x299   : > { %v4983_v55 = vpop.permute.xlu1 %4982  ;;  %v3161_v35 = vadd.f32 %v12287_v25, %v10250_v37  ;;  %4366 = vst.msk [vmem:[#allocation3 + $0x48] sm:$0xf] %vm1357_vm6, %v4277_v18  ;;  %5000 = vrot.lane.b32.xlu0 %v12626_v9, %s10837_s26  ;;  %s14319_s2 = sld [smem:[#allocation5 + $0x18]] }
 0x29a   : > { %5071 = vst.msk [vmem:[#allocation3 + $0x58] sm:$0xf] %vm1100_vm5, %v4983_v55  ;;  %v10252_v61 = vpop.f32.mrf.mxu0 }
 0x29b   : > { %v10253_v8 = vadd.f32 %v10252_v61, %v10251_v17  ;;  %v3322_v28 = vadd.f32 %v3321_v19, %v3161_v35  ;;  %4042 = vrot.lane.b32.xlu1 %v12468_v20, %s10837_s26  ;;  %v5237_v58 = vpop.permute.xlu0 %5236 }
 0x29c   : > { %5326 = vst.msk [vmem:[#allocation3 + $0x4c] sm:$0xf] %vm1357_vm6, %v5237_v58 }
 0x29d   : > { %v10693_v5 = vld [vmem:[#allocation3 + $0xc8] ss:$12 sps:$4 sm:$0xff]   ;;  %v3388_v48 = vmax.f32 %v3322_v28, 0.0  ;;  %v4279_v13 = vpop.permute.xlu1 %4278  ;;  %v3164_v21 = vadd.f32 %v12287_v25, %v10253_v8  ;;  %4296 = vrot.lane.b32.xlu0 %v12560_v11, %s10838_s18 }
 0x29e   : > { %4367 = vst.msk [vmem:[#allocation3 + $0x54] sm:$0xf] %vm1357_vm6, %v4279_v13  ;;  %10495 = vmatprep.mubr.msk.bf16.mxu0 %vm319_vm0, %v10693_v5 }
 0x29f   : > { %3420 = vst.msk [vmem:[#allocation2 + $0x109] sm:$0xff] %vm319_vm0, %v3388_v48  ;;  %v3325_v20 = vadd.f32 %v3324_v52, %v3164_v21  ;;  %5002 = vrot.lane.b32.xlu1 %v12631_v10, %s10837_s26  ;;  %v3769_v25 = vpop.permute.xlu0 %3768 }
 0x2a0   : > { %3856 = vst.msk [vmem:[#allocation3 + $0x60] sm:$0xf] %vm843_vm4, %v3769_v25 }
 0x2a1   : > { %v3389_v47 = vmax.f32 %v3325_v20, 0.0  ;;  %v5239_v51 = vpop.permute.xlu1 %5238  ;;  %5256 = vrot.lane.b32.xlu0 %v12646_v15, %s10838_s18  ;;  %v12724_v20 = vpop.f32.mrf.mxu1 }
 0x2a2   : > { %5327 = vst.msk [vmem:[#allocation3 + $0x58] sm:$0xf] %vm1357_vm6, %v5239_v51 }
 0x2a3   : > { %3421 = vst.msk [vmem:[#allocation2 + $0x111] sm:$0xff] %vm319_vm0, %v3389_v47  ;;  %4298 = vrot.lane.b32.xlu1 %v12565_v53, %s10838_s18  ;;  %v4729_v11 = vpop.permute.xlu0 %4728  ;;  %v5556_v46 = vld [vmem:[#allocation3 + $0x48] sm:$0xff] }
 0x2a4   : > { %4816 = vst.msk [vmem:[#allocation3 + $0x64] sm:$0xf] %vm843_vm4, %v4729_v11 }
 0x2a5   : > { %v3771_v14 = vpop.permute.xlu1 %3770  ;;  %3788 = vrot.lane.b32.xlu0 %v12581_v60, %s10836_s25 }
 0x2a6   : > { %3857 = vst.msk [vmem:[#allocation3 + $0x6c] sm:$0xf] %vm843_vm4, %v3771_v14  ;;  %v4412_v56 = vld [vmem:[#allocation2 + $0x109] sm:$0xff] }
 0x2a7   : > { %5258 = vrot.lane.b32.xlu1 %v12650_v0, %s10838_s18  ;;  %v3454_v53 = vld [vmem:[#allocation2 + $0x108] sm:$0xff]  ;;  %v10031_v22 = vpack.c.bf16 %v4412_v56, %v4412_v56  ;;  %v4025_v50 = vpop.permute.xlu0 %4024 }
 0x2a8   : > { %v9905_v43 = vpack.c.bf16 %v3454_v53, %v3454_v53  ;;  %4112 = vst.msk [vmem:[#allocation3 + $0x60] sm:$0xf] %vm1100_vm5, %v4025_v50  ;;  %v4858_v19 = vld [vmem:[#allocation2 + $0x108] sm:$0xff] }
 0x2a9   : > { %v4731_v1 = vpop.permute.xlu1 %4730  ;;  %v5558_v32 = vld [vmem:[#allocation3 + $0x54] sm:$0xff]  ;;  %4572 = vst.msk [vmem:[#allocation3 + $0xf4] sm:$0xf] %vm586_vm3, %v10031_v22  ;;  %4748 = vrot.lane.b32.xlu0 %v12601_v57, %s10836_s25  ;;  %v12693_v55 = vpack.c.bf16 %v4858_v19, %v4858_v19 }
 0x2aa   : > { %v10694_v7 = vld [vmem:[#allocation3 + $0x4c] ss:$12 sps:$4 sm:$0xff]   ;;  %4817 = vst.msk [vmem:[#allocation3 + $0x70] sm:$0xf] %vm843_vm4, %v4731_v1  ;;  %v9413_v44 = vcombine.low %v5556_v46, %v5558_v32  ;;  %v5371_v24 = vld [vmem:[#allocation2 + $0x112] sm:$0xff] }
 0x2ab   : > { %v5370_v42 = vld [vmem:[#allocation2 + $0x10a] sm:$0xff]  ;;  %3614 = vst.msk [vmem:[#allocation3 + $0x108] sm:$0xf] %vm586_vm3, %v9905_v43  ;;  %3790 = vrot.lane.b32.xlu1 %v12585_v39, %s10836_s25  ;;  %6103 = vmatprep.mubr.bf16.mxu1 %v10694_v7  ;;  %v12666_v4 = vpack.c.bf16 %v5371_v24, %v5371_v24  ;;  %v4985_v38 = vpop.permute.xlu0 %4984  ;;  %v3337_v7 = vpop.f32.mrf.mxu1 }
 0x2ac   : > { %v12664_v60 = vpack.c.bf16 %v5370_v42, %v5370_v42  ;;  %v4413_v45 = vld [vmem:[#allocation2 + $0x111] sm:$0xff]  ;;  %v10254_v41 = vpop.f32.mrf.mxu0  ;;  %6104 = vmatmul.mubr.bf16.gmra.mxu1 %v9413_v44  ;;  %5072 = vst.msk [vmem:[#allocation3 + $0x64] sm:$0xf] %vm1100_vm5, %v4985_v38  ;;  %v5114_v8 = vld [vmem:[#allocation2 + $0x109] sm:$0xff] }
 0x2ad   : > { %v3455_v27 = vld [vmem:[#allocation2 + $0x110] sm:$0xff]  ;;  %v10032_v49 = vpack.c.bf16 %v4413_v45, %v4413_v45  ;;  %v4027_v59 = vpop.permute.xlu1 %4026  ;;  %5531 = vst.msk [vmem:[#allocation3 + $0xec] sm:$0xf] %vm586_vm3, %v12666_v4  ;;  %4044 = vrot.lane.b32.xlu0 %v12536_v12, %s10837_s26 }
 0x2ae   : > { %v9906_v6 = vpack.c.bf16 %v3455_v27, %v3455_v27  ;;  %5530 = vst.msk [vmem:[#allocation3 + $0xe0] sm:$0xf] %vm586_vm3, %v12664_v60  ;;  %v10255_v39 = vpop.f32.mrf.mxu0  ;;  %v4859_v37 = vld [vmem:[#allocation2 + $0x110] sm:$0xff] }
 0x2af   : > { %4113 = vst.msk [vmem:[#allocation3 + $0x6c] sm:$0xf] %vm1100_vm5, %v4027_v59  ;;  %v10256_v2 = vadd.f32 %v10255_v39, %v10254_v41  ;;  %4750 = vrot.lane.b32.xlu1 %v12603_v30, %s10836_s25  ;;  %v4281_v62 = vpop.permute.xlu0 %4280  ;;  %v12698_v29 = vpack.c.bf16 %v4859_v37, %v4859_v37  ;;  %v5115_v48 = vld [vmem:[#allocation2 + $0x111] sm:$0xff]  ;;  %v12750_v41 = vpop.f32.mrf.mxu1 }
 0x2b0   : > { %4573 = vst.msk [vmem:[#allocation3 + $0x100] sm:$0xf] %vm586_vm3, %v10032_v49  ;;  %3615 = vst.msk [vmem:[#allocation3 + $0x114] sm:$0xf] %vm586_vm3, %v9906_v6  ;;  %v10257_v63 = vpop.f32.mrf.mxu0  ;;  %v12718_v21 = vpack.c.bf16 %v5115_v48, %v5115_v48 }
 0x2b1   : > { %v3169_v54 = vadd.f32 %v12683_v26, %v10256_v2  ;;  %v4987_v31 = vpop.permute.xlu1 %4986  ;;  %4368 = vst.msk [vmem:[#allocation3 + $0x60] sm:$0xf] %vm1357_vm6, %v4281_v62  ;;  %5004 = vrot.lane.b32.xlu0 %v12693_v55, %s10837_s26 }
 0x2b2   : > { %5073 = vst.msk [vmem:[#allocation3 + $0x70] sm:$0xf] %vm1100_vm5, %v4987_v31  ;;  %v10258_v36 = vpop.f32.mrf.mxu0  ;;  %v3340_v31 = vpop.f32.mrf.mxu1 }
 0x2b3   : > { %v3330_v17 = vadd.f32 %v12591_v34, %v3169_v54  ;;  %v10259_v3 = vadd.f32 %v10258_v36, %v10257_v63  ;;  %4046 = vrot.lane.b32.xlu1 %v12538_v16, %s10837_s26  ;;  %v5241_v34 = vpop.permute.xlu0 %5240 }
 0x2b4   : > { %5328 = vst.msk [vmem:[#allocation3 + $0x64] sm:$0xf] %vm1357_vm6, %v5241_v34 }
 0x2b5   : > { %v10696_v35 = vld [vmem:[#allocation3 + $0xe0] ss:$12 sps:$4 sm:$0xff]   ;;  %v3390_v61 = vmax.f32 %v3330_v17, 0.0  ;;  %v3172_v18 = vadd.f32 %v12683_v26, %v10259_v3  ;;  %v4283_v12 = vpop.permute.xlu1 %4282  ;;  %4300 = vrot.lane.b32.xlu0 %v12626_v9, %s10838_s18 }
 0x2b6   : > { %4369 = vst.msk [vmem:[#allocation3 + $0x6c] sm:$0xf] %vm1357_vm6, %v4283_v12  ;;  %10496 = vmatmul.mubr.msk.bf16.gmra.mxu0 %vm319_vm0, %v10696_v35 }
 0x2b7   : > { %3422 = vst.msk [vmem:[#allocation2 + $0x121] sm:$0xff] %vm319_vm0, %v3390_v61  ;;  %v3333_v16 = vadd.f32 %v12617_v23, %v3172_v18  ;;  %5006 = vrot.lane.b32.xlu1 %v12698_v29, %s10837_s26  ;;  %v3773_v5 = vpop.permute.xlu0 %3772  ;;  %v12714_v23 = vpack.c.bf16 %v5114_v8, %v5114_v8 }
 0x2b8   : > { %3858 = vst.msk [vmem:[#allocation3 + $0x78] sm:$0xf] %vm843_vm4, %v3773_v5 }
 0x2b9   : > { %v3391_v28 = vmax.f32 %v3333_v16, 0.0  ;;  %v5243_v52 = vpop.permute.xlu1 %5242  ;;  %5260 = vrot.lane.b32.xlu0 %v12714_v23, %s10838_s18 }
 0x2ba   : > { %5329 = vst.msk [vmem:[#allocation3 + $0x70] sm:$0xf] %vm1357_vm6, %v5243_v52 }
 0x2bb   : > { %3423 = vst.msk [vmem:[#allocation2 + $0x129] sm:$0xff] %vm319_vm0, %v3391_v28  ;;  %4302 = vrot.lane.b32.xlu1 %v12631_v10, %s10838_s18  ;;  %v4733_v9 = vpop.permute.xlu0 %4732  ;;  %v5560_v25 = vld [vmem:[#allocation3 + $0x60] sm:$0xff] }
 0x2bc   : > { %4818 = vst.msk [vmem:[#allocation3 + $0x7c] sm:$0xf] %vm843_vm4, %v4733_v9 }
 0x2bd   : > { %v3775_v13 = vpop.permute.xlu1 %3774  ;;  %3792 = vrot.lane.b32.xlu0 %v12646_v15, %s10836_s25 }
 0x2be   : > { %3859 = vst.msk [vmem:[#allocation3 + $0x84] sm:$0xf] %vm843_vm4, %v3775_v13  ;;  %v4414_v58 = vld [vmem:[#allocation2 + $0x121] sm:$0xff] }
 0x2bf   : > { %5262 = vrot.lane.b32.xlu1 %v12718_v21, %s10838_s18  ;;  %v3456_v10 = vld [vmem:[#allocation2 + $0x120] sm:$0xff]  ;;  %v10033_v40 = vpack.c.bf16 %v4414_v58, %v4414_v58  ;;  %v4029_v11 = vpop.permute.xlu0 %4028 }
 0x2c0   : > { %v9907_v47 = vpack.c.bf16 %v3456_v10, %v3456_v10  ;;  %4114 = vst.msk [vmem:[#allocation3 + $0x78] sm:$0xf] %vm1100_vm5, %v4029_v11  ;;  %v4860_v49 = vld [vmem:[#allocation2 + $0x120] sm:$0xff] }
 0x2c1   : > { %v4735_v51 = vpop.permute.xlu1 %4734  ;;  %v5562_v33 = vld [vmem:[#allocation3 + $0x6c] sm:$0xff]  ;;  %4574 = vst.msk [vmem:[#allocation3 + $0x10c] sm:$0xf] %vm586_vm3, %v10033_v40  ;;  %4752 = vrot.lane.b32.xlu0 %v12664_v60, %s10836_s25  ;;  %v12759_v54 = vpack.c.bf16 %v4860_v49, %v4860_v49 }
 0x2c2   : > { %v10697_v14 = vld [vmem:[#allocation3 + $0x64] ss:$12 sps:$4 sm:$0xff]   ;;  %4819 = vst.msk [vmem:[#allocation3 + $0x88] sm:$0xf] %vm843_vm4, %v4735_v51  ;;  %v9416_v56 = vcombine.low %v5560_v25, %v5562_v33  ;;  %v5373_v22 = vld [vmem:[#allocation2 + $0x12a] sm:$0xff] }
 0x2c3   : > { %v5372_v53 = vld [vmem:[#allocation2 + $0x122] sm:$0xff]  ;;  %3616 = vst.msk [vmem:[#allocation3 + $0x120] sm:$0xf] %vm586_vm3, %v9907_v47  ;;  %3794 = vrot.lane.b32.xlu1 %v12650_v0, %s10836_s25  ;;  %6111 = vmatprep.mubr.bf16.mxu1 %v10697_v14  ;;  %v12736_v43 = vpack.c.bf16 %v5373_v22, %v5373_v22  ;;  %v4989_v24 = vpop.permute.xlu0 %4988 }
 0x2c4   : > { %v12734_v15 = vpack.c.bf16 %v5372_v53, %v5372_v53  ;;  %v4415_v1 = vld [vmem:[#allocation2 + $0x129] sm:$0xff]  ;;  %v10260_v32 = vpop.f32.mrf.mxu0  ;;  %6112 = vmatmul.mubr.bf16.gmra.mxu1 %v9416_v56  ;;  %5074 = vst.msk [vmem:[#allocation3 + $0x7c] sm:$0xf] %vm1100_vm5, %v4989_v24  ;;  %v5116_v35 = vld [vmem:[#allocation2 + $0x121] sm:$0xff] }
 0x2c5   : > { %v3457_v46 = vld [vmem:[#allocation2 + $0x128] sm:$0xff]  ;;  %v10034_v50 = vpack.c.bf16 %v4415_v1, %v4415_v1  ;;  %v4031_v42 = vpop.permute.xlu1 %4030  ;;  %5533 = vst.msk [vmem:[#allocation3 + $0x104] sm:$0xf] %vm586_vm3, %v12736_v43  ;;  %4048 = vrot.lane.b32.xlu0 %v12601_v57, %s10837_s26  ;;  %v12779_v16 = vpack.c.bf16 %v5116_v35, %v5116_v35 }
 0x2c6   : > { %v9908_v44 = vpack.c.bf16 %v3457_v46, %v3457_v46  ;;  %5532 = vst.msk [vmem:[#allocation3 + $0xf8] sm:$0xf] %vm586_vm3, %v12734_v15  ;;  %v10261_v0 = vpop.f32.mrf.mxu0  ;;  %v4861_v2 = vld [vmem:[#allocation2 + $0x128] sm:$0xff] }
 0x2c7   : > { %4115 = vst.msk [vmem:[#allocation3 + $0x84] sm:$0xf] %vm1100_vm5, %v4031_v42  ;;  %v10262_v45 = vadd.f32 %v10261_v0, %v10260_v32  ;;  %4754 = vrot.lane.b32.xlu1 %v12666_v4, %s10836_s25  ;;  %v4285_v38 = vpop.permute.xlu0 %4284  ;;  %v12764_v17 = vpack.c.bf16 %v4861_v2, %v4861_v2  ;;  %v5117_v34 = vld [vmem:[#allocation2 + $0x129] sm:$0xff] }
 0x2c8   : > { %4575 = vst.msk [vmem:[#allocation3 + $0x118] sm:$0xf] %vm586_vm3, %v10034_v50  ;;  %3617 = vst.msk [vmem:[#allocation3 + $0x12c] sm:$0xf] %vm586_vm3, %v9908_v44  ;;  %v10263_v27 = vpop.f32.mrf.mxu0  ;;  %v12783_v28 = vpack.c.bf16 %v5117_v34, %v5117_v34 }
 0x2c9   : > { %v4991_v6 = vpop.permute.xlu1 %4990  ;;  %v3177_v59 = vadd.f32 %v12683_v26, %v10262_v45  ;;  %4370 = vst.msk [vmem:[#allocation3 + $0x78] sm:$0xf] %vm1357_vm6, %v4285_v38  ;;  %5008 = vrot.lane.b32.xlu0 %v12759_v54, %s10837_s26 }
 0x2ca   : > { %5075 = vst.msk [vmem:[#allocation3 + $0x88] sm:$0xf] %vm1100_vm5, %v4991_v6  ;;  %v10264_v39 = vpop.f32.mrf.mxu0 }
 0x2cb   : > { %v10265_v63 = vadd.f32 %v10264_v39, %v10263_v27  ;;  %v3338_v19 = vadd.f32 %v3337_v7, %v3177_v59  ;;  %4050 = vrot.lane.b32.xlu1 %v12603_v30, %s10837_s26  ;;  %v5245_v3 = vpop.permute.xlu0 %5244 }
 0x2cc   : > { %5330 = vst.msk [vmem:[#allocation3 + $0x7c] sm:$0xf] %vm1357_vm6, %v5245_v3 }
 0x2cd   : > { %v10699_v36 = vld [vmem:[#allocation3 + $0xf8] ss:$12 sps:$4 sm:$0xff]   ;;  %v3392_v62 = vmax.f32 %v3338_v19, 0.0  ;;  %v4287_v57 = vpop.permute.xlu1 %4286  ;;  %v3180_v37 = vadd.f32 %v12683_v26, %v10265_v63  ;;  %4304 = vrot.lane.b32.xlu0 %v12693_v55, %s10838_s18 }
 0x2ce   : > { %4371 = vst.msk [vmem:[#allocation3 + $0x84] sm:$0xf] %vm1357_vm6, %v4287_v57  ;;  %10499 = vmatprep.mubr.msk.bf16.mxu0 %vm319_vm0, %v10699_v36 }
 0x2cf   : > { %3424 = vst.msk [vmem:[#allocation2 + $0x139] sm:$0xff] %vm319_vm0, %v3392_v62  ;;  %v3341_v30 = vadd.f32 %v3340_v31, %v3180_v37  ;;  %5010 = vrot.lane.b32.xlu1 %v12764_v17, %s10837_s26  ;;  %v3777_v12 = vpop.permute.xlu0 %3776 }
 0x2d0   : > { %3860 = vst.msk [vmem:[#allocation3 + $0x90] sm:$0xf] %vm843_vm4, %v3777_v12 }
 0x2d1   : > { %v3393_v61 = vmax.f32 %v3341_v30, 0.0  ;;  %v5247_v18 = vpop.permute.xlu1 %5246  ;;  %5264 = vrot.lane.b32.xlu0 %v12779_v16, %s10838_s18 }
 0x2d2   : > { %5331 = vst.msk [vmem:[#allocation3 + $0x88] sm:$0xf] %vm1357_vm6, %v5247_v18 }
 0x2d3   : > { %3425 = vst.msk [vmem:[#allocation2 + $0x141] sm:$0xff] %vm319_vm0, %v3393_v61  ;;  %4306 = vrot.lane.b32.xlu1 %v12698_v29, %s10838_s18  ;;  %v4737_v52 = vpop.permute.xlu0 %4736  ;;  %v5564_v9 = vld [vmem:[#allocation3 + $0x78] sm:$0xff] }
 0x2d4   : > { %4820 = vst.msk [vmem:[#allocation3 + $0x94] sm:$0xf] %vm843_vm4, %v4737_v52 }
 0x2d5   : > { %v3779_v8 = vpop.permute.xlu1 %3778  ;;  %3796 = vrot.lane.b32.xlu0 %v12714_v23, %s10836_s25 }
 0x2d6   : > { %3861 = vst.msk [vmem:[#allocation3 + $0x9c] sm:$0xf] %vm843_vm4, %v3779_v8  ;;  %v5118_v55 = vld [vmem:[#allocation2 + $0x139] sm:$0xff] }
 0x2d7   : > { %5266 = vrot.lane.b32.xlu1 %v12783_v28, %s10838_s18  ;;  %v12788_v5 = vpack.c.bf16 %v5118_v55, %v5118_v55  ;;  %v3458_v29 = vld [vmem:[#allocation2 + $0x138] sm:$0xff]  ;;  %v4033_v25 = vpop.permute.xlu0 %4032 }
 0x2d8   : > { %v9909_v48 = vpack.c.bf16 %v3458_v29, %v3458_v29  ;;  %4116 = vst.msk [vmem:[#allocation3 + $0x90] sm:$0xf] %vm1100_vm5, %v4033_v25  ;;  %v4862_v50 = vld [vmem:[#allocation2 + $0x138] sm:$0xff] }
 0x2d9   : > { %v4739_v13 = vpop.permute.xlu1 %4738  ;;  %v5566_v58 = vld [vmem:[#allocation3 + $0x84] sm:$0xff]  ;;  %4576 = vst.msk [vmem:[#allocation3 + $0x124] sm:$0xf] %vm586_vm3, %v12788_v5  ;;  %4756 = vrot.lane.b32.xlu0 %v12734_v15, %s10836_s25  ;;  %v12826_v6 = vpack.c.bf16 %v4862_v50, %v4862_v50 }
 0x2da   : > { %v10700_v10 = vld [vmem:[#allocation3 + $0x7c] ss:$12 sps:$4 sm:$0xff]   ;;  %4821 = vst.msk [vmem:[#allocation3 + $0xa0] sm:$0xf] %vm843_vm4, %v4739_v13  ;;  %v9419_v40 = vcombine.low %v5564_v9, %v5566_v58  ;;  %v5375_v51 = vld [vmem:[#allocation2 + $0x142] sm:$0xff] }
 0x2db   : > { %v5374_v47 = vld [vmem:[#allocation2 + $0x13a] sm:$0xff]  ;;  %3618 = vst.msk [vmem:[#allocation3 + $0x138] sm:$0xf] %vm586_vm3, %v9909_v48  ;;  %3798 = vrot.lane.b32.xlu1 %v12718_v21, %s10836_s25  ;;  %6119 = vmatprep.mubr.bf16.mxu1 %v10700_v10  ;;  %v12801_v23 = vpack.c.bf16 %v5375_v51, %v5375_v51  ;;  %v4993_v32 = vpop.permute.xlu0 %4992 }
 0x2dc   : > { %v12799_v33 = vpack.c.bf16 %v5374_v47, %v5374_v47  ;;  %v5119_v14 = vld [vmem:[#allocation2 + $0x141] sm:$0xff]  ;;  %v10266_v56 = vpop.f32.mrf.mxu0  ;;  %6120 = vmatmul.mubr.bf16.gmra.mxu1 %v9419_v40  ;;  %5076 = vst.msk [vmem:[#allocation3 + $0x94] sm:$0xf] %vm1100_vm5, %v4993_v32 }
 0x2dd   : > { %v3459_v11 = vld [vmem:[#allocation2 + $0x140] sm:$0xff]  ;;  %v12804_v53 = vpack.c.bf16 %v5119_v14, %v5119_v14  ;;  %v4035_v1 = vpop.permute.xlu1 %4034  ;;  %5535 = vst.msk [vmem:[#allocation3 + $0x11c] sm:$0xf] %vm586_vm3, %v12801_v23  ;;  %4052 = vrot.lane.b32.xlu0 %v12664_v60, %s10837_s26 }
 0x2de   : > { %v9910_v22 = vpack.c.bf16 %v3459_v11, %v3459_v11  ;;  %5534 = vst.msk [vmem:[#allocation3 + $0x110] sm:$0xf] %vm586_vm3, %v12799_v33  ;;  %v10267_v21 = vpop.f32.mrf.mxu0  ;;  %v4863_v24 = vld [vmem:[#allocation2 + $0x140] sm:$0xff] }
 0x2df   : > { %4117 = vst.msk [vmem:[#allocation3 + $0x9c] sm:$0xf] %vm1100_vm5, %v4035_v1  ;;  %v10268_v46 = vadd.f32 %v10267_v21, %v10266_v56  ;;  %4758 = vrot.lane.b32.xlu1 %v12736_v43, %s10836_s25  ;;  %v4289_v49 = vpop.permute.xlu0 %4288  ;;  %v12832_v2 = vpack.c.bf16 %v4863_v24, %v4863_v24 }
 0x2e0   : > { %4577 = vst.msk [vmem:[#allocation3 + $0x130] sm:$0xf] %vm586_vm3, %v12804_v53  ;;  %3619 = vst.msk [vmem:[#allocation3 + $0x144] sm:$0xf] %vm586_vm3, %v9910_v22  ;;  %v10269_v7 = vpop.f32.mrf.mxu0 }
 0x2e1   : > { %v3185_v44 = vadd.f32 %v12683_v26, %v10268_v46  ;;  %v4995_v42 = vpop.permute.xlu1 %4994  ;;  %4372 = vst.msk [vmem:[#allocation3 + $0x90] sm:$0xf] %vm1357_vm6, %v4289_v49  ;;  %5012 = vrot.lane.b32.xlu0 %v12826_v6, %s10837_s26 }
 0x2e2   : > { %5077 = vst.msk [vmem:[#allocation3 + $0xa0] sm:$0xf] %vm1100_vm5, %v4995_v42  ;;  %v10270_v0 = vpop.f32.mrf.mxu0 }
 0x2e3   : > { %v3346_v45 = vadd.f32 %v12724_v20, %v3185_v44  ;;  %v10271_v27 = vadd.f32 %v10270_v0, %v10269_v7  ;;  %4054 = vrot.lane.b32.xlu1 %v12666_v4, %s10837_s26  ;;  %v5249_v20 = vpop.permute.xlu0 %5248 }
 0x2e4   : > { %5332 = vst.msk [vmem:[#allocation3 + $0x94] sm:$0xf] %vm1357_vm6, %v5249_v20 }
 0x2e5   : > { %v10702_v59 = vld [vmem:[#allocation3 + $0x110] ss:$12 sps:$4 sm:$0xff]   ;;  %v3394_v39 = vmax.f32 %v3346_v45, 0.0  ;;  %v3188_v38 = vadd.f32 %v12683_v26, %v10271_v27  ;;  %v4291_v60 = vpop.permute.xlu1 %4290  ;;  %4308 = vrot.lane.b32.xlu0 %v12759_v54, %s10838_s18 }
 0x2e6   : > { %4373 = vst.msk [vmem:[#allocation3 + $0x9c] sm:$0xf] %vm1357_vm6, %v4291_v60  ;;  %10500 = vmatmul.mubr.msk.bf16.gmra.mxu0 %vm319_vm0, %v10702_v59 }
 0x2e7   : > { %3426 = vst.msk [vmem:[#allocation2 + $0x151] sm:$0xff] %vm319_vm0, %v3394_v39  ;;  %v3349_v4 = vadd.f32 %v12750_v41, %v3188_v38  ;;  %5014 = vrot.lane.b32.xlu1 %v12832_v2, %s10837_s26  ;;  %v3781_v31 = vpop.permute.xlu0 %3780 }
 0x2e8   : > { %3862 = vst.msk [vmem:[#allocation3 + $0xa8] sm:$0xf] %vm843_vm4, %v3781_v31 }
 0x2e9   : > { %v3395_v63 = vmax.f32 %v3349_v4, 0.0  ;;  %v5251_v19 = vpop.permute.xlu1 %5250  ;;  %5268 = vrot.lane.b32.xlu0 %v12788_v5, %s10838_s18 }
 0x2ea   : > { %5333 = vst.msk [vmem:[#allocation3 + $0xa0] sm:$0xf] %vm1357_vm6, %v5251_v19 }
 0x2eb   : > { %3427 = vst.msk [vmem:[#allocation2 + $0x159] sm:$0xff] %vm319_vm0, %v3395_v63  ;;  %4310 = vrot.lane.b32.xlu1 %v12764_v17, %s10838_s18  ;;  %v4741_v54 = vpop.permute.xlu0 %4740  ;;  %v12856_v17 = vpop.f32.mrf.mxu1  ;;  %v5568_v30 = vld [vmem:[#allocation3 + $0x90] sm:$0xff] }
 0x2ec   : > { %4822 = vst.msk [vmem:[#allocation3 + $0xac] sm:$0xf] %vm843_vm4, %v4741_v54 }
 0x2ed   : > { %v3783_v41 = vpop.permute.xlu1 %3782  ;;  %3800 = vrot.lane.b32.xlu0 %v12779_v16, %s10836_s25  ;;  %v3353_v13 = vpop.f32.mrf.mxu1 }
 0x2ee   : > { %3863 = vst.msk [vmem:[#allocation3 + $0xb4] sm:$0xf] %vm843_vm4, %v3783_v41  ;;  %v5120_v36 = vld [vmem:[#allocation2 + $0x151] sm:$0xff] }
 0x2ef   : > { %v3460_v62 = vld [vmem:[#allocation2 + $0x150] sm:$0xff]  ;;  %5270 = vrot.lane.b32.xlu1 %v12804_v53, %s10838_s18  ;;  %v12853_v57 = vpack.c.bf16 %v5120_v36, %v5120_v36  ;;  %v4037_v8 = vpop.permute.xlu0 %4036  ;;  %v12886_v25 = vpop.f32.mrf.mxu1 }
 0x2f0   : > { %v9911_v37 = vpack.c.bf16 %v3460_v62, %v3460_v62  ;;  %4118 = vst.msk [vmem:[#allocation3 + $0xa8] sm:$0xf] %vm1100_vm5, %v4037_v8  ;;  %v4864_v14 = vld [vmem:[#allocation2 + $0x150] sm:$0xff] }
 0x2f1   : > { %v4743_v3 = vpop.permute.xlu1 %4742  ;;  %v5570_v35 = vld [vmem:[#allocation3 + $0x9c] sm:$0xff]  ;;  %4578 = vst.msk [vmem:[#allocation3 + $0x13c] sm:$0xf] %vm586_vm3, %v12853_v57  ;;  %4760 = vrot.lane.b32.xlu0 %v12799_v33, %s10836_s25  ;;  %v12894_v7 = vpack.c.bf16 %v4864_v14, %v4864_v14  ;;  %v3356_v50 = vpop.f32.mrf.mxu1 }
 0x2f2   : > { %v10703_v61 = vld [vmem:[#allocation3 + $0x94] ss:$12 sps:$4 sm:$0xff]   ;;  %3620 = vst.msk [vmem:[#allocation3 + $0x150] sm:$0xf] %vm586_vm3, %v9911_v37  ;;  %v9422_v18 = vcombine.low %v5568_v30, %v5570_v35  ;;  %v5377_v34 = vld [vmem:[#allocation2 + $0x15a] sm:$0xff] }
 0x2f3   : > { %4823 = vst.msk [vmem:[#allocation3 + $0xb8] sm:$0xf] %vm843_vm4, %v4743_v3  ;;  %v5376_v12 = vld [vmem:[#allocation2 + $0x152] sm:$0xff]  ;;  %3802 = vrot.lane.b32.xlu1 %v12783_v28, %s10836_s25  ;;  %6127 = vmatprep.mubr.bf16.mxu1 %v10703_v61  ;;  %v12868_v16 = vpack.c.bf16 %v5377_v34, %v5377_v34  ;;  %v4997_v47 = vpop.permute.xlu0 %4996 }
 0x2f4   : > { %v12866_v55 = vpack.c.bf16 %v5376_v12, %v5376_v12  ;;  %v5121_v52 = vld [vmem:[#allocation2 + $0x159] sm:$0xff]  ;;  %v10272_v48 = vpop.f32.mrf.mxu0  ;;  %6128 = vmatmul.mubr.bf16.gmra.mxu1 %v9422_v18  ;;  %5078 = vst.msk [vmem:[#allocation3 + $0xac] sm:$0xf] %vm1100_vm5, %v4997_v47 }
 0x2f5   : > { %v3461_v29 = vld [vmem:[#allocation2 + $0x158] sm:$0xff]  ;;  %v12871_v9 = vpack.c.bf16 %v5121_v52, %v5121_v52  ;;  %v4039_v10 = vpop.permute.xlu1 %4038  ;;  %5537 = vst.msk [vmem:[#allocation3 + $0x134] sm:$0xf] %vm586_vm3, %v12868_v16  ;;  %4056 = vrot.lane.b32.xlu0 %v12734_v15, %s10837_s26 }
 0x2f6   : > { %v9912_v58 = vpack.c.bf16 %v3461_v29, %v3461_v29  ;;  %5536 = vst.msk [vmem:[#allocation3 + $0x128] sm:$0xf] %vm586_vm3, %v12866_v55  ;;  %v10273_v28 = vpop.f32.mrf.mxu0  ;;  %v4865_v1 = vld [vmem:[#allocation2 + $0x158] sm:$0xff] }
 0x2f7   : > { %4119 = vst.msk [vmem:[#allocation3 + $0xb4] sm:$0xf] %vm1100_vm5, %v4039_v10  ;;  %v10274_v40 = vadd.f32 %v10273_v28, %v10272_v48  ;;  %4762 = vrot.lane.b32.xlu1 %v12801_v23, %s10836_s25  ;;  %v4293_v32 = vpop.permute.xlu0 %4292  ;;  %v12900_v24 = vpack.c.bf16 %v4865_v1, %v4865_v1 }
 0x2f8   : > { %4579 = vst.msk [vmem:[#allocation3 + $0x148] sm:$0xf] %vm586_vm3, %v12871_v9  ;;  %3621 = vst.msk [vmem:[#allocation3 + $0x15c] sm:$0xf] %vm586_vm3, %v9912_v58  ;;  %v10275_v51 = vpop.f32.mrf.mxu0 }
 0x2f9   : > { %v4999_v11 = vpop.permute.xlu1 %4998  ;;  %v3193_v56 = vadd.f32 %v12683_v26, %v10274_v40  ;;  %4374 = vst.msk [vmem:[#allocation3 + $0xa8] sm:$0xf] %vm1357_vm6, %v4293_v32  ;;  %5016 = vrot.lane.b32.xlu0 %v12894_v7, %s10837_s26 }
 0x2fa   : > { %5079 = vst.msk [vmem:[#allocation3 + $0xb8] sm:$0xf] %vm1100_vm5, %v4999_v11  ;;  %v10276_v22 = vpop.f32.mrf.mxu0 }
 0x2fb   : > { %v10277_v21 = vadd.f32 %v10276_v22, %v10275_v51  ;;  %v3354_v46 = vadd.f32 %v3353_v13, %v3193_v56  ;;  %4058 = vrot.lane.b32.xlu1 %v12736_v43, %s10837_s26  ;;  %v5253_v45 = vpop.permute.xlu0 %5252 }
 0x2fc   : > { %5334 = vst.msk [vmem:[#allocation3 + $0xac] sm:$0xf] %vm1357_vm6, %v5253_v45 }
 0x2fd   : > { %v10705_v44 = vld [vmem:[#allocation3 + $0x128] ss:$12 sps:$4 sm:$0xff]   ;;  %v3396_v42 = vmax.f32 %v3354_v46, 0.0  ;;  %v4295_v15 = vpop.permute.xlu1 %4294  ;;  %v3196_v0 = vadd.f32 %v12683_v26, %v10277_v21  ;;  %4312 = vrot.lane.b32.xlu0 %v12826_v6, %s10838_s18 }
 0x2fe   : > { %4375 = vst.msk [vmem:[#allocation3 + $0xb4] sm:$0xf] %vm1357_vm6, %v4295_v15  ;;  %10503 = vmatprep.mubr.msk.bf16.mxu0 %vm319_vm0, %v10705_v44 }
 0x2ff   : > { %3428 = vst.msk [vmem:[#allocation2 + $0x169] sm:$0xff] %vm319_vm0, %v3396_v42  ;;  %v3357_v43 = vadd.f32 %v3356_v50, %v3196_v0  ;;  %5018 = vrot.lane.b32.xlu1 %v12900_v24, %s10837_s26  ;;  %v3785_v59 = vpop.permute.xlu0 %3784 }
 0x300   : > { %3864 = vst.msk [vmem:[#allocation3 + $0xc0] sm:$0xf] %vm843_vm4, %v3785_v59 }
 0x301   : > { %v3397_v27 = vmax.f32 %v3357_v43, 0.0  ;;  %v5255_v49 = vpop.permute.xlu1 %5254  ;;  %5272 = vrot.lane.b32.xlu0 %v12853_v57, %s10838_s18 }
 0x302   : > { %5335 = vst.msk [vmem:[#allocation3 + $0xb8] sm:$0xf] %vm1357_vm6, %v5255_v49 }
 0x303   : > { %3429 = vst.msk [vmem:[#allocation2 + $0x171] sm:$0xff] %vm319_vm0, %v3397_v27  ;;  %4314 = vrot.lane.b32.xlu1 %v12832_v2, %s10838_s18  ;;  %v4745_v6 = vpop.permute.xlu0 %4744  ;;  %v5572_v63 = vld [vmem:[#allocation3 + $0xa8] sm:$0xff] }
 0x304   : > { %4824 = vst.msk [vmem:[#allocation3 + $0xc4] sm:$0xf] %vm843_vm4, %v4745_v6 }
 0x305   : > { %v3787_v39 = vpop.permute.xlu1 %3786  ;;  %3804 = vrot.lane.b32.xlu0 %v12788_v5, %s10836_s25 }
 0x306   : > { %3865 = vst.msk [vmem:[#allocation3 + $0xcc] sm:$0xf] %vm843_vm4, %v3787_v39  ;;  %v4866_v38 = vld [vmem:[#allocation2 + $0x168] sm:$0xff] }
 0x307   : > { %v5122_v60 = vld [vmem:[#allocation2 + $0x169] sm:$0xff]  ;;  %5274 = vrot.lane.b32.xlu1 %v12871_v9, %s10838_s18  ;;  %v12920_v4 = vpack.c.bf16 %v4866_v38, %v4866_v38  ;;  %v4041_v37 = vpop.permute.xlu0 %4040 }
 0x308   : > { %v12922_v20 = vpack.c.bf16 %v5122_v60, %v5122_v60  ;;  %4120 = vst.msk [vmem:[#allocation3 + $0xc0] sm:$0xf] %vm1100_vm5, %v4041_v37 }
 0x309   : > { %v4747_v2 = vpop.permute.xlu1 %4746  ;;  %v5574_v19 = vld [vmem:[#allocation3 + $0xb4] sm:$0xff]  ;;  %3622 = vst.msk [vmem:[#allocation3 + $0x168] sm:$0xf] %vm586_vm3, %v12920_v4  ;;  %4764 = vrot.lane.b32.xlu0 %v12866_v55, %s10836_s25 }
 0x30a   : > { %v10706_v31 = vld [vmem:[#allocation3 + $0xac] ss:$12 sps:$4 sm:$0xff]   ;;  %4580 = vst.msk [vmem:[#allocation3 + $0x154] sm:$0xf] %vm586_vm3, %v12922_v20  ;;  %v9425_v41 = vcombine.low %v5572_v63, %v5574_v19  ;;  %v4867_v36 = vld [vmem:[#allocation2 + $0x170] sm:$0xff] }
 0x30b   : > { %4825 = vst.msk [vmem:[#allocation3 + $0xd0] sm:$0xf] %vm843_vm4, %v4747_v2  ;;  %v5378_v62 = vld [vmem:[#allocation2 + $0x16a] sm:$0xff]  ;;  %v5379_v54 = vld [vmem:[#allocation2 + $0x172] sm:$0xff]  ;;  %3806 = vrot.lane.b32.xlu1 %v12804_v53, %s10836_s25  ;;  %6135 = vmatprep.mubr.bf16.mxu1 %v10706_v31  ;;  %v12934_v5 = vpack.c.bf16 %v4867_v36, %v4867_v36  ;;  %v5001_v8 = vpop.permute.xlu0 %5000 }
 0x30c   : > { %v12936_v3 = vpack.c.bf16 %v5378_v62, %v5378_v62  ;;  %v12938_v30 = vpack.c.bf16 %v5379_v54, %v5379_v54  ;;  %v5123_v35 = vld [vmem:[#allocation2 + $0x171] sm:$0xff]  ;;  %v10278_v61 = vpop.f32.mrf.mxu0  ;;  %6136 = vmatmul.mubr.bf16.gmra.mxu1 %v9425_v41  ;;  %5080 = vst.msk [vmem:[#allocation3 + $0xc4] sm:$0xf] %vm1100_vm5, %v5001_v8 }
 0x30d   : > { %v12941_v18 = vpack.c.bf16 %v5123_v35, %v5123_v35  ;;  %v4043_v12 = vpop.permute.xlu1 %4042  ;;  %3623 = vst.msk [vmem:[#allocation3 + $0x174] sm:$0xf] %vm586_vm3, %v12934_v5  ;;  %4060 = vrot.lane.b32.xlu0 %v12799_v33, %s10837_s26 }
 0x30e   : > { %5538 = vst.msk [vmem:[#allocation3 + $0x140] sm:$0xf] %vm586_vm3, %v12936_v3  ;;  %5539 = vst.msk [vmem:[#allocation3 + $0x14c] sm:$0xf] %vm586_vm3, %v12938_v30  ;;  %v10279_v53 = vpop.f32.mrf.mxu0 }
 0x30f   : > { %4121 = vst.msk [vmem:[#allocation3 + $0xcc] sm:$0xf] %vm1100_vm5, %v4043_v12  ;;  %v10280_v34 = vadd.f32 %v10279_v53, %v10278_v61  ;;  %4766 = vrot.lane.b32.xlu1 %v12868_v16, %s10836_s25  ;;  %v4297_v28 = vpop.permute.xlu0 %4296 }
 0x310   : > { %4581 = vst.msk [vmem:[#allocation3 + $0x160] sm:$0xf] %vm586_vm3, %v12941_v18  ;;  %v10281_v52 = vpop.f32.mrf.mxu0 }
 0x311   : > { %v3201_v29 = vadd.f32 %v12683_v26, %v10280_v34  ;;  %v5003_v48 = vpop.permute.xlu1 %5002  ;;  %4376 = vst.msk [vmem:[#allocation3 + $0xc0] sm:$0xf] %vm1357_vm6, %v4297_v28  ;;  %5020 = vrot.lane.b32.xlu0 %v12920_v4, %s10837_s26 }
 0x312   : > { %5081 = vst.msk [vmem:[#allocation3 + $0xd0] sm:$0xf] %vm1100_vm5, %v5003_v48  ;;  %v10282_v13 = vpop.f32.mrf.mxu0 }
 0x313   : > { %v3362_v58 = vadd.f32 %v12856_v17, %v3201_v29  ;;  %v10283_v10 = vadd.f32 %v10282_v13, %v10281_v52  ;;  %4062 = vrot.lane.b32.xlu1 %v12801_v23, %s10837_s26  ;;  %v5257_v23 = vpop.permute.xlu0 %5256  ;;  %v4870_v52 = vld [vmem:[#allocation2 + $0x198] sm:$0xff]  ;;  %v4871_v13 = vld [vmem:[#allocation2 + $0x1a0] sm:$0xff] }
 0x314   : > { %5336 = vst.msk [vmem:[#allocation3 + $0xc4] sm:$0xf] %vm1357_vm6, %v5257_v23  ;;  %v5127_v23 = vld [vmem:[#allocation2 + $0x1a1] sm:$0xff] }
 0x315   : > { %v10708_v40 = vld [vmem:[#allocation3 + $0x140] ss:$12 sps:$4 sm:$0xff]   ;;  %v3398_v47 = vmax.f32 %v3362_v58, 0.0  ;;  %v3204_v51 = vadd.f32 %v12683_v26, %v10283_v10  ;;  %v4299_v14 = vpop.permute.xlu1 %4298  ;;  %4316 = vrot.lane.b32.xlu0 %v12894_v7, %s10838_s18  ;;  %v10105_v10 = vpack.c.bf16 %v4870_v52, %v4870_v52 }
 0x316   : > { %4377 = vst.msk [vmem:[#allocation3 + $0xcc] sm:$0xf] %vm1357_vm6, %v4299_v14  ;;  %10504 = vmatmul.mubr.msk.bf16.gmra.mxu0 %vm319_vm0, %v10708_v40 }
 0x317   : > { %3430 = vst.msk [vmem:[#allocation2 + $0x181] sm:$0xff] %vm319_vm0, %v3398_v47  ;;  %v3365_v33 = vadd.f32 %v12886_v25, %v3204_v51  ;;  %5022 = vrot.lane.b32.xlu1 %v12934_v5, %s10837_s26  ;;  %v3789_v11 = vpop.permute.xlu0 %3788  ;;  %v10106_v51 = vpack.c.bf16 %v4871_v13, %v4871_v13 }
 0x318   : > { %3866 = vst.msk [vmem:[#allocation3 + $0xd8] sm:$0xf] %vm843_vm4, %v3789_v11  ;;  %v10138_v11 = vpack.c.bf16 %v5127_v23, %v5127_v23 }
 0x319   : > { %v3399_v17 = vmax.f32 %v3365_v33, 0.0  ;;  %v5259_v26 = vpop.permute.xlu1 %5258  ;;  %5276 = vrot.lane.b32.xlu0 %v12922_v20, %s10838_s18  ;;  %v5126_v33 = vld [vmem:[#allocation2 + $0x199] sm:$0xff] }
 0x31a   : > { %5337 = vst.msk [vmem:[#allocation3 + $0xd0] sm:$0xf] %vm1357_vm6, %v5259_v26 }
 0x31b   : > { %3431 = vst.msk [vmem:[#allocation2 + $0x189] sm:$0xff] %vm319_vm0, %v3399_v17  ;;  %4318 = vrot.lane.b32.xlu1 %v12900_v24, %s10838_s18  ;;  %v4749_v22 = vpop.permute.xlu0 %4748  ;;  %v5576_v46 = vld [vmem:[#allocation3 + $0xc0] sm:$0xff] }
 0x31c   : > { %4826 = vst.msk [vmem:[#allocation3 + $0xdc] sm:$0xf] %vm843_vm4, %v4749_v22 }
 0x31d   : > { %v3791_v25 = vpop.permute.xlu1 %3790  ;;  %3808 = vrot.lane.b32.xlu0 %v12853_v57, %s10836_s25 }
 0x31e   : > { %3867 = vst.msk [vmem:[#allocation3 + $0xe4] sm:$0xf] %vm843_vm4, %v3791_v25  ;;  %v5124_v56 = vld [vmem:[#allocation2 + $0x181] sm:$0xff] }
 0x31f   : > { %5278 = vrot.lane.b32.xlu1 %v12941_v18, %s10838_s18  ;;  %v10135_v1 = vpack.c.bf16 %v5124_v56, %v5124_v56  ;;  %v4045_v15 = vpop.permute.xlu0 %4044  ;;  %v4868_v38 = vld [vmem:[#allocation2 + $0x180] sm:$0xff] }
 0x320   : > { %4122 = vst.msk [vmem:[#allocation3 + $0xd8] sm:$0xf] %vm1100_vm5, %v4045_v15  ;;  %v13013_v31 = vpack.c.bf16 %v4868_v38, %v4868_v38 }
 0x321   : > { %v4751_v21 = vpop.permute.xlu1 %4750  ;;  %v5578_v32 = vld [vmem:[#allocation3 + $0xcc] sm:$0xff]  ;;  %4582 = vst.msk [vmem:[#allocation3 + $0x16c] sm:$0xf] %vm586_vm3, %v10135_v1  ;;  %4768 = vrot.lane.b32.xlu0 %v12936_v3, %s10836_s25 }
 0x322   : > { %v10709_v7 = vld [vmem:[#allocation3 + $0xc4] ss:$12 sps:$4 sm:$0xff]   ;;  %4827 = vst.msk [vmem:[#allocation3 + $0xe8] sm:$0xf] %vm843_vm4, %v4751_v21  ;;  %v9428_v50 = vcombine.low %v5576_v46, %v5578_v32  ;;  %v5125_v44 = vld [vmem:[#allocation2 + $0x189] sm:$0xff] }
 0x323   : > { %v4614_v42 = vld [vmem:[#allocation2 + $0x182] sm:$0xff]  ;;  %3810 = vrot.lane.b32.xlu1 %v12871_v9, %s10836_s25  ;;  %6143 = vmatprep.mubr.bf16.mxu1 %v10709_v7  ;;  %v10136_v0 = vpack.c.bf16 %v5125_v44, %v5125_v44  ;;  %v4615_v43 = vld [vmem:[#allocation2 + $0x18a] sm:$0xff]  ;;  %v10318_v57 = vpop.f32.mrf.mxu1  ;;  %v5005_v59 = vpop.permute.xlu0 %5004 }
 0x324   : > { %v10073_v24 = vpack.c.bf16 %v4614_v42, %v4614_v42  ;;  %6144 = vmatmul.mubr.bf16.gmra.mxu1 %v9428_v50  ;;  %v10074_v45 = vpack.c.bf16 %v4615_v43, %v4615_v43  ;;  %5082 = vst.msk [vmem:[#allocation3 + $0xdc] sm:$0xf] %vm1100_vm5, %v5005_v59  ;;  %v4869_v2 = vld [vmem:[#allocation2 + $0x188] sm:$0xff] }
 0x325   : > { %v4047_v27 = vpop.permute.xlu1 %4046  ;;  %4583 = vst.msk [vmem:[#allocation3 + $0x178] sm:$0xf] %vm586_vm3, %v10136_v0  ;;  %v10319_v9 = vpop.f32.mrf.mxu1  ;;  %4064 = vrot.lane.b32.xlu0 %v12866_v55, %s10837_s26  ;;  %v13018_v36 = vpack.c.bf16 %v4869_v2, %v4869_v2 }
 0x326   : > { %5540 = vst.msk [vmem:[#allocation3 + $0x158] sm:$0xf] %vm586_vm3, %v10073_v24  ;;  %5541 = vst.msk [vmem:[#allocation3 + $0x164] sm:$0xf] %vm586_vm3, %v10074_v45  ;;  %v13001_v49 = vadd.f32 %v10319_v9, %v10318_v57  ;;  %vm7042_vm3 = vcmask 1047559  }
 0x327   : > { %4123 = vst.msk [vmem:[#allocation3 + $0xe4] sm:$0xf] %vm1100_vm5, %v4047_v27  ;;  %4770 = vrot.lane.b32.xlu1 %v12938_v30, %s10836_s25  ;;  %v10321_v39 = vpop.f32.mrf.mxu1  ;;  %v4301_v19 = vpop.permute.xlu0 %4300 }
 0x328   : > { %4378 = vst.msk [vmem:[#allocation3 + $0xd8] sm:$0xf] %vm1357_vm6, %v4301_v19 }
 0x329   : > { %v5007_v60 = vpop.permute.xlu1 %5006  ;;  %v10322_v6 = vpop.f32.mrf.mxu1  ;;  %5024 = vrot.lane.b32.xlu0 %v13013_v31, %s10837_s26 }
 0x32a   : > { %5083 = vst.msk [vmem:[#allocation3 + $0xe8] sm:$0xf] %vm1100_vm5, %v5007_v60  ;;  %v13009_v63 = vadd.f32 %v10322_v6, %v10321_v39 }
 0x32b   : > { %4066 = vrot.lane.b32.xlu1 %v12868_v16, %s10837_s26  ;;  %v5261_v55 = vpop.permute.xlu0 %5260 }
 0x32c   : > { %5338 = vst.msk [vmem:[#allocation3 + $0xdc] sm:$0xf] %vm1357_vm6, %v5261_v55 }
 0x32d   : > { %v4303_v41 = vpop.permute.xlu1 %4302  ;;  %4320 = vrot.lane.b32.xlu0 %v12920_v4, %s10838_s18 }
 0x32e   : > { %4379 = vst.msk [vmem:[#allocation3 + $0xe4] sm:$0xf] %vm1357_vm6, %v4303_v41 }
 0x32f   : > { %5026 = vrot.lane.b32.xlu1 %v13018_v36, %s10837_s26  ;;  %v3793_v62 = vpop.permute.xlu0 %3792 }
 0x330   : > { %3868 = vst.msk [vmem:[#allocation3 + $0xf0] sm:$0xf] %vm843_vm4, %v3793_v62 }
 0x331   : > { %v5263_v16 = vpop.permute.xlu1 %5262  ;;  %5280 = vrot.lane.b32.xlu0 %v10135_v1, %s10838_s18 }
 0x332   : > { %5339 = vst.msk [vmem:[#allocation3 + $0xe8] sm:$0xf] %vm1357_vm6, %v5263_v16 }
 0x333   : > { %4322 = vrot.lane.b32.xlu1 %v12934_v5, %s10838_s18  ;;  %v4753_v37 = vpop.permute.xlu0 %4752  ;;  %v5580_v4 = vld [vmem:[#allocation3 + $0xd8] sm:$0xff] }
 0x334   : > { %4828 = vst.msk [vmem:[#allocation3 + $0xf4] sm:$0xf] %vm843_vm4, %v4753_v37 }
 0x335   : > { %v3795_v54 = vpop.permute.xlu1 %3794  ;;  %3812 = vrot.lane.b32.xlu0 %v12922_v20, %s10836_s25 }
 0x336   : > { %3869 = vst.msk [vmem:[#allocation3 + $0xfc] sm:$0xf] %vm843_vm4, %v3795_v54 }
 0x337   : > { %5282 = vrot.lane.b32.xlu1 %v10136_v0, %s10838_s18  ;;  %v4049_v53 = vpop.permute.xlu0 %4048 }
 0x338   : > { %4124 = vst.msk [vmem:[#allocation3 + $0xf0] sm:$0xf] %vm1100_vm5, %v4049_v53 }
 0x339   : > { %v4755_v35 = vpop.permute.xlu1 %4754  ;;  %v5582_v61 = vld [vmem:[#allocation3 + $0xe4] sm:$0xff]  ;;  %4772 = vrot.lane.b32.xlu0 %v10073_v24, %s10836_s25 }
 0x33a   : > { %v10711_v5 = vld [vmem:[#allocation3 + $0xdc] ss:$12 sps:$4 sm:$0xff]   ;;  %4829 = vst.msk [vmem:[#allocation3 + $0x100] sm:$0xf] %vm843_vm4, %v4755_v35  ;;  %v9431_v12 = vcombine.low %v5580_v4, %v5582_v61 }
 0x33b   : > { %3814 = vrot.lane.b32.xlu1 %v12941_v18, %s10836_s25  ;;  %6151 = vmatprep.mubr.bf16.mxu1 %v10711_v5  ;;  %v5009_v48 = vpop.permute.xlu0 %5008 }
 0x33c   : > { %v10324_v34 = vpop.f32.mrf.mxu1  ;;  %6152 = vmatmul.mubr.bf16.gmra.mxu1 %v9431_v12  ;;  %5084 = vst.msk [vmem:[#allocation3 + $0xf4] sm:$0xf] %vm1100_vm5, %v5009_v48 }
 0x33d   : > { %v4051_v8 = vpop.permute.xlu1 %4050  ;;  %4068 = vrot.lane.b32.xlu0 %v12936_v3, %s10837_s26 }
 0x33e   : > { %4125 = vst.msk [vmem:[#allocation3 + $0xfc] sm:$0xf] %vm1100_vm5, %v4051_v8  ;;  %v10325_v20 = vpop.f32.mrf.mxu1 }
 0x33f   : > { %4774 = vrot.lane.b32.xlu1 %v10074_v45, %s10836_s25  ;;  %v13043_v29 = vadd.f32 %v10325_v20, %v10324_v34  ;;  %v4305_v47 = vpop.permute.xlu0 %4304  ;;  %s15539_s25 = smov 127  }
 0x340   : > { %v10327_v18 = vpop.f32.mrf.mxu1  ;;  %4380 = vst.msk [vmem:[#allocation3 + $0xf0] sm:$0xf] %vm1357_vm6, %v4305_v47 }
 0x341   : > { %v5011_v58 = vpop.permute.xlu1 %5010  ;;  %5028 = vrot.lane.b32.xlu0 %v10105_v10, %s10837_s26 }
 0x342   : > { %5085 = vst.msk [vmem:[#allocation3 + $0x100] sm:$0xf] %vm1100_vm5, %v5011_v58  ;;  %v10328_v28 = vpop.f32.mrf.mxu1 }
 0x343   : > { %4070 = vrot.lane.b32.xlu1 %v12938_v30, %s10837_s26  ;;  %v13051_v40 = vadd.f32 %v10328_v28, %v10327_v18  ;;  %v5265_v3 = vpop.permute.xlu0 %5264  ;;  %v10137_v30 = vpack.c.bf16 %v5126_v33, %v5126_v33 }
 0x344   : > { %5340 = vst.msk [vmem:[#allocation3 + $0xf4] sm:$0xf] %vm1357_vm6, %v5265_v3 }
 0x345   : > { %v4307_v14 = vpop.permute.xlu1 %4306  ;;  %4324 = vrot.lane.b32.xlu0 %v13013_v31, %s10838_s18 }
 0x346   : > { %4381 = vst.msk [vmem:[#allocation3 + $0xfc] sm:$0xf] %vm1357_vm6, %v4307_v14 }
 0x347   : > { %5030 = vrot.lane.b32.xlu1 %v10106_v51, %s10837_s26  ;;  %v3797_v26 = vpop.permute.xlu0 %3796  ;;  %s15544_s26 = smov 126  }
 0x348   : > { %3870 = vst.msk [vmem:[#allocation3 + $0x108] sm:$0xf] %vm843_vm4, %v3797_v26 }
 0x349   : > { %v5267_v17 = vpop.permute.xlu1 %5266  ;;  %5284 = vrot.lane.b32.xlu0 %v10137_v30, %s10838_s18 }
 0x34a   : > { %5341 = vst.msk [vmem:[#allocation3 + $0x100] sm:$0xf] %vm1357_vm6, %v5267_v17 }
 0x34b   : > { %4326 = vrot.lane.b32.xlu1 %v13018_v36, %s10838_s18  ;;  %v4757_v56 = vpop.permute.xlu0 %4756  ;;  %v5584_v1 = vld [vmem:[#allocation3 + $0xf0] sm:$0xff] }
 0x34c   : > { %4830 = vst.msk [vmem:[#allocation3 + $0x10c] sm:$0xf] %vm843_vm4, %v4757_v56 }
 0x34d   : > { %v3799_v25 = vpop.permute.xlu1 %3798 }
 0x34e   : > { %3871 = vst.msk [vmem:[#allocation3 + $0x114] sm:$0xf] %vm843_vm4, %v3799_v25 }
 0x34f   : > { %5286 = vrot.lane.b32.xlu1 %v10138_v11, %s10838_s18  ;;  %v4053_v7 = vpop.permute.xlu0 %4052  ;;  %s15551_s18 = smov 125  }
 0x350   : > { %4126 = vst.msk [vmem:[#allocation3 + $0x108] sm:$0xf] %vm1100_vm5, %v4053_v7 }
 0x351   : > { %v4759_v22 = vpop.permute.xlu1 %4758  ;;  %v5586_v21 = vld [vmem:[#allocation3 + $0xfc] sm:$0xff] }
 0x352   : > { %v10713_v46 = vld [vmem:[#allocation3 + $0xf4] ss:$12 sps:$4 sm:$0xff]   ;;  %4831 = vst.msk [vmem:[#allocation3 + $0x118] sm:$0xf] %vm843_vm4, %v4759_v22  ;;  %v9434_v32 = vcombine.low %v5584_v1, %v5586_v21 }
 0x353   : > { %6159 = vmatprep.mubr.bf16.mxu1 %v10713_v46  ;;  %v5013_v44 = vpop.permute.xlu0 %5012 }
 0x354   : > { %6160 = vmatmul.mubr.bf16.gmra.mxu1 %v9434_v32  ;;  %5086 = vst.msk [vmem:[#allocation3 + $0x10c] sm:$0xf] %vm1100_vm5, %v5013_v44 }
 0x355   : > { %v4055_v50 = vpop.permute.xlu1 %4054 }
 0x356   : > { %4127 = vst.msk [vmem:[#allocation3 + $0x114] sm:$0xf] %vm1100_vm5, %v4055_v50 }
 0x357   : > { %v4309_v15 = vpop.permute.xlu0 %4308 }
 0x358   : > { %4382 = vst.msk [vmem:[#allocation3 + $0x108] sm:$0xf] %vm1357_vm6, %v4309_v15 }
 0x359   : > { %v5015_v42 = vpop.permute.xlu1 %5014 }
 0x35a   : > { %5087 = vst.msk [vmem:[#allocation3 + $0x118] sm:$0xf] %vm1100_vm5, %v5015_v42 }
 0x35b   : > { %v5269_v24 = vpop.permute.xlu0 %5268 }
 0x35c   : > { %5342 = vst.msk [vmem:[#allocation3 + $0x10c] sm:$0xf] %vm1357_vm6, %v5269_v24 }
 0x35d   : > { %v4311_v0 = vpop.permute.xlu1 %4310 }
 0x35e   : > { %4383 = vst.msk [vmem:[#allocation3 + $0x114] sm:$0xf] %vm1357_vm6, %v4311_v0 }
 0x35f   : > { %v3801_v57 = vpop.permute.xlu0 %3800 }
 0x360   : > { %3872 = vst.msk [vmem:[#allocation3 + $0x120] sm:$0xf] %vm843_vm4, %v3801_v57 }
 0x361   : > { %v5271_v43 = vpop.permute.xlu1 %5270 }
 0x362   : > { %5343 = vst.msk [vmem:[#allocation3 + $0x118] sm:$0xf] %vm1357_vm6, %v5271_v43 }
 0x363   : > { %v4761_v27 = vpop.permute.xlu0 %4760  ;;  %v5588_v59 = vld [vmem:[#allocation3 + $0x108] sm:$0xff] }
 0x364   : > { %4832 = vst.msk [vmem:[#allocation3 + $0x124] sm:$0xf] %vm843_vm4, %v4761_v27 }
 0x365   : > { %v3803_v45 = vpop.permute.xlu1 %3802 }
 0x366   : > { %3873 = vst.msk [vmem:[#allocation3 + $0x12c] sm:$0xf] %vm843_vm4, %v3803_v45 }
 0x367   : > { %v4057_v6 = vpop.permute.xlu0 %4056 }
 0x368   : > { %4128 = vst.msk [vmem:[#allocation3 + $0x120] sm:$0xf] %vm1100_vm5, %v4057_v6  ;;  %v13127_v6 = vpop.f32.mrf.mxu1 }
 0x369   : > { %v4763_v9 = vpop.permute.xlu1 %4762  ;;  %v5590_v39 = vld [vmem:[#allocation3 + $0x114] sm:$0xff] }
 0x36a   : > { %v10715_v38 = vld [vmem:[#allocation3 + $0x10c] ss:$12 sps:$4 sm:$0xff]   ;;  %4833 = vst.msk [vmem:[#allocation3 + $0x130] sm:$0xf] %vm843_vm4, %v4763_v9  ;;  %v9437_v60 = vcombine.low %v5588_v59, %v5590_v39 }
 0x36b   : > { %6167 = vmatprep.mubr.bf16.mxu1 %v10715_v38  ;;  %v5017_v19 = vpop.permute.xlu0 %5016  ;;  %v10726_v38 = vld [vmem:[#allocation3 + $0x158] ss:$12 sps:$4 sm:$0xff]  }
 0x36c   : > { %6168 = vmatmul.mubr.bf16.gmra.mxu1 %v9437_v60  ;;  %5088 = vst.msk [vmem:[#allocation3 + $0x124] sm:$0xf] %vm1100_vm5, %v5017_v19  ;;  %v10727_v60 = vld [vmem:[#allocation3 + $0x170] ss:$12 sps:$4 sm:$0xff]  }
 0x36d   : > { %v4059_v2 = vpop.permute.xlu1 %4058 }
 0x36e   : > { %4129 = vst.msk [vmem:[#allocation3 + $0x12c] sm:$0xf] %vm1100_vm5, %v4059_v2  ;;  %v13129_v2 = vpop.f32.mrf.mxu1 }
 0x36f   : > { %v4313_v41 = vpop.permute.xlu0 %4312 }
 0x370   : > { %4384 = vst.msk [vmem:[#allocation3 + $0x120] sm:$0xf] %vm1357_vm6, %v4313_v41  ;;  %v13131_v19 = vpop.f32.mrf.mxu1 }
 0x371   : > { %v5019_v31 = vpop.permute.xlu1 %5018 }
 0x372   : > { %5089 = vst.msk [vmem:[#allocation3 + $0x130] sm:$0xf] %vm1100_vm5, %v5019_v31  ;;  %v13133_v31 = vpop.f32.mrf.mxu1 }
 0x373   : > { %v5273_v55 = vpop.permute.xlu0 %5272 }
 0x374   : > { %5344 = vst.msk [vmem:[#allocation3 + $0x124] sm:$0xf] %vm1357_vm6, %v5273_v55  ;;  %v13135_v41 = vpop.f32.mrf.mxu1 }
 0x375   : > { %v4315_v36 = vpop.permute.xlu1 %4314 }
 0x376   : > { %4385 = vst.msk [vmem:[#allocation3 + $0x12c] sm:$0xf] %vm1357_vm6, %v4315_v36  ;;  %v13137_v36 = vpop.f32.mrf.mxu1 }
 0x377   : > { %v3805_v62 = vpop.permute.xlu0 %3804 }
 0x378   : > { %3874 = vst.msk [vmem:[#allocation3 + $0x138] sm:$0xf] %vm843_vm4, %v3805_v62  ;;  %v13139_v55 = vpop.f32.mrf.mxu1 }
 0x379   : > { %v5275_v16 = vpop.permute.xlu1 %5274 }
 0x37a   : > { %5345 = vst.msk [vmem:[#allocation3 + $0x130] sm:$0xf] %vm1357_vm6, %v5275_v16  ;;  %v13141_v16 = vpop.f32.mrf.mxu1 }
 0x37b   : > { %v4765_v37 = vpop.permute.xlu0 %4764  ;;  %v5592_v4 = vld [vmem:[#allocation3 + $0x120] sm:$0xff] }
 0x37c   : > { %4834 = vst.msk [vmem:[#allocation3 + $0x13c] sm:$0xf] %vm843_vm4, %v4765_v37 }
 0x37d   : > { %v3807_v54 = vpop.permute.xlu1 %3806 }
 0x37e   : > { %3875 = vst.msk [vmem:[#allocation3 + $0x144] sm:$0xf] %vm843_vm4, %v3807_v54 }
 0x37f   : > { %v4061_v53 = vpop.permute.xlu0 %4060 }
 0x380   : > { %4130 = vst.msk [vmem:[#allocation3 + $0x138] sm:$0xf] %vm1100_vm5, %v4061_v53 }
 0x381   : > { %v4767_v35 = vpop.permute.xlu1 %4766  ;;  %v5594_v61 = vld [vmem:[#allocation3 + $0x12c] sm:$0xff] }
 0x382   : > { %v10717_v5 = vld [vmem:[#allocation3 + $0x124] ss:$12 sps:$4 sm:$0xff]   ;;  %4835 = vst.msk [vmem:[#allocation3 + $0x148] sm:$0xf] %vm843_vm4, %v4767_v35  ;;  %v9440_v12 = vcombine.low %v5592_v4, %v5594_v61 }
 0x383   : > { %6175 = vmatprep.mubr.bf16.mxu1 %v10717_v5  ;;  %v5021_v8 = vpop.permute.xlu0 %5020 }
 0x384   : > { %6176 = vmatmul.mubr.bf16.gmra.mxu1 %v9440_v12  ;;  %5090 = vst.msk [vmem:[#allocation3 + $0x13c] sm:$0xf] %vm1100_vm5, %v5021_v8  ;;  %v13143_v62 = vpop.f32.mrf.mxu1 }
 0x385   : > { %v4063_v34 = vpop.permute.xlu1 %4062 }
 0x386   : > { %4131 = vst.msk [vmem:[#allocation3 + $0x144] sm:$0xf] %vm1100_vm5, %v4063_v34  ;;  %v13145_v54 = vpop.f32.mrf.mxu1 }
 0x387   : > { %v4317_v52 = vpop.permute.xlu0 %4316 }
 0x388   : > { %4386 = vst.msk [vmem:[#allocation3 + $0x138] sm:$0xf] %vm1357_vm6, %v4317_v52  ;;  %v13147_v37 = vpop.f32.mrf.mxu1 }
 0x389   : > { %v5023_v20 = vpop.permute.xlu1 %5022 }
 0x38a   : > { %5091 = vst.msk [vmem:[#allocation3 + $0x148] sm:$0xf] %vm1100_vm5, %v5023_v20  ;;  %v13149_v35 = vpop.f32.mrf.mxu1 }
 0x38b   : > { %v5277_v18 = vpop.permute.xlu0 %5276 }
 0x38c   : > { %5346 = vst.msk [vmem:[#allocation3 + $0x13c] sm:$0xf] %vm1357_vm6, %v5277_v18 }
 0x38d   : > { %v4319_v48 = vpop.permute.xlu1 %4318 }
 0x38e   : > { %4387 = vst.msk [vmem:[#allocation3 + $0x144] sm:$0xf] %vm1357_vm6, %v4319_v48 }
 0x38f   : > { %v3809_v58 = vpop.permute.xlu0 %3808 }
 0x390   : > { %3876 = vst.msk [vmem:[#allocation3 + $0x150] sm:$0xf] %vm843_vm4, %v3809_v58  ;;  %v10481_v58 = vpop.f32.mrf.mxu0 }
 0x391   : > { %v5279_v13 = vpop.permute.xlu1 %5278 }
 0x392   : > { %5347 = vst.msk [vmem:[#allocation3 + $0x148] sm:$0xf] %vm1357_vm6, %v5279_v13 }
 0x393   : > { %v4769_v28 = vpop.permute.xlu0 %4768  ;;  %v5596_v51 = vld [vmem:[#allocation3 + $0x138] sm:$0xff] }
 0x394   : > { %4836 = vst.msk [vmem:[#allocation3 + $0x154] sm:$0xf] %vm843_vm4, %v4769_v28  ;;  %v6514_v28 = vld [vmem:[%s15621_s5 + $0x18] sm:$0xff] }
 0x395   : > { %v3811_v10 = vpop.permute.xlu1 %3810 }
 0x396   : > { %3877 = vst.msk [vmem:[#allocation3 + $0x15c] sm:$0xf] %vm843_vm4, %v3811_v10 }
 0x397   : > { %v4065_v23 = vpop.permute.xlu0 %4064 }
 0x398   : > { %4132 = vst.msk [vmem:[#allocation3 + $0x150] sm:$0xf] %vm1100_vm5, %v4065_v23  ;;  %v6511_v23 = vld [vmem:[%s15621_s5] sm:$0xff] }
 0x399   : > { %v4771_v47 = vpop.permute.xlu1 %4770  ;;  %v5598_v14 = vld [vmem:[#allocation3 + $0x144] sm:$0xff] }
 0x39a   : > { %v10719_v33 = vld [vmem:[#allocation3 + $0x13c] ss:$12 sps:$4 sm:$0xff]   ;;  %4837 = vst.msk [vmem:[#allocation3 + $0x160] sm:$0xf] %vm843_vm4, %v4771_v47  ;;  %v9443_v3 = vcombine.low %v5596_v51, %v5598_v14  ;;  %v6513_v47 = vld [vmem:[%s15621_s5 + $0x10] sm:$0xff] }
 0x39b   : > { %6183 = vmatprep.mubr.bf16.mxu1 %v10719_v33  ;;  %v5025_v30 = vpop.permute.xlu0 %5024  ;;  %v13183_v51 = vld [vmem:[#allocation4] sm:$0xff]  ;;  %v6512_v14 = vld [vmem:[%s15621_s5 + $0x8] sm:$0xff]  ;;  %v6242_v33 = vpop.f32.mrf.mxu0  ;;  %s14329_s5 = sld [smem:[#allocation5 + $0x1a]] }
 0x39c   : > { %6184 = vmatmul.mubr.bf16.gmra.mxu1 %v9443_v3  ;;  %5092 = vst.msk [vmem:[#allocation3 + $0x154] sm:$0xf] %vm1100_vm5, %v5025_v30  ;;  %v13151_v4 = vpop.f32.mrf.mxu1  ;;  %15622 = vst [vmem:[#allocation20_spill] sm:$0xff] %v13183_v51 }
 0x39d   : > { %v4067_v17 = vpop.permute.xlu1 %4066 }
 0x39e   : > { %4133 = vst.msk [vmem:[#allocation3 + $0x15c] sm:$0xf] %vm1100_vm5, %v4067_v17  ;;  %v13153_v61 = vpop.f32.mrf.mxu1  ;;  %v10482_v17 = vpop.f32.mrf.mxu0 }
 0x39f   : > { %v4321_v11 = vpop.permute.xlu0 %4320 }
 0x3a0   : > { %4388 = vst.msk [vmem:[#allocation3 + $0x150] sm:$0xf] %vm1357_vm6, %v4321_v11  ;;  %v13155_v5 = vpop.f32.mrf.mxu1 }
 0x3a1   : > { %v5027_v26 = vpop.permute.xlu1 %5026 }
 0x3a2   : > { %5093 = vst.msk [vmem:[#allocation3 + $0x160] sm:$0xf] %vm1100_vm5, %v5027_v26  ;;  %v13157_v12 = vpop.f32.mrf.mxu1  ;;  %v6245_v26 = vpop.f32.mrf.mxu0 }
 0x3a3   : > { %v5281_v56 = vpop.permute.xlu0 %5280 }
 0x3a4   : > { %5348 = vst.msk [vmem:[#allocation3 + $0x154] sm:$0xf] %vm1357_vm6, %v5281_v56  ;;  %v10485_v56 = vpop.f32.mrf.mxu0 }
 0x3a5   : > { %v4323_v25 = vpop.permute.xlu1 %4322 }
 0x3a6   : > { %4389 = vst.msk [vmem:[#allocation3 + $0x15c] sm:$0xf] %vm1357_vm6, %v4323_v25 }
 0x3a7   : > { %v3813_v1 = vpop.permute.xlu0 %3812 }
 0x3a8   : > { %3878 = vst.msk [vmem:[#allocation3 + $0x168] sm:$0xf] %vm843_vm4, %v3813_v1  ;;  %v6258_v1 = vpop.f32.mrf.mxu0 }
 0x3a9   : > { %v5283_v22 = vpop.permute.xlu1 %5282 }
 0x3aa   : > { %5349 = vst.msk [vmem:[#allocation3 + $0x160] sm:$0xf] %vm1357_vm6, %v5283_v22 }
 0x3ab   : > { %v4773_v46 = vpop.permute.xlu0 %4772  ;;  %v5600_v7 = vld [vmem:[#allocation3 + $0x150] sm:$0xff] }
 0x3ac   : > { %4838 = vst.msk [vmem:[#allocation3 + $0x16c] sm:$0xf] %vm843_vm4, %v4773_v46  ;;  %v13209_v46 = vpop.f32.mrf.mxu0 }
 0x3ad   : > { %v3815_v21 = vpop.permute.xlu1 %3814 }
 0x3ae   : > { %3879 = vst.msk [vmem:[#allocation3 + $0x174] sm:$0xf] %vm843_vm4, %v3815_v21 }
 0x3af   : > { %v4069_v15 = vpop.permute.xlu0 %4068 }
 0x3b0   : > { %4134 = vst.msk [vmem:[#allocation3 + $0x168] sm:$0xf] %vm1100_vm5, %v4069_v15 }
 0x3b1   : > { %v4775_v32 = vpop.permute.xlu1 %4774  ;;  %v5602_v50 = vld [vmem:[#allocation3 + $0x15c] sm:$0xff] }
 0x3b2   : > { %v10721_v44 = vld [vmem:[#allocation3 + $0x154] ss:$12 sps:$4 sm:$0xff]   ;;  %4839 = vst.msk [vmem:[#allocation3 + $0x178] sm:$0xf] %vm843_vm4, %v4775_v32  ;;  %v9446_v42 = vcombine.low %v5600_v7, %v5602_v50  ;;  %v6261_v7 = vpop.f32.mrf.mxu0  ;;  %vm7053_vm4 = vcmask 154648  }
 0x3b3   : > { %6191 = vmatprep.mubr.bf16.mxu1 %v10721_v44  ;;  %v5029_v24 = vpop.permute.xlu0 %5028 }
 0x3b4   : > { %6192 = vmatmul.mubr.bf16.gmra.mxu1 %v9446_v42  ;;  %5094 = vst.msk [vmem:[#allocation3 + $0x16c] sm:$0xf] %vm1100_vm5, %v5029_v24  ;;  %v13159_v53 = vpop.f32.mrf.mxu1  ;;  %v13215_v44 = vpop.f32.mrf.mxu0 }
 0x3b5   : > { %v4071_v0 = vpop.permute.xlu1 %4070 }
 0x3b6   : > { %4135 = vst.msk [vmem:[#allocation3 + $0x174] sm:$0xf] %vm1100_vm5, %v4071_v0  ;;  %v13161_v34 = vpop.f32.mrf.mxu1  ;;  %v13219_v15 = vpop.f32.mrf.mxu0 }
 0x3b7   : > { %v4325_v57 = vpop.permute.xlu0 %4324 }
 0x3b8   : > { %4390 = vst.msk [vmem:[#allocation3 + $0x168] sm:$0xf] %vm1357_vm6, %v4325_v57  ;;  %v13163_v8 = vpop.f32.mrf.mxu1  ;;  %v13223_v24 = vpop.f32.mrf.mxu0 }
 0x3b9   : > { %v5031_v43 = vpop.permute.xlu1 %5030 }
 0x3ba   : > { %5095 = vst.msk [vmem:[#allocation3 + $0x178] sm:$0xf] %vm1100_vm5, %v5031_v43  ;;  %v13165_v20 = vpop.f32.mrf.mxu1 }
 0x3bb   : > { %v5285_v27 = vpop.permute.xlu0 %5284 }
 0x3bc   : > { %5350 = vst.msk [vmem:[#allocation3 + $0x16c] sm:$0xf] %vm1357_vm6, %v5285_v27 }
 0x3bd   : > { %v4327_v45 = vpop.permute.xlu1 %4326 }
 0x3be   : > { %4391 = vst.msk [vmem:[#allocation3 + $0x174] sm:$0xf] %vm1357_vm6, %v4327_v45  ;;  %v13229_v45 = vpop.f32.mrf.mxu0 }
 0x3c0   : > { %v13231_v27 = vpop.f32.mrf.mxu0 }
 0x3c1   : > { %v5287_v9 = vpop.permute.xlu1 %5286 }
 0x3c2   : > { %5351 = vst.msk [vmem:[#allocation3 + $0x178] sm:$0xf] %vm1357_vm6, %v5287_v9 }
 0x3c5   : > { %v10725_v39 = vld [vmem:[#allocation3 + $0x168] ss:$12 sps:$4 sm:$0xff]  }
 0x3c9   : > { %v10723_v59 = vld [vmem:[#allocation3 + $0x16c] ss:$12 sps:$4 sm:$0xff]  }
 0x3ca   : > { %6199 = vmatprep.mubr.bf16.mxu1 %v10723_v59  ;;  %v13238_v59 = vld [vmem:[%s15625_s4] ss:$0 sm:$0xff]  ;;  %s15689_s4 = smov 122  }
 0x3cb   : > { %6200 = vmatmul.mubr.bf16.gmra.mxu1 %v10725_v39  ;;  %v6085_v39 = vadd.f32 %v13009_v63, %v13238_v59  ;;  %v10335_v63 = vadd.f32 %v13133_v31, %v13131_v19  ;;  %v10341_v31 = vadd.f32 %v13141_v16, %v13139_v55 }
 0x3cc   : > { %10507 = vmatprep.mubr.msk.bf16.mxu1 %vm319_vm0, %v10726_v38  ;;  %v13167_v52 = vpop.f32.mrf.mxu1  ;;  %v6082_v38 = vadd.f32 %v13001_v49, %v13238_v59 }
 0x3cd   : > { %v6101_v19 = vadd.f32 %v10335_v63, %v13238_v59 }
 0x3ce   : > { %v13169_v48 = vpop.f32.mrf.mxu1 }
 0x3cf   : > { %v13301_v63 = vadd.f32 %v6261_v7, %v6101_v19  ;;  %v10350_v7 = vadd.f32 %v13153_v61, %v13151_v4  ;;  %v10353_v4 = vadd.f32 %v13157_v12, %v13155_v5 }
 0x3d0   : > { %v13171_v18 = vpop.f32.mrf.mxu1 }
 0x3d2   : > { %v13173_v13 = vpop.f32.mrf.mxu1 }
 0x3d3   : > { %10508 = vmatmul.mubr.msk.bf16.vlgmr.msra.gmra.mxu1 %vm319_vm0, %v10727_v60  ;;  %v13244_v60 = vpop.f32.mrf.mxu0 }
 0x3d4   : > { %10512 = vmatpush3.msra.mxu1 %v6514_v28  ;;  %10519 = vmatprep.mubr.msk.f32.mxu1 %vm10839_vm7, %v13183_v51 }
 0x3d5   : > { %10513 = vmatprep.subr.mxu1 %v13183_v51  ;;  %v13260_v49 = vpop.f32.mrf.mxu0 }
 0x3d6   : > { %10514 = vmatpush3.msra.mxu1 %v6513_v47  ;;  %v6090_v47 = vadd.f32 %v13043_v29, %v13238_v59 }
 0x3d7   : > { %10515 = vmatprep.subr.mxu1 %v13183_v51 }
 0x3d8   : > { %10516 = vmatpush3.msra.mxu1 %v6512_v14  ;;  %v10332_v14 = vadd.f32 %v13129_v2, %v13127_v6  ;;  %v10338_v6 = vadd.f32 %v13137_v36, %v13135_v41 }
 0x3d9   : > { %10517 = vmatprep.subr.mxu1 %v13183_v51 }
 0x3da   : > { %10518 = vmatpush3.msra.mxu1 %v6511_v23  ;;  %v13252_v23 = vadd.f32 %v6245_v26, %v6085_v39  ;;  %v6098_v29 = vadd.f32 %v10332_v14, %v13238_v59  ;;  %v13282_v39 = vpop.f32.mrf.mxu0 }
 0x3db   : > { %10522 = vmatprep.subr.mxu1 %v13183_v51  ;;  %v6093_v51 = vadd.f32 %v13051_v40, %v13238_v59 }
 0x3dc   : > { %v6370_v40 = vsel %vm319_vm0, %v13252_v23, 0.0  ;;  %v13286_v36 = vadd.f32 %v6258_v1, %v6098_v29  ;;  %v6109_v29 = vadd.f32 %v10341_v31, %v13238_v59 }
 0x3dd   : > { %v13273_v26 = vadd.f32 %v10482_v17, %v6093_v51  ;;  %v6106_v51 = vadd.f32 %v10338_v6, %v13238_v59  ;;  %v10344_v17 = vadd.f32 %v13145_v54, %v13143_v62  ;;  %v10347_v62 = vadd.f32 %v13149_v35, %v13147_v37 }
 0x3de   : > { %v6444_v37 = vsel %vm319_vm0, %v13286_v36, -inf }
 0x3df   : > { %v6374_v1 = vsel %vm319_vm0, %v13273_v26, 0.0 }
 0x3e4   : > { %v13175_v10 = vpop.f32.mrf.mxu1 }
 0x3e6   : > { %v13191_v3 = vpop.f32.mrf.mxu1 }
 0x3e8   : > { %v13198_v30 = vpop.f32.mrf.mxu1 }
 0x3ea   : > { %v13201_v11 = vpop.f32.mrf.mxu1 }
 0x3fc   : > { %v13203_v25 = vpop.f32.mrf.mxu1 }
 0x3fe   : > { %v13205_v22 = vpop.f32.mrf.mxu1 }
 0x400   : > { %v13207_v21 = vpop.f32.mrf.mxu1 }
 0x402   : > { %v13211_v32 = vpop.f32.mrf.mxu1 }
 0x414   : > { %v13213_v50 = vpop.f32.mrf.mxu1 }
 0x416   : > { %v13217_v42 = vpop.f32.mrf.mxu1 }
 0x418   : > { %v13221_v0 = vpop.f32.mrf.mxu1 }
 0x41a   : > { %v13225_v43 = vpop.f32.mrf.mxu1 }
 0x42c   : > { %v13227_v57 = vpop.f32.mrf.mxu1 }
 0x42d   : > { %15623 = vst [vmem:[#allocation21_spill] sm:$0xff] %v13227_v57 }
 0x42e   : > { %v13233_v9 = vpop.f32.mrf.mxu1 }
 0x42f   : > { %15624 = vst [vmem:[#allocation22_spill] sm:$0xff] %v13233_v9  ;;  %v13258_v9 = vadd.f32 %v6242_v33, %v6082_v38  ;;  %v6441_v33 = vsel %vm319_vm0, %v13252_v23, -inf }
 0x430   : > { %v13246_v28 = vpop.f32.mrf.mxu1 }
 0x431   : > { %15626 = vst [vmem:[#allocation23_spill] sm:$0xff] %v13246_v28  ;;  %15627 = vst [vmem:[#allocation24_spill] sm:$0xff] %v13258_v9  ;;  %v13264_v28 = vadd.f32 %v10481_v58, %v6090_v47  ;;  %v6369_v58 = vsel %vm319_vm0, %v13258_v9, 0.0  ;;  %v6440_v55 = vsel %vm319_vm0, %v13258_v9, -inf  ;;  %v13295_v47 = vpop.f32.mrf.mxu0  ;;  %v6114_v9 = vadd.f32 %v10344_v17, %v13238_v59 }
 0x432   : > { %v13262_v57 = vpop.f32.mrf.mxu1  ;;  %v6371_v16 = vadd.f32 %v6370_v40, %v6369_v58  ;;  %v6445_v54 = vmax.f32 %v6440_v55, %v6441_v33  ;;  %v6443_v40 = vsel %vm319_vm0, %v13273_v26, -inf  ;;  %v6376_v58 = vsel %vm319_vm0, %v13286_v36, 0.0 }
 0x433   : > { %15628 = vst [vmem:[#allocation25_spill] sm:$0xff] %v13264_v28  ;;  %v6372_v41 = vsel %vm319_vm0, %v13264_v28, 0.0  ;;  %v6442_v38 = vsel %vm319_vm0, %v13264_v28, -inf  ;;  %v13310_v28 = vadd.f32 %v10485_v56, %v6106_v51  ;;  %v13317_v35 = vpop.f32.mrf.mxu0  ;;  %v13324_v56 = vadd.f32 %v13209_v46, %v6109_v29 }
 0x434   : > { %v6373_v6 = vadd.f32 %v6372_v41, %v6371_v16  ;;  %v6447_v19 = vmax.f32 %v6442_v38, %v6445_v54  ;;  %v6378_v41 = vsel %vm319_vm0, %v13301_v63, 0.0  ;;  %v6117_v51 = vadd.f32 %v10347_v62, %v13238_v59 }
 0x435   : > { %v6446_v55 = vsel %vm319_vm0, %v13301_v63, -inf  ;;  %v6380_v16 = vsel %vm319_vm0, %v13310_v28, 0.0  ;;  %v13334_v38 = vadd.f32 %v13219_v15, %v6114_v9  ;;  %v10356_v46 = vadd.f32 %v13161_v34, %v13159_v53  ;;  %v13341_v12 = vpop.f32.mrf.mxu0 }
 0x436   : > { %v6375_v31 = vadd.f32 %v6374_v1, %v6373_v6  ;;  %v6449_v61 = vmax.f32 %v6443_v40, %v6447_v19  ;;  %v6122_v1 = vadd.f32 %v10350_v7, %v13238_v59  ;;  %v6448_v5 = vsel %vm319_vm0, %v13310_v28, -inf }
 0x437   : > { %v6382_v6 = vsel %vm319_vm0, %v13324_v56, 0.0  ;;  %v13348_v15 = vadd.f32 %v13229_v45, %v6117_v51  ;;  %v6125_v9 = vadd.f32 %v10353_v4, %v13238_v59  ;;  %v10359_v53 = vadd.f32 %v13165_v20, %v13163_v8  ;;  %v6309_v20 = vpop.f32.mrf.mxu0 }
 0x438   : > { %v6377_v17 = vadd.f32 %v6376_v58, %v6375_v31  ;;  %v6451_v29 = vmax.f32 %v6444_v37, %v6449_v61  ;;  %v6450_v58 = vsel %vm319_vm0, %v13324_v56, -inf  ;;  %v6384_v19 = vsel %vm319_vm0, %v13334_v38, 0.0 }
 0x439   : > { %v13360_v31 = vadd.f32 %v13215_v44, %v6122_v1  ;;  %v6130_v45 = vadd.f32 %v10356_v46, %v13238_v59  ;;  %v10362_v37 = vadd.f32 %v13169_v48, %v13167_v52  ;;  %v6452_v51 = vsel %vm319_vm0, %v13334_v38, -inf  ;;  %v13377_v48 = vpop.f32.mrf.mxu0 }
 0x43a   : > { %v6379_v62 = vadd.f32 %v6378_v41, %v6377_v17  ;;  %v6453_v34 = vmax.f32 %v6446_v55, %v6451_v29  ;;  %v6386_v4 = vsel %vm319_vm0, %v13348_v15, 0.0  ;;  %v13370_v61 = vadd.f32 %v13223_v24, %v6125_v9 }
 0x43b   : > { %v6133_v44 = vadd.f32 %v10359_v53, %v13238_v59  ;;  %v10365_v17 = vadd.f32 %v13173_v13, %v13171_v18  ;;  %v6454_v52 = vsel %vm319_vm0, %v13348_v15, -inf  ;;  %v6388_v46 = vsel %vm319_vm0, %v13360_v31, 0.0 }
 0x43c   : > { %v6381_v40 = vadd.f32 %v6380_v16, %v6379_v62  ;;  %v6455_v41 = vmax.f32 %v6448_v5, %v6453_v34  ;;  %v13384_v24 = vadd.f32 %v13244_v60, %v6130_v45  ;;  %v6138_v29 = vadd.f32 %v10362_v37, %v13238_v59 }
 0x43d   : > { %v10368_v18 = vadd.f32 %v13191_v3, %v13175_v10  ;;  %v6456_v5 = vsel %vm319_vm0, %v13360_v31, -inf  ;;  %v13394_v9 = vadd.f32 %v13282_v39, %v6133_v44  ;;  %v6141_v53 = vadd.f32 %v10365_v17, %v13238_v59  ;;  %v6322_v3 = vpop.f32.mrf.mxu0 }
 0x43e   : > { %v6383_v8 = vadd.f32 %v6382_v6, %v6381_v40  ;;  %v6457_v55 = vmax.f32 %v6450_v58, %v6455_v41  ;;  %v6390_v6 = vsel %vm319_vm0, %v13370_v61, 0.0  ;;  %v10371_v60 = vadd.f32 %v13201_v11, %v13198_v30 }
 0x43f   : > { %v6458_v10 = vsel %vm319_vm0, %v13370_v61, -inf  ;;  %v13406_v45 = vadd.f32 %v13231_v27, %v6138_v29  ;;  %v6146_v39 = vadd.f32 %v10368_v18, %v13238_v59  ;;  %v10374_v37 = vadd.f32 %v13205_v22, %v13203_v25  ;;  %v10502_v17 = vpop.f32.mrf.mxu0 }
 0x440   : > { %v6385_v16 = vadd.f32 %v6384_v19, %v6383_v8  ;;  %v6459_v13 = vmax.f32 %v6452_v51, %v6457_v55  ;;  %v6392_v19 = vsel %vm319_vm0, %v13384_v24, 0.0  ;;  %v6460_v41 = vsel %vm319_vm0, %v13384_v24, -inf }
 0x441   : > { %v6394_v8 = vsel %vm319_vm0, %v13394_v9, 0.0  ;;  %v13416_v51 = vadd.f32 %v13260_v49, %v6141_v53  ;;  %v10377_v27 = vadd.f32 %v13211_v32, %v13207_v21  ;;  %v6462_v25 = vsel %vm319_vm0, %v13394_v9, -inf }
 0x442   : > { %v6387_v62 = vadd.f32 %v6386_v4, %v6385_v16  ;;  %v6461_v34 = vmax.f32 %v6454_v52, %v6459_v13  ;;  %v6149_v4 = vadd.f32 %v10371_v60, %v13238_v59  ;;  %v6396_v16 = vsel %vm319_vm0, %v13406_v45, 0.0 }
 0x443   : > { %v13426_v52 = vadd.f32 %v13317_v35, %v6146_v39  ;;  %v6154_v49 = vadd.f32 %v10374_v37, %v13238_v59  ;;  %v6464_v32 = vsel %vm319_vm0, %v13406_v45, -inf  ;;  %v6398_v13 = vsel %vm319_vm0, %v13416_v51, 0.0 }
 0x444   : > { %v13269_v2 = vpop.f32.mrf.mxu1  ;;  %v6389_v40 = vadd.f32 %v6388_v46, %v6387_v62  ;;  %v6463_v30 = vmax.f32 %v6456_v5, %v6461_v34  ;;  %v10380_v46 = vadd.f32 %v13217_v42, %v13213_v50  ;;  %v13437_v62 = vadd.f32 %v6309_v20, %v6149_v4 }
 0x445   : > { %v6157_v35 = vadd.f32 %v10377_v27, %v13238_v59  ;;  %v10383_v5 = vadd.f32 %v13225_v43, %v13221_v0  ;;  %v6466_v42 = vsel %vm319_vm0, %v13416_v51, -inf  ;;  %v6400_v60 = vsel %vm319_vm0, %v13426_v52, 0.0  ;;  %v15631_v43 = vld [vmem:[#allocation23_spill] sm:$0xff] }
 0x446   : > { %v13297_v14 = vpop.f32.mrf.mxu1  ;;  %v6391_v11 = vadd.f32 %v6390_v6, %v6389_v40  ;;  %v6465_v44 = vmax.f32 %v6458_v10, %v6463_v30  ;;  %v6325_v6 = vpop.f32.mrf.mxu0  ;;  %v13447_v34 = vadd.f32 %v13295_v47, %v6154_v49  ;;  %v6162_v20 = vadd.f32 %v10380_v46, %v13238_v59  ;;  %v15629_v40 = vld [vmem:[#allocation21_spill] sm:$0xff]  ;;  %v15630_v10 = vld [vmem:[#allocation22_spill] sm:$0xff] }
 0x447   : > { %v10389_v30 = vadd.f32 %v13262_v57, %v15631_v43  ;;  %v13459_v47 = vadd.f32 %v13341_v12, %v6157_v35  ;;  %v6165_v4 = vadd.f32 %v10383_v5, %v13238_v59  ;;  %v10392_v49 = vadd.f32 %v13297_v14, %v13269_v2 }
 0x448   : > { %v13319_v33 = vpop.f32.mrf.mxu1  ;;  %v6393_v55 = vadd.f32 %v6392_v19, %v6391_v11  ;;  %v6467_v29 = vmax.f32 %v6460_v41, %v6465_v44  ;;  %v10386_v19 = vadd.f32 %v15630_v10, %v15629_v40  ;;  %v10505_v0 = vpop.f32.mrf.mxu0  ;;  %v6468_v41 = vsel %vm319_vm0, %v13426_v52, -inf }
 0x449   : > { %v6404_v57 = vsel %vm319_vm0, %v13447_v34, 0.0  ;;  %v6406_v35 = vsel %vm319_vm0, %v13459_v47, 0.0  ;;  %v13476_v5 = vadd.f32 %v6325_v6, %v6165_v4  ;;  %v6178_v6 = vadd.f32 %v10392_v49, %v13238_v59 }
 0x44a   : > { %v13343_v54 = vpop.f32.mrf.mxu1  ;;  %v6395_v21 = vadd.f32 %v6394_v8, %v6393_v55  ;;  %v6469_v53 = vmax.f32 %v6462_v25, %v6467_v29  ;;  %v6402_v8 = vsel %vm319_vm0, %v13437_v62, 0.0  ;;  %v6470_v55 = vsel %vm319_vm0, %v13437_v62, -inf  ;;  %v6338_v46 = vpop.f32.mrf.mxu0 }
 0x44b   : > { %v13466_v25 = vadd.f32 %v6322_v3, %v6162_v20  ;;  %v10395_v3 = vadd.f32 %v13343_v54, %v13319_v33 }
 0x44c   : > { %v6397_v50 = vadd.f32 %v6396_v16, %v6395_v21  ;;  %v6471_v39 = vmax.f32 %v6464_v32, %v6469_v53  ;;  %v6170_v16 = vadd.f32 %v10386_v19, %v13238_v59  ;;  %v6472_v21 = vsel %vm319_vm0, %v13447_v34, -inf  ;;  %v10506_v20 = vpop.f32.mrf.mxu0 }
 0x44d   : > { %v6173_v32 = vadd.f32 %v10389_v30, %v13238_v59  ;;  %v6476_v33 = vsel %vm319_vm0, %v13466_v25, -inf  ;;  %v6181_v19 = vadd.f32 %v10395_v3, %v13238_v59 }
 0x44e   : > { %v6399_v37 = vadd.f32 %v6398_v13, %v6397_v50  ;;  %v6473_v27 = vmax.f32 %v6466_v42, %v6471_v39  ;;  %v6474_v50 = vsel %vm319_vm0, %v13459_v47, -inf  ;;  %v6408_v42 = vsel %vm319_vm0, %v13466_v25, 0.0  ;;  %v6341_v4 = vpop.f32.mrf.mxu0 }
 0x44f   : > { %v13492_v54 = vadd.f32 %v10502_v17, %v6173_v32 }
 0x450   : > { %v6401_v44 = vadd.f32 %v6400_v60, %v6399_v37  ;;  %v6475_v12 = vmax.f32 %v6468_v41, %v6473_v27  ;;  %v13487_v60 = vadd.f32 %v13377_v48, %v6170_v16  ;;  %v6478_v41 = vsel %vm319_vm0, %v13476_v5, -inf }
 0x451   : > { %v6482_v32 = vsel %vm319_vm0, %v13492_v54, -inf }
 0x452   : > { %v6403_v29 = vadd.f32 %v6402_v8, %v6401_v44  ;;  %v6481_v14 = vmax.f32 %v6470_v55, %v6475_v12  ;;  %v6412_v17 = vsel %vm319_vm0, %v13487_v60, 0.0  ;;  %v13503_v8 = vadd.f32 %v6338_v46, %v6178_v6 }
 0x453   : > { %v6480_v55 = vsel %vm319_vm0, %v13487_v60, -inf }
 0x454   : > { %v6405_v53 = vadd.f32 %v6404_v57, %v6403_v29  ;;  %v6489_v40 = vmax.f32 %v6481_v14, %v6472_v21  ;;  %v13509_v57 = vadd.f32 %v6341_v4, %v6181_v19 }
 0x456   : > { %v6407_v10 = vadd.f32 %v6406_v35, %v6405_v53  ;;  %v6497_v37 = vmax.f32 %v6489_v40, %v6474_v50  ;;  %v6416_v35 = vsel %vm319_vm0, %v13503_v8, 0.0 }
 0x458   : > { %v6409_v43 = vadd.f32 %v6408_v42, %v6407_v10  ;;  %v6477_v27 = vmax.f32 %v6497_v37, %v6476_v33 }
 0x45a   : > { %v6485_v29 = vmax.f32 %v6477_v27, %v6478_v41 }
 0x45c   : > { %v13355_v7 = vpop.f32.mrf.mxu1 }
 0x45e   : > { %v13379_v1 = vpop.f32.mrf.mxu1 }
 0x45f   : > { %v10398_v2 = vadd.f32 %v13379_v1, %v13355_v7  ;;  %v6410_v1 = vsel %vm319_vm0, %v13476_v5, 0.0 }
 0x460   : > { %v13401_v58 = vpop.f32.mrf.mxu1  ;;  %v6411_v44 = vadd.f32 %v6410_v1, %v6409_v43 }
 0x461   : > { %v6186_v39 = vadd.f32 %v10398_v2, %v13238_v59  ;;  %v6493_v2 = vmax.f32 %v6485_v29, %v6480_v55 }
 0x462   : > { %v10400_v22 = vpop.f32.mrf.mxu1  ;;  %v6413_v46 = vadd.f32 %v6412_v17, %v6411_v44 }
 0x463   : > { %v10401_v48 = vadd.f32 %v10400_v22, %v13401_v58  ;;  %v6414_v58 = vsel %vm319_vm0, %v13492_v54, 0.0  ;;  %v13511_v16 = vadd.f32 %v10505_v0, %v6186_v39  ;;  %v6418_v0 = vsel %vm319_vm0, %v13509_v57, 0.0 }
 0x464   : > { %v6415_v14 = vadd.f32 %v6414_v58, %v6413_v46  ;;  %v6483_v40 = vmax.f32 %v6493_v2, %v6482_v32 }
 0x465   : > { %v6189_v49 = vadd.f32 %v10401_v48, %v13238_v59  ;;  %v6488_v6 = vsel %vm319_vm0, %v13511_v16, -inf  ;;  %v6420_v33 = vsel %vm319_vm0, %v13511_v16, 0.0 }
 0x466   : > { %v6417_v10 = vadd.f32 %v6416_v35, %v6415_v14 }
 0x467   : > { %v13521_v50 = vadd.f32 %v10506_v20, %v6189_v49  ;;  %v6491_v20 = vmax.f32 %v6483_v40, %v6488_v6  ;;  %v6486_v40 = vsel %vm319_vm0, %v13509_v57, -inf }
 0x468   : > { %v6419_v48 = vadd.f32 %v6418_v0, %v6417_v10 }
 0x469   : > { %v6422_v41 = vsel %vm319_vm0, %v13521_v50, 0.0  ;;  %v6490_v35 = vsel %vm319_vm0, %v13521_v50, -inf }
 0x46a   : > { %v6421_v4 = vadd.f32 %v6420_v33, %v6419_v48 }
 0x46c   : > { %v6423_v58 = vadd.f32 %v6422_v41, %v6421_v4 }
 0x474   : > { %v13433_v18 = vpop.f32.mrf.mxu1 }
 0x476   : > { %v10403_v11 = vpop.f32.mrf.mxu1 }
 0x477   : > { %v10404_v3 = vadd.f32 %v10403_v11, %v13433_v18 }
 0x478   : > { %v10405_v13 = vpop.f32.mrf.mxu1 }
 0x479   : > { %v6194_v39 = vadd.f32 %v10404_v3, %v13238_v59 }
 0x47a   : > { %v10406_v7 = vpop.f32.mrf.mxu1 }
 0x47b   : > { %v10407_v18 = vadd.f32 %v10406_v7, %v10405_v13  ;;  %v6484_v7 = vsel %vm319_vm0, %v13503_v8, -inf }
 0x47d   : > { %v6197_v55 = vadd.f32 %v10407_v18, %v13238_v59 }
 0x48b   : > { %v10408_v30 = vpop.f32.mrf.mxu1 }
 0x48d   : > { %v10409_v22 = vpop.f32.mrf.mxu1 }
 0x48e   : > { %v10410_v12 = vadd.f32 %v10409_v22, %v10408_v30 }
 0x48f   : > { %v10411_v21 = vpop.f32.mrf.mxu1 }
 0x490   : > { %v6202_v42 = vadd.f32 %v10410_v12, %v13238_v59 }
 0x491   : > { %v10412_v53 = vpop.f32.mrf.mxu1 }
 0x492   : > { %v10413_v11 = vadd.f32 %v10412_v53, %v10411_v21 }
 0x493   : > { %v10509_v1 = vpop.f32.mrf.mxu1 }
 0x494   : > { %v13528_v19 = vadd.f32 %v10509_v1, %v6202_v42  ;;  %v6205_v44 = vadd.f32 %v10413_v11, %v13238_v59 }
 0x495   : > { %v6354_v37 = vpop.f32.mrf.mxu1 }
 0x496   : > { %v6496_v43 = vsel %vm319_vm0, %v13528_v19, -inf  ;;  %v13533_v30 = vadd.f32 %v6354_v37, %v6194_v39  ;;  %v6428_v14 = vsel %vm319_vm0, %v13528_v19, 0.0 }
 0x497   : > { %v6499_v17 = vmax.f32 %v6491_v20, %v6496_v43  ;;  %v10510_v27 = vpop.f32.mrf.mxu1 }
 0x498   : > { %v6424_v13 = vsel %vm319_vm0, %v13533_v30, 0.0  ;;  %v6492_v12 = vsel %vm319_vm0, %v13533_v30, -inf  ;;  %v13545_v29 = vadd.f32 %v10510_v27, %v6205_v44 }
 0x499   : > { %v6501_v22 = vmax.f32 %v6484_v7, %v6499_v17  ;;  %v6357_v49 = vpop.f32.mrf.mxu1  ;;  %v6425_v21 = vadd.f32 %v6424_v13, %v6423_v58 }
 0x49a   : > { %v13547_v46 = vadd.f32 %v6357_v49, %v6197_v55  ;;  %v6498_v53 = vsel %vm319_vm0, %v13545_v29, -inf  ;;  %v6430_v6 = vsel %vm319_vm0, %v13545_v29, 0.0  ;;  %v6589_v55 = vld [vmem:[%s15632_s6] sm:$0x3]  ;;  %s14336_s6 = sld [smem:[#allocation5 + $0x1c]] }
 0x49b   : > { %v6479_v32 = vmax.f32 %v6492_v12, %v6501_v22  ;;  %v15633_v22 = vld [vmem:[#allocation20_spill] sm:$0xff] }
 0x49c   : > { %v6426_v3 = vsel %vm319_vm0, %v13547_v46, 0.0  ;;  %v6494_v1 = vsel %vm319_vm0, %v13547_v46, -inf }
 0x49d   : > { %v6487_v2 = vmax.f32 %v6479_v32, %v6490_v35  ;;  %v6427_v59 = vadd.f32 %v6426_v3, %v6425_v21 }
 0x49f   : > { %v6495_v0 = vmax.f32 %v6487_v2, %v6498_v53  ;;  %v6429_v42 = vadd.f32 %v6428_v14, %v6427_v59 }
 0x4a1   : > { %v6431_v10 = vadd.f32 %v6430_v6, %v6429_v42  ;;  %v6500_v33 = vmax.f32 %v6486_v40, %v6495_v0  ;;  %v6678_v0 = vlaneseq }
 0x4a3   : > { %v6432_v18 = vrot.slane %v6431_v10, 4  ;;  %v6502_v11 = vmax.f32 %v6500_v33, %v6494_v1  ;;  %v13570_v42 = vshrl.u32 %v6678_v0, 7  ;;  %v15637_v1 = vld [vmem:[#allocation24_spill] sm:$0xff] }
 0x4a5   : > { %v6433_v39 = vadd.f32 %v6432_v18, %v6431_v10  ;;  %v6503_v48 = vrot.slane %v6502_v11, 4  ;;  %15634 = vst [vmem:[#allocation21_spill] sm:$0xff] %v13570_v42  ;;  %v13573_v6 = vsub.s32 0, %v13570_v42 }
 0x4a7   : > { %v6434_v20 = vrot.slane %v6433_v39, 2  ;;  %v6504_v37 = vmax.f32 %v6502_v11, %v6503_v48  ;;  %15635 = vst [vmem:[#allocation22_spill] sm:$0xff] %v13573_v6 }
 0x4a9   : > { %v6505_v43 = vrot.slane %v6504_v37, 2  ;;  %v6435_v41 = vadd.f32 %v6434_v20, %v6433_v39  ;;  %v15640_v20 = vld [vmem:[#allocation25_spill] sm:$0xff] }
 0x4ab   : > { %v6436_v17 = vrot.slane %v6435_v41, 1  ;;  %v6506_v4 = vmax.f32 %v6504_v37, %v6505_v43 }
 0x4ad   : > { %v6437_v27 = vadd.f32 %v6436_v17, %v6435_v41  ;;  %v6507_v13 = vrot.slane %v6506_v4, 1 }
 0x4af   : > { %v6439_v7 = vmul.f32 0.00390625, %v6437_v27  ;;  %v6508_v44 = vmax.f32 %v6506_v4, %v6507_v13 }
 0x4b1   : > { %v6510_v58 = vsel %vm6509_vm8, %v6439_v7, %v6508_v44 }
 0x4b2   : > { %10520 = vmatmul.mubr.msk.f32.vlgmr.msra.gmra.mxu1 %vm319_vm0, %v6510_v58 }
 0x4b3   : > { %10523 = vmatpush3.msk.msra.mxu1 %vm6594_vm9, %v6589_v55  ;;  %10524 = vmatprep.mubr.msk.f32.mxu1 %vm10839_vm7, %v15633_v22 }
 0x572   : > { %v6584_v49 = vpop.f32.mrf.mxu1 }
 0x573   : > { %v6588_v12 = vmax.f32 %v6584_v49, 0.0 }
 0x574   : > { %v10521_v21 = vpop.f32.mrf.mxu1 }
 0x575   : > { %10525 = vmatmul.mubr.msk.f32.vlgmr.msra.gmra.mxu1 %vm6590_vm10, %v6588_v12 }
 0x635   : > { %v6664_v32 = vpop.f32.mrf.mxu1 }
 0x636   : > { %v6669_v35 = vrot.slane %v6664_v32, 1 }
 0x637   : > { %v10526_v3 = vpop.f32.mrf.mxu1 }
 0x638   : > { %v6671_v2 = vadd.f32 %v6669_v35, %v6664_v32 }
 0x63a   : > { %v9489_v59 = vmul.f32 -1.442695, %v6671_v2 }
 0x63c   : > { %10728 = vpow2.f32 %v9489_v59 }
 0x649   : > { %v10729_v14 = vpop.eup %10728 }
 0x64a   : > { %v6675_v53 = vadd.f32 1.0, %v10729_v14 }
 0x64c   : > { %10730 = vrcp.f32 %v6675_v53 }
 0x659   : > { %v10731_v40 = vpop.eup %10730 }
 0x65a   : > { %v13576_v10 = vrot.slane %v10731_v40, %v13573_v6  ;;  %v15559_v6 = vstv %s14247_s21 }
 0x65c   : > { %v13580_v33 = vmul.f32 %v13576_v10, %v13252_v23  ;;  %v13584_v18 = vmul.f32 %v13576_v10, %v15637_v1  ;;  %v13592_v48 = vmul.f32 %v13576_v10, %v13286_v36  ;;  %v13596_v37 = vmul.f32 %v13576_v10, %v15640_v20 }
 0x65d   : > { %v13604_v41 = vmul.f32 %v13576_v10, %v13310_v28  ;;  %v13608_v36 = vmul.f32 %v13576_v10, %v13273_v26  ;;  %v13616_v27 = vmul.f32 %v13576_v10, %v13334_v38  ;;  %v13620_v28 = vmul.f32 %v13576_v10, %v13301_v63 }
 0x65e   : > { %15636 = vst [vmem:[#allocation23_spill] sm:$0xff] %v13580_v33  ;;  %15638 = vst [vmem:[#allocation20_spill] sm:$0xff] %v13584_v18  ;;  %v6723_v11 = vsel %vm319_vm0, %v13580_v33, 0.0  ;;  %v6720_v39 = vsel %vm319_vm0, %v13584_v18, 0.0  ;;  %v6732_v23 = vsel %vm319_vm0, %v13592_v48, 0.0  ;;  %v6726_v43 = vsel %vm319_vm0, %v13596_v37, 0.0 }
 0x65f   : > { %15639 = vst [vmem:[#allocation24_spill] sm:$0xff] %v13592_v48  ;;  %15641 = vst [vmem:[#allocation25_spill] sm:$0xff] %v13596_v37  ;;  %6724 = vadd.xlane.f32.xlu1 %v6723_v11  ;;  %6721 = vadd.xlane.f32.xlu0 %v6720_v39  ;;  %v6738_v17 = vsel %vm319_vm0, %v13604_v41, 0.0  ;;  %v6729_v4 = vsel %vm319_vm0, %v13608_v36, 0.0  ;;  %v6744_v26 = vsel %vm319_vm0, %v13616_v27, 0.0  ;;  %v6735_v13 = vsel %vm319_vm0, %v13620_v28, 0.0 }
 0x660   : > { %15642 = vst [vmem:[#allocation26_spill] sm:$0xff] %v13604_v41  ;;  %15643 = vst [vmem:[#allocation27_spill] sm:$0xff] %v13608_v36  ;;  %v13628_v7 = vmul.f32 %v13576_v10, %v13360_v31  ;;  %v13632_v38 = vmul.f32 %v13576_v10, %v13324_v56  ;;  %v13640_v55 = vmul.f32 %v13576_v10, %v13384_v24 }
 0x661   : > { %15644 = vst [vmem:[#allocation28_spill] sm:$0xff] %v13616_v27  ;;  %15645 = vst [vmem:[#allocation29_spill] sm:$0xff] %v13620_v28  ;;  %v13644_v31 = vmul.f32 %v13576_v10, %v13348_v15  ;;  %v13652_v22 = vmul.f32 %v13576_v10, %v13406_v45  ;;  %v13656_v24 = vmul.f32 %v13576_v10, %v13370_v61 }
 0x662   : > { %15646 = vst [vmem:[#allocation30_spill] sm:$0xff] %v13628_v7  ;;  %15647 = vst [vmem:[#allocation31_spill] sm:$0xff] %v13632_v38  ;;  %v6750_v63 = vsel %vm319_vm0, %v13628_v7, 0.0  ;;  %v6741_v44 = vsel %vm319_vm0, %v13632_v38, 0.0  ;;  %v6756_v56 = vsel %vm319_vm0, %v13640_v55, 0.0  ;;  %v13664_v12 = vmul.f32 %v13576_v10, %v13426_v52 }
 0x663   : > { %6733 = vadd.xlane.f32.xlu1 %v6732_v23  ;;  %6727 = vadd.xlane.f32.xlu0 %v6726_v43  ;;  %15648 = vst [vmem:[#allocation32_spill] sm:$0xff] %v13640_v55  ;;  %15649 = vst [vmem:[#allocation33_spill] sm:$0xff] %v13644_v31  ;;  %v6747_v58 = vsel %vm319_vm0, %v13644_v31, 0.0  ;;  %v6762_v15 = vsel %vm319_vm0, %v13652_v22, 0.0  ;;  %v6753_v49 = vsel %vm319_vm0, %v13656_v24, 0.0  ;;  %v13668_v45 = vmul.f32 %v13576_v10, %v13394_v9 }
 0x664   : > { %15650 = vst [vmem:[#allocation34_spill] sm:$0xff] %v13652_v22  ;;  %15651 = vst [vmem:[#allocation35_spill] sm:$0xff] %v13656_v24  ;;  %v6768_v61 = vsel %vm319_vm0, %v13664_v12, 0.0  ;;  %v13676_v32 = vmul.f32 %v13576_v10, %v13447_v34  ;;  %v13680_v52 = vmul.f32 %v13576_v10, %v13416_v51  ;;  %v13688_v3 = vmul.f32 %v13576_v10, %v13466_v25 }
 0x665   : > { %15652 = vst [vmem:[#allocation36_spill] sm:$0xff] %v13664_v12  ;;  %15653 = vst [vmem:[#allocation37_spill] sm:$0xff] %v13668_v45  ;;  %v6759_v21 = vsel %vm319_vm0, %v13668_v45, 0.0  ;;  %v13692_v34 = vmul.f32 %v13576_v10, %v13437_v62  ;;  %v13700_v59 = vmul.f32 %v13576_v10, %v13487_v60  ;;  %v13704_v25 = vmul.f32 %v13576_v10, %v13459_v47 }
 0x666   : > { %15654 = vst [vmem:[#allocation38_spill] sm:$0xff] %v13676_v32  ;;  %15655 = vst [vmem:[#allocation39_spill] sm:$0xff] %v13680_v52  ;;  %v6774_v9 = vsel %vm319_vm0, %v13676_v32, 0.0  ;;  %v6765_v35 = vsel %vm319_vm0, %v13680_v52, 0.0  ;;  %v6780_v51 = vsel %vm319_vm0, %v13688_v3, 0.0  ;;  %v13712_v53 = vmul.f32 %v13576_v10, %v13503_v8 }
 0x667   : > { %6739 = vadd.xlane.f32.xlu1 %v6738_v17  ;;  %6730 = vadd.xlane.f32.xlu0 %v6729_v4  ;;  %15656 = vst [vmem:[#allocation40_spill] sm:$0xff] %v13688_v3  ;;  %15657 = vst [vmem:[#allocation41_spill] sm:$0xff] %v13692_v34  ;;  %v6771_v2 = vsel %vm319_vm0, %v13692_v34, 0.0  ;;  %v6786_v62 = vsel %vm319_vm0, %v13700_v59, 0.0  ;;  %v6777_v14 = vsel %vm319_vm0, %v13704_v25, 0.0  ;;  %v13716_v60 = vmul.f32 %v13576_v10, %v13476_v5 }
 0x668   : > { %15658 = vst [vmem:[#allocation42_spill] sm:$0xff] %v13700_v59  ;;  %15659 = vst [vmem:[#allocation43_spill] sm:$0xff] %v13704_v25  ;;  %v6792_v47 = vsel %vm319_vm0, %v13712_v53, 0.0  ;;  %v13724_v1 = vmul.f32 %v13576_v10, %v13511_v16  ;;  %v13728_v8 = vmul.f32 %v13576_v10, %v13492_v54  ;;  %v13732_v5 = vmul.f32 %v13576_v10, %v13533_v30 }
 0x669   : > { %15660 = vst [vmem:[#allocation44_spill] sm:$0xff] %v13712_v53  ;;  %15661 = vst [vmem:[#allocation45_spill] sm:$0xff] %v13716_v60  ;;  %v6783_v40 = vsel %vm319_vm0, %v13716_v60, 0.0  ;;  %v13740_v16 = vmul.f32 %v13576_v10, %v13509_v57  ;;  %v13744_v54 = vmul.f32 %v13576_v10, %v13528_v19  ;;  %v13752_v23 = vmul.f32 %v13576_v10, %v13521_v50 }
 0x66a   : > { %15662 = vst [vmem:[#allocation46_spill] sm:$0xff] %v13724_v1  ;;  %15663 = vst [vmem:[#allocation47_spill] sm:$0xff] %v13728_v8  ;;  %v6798_v11 = vsel %vm319_vm0, %v13724_v1, 0.0  ;;  %v6789_v39 = vsel %vm319_vm0, %v13728_v8, 0.0  ;;  %v6804_v30 = vsel %vm319_vm0, %v13732_v5, 0.0  ;;  %v13756_v57 = vmul.f32 %v13576_v10, %v13547_v46 }
 0x66b   : > { %6745 = vadd.xlane.f32.xlu1 %v6744_v26  ;;  %6736 = vadd.xlane.f32.xlu0 %v6735_v13  ;;  %15664 = vst [vmem:[#allocation48_spill] sm:$0xff] %v13732_v5  ;;  %15665 = vst [vmem:[#allocation49_spill] sm:$0xff] %v13740_v16  ;;  %v6795_v20 = vsel %vm319_vm0, %v13740_v16, 0.0  ;;  %v6810_v19 = vsel %vm319_vm0, %v13744_v54, 0.0  ;;  %v6801_v43 = vsel %vm319_vm0, %v13752_v23, 0.0  ;;  %v13764_v17 = vmul.f32 %v13576_v10, %v13545_v29 }
 0x66c   : > { %15666 = vst [vmem:[#allocation50_spill] sm:$0xff] %v13744_v54  ;;  %15667 = vst [vmem:[#allocation51_spill] sm:$0xff] %v13752_v23  ;;  %v7056_v50 = vsel %vm319_vm0, %v13584_v18, -inf  ;;  %v6807_v4 = vsel %vm319_vm0, %v13756_v57, 0.0  ;;  %v7062_v46 = vsel %vm319_vm0, %v13596_v37, -inf  ;;  %v7068_v29 = vsel %vm319_vm0, %v13592_v48, -inf }
 0x66d   : > { %15668 = vst [vmem:[#allocation52_spill] sm:$0xff] %v13756_v57  ;;  %15669 = vst [vmem:[#allocation53_spill] sm:$0xff] %v13764_v17  ;;  %v6813_v26 = vsel %vm319_vm0, %v13764_v17, 0.0  ;;  %v7059_v10 = vsel %vm319_vm0, %v13580_v33, -inf  ;;  %v7074_v13 = vsel %vm319_vm0, %v13604_v41, -inf  ;;  %v15553_v48 = vstv %s14245_s20 }
 0x66e   : > { %v15685_v33 = vstv %s14231_s17 }
 0x66f   : > { %6751 = vadd.xlane.f32.xlu1 %v6750_v63  ;;  %6742 = vadd.xlane.f32.xlu0 %v6741_v44  ;;  %v7065_v63 = vsel %vm319_vm0, %v13608_v36, -inf  ;;  %v7080_v44 = vsel %vm319_vm0, %v13616_v27, -inf }
 0x673   : > { %6757 = vadd.xlane.f32.xlu1 %v6756_v56  ;;  %6748 = vadd.xlane.f32.xlu0 %v6747_v58  ;;  %v7071_v56 = vsel %vm319_vm0, %v13620_v28, -inf  ;;  %v7086_v58 = vsel %vm319_vm0, %v13628_v7, -inf  ;;  %v15548_v28 = vstv %s14233_s19 }
 0x677   : > { %6763 = vadd.xlane.f32.xlu1 %v6762_v15  ;;  %6754 = vadd.xlane.f32.xlu0 %v6753_v49  ;;  %v7077_v15 = vsel %vm319_vm0, %v13632_v38, -inf  ;;  %v7092_v49 = vsel %vm319_vm0, %v13640_v55, -inf }
 0x67b   : > { %6769 = vadd.xlane.f32.xlu1 %v6768_v61  ;;  %6760 = vadd.xlane.f32.xlu0 %v6759_v21  ;;  %v7083_v61 = vsel %vm319_vm0, %v13644_v31, -inf  ;;  %v7098_v21 = vsel %vm319_vm0, %v13652_v22, -inf }
 0x67f   : > { %6775 = vadd.xlane.f32.xlu1 %v6774_v9  ;;  %6766 = vadd.xlane.f32.xlu0 %v6765_v35  ;;  %v7089_v9 = vsel %vm319_vm0, %v13656_v24, -inf  ;;  %v7104_v35 = vsel %vm319_vm0, %v13664_v12, -inf }
 0x683   : > { %6781 = vadd.xlane.f32.xlu1 %v6780_v51  ;;  %6772 = vadd.xlane.f32.xlu0 %v6771_v2  ;;  %v7095_v51 = vsel %vm319_vm0, %v13668_v45, -inf  ;;  %v7110_v2 = vsel %vm319_vm0, %v13676_v32, -inf }
 0x687   : > { %6787 = vadd.xlane.f32.xlu1 %v6786_v62  ;;  %6778 = vadd.xlane.f32.xlu0 %v6777_v14  ;;  %v7101_v62 = vsel %vm319_vm0, %v13680_v52, -inf  ;;  %v7116_v14 = vsel %vm319_vm0, %v13688_v3, -inf }
 0x68b   : > { %6793 = vadd.xlane.f32.xlu1 %v6792_v47  ;;  %6784 = vadd.xlane.f32.xlu0 %v6783_v40  ;;  %v7107_v47 = vsel %vm319_vm0, %v13692_v34, -inf  ;;  %v7122_v40 = vsel %vm319_vm0, %v13700_v59, -inf }
 0x68f   : > { %6799 = vadd.xlane.f32.xlu1 %v6798_v11  ;;  %6790 = vadd.xlane.f32.xlu0 %v6789_v39  ;;  %v7113_v11 = vsel %vm319_vm0, %v13704_v25, -inf  ;;  %v7128_v39 = vsel %vm319_vm0, %v13712_v53, -inf }
 0x693   : > { %6805 = vadd.xlane.f32.xlu1 %v6804_v30  ;;  %6796 = vadd.xlane.f32.xlu0 %v6795_v20  ;;  %v7119_v30 = vsel %vm319_vm0, %v13716_v60, -inf  ;;  %v7134_v20 = vsel %vm319_vm0, %v13724_v1, -inf }
 0x697   : > { %6811 = vadd.xlane.f32.xlu1 %v6810_v19  ;;  %6802 = vadd.xlane.f32.xlu0 %v6801_v43  ;;  %v7125_v19 = vsel %vm319_vm0, %v13728_v8, -inf  ;;  %v7140_v43 = vsel %vm319_vm0, %v13732_v5, -inf }
 0x69b   : > { %7057 = vmax.xlane.f32.xlu1 %v7056_v50  ;;  %6808 = vadd.xlane.f32.xlu0 %v6807_v4  ;;  %v7131_v50 = vsel %vm319_vm0, %v13740_v16, -inf  ;;  %v7146_v4 = vsel %vm319_vm0, %v13744_v54, -inf }
 0x69f   : > { %7063 = vmax.xlane.f32.xlu1 %v7062_v46  ;;  %6814 = vadd.xlane.f32.xlu0 %v6813_v26  ;;  %v7137_v46 = vsel %vm319_vm0, %v13752_v23, -inf  ;;  %v7143_v26 = vsel %vm319_vm0, %v13756_v57, -inf }
 0x6a3   : > { %7069 = vmax.xlane.f32.xlu1 %v7068_v29  ;;  %7060 = vmax.xlane.f32.xlu0 %v7059_v10  ;;  %v7149_v29 = vsel %vm319_vm0, %v13764_v17, -inf }
 0x6a7   : > { %7075 = vmax.xlane.f32.xlu1 %v7074_v13  ;;  %7066 = vmax.xlane.f32.xlu0 %v7065_v63 }
 0x6ab   : > { %7081 = vmax.xlane.f32.xlu1 %v7080_v44  ;;  %7072 = vmax.xlane.f32.xlu0 %v7071_v56 }
 0x6af   : > { %7087 = vmax.xlane.f32.xlu1 %v7086_v58  ;;  %7078 = vmax.xlane.f32.xlu0 %v7077_v15 }
 0x6b3   : > { %7093 = vmax.xlane.f32.xlu1 %v7092_v49  ;;  %7084 = vmax.xlane.f32.xlu0 %v7083_v61  ;;  %v6882_v61 = vand.u32 127, %v6678_v0 }
 0x6b7   : > { %7099 = vmax.xlane.f32.xlu1 %v7098_v21  ;;  %7090 = vmax.xlane.f32.xlu0 %v7089_v9 }
 0x6bb   : > { %7105 = vmax.xlane.f32.xlu1 %v7104_v35  ;;  %7096 = vmax.xlane.f32.xlu0 %v7095_v51  ;;  %v6888_v35 = vadd.s32 4294967285, %v6882_v61  ;;  %v6883_v51 = vadd.s32 4294967293, %v6882_v61 }
 0x6bf   : > { %7111 = vmax.xlane.f32.xlu1 %v7110_v2  ;;  %7102 = vmax.xlane.f32.xlu0 %v7101_v62 }
 0x6c3   : > { %7117 = vmax.xlane.f32.xlu1 %v7116_v14  ;;  %7108 = vmax.xlane.f32.xlu0 %v7107_v47  ;;  %v13836_v14 = vsub.s32 %v6888_v35, %v13570_v42 }
 0x6c7   : > { %7123 = vmax.xlane.f32.xlu1 %v7122_v40  ;;  %7114 = vmax.xlane.f32.xlu0 %v7113_v11  ;;  %v13839_v11 = vsub.s32 %v6883_v51, %v13570_v42 }
 0x6cb   : > { %7129 = vmax.xlane.f32.xlu1 %v7128_v39  ;;  %7120 = vmax.xlane.f32.xlu0 %v7119_v30 }
 0x6cf   : > { %7135 = vmax.xlane.f32.xlu1 %v7134_v20  ;;  %7126 = vmax.xlane.f32.xlu0 %v7125_v19 }
 0x6d3   : > { %7141 = vmax.xlane.f32.xlu1 %v7140_v43  ;;  %7132 = vmax.xlane.f32.xlu0 %v7131_v50 }
 0x6d7   : > { %7147 = vmax.xlane.f32.xlu1 %v7146_v4  ;;  %7138 = vmax.xlane.f32.xlu0 %v7137_v46 }
 0x6db   : > { %7144 = vmax.xlane.f32.xlu0 %v7143_v26 }
 0x6df   : > { %7150 = vmax.xlane.f32.xlu0 %v7149_v29 }
 0x6e8   : > { %v6725_v10 = vpop.xlane.xlu1 %6724  ;;  %v6722_v13 = vpop.xlane.xlu0 %6721 }
 0x6e9   : > { %v6818_v40 = vmul.f32 0.03125, %v6725_v10  ;;  %v6817_v39 = vmul.f32 0.03125, %v6722_v13 }
 0x6eb   : > { %v6892_v61 = vrot.slane %v6818_v40, %v13836_v14  ;;  %v6887_v10 = vrot.slane %v6817_v39, %v13839_v11 }
 0x6ec   : > { %v6734_v63 = vpop.xlane.xlu1 %6733  ;;  %v6728_v44 = vpop.xlane.xlu0 %6727 }
 0x6ed   : > { %v6819_v20 = vmul.f32 0.03125, %v6728_v44  ;;  %v6821_v43 = vmul.f32 0.03125, %v6734_v63 }
 0x6ef   : > { %v6898_v13 = vrot.slane %v6819_v20, %v13839_v11 }
 0x6f0   : > { %v6740_v56 = vpop.xlane.xlu1 %6739  ;;  %v6731_v58 = vpop.xlane.xlu0 %6730 }
 0x6f1   : > { %v6820_v47 = vmul.f32 0.03125, %v6731_v58  ;;  %v6823_v46 = vmul.f32 0.03125, %v6740_v56 }
 0x6f3   : > { %v6902_v26 = vrot.slane %v6820_v47, %v13836_v14  ;;  %v6916_v47 = vrot.slane %v6823_v46, %v13839_v11 }
 0x6f4   : > { %v6746_v15 = vpop.xlane.xlu1 %6745  ;;  %v6737_v49 = vpop.xlane.xlu0 %6736 }
 0x6f5   : > { %v6822_v30 = vmul.f32 0.03125, %v6737_v49  ;;  %v6825_v58 = vmul.f32 0.03125, %v6746_v15  ;;  %v6907_v49 = vrot.slane %v6821_v43, %v13839_v11  ;;  %v6903_v15 = vsel %vm6893_vm11, %v6902_v26, %v6898_v13 }
 0x6f7   : > { %v6911_v35 = vrot.slane %v6822_v30, %v13836_v14  ;;  %v6894_v30 = vsel %vm6893_vm11, %v6892_v61, %v6887_v10 }
 0x6f8   : > { %v6752_v21 = vpop.xlane.xlu1 %6751  ;;  %v6743_v9 = vpop.xlane.xlu0 %6742 }
 0x6f9   : > { %v6824_v19 = vmul.f32 0.03125, %v6743_v9  ;;  %v6827_v44 = vmul.f32 0.03125, %v6752_v21  ;;  %v6925_v21 = vrot.slane %v6825_v58, %v13839_v11  ;;  %v6912_v20 = vsel %vm6893_vm11, %v6911_v35, %v6907_v49 }
 0x6fb   : > { %v6920_v63 = vrot.slane %v6824_v19, %v13836_v14 }
 0x6fc   : > { %v6758_v2 = vpop.xlane.xlu1 %6757  ;;  %v6749_v62 = vpop.xlane.xlu0 %6748 }
 0x6fd   : > { %v6826_v0 = vmul.f32 0.03125, %v6749_v62  ;;  %v6829_v56 = vmul.f32 0.03125, %v6758_v2  ;;  %v6934_v2 = vrot.slane %v6827_v44, %v13839_v11  ;;  %v6921_v19 = vsel %vm6893_vm11, %v6920_v63, %v6916_v47 }
 0x6ff   : > { %v6929_v9 = vrot.slane %v6826_v0, %v13836_v14  ;;  %v6943_v46 = vrot.slane %v6829_v56, %v13839_v11 }
 0x700   : > { %v6764_v50 = vpop.xlane.xlu1 %6763  ;;  %v6755_v4 = vpop.xlane.xlu0 %6754 }
 0x701   : > { %v6828_v29 = vmul.f32 0.03125, %v6755_v4  ;;  %v6831_v43 = vmul.f32 0.03125, %v6764_v50  ;;  %v7031_v4 = vsel %vm7030_vm12, %v6903_v15, %v6894_v30  ;;  %v6930_v26 = vsel %vm6893_vm11, %v6929_v9, %v6925_v21 }
 0x702   : > { %v7033_v10 = vsel %vm7032_vm13, %v6912_v20, %v7031_v4 }
 0x703   : > { %v6938_v40 = vrot.slane %v6828_v29, %v13836_v14  ;;  %v7035_v13 = vsel %vm7034_vm14, %v6921_v19, %v7033_v10  ;;  %v6952_v63 = vrot.slane %v6831_v43, %v13839_v11 }
 0x704   : > { %v6770_v51 = vpop.xlane.xlu1 %6769  ;;  %v6761_v62 = vpop.xlane.xlu0 %6760  ;;  %v7037_v44 = vsel %vm7036_vm15, %v6930_v26, %v7035_v13 }
 0x705   : > { %v6830_v39 = vmul.f32 0.03125, %v6761_v62  ;;  %v6939_v58 = vsel %vm6893_vm11, %v6938_v40, %v6934_v2 }
 0x706   : > { %v7039_v56 = vsel %vm7038_vm1, %v6939_v58, %v7037_v44  ;;  %v6833_v58 = vmul.f32 0.03125, %v6770_v51 }
 0x707   : > { %v6947_v0 = vrot.slane %v6830_v39, %v13836_v14 }
 0x708   : > { %v6776_v29 = vpop.xlane.xlu1 %6775  ;;  %v6767_v61 = vpop.xlane.xlu0 %6766  ;;  %v6961_v51 = vrot.slane %v6833_v58, %v13839_v11 }
 0x709   : > { %v6832_v35 = vmul.f32 0.03125, %v6767_v61  ;;  %v6948_v50 = vsel %vm6893_vm11, %v6947_v0, %v6943_v46  ;;  %v6835_v61 = vmul.f32 0.03125, %v6776_v29 }
 0x70a   : > { %v7041_v47 = vsel %vm7040_vm2, %v6948_v50, %v7039_v56 }
 0x70b   : > { %v6956_v49 = vrot.slane %v6832_v35, %v13836_v14 }
 0x70c   : > { %v6782_v9 = vpop.xlane.xlu1 %6781  ;;  %v6773_v62 = vpop.xlane.xlu0 %6772 }
 0x70d   : > { %v6957_v15 = vsel %vm6893_vm11, %v6956_v49, %v6952_v63  ;;  %v6834_v46 = vmul.f32 0.03125, %v6773_v62  ;;  %v6837_v35 = vmul.f32 0.03125, %v6782_v9 }
 0x70e   : > { %v7043_v40 = vsel %vm7042_vm3, %v6957_v15, %v7041_v47 }
 0x70f   : > { %7054 = vst.msk [vmem:[#allocation4 + $0x3] sm:$0xff] %vm7053_vm4, %v7043_v40  ;;  %v6965_v47 = vrot.slane %v6834_v46, %v13836_v14  ;;  %v6979_v9 = vrot.slane %v6837_v35, %v13839_v11 }
 0x710   : > { %v6788_v39 = vpop.xlane.xlu1 %6787  ;;  %v6779_v30 = vpop.xlane.xlu0 %6778 }
 0x711   : > { %v6836_v4 = vmul.f32 0.03125, %v6779_v30  ;;  %v6839_v63 = vmul.f32 0.03125, %v6788_v39  ;;  %v6970_v30 = vrot.slane %v6835_v61, %v13839_v11 }
 0x713   : > { %v6974_v49 = vrot.slane %v6836_v4, %v13836_v14  ;;  %v6988_v4 = vrot.slane %v6839_v63, %v13839_v11 }
 0x714   : > { %v6794_v21 = vpop.xlane.xlu1 %6793  ;;  %v6785_v20 = vpop.xlane.xlu0 %6784 }
 0x715   : > { %v6838_v26 = vmul.f32 0.03125, %v6785_v20  ;;  %v6841_v15 = vmul.f32 0.03125, %v6794_v21  ;;  %v6975_v21 = vsel %vm6893_vm11, %v6974_v49, %v6970_v30 }
 0x717   : > { %v6983_v40 = vrot.slane %v6838_v26, %v13836_v14  ;;  %v6997_v61 = vrot.slane %v6841_v15, %v13839_v11 }
 0x718   : > { %v6800_v2 = vpop.xlane.xlu1 %6799  ;;  %v6791_v19 = vpop.xlane.xlu0 %6790 }
 0x719   : > { %v6840_v10 = vmul.f32 0.03125, %v6791_v19  ;;  %v6843_v62 = vmul.f32 0.03125, %v6800_v2  ;;  %v6966_v2 = vsel %vm6893_vm11, %v6965_v47, %v6961_v51 }
 0x71b   : > { %v6992_v29 = vrot.slane %v6840_v10, %v13836_v14  ;;  %v6984_v10 = vsel %vm6893_vm11, %v6983_v40, %v6979_v9  ;;  %v7006_v58 = vrot.slane %v6843_v62, %v13839_v11 }
 0x71c   : > { %v6806_v43 = vpop.xlane.xlu1 %6805  ;;  %v6797_v0 = vpop.xlane.xlu0 %6796 }
 0x71d   : > { %v6842_v13 = vmul.f32 0.03125, %v6797_v0  ;;  %v6845_v20 = vmul.f32 0.03125, %v6806_v43  ;;  %v6993_v43 = vsel %vm6893_vm11, %v6992_v29, %v6988_v4 }
 0x71f   : > { %v7001_v39 = vrot.slane %v6842_v13, %v13836_v14  ;;  %v7015_v63 = vrot.slane %v6845_v20, %v13839_v11 }
 0x720   : > { %v6812_v50 = vpop.xlane.xlu1 %6811  ;;  %v6803_v44 = vpop.xlane.xlu0 %6802 }
 0x721   : > { %v6844_v56 = vmul.f32 0.03125, %v6803_v44  ;;  %v6847_v35 = vmul.f32 0.03125, %v6812_v50  ;;  %v7044_v44 = vsel %vm7030_vm12, %v6975_v21, %v6966_v2  ;;  %v7002_v49 = vsel %vm6893_vm11, %v7001_v39, %v6997_v61 }
 0x722   : > { %v7045_v47 = vsel %vm7032_vm13, %v6984_v10, %v7044_v44 }
 0x723   : > { %v7010_v46 = vrot.slane %v6844_v56, %v13836_v14  ;;  %v7046_v62 = vsel %vm7034_vm14, %v6993_v43, %v7045_v47  ;;  %v7024_v51 = vrot.slane %v6847_v35, %v13839_v11 }
 0x724   : > { %v7058_v19 = vpop.xlane.xlu1 %7057  ;;  %v6809_v0 = vpop.xlane.xlu0 %6808  ;;  %v7047_v50 = vsel %vm7036_vm15, %v7002_v49, %v7046_v62 }
 0x725   : > { %v6846_v26 = vmul.f32 0.03125, %v6809_v0  ;;  %v7011_v15 = vsel %vm6893_vm11, %v7010_v46, %v7006_v58 }
 0x726   : > { %v7048_v20 = vsel %vm7038_vm1, %v7011_v15, %v7047_v50  ;;  %v7187_v50 = vrot.slane %v7058_v19, %v13839_v11 }
 0x727   : > { %v7019_v13 = vrot.slane %v6846_v26, %v13836_v14 }
 0x728   : > { %v7064_v56 = vpop.xlane.xlu1 %7063  ;;  %v6815_v30 = vpop.xlane.xlu0 %6814 }
 0x729   : > { %v6848_v40 = vmul.f32 0.03125, %v6815_v30  ;;  %v7020_v29 = vsel %vm6893_vm11, %v7019_v13, %v7015_v63  ;;  %v7196_v47 = vrot.slane %v7064_v56, %v13839_v11 }
 0x72a   : > { %v7049_v4 = vsel %vm7040_vm2, %v7020_v29, %v7048_v20 }
 0x72b   : > { %v7028_v9 = vrot.slane %v6848_v40, %v13836_v14 }
 0x72c   : > { %v7070_v39 = vpop.xlane.xlu1 %7069  ;;  %v7061_v0 = vpop.xlane.xlu0 %7060 }
 0x72d   : > { %v7029_v21 = vsel %vm6893_vm11, %v7028_v9, %v7024_v51  ;;  %v7191_v15 = vrot.slane %v7061_v0, %v13836_v14  ;;  %v7205_v62 = vrot.slane %v7070_v39, %v13839_v11 }
 0x72e   : > { %v7050_v46 = vsel %vm7042_vm3, %v7029_v21, %v7049_v4 }
 0x72f   : > { %7055 = vst.msk [vmem:[#allocation4 + $0xb] sm:$0xff] %vm7053_vm4, %v7050_v46  ;;  %v7192_v46 = vsel %vm6893_vm11, %v7191_v15, %v7187_v50 }
 0x730   : > { %v7076_v26 = vpop.xlane.xlu1 %7075  ;;  %v7067_v2 = vpop.xlane.xlu0 %7066 }
 0x731   : > { %v7200_v44 = vrot.slane %v7067_v2, %v13836_v14  ;;  %v7214_v51 = vrot.slane %v7076_v26, %v13839_v11 }
 0x733   : > { %v7201_v9 = vsel %vm6893_vm11, %v7200_v44, %v7196_v47 }
 0x734   : > { %v7082_v61 = vpop.xlane.xlu1 %7081  ;;  %v7073_v10 = vpop.xlane.xlu0 %7072  ;;  %v7328_v26 = vsel %vm7030_vm12, %v7201_v9, %v7192_v46 }
 0x735   : > { %v7209_v63 = vrot.slane %v7073_v10, %v13836_v14  ;;  %v7223_v4 = vrot.slane %v7082_v61, %v13839_v11 }
 0x736   : > { %v14173_v1 = vld [vmem:[#allocation4 + $0xb] sm:$0xff] }
 0x737   : > { %v7210_v56 = vsel %vm6893_vm11, %v7209_v63, %v7205_v62  ;;  %v14191_v8 = vld [vmem:[#allocation4 + $0x5] sm:$0xff] }
 0x738   : > { %v7088_v58 = vpop.xlane.xlu1 %7087  ;;  %v7079_v43 = vpop.xlane.xlu0 %7078  ;;  %v7329_v61 = vsel %vm7032_vm13, %v7210_v56, %v7328_v26  ;;  %v14217_v55 = vld [vmem:[#allocation4 + $0xc] sm:$0xff] }
 0x739   : > { %v7218_v40 = vrot.slane %v7079_v43, %v13836_v14  ;;  %v7232_v39 = vrot.slane %v7088_v58, %v13839_v11  ;;  %v14239_v31 = vld [vmem:[#allocation4 + $0x6] sm:$0xff] }
 0x73b   : > { %v7219_v2 = vsel %vm6893_vm11, %v7218_v40, %v7214_v51 }
 0x73c   : > { %v7094_v35 = vpop.xlane.xlu1 %7093  ;;  %v7085_v13 = vpop.xlane.xlu0 %7084  ;;  %v7330_v44 = vsel %vm7034_vm14, %v7219_v2, %v7329_v61 }
 0x73d   : > { %v7227_v29 = vrot.slane %v7085_v13, %v13836_v14  ;;  %v7241_v10 = vrot.slane %v7094_v35, %v13839_v11 }
 0x73f   : > { %v7228_v43 = vsel %vm6893_vm11, %v7227_v29, %v7223_v4 }
 0x740   : > { %v7100_v49 = vpop.xlane.xlu1 %7099  ;;  %v7091_v30 = vpop.xlane.xlu0 %7090  ;;  %v7331_v47 = vsel %vm7036_vm15, %v7228_v43, %v7330_v44 }
 0x741   : > { %v7236_v20 = vrot.slane %v7091_v30, %v13836_v14  ;;  %v7250_v15 = vrot.slane %v7100_v49, %v13839_v11 }
 0x743   : > { %v7237_v13 = vsel %vm6893_vm11, %v7236_v20, %v7232_v39 }
 0x744   : > { %v7106_v21 = vpop.xlane.xlu1 %7105  ;;  %v7097_v0 = vpop.xlane.xlu0 %7096  ;;  %v7332_v35 = vsel %vm7038_vm1, %v7237_v13, %v7331_v47 }
 0x745   : > { %v7245_v19 = vrot.slane %v7097_v0, %v13836_v14  ;;  %v7259_v47 = vrot.slane %v7106_v21, %v13839_v11 }
 0x747   : > { %v7246_v63 = vsel %vm6893_vm11, %v7245_v19, %v7241_v10 }
 0x748   : > { %v7112_v30 = vpop.xlane.xlu1 %7111  ;;  %v7103_v58 = vpop.xlane.xlu0 %7102  ;;  %v7333_v62 = vsel %vm7040_vm2, %v7246_v63, %v7332_v35 }
 0x749   : > { %v7254_v40 = vrot.slane %v7103_v58, %v13836_v14  ;;  %v7268_v61 = vrot.slane %v7112_v30, %v13839_v11 }
 0x74b   : > { %v7255_v29 = vsel %vm6893_vm11, %v7254_v40, %v7250_v15 }
 0x74c   : > { %v7334_v50 = vsel %vm7042_vm3, %v7255_v29, %v7333_v62  ;;  %v7118_v51 = vpop.xlane.xlu1 %7117  ;;  %v7109_v9 = vpop.xlane.xlu0 %7108 }
 0x74d   : > { %7345 = vst.msk [vmem:[#allocation4 + $0x1b] sm:$0xff] %vm7053_vm4, %v7334_v50  ;;  %v7263_v13 = vrot.slane %v7109_v9, %v13836_v14  ;;  %v7277_v63 = vrot.slane %v7118_v51, %v13839_v11 }
 0x74f   : > { %v7264_v50 = vsel %vm6893_vm11, %v7263_v13, %v7259_v47 }
 0x750   : > { %v7124_v20 = vpop.xlane.xlu1 %7123  ;;  %v7115_v4 = vpop.xlane.xlu0 %7114 }
 0x751   : > { %v7272_v19 = vrot.slane %v7115_v4, %v13836_v14  ;;  %v7286_v15 = vrot.slane %v7124_v20, %v13839_v11 }
 0x753   : > { %v7273_v40 = vsel %vm6893_vm11, %v7272_v19, %v7268_v61 }
 0x754   : > { %v7130_v56 = vpop.xlane.xlu1 %7129  ;;  %v7121_v0 = vpop.xlane.xlu0 %7120  ;;  %v7823_v46 = vld [vmem:[#allocation4 + $0x18] sm:$0xff]  ;;  %v7335_v21 = vsel %vm7030_vm12, %v7273_v40, %v7264_v50  ;;  %v14007_v40 = vld [vmem:[#allocation4] sm:$0xff] }
 0x755   : > { %7832 = vrot.lane.b32.xlu0 %v7823_v46, %s15539_s25  ;;  %v7281_v26 = vrot.slane %v7121_v0, %v13836_v14  ;;  %v7295_v30 = vrot.slane %v7130_v56, %v13839_v11  ;;  %v7891_v47 = vld [vmem:[#allocation4 + $0x19] sm:$0xff]  ;;  %v7351_v42 = vmul.f32 %v15685_v33, %v14007_v40 }
 0x757   : > { %v7282_v62 = vsel %vm6893_vm11, %v7281_v26, %v7277_v63 }
 0x758   : > { %v7127_v49 = vpop.xlane.xlu0 %7126  ;;  %v7136_v39 = vpop.xlane.xlu1 %7135 }
 0x759   : > { %7842 = vrot.lane.b32.xlu0 %v7823_v46, %s15544_s26  ;;  %v7290_v44 = vrot.slane %v7127_v49, %v13836_v14  ;;  %v7304_v9 = vrot.slane %v7136_v39, %v13839_v11  ;;  %v7336_v49 = vsel %vm7032_vm13, %v7282_v62, %v7335_v21  ;;  %v14051_v62 = vld [vmem:[#allocation4 + $0x2] sm:$0xff] }
 0x75b   : > { %v7291_v51 = vsel %vm6893_vm11, %v7290_v44, %v7286_v15  ;;  %v14002_v15 = vld [vmem:[#allocation4 + $0x8] sm:$0xff] }
 0x75c   : > { %v7133_v2 = vpop.xlane.xlu0 %7132  ;;  %v7142_v10 = vpop.xlane.xlu1 %7141  ;;  %v7337_v39 = vsel %vm7034_vm14, %v7291_v51, %v7336_v49 }
 0x75d   : > { %7852 = vrot.lane.b32.xlu0 %v7823_v46, %s15551_s18  ;;  %v7299_v58 = vrot.slane %v7133_v2, %v13836_v14  ;;  %v7313_v20 = vrot.slane %v7142_v10, %v13839_v11 }
 0x75f   : > { %v7300_v56 = vsel %vm6893_vm11, %v7299_v58, %v7295_v30  ;;  %v14025_v30 = vld [vmem:[#allocation4 + $0x1] sm:$0xff] }
 0x760   : > { %v7139_v43 = vpop.xlane.xlu0 %7138  ;;  %v7148_v0 = vpop.xlane.xlu1 %7147 }
 0x761   : > { %7862 = vrot.lane.b32.xlu0 %v7823_v46, %s15554_s10  ;;  %v7308_v35 = vrot.slane %v7139_v43, %v13836_v14  ;;  %v7338_v43 = vsel %vm7036_vm15, %v7300_v56, %v7337_v39  ;;  %v7322_v61 = vrot.slane %v7148_v0, %v13839_v11  ;;  %v14091_v56 = vld [vmem:[#allocation4 + $0x3] sm:$0xff] }
 0x763   : > { %v7309_v2 = vsel %vm6893_vm11, %v7308_v35, %v7304_v9 }
 0x764   : > { %v7145_v29 = vpop.xlane.xlu0 %7144  ;;  %v7339_v10 = vsel %vm7038_vm1, %v7309_v2, %v7338_v43  ;;  %v14121_v43 = vld [vmem:[#allocation4 + $0xa] sm:$0xff] }
 0x765   : > { %v7317_v4 = vrot.slane %v7145_v29, %v13836_v14  ;;  %7872 = vrot.lane.b32.xlu0 %v7823_v46, %s15549_s12 }
 0x767   : > { %v7318_v19 = vsel %vm6893_vm11, %v7317_v4, %v7313_v20  ;;  %v14077_v4 = vld [vmem:[#allocation4 + $0x9] sm:$0xff] }
 0x768   : > { %v7151_v26 = vpop.xlane.xlu0 %7150  ;;  %v7340_v44 = vsel %vm7040_vm2, %v7318_v19, %v7339_v10 }
 0x769   : > { %v7326_v13 = vrot.slane %v7151_v26, %v13836_v14  ;;  %7882 = vrot.lane.b32.xlu0 %v7823_v46, %s15556_s13  ;;  %v13985_v14 = vld [vmem:[#allocation4 + $0x1a] sm:$0xff] }
 0x76b   : > { %v7327_v63 = vsel %vm6893_vm11, %v7326_v13, %v7322_v61 }
 0x76c   : > { %v7341_v58 = vsel %vm7042_vm3, %v7327_v63, %v7340_v44  ;;  %v14139_v63 = vld [vmem:[#allocation4 + $0x4] sm:$0xff] }
 0x76d   : > { %7346 = vst.msk [vmem:[#allocation4 + $0x23] sm:$0xff] %vm7053_vm4, %v7341_v58  ;;  %7900 = vrot.lane.b32.xlu0 %v7891_v47, %s15539_s25 }
 0x771   : > { %7910 = vrot.lane.b32.xlu0 %v7891_v47, %s15544_s26 }
 0x774   : > { %v7824_v11 = vld [vmem:[#allocation4 + $0x20] sm:$0xff] }
 0x775   : > { %7920 = vrot.lane.b32.xlu0 %v7891_v47, %s15551_s18  ;;  %7834 = vrot.lane.b32.xlu1 %v7824_v11, %s15539_s25  ;;  %v7892_v46 = vld [vmem:[#allocation4 + $0x21] sm:$0xff] }
 0x776   : > { %v14015_v35 = vld [vmem:[#allocation4 + $0x22] sm:$0xff] }
 0x779   : > { %7930 = vrot.lane.b32.xlu0 %v7891_v47, %s15554_s10  ;;  %7844 = vrot.lane.b32.xlu1 %v7824_v11, %s15544_s26 }
 0x77d   : > { %7940 = vrot.lane.b32.xlu0 %v7891_v47, %s15549_s12  ;;  %7854 = vrot.lane.b32.xlu1 %v7824_v11, %s15551_s18 }
 0x781   : > { %7950 = vrot.lane.b32.xlu0 %v7891_v47, %s15556_s13  ;;  %7864 = vrot.lane.b32.xlu1 %v7824_v11, %s15554_s10 }
 0x785   : > { %7968 = vrot.lane.b32.xlu0 %v13985_v14, %s15539_s25  ;;  %7874 = vrot.lane.b32.xlu1 %v7824_v11, %s15549_s12 }
 0x789   : > { %7978 = vrot.lane.b32.xlu0 %v13985_v14, %s15544_s26  ;;  %7884 = vrot.lane.b32.xlu1 %v7824_v11, %s15556_s13 }
 0x78d   : > { %7988 = vrot.lane.b32.xlu0 %v13985_v14, %s15551_s18  ;;  %7902 = vrot.lane.b32.xlu1 %v7892_v46, %s15539_s25 }
 0x791   : > { %7998 = vrot.lane.b32.xlu0 %v13985_v14, %s15554_s10  ;;  %7912 = vrot.lane.b32.xlu1 %v7892_v46, %s15544_s26 }
 0x795   : > { %8008 = vrot.lane.b32.xlu0 %v13985_v14, %s15549_s12  ;;  %7922 = vrot.lane.b32.xlu1 %v7892_v46, %s15551_s18 }
 0x799   : > { %7358 = vrot.lane.b32.xlu0 %v14002_v15, %s15539_s25  ;;  %7932 = vrot.lane.b32.xlu1 %v7892_v46, %s15554_s10 }
 0x79d   : > { %7376 = vrot.lane.b32.xlu0 %v14007_v40, %s15551_s18  ;;  %7942 = vrot.lane.b32.xlu1 %v7892_v46, %s15549_s12 }
 0x7a1   : > { %7386 = vrot.lane.b32.xlu0 %v14007_v40, %s15554_s10  ;;  %7952 = vrot.lane.b32.xlu1 %v7892_v46, %s15556_s13 }
 0x7a5   : > { %7396 = vrot.lane.b32.xlu0 %v14007_v40, %s15549_s12  ;;  %7970 = vrot.lane.b32.xlu1 %v14015_v35, %s15539_s25 }
 0x7a9   : > { %7406 = vrot.lane.b32.xlu0 %v14007_v40, %s15556_s13  ;;  %7980 = vrot.lane.b32.xlu1 %v14015_v35, %s15544_s26 }
 0x7ad   : > { %7424 = vrot.lane.b32.xlu0 %v14025_v30, %s15539_s25  ;;  %7990 = vrot.lane.b32.xlu1 %v14015_v35, %s15551_s18 }
 0x7b1   : > { %7434 = vrot.lane.b32.xlu0 %v14025_v30, %s15544_s26  ;;  %8000 = vrot.lane.b32.xlu1 %v14015_v35, %s15554_s10 }
 0x7b5   : > { %7444 = vrot.lane.b32.xlu0 %v14025_v30, %s15551_s18  ;;  %8010 = vrot.lane.b32.xlu1 %v14015_v35, %s15549_s12 }
 0x7b9   : > { %7454 = vrot.lane.b32.xlu0 %v14025_v30, %s15554_s10  ;;  %7356 = vrot.lane.b32.xlu1 %v14007_v40, %s15539_s25 }
 0x7bd   : > { %7464 = vrot.lane.b32.xlu0 %v14025_v30, %s15549_s12  ;;  %7366 = vrot.lane.b32.xlu1 %v14007_v40, %s15544_s26 }
 0x7c1   : > { %7474 = vrot.lane.b32.xlu0 %v14025_v30, %s15556_s13  ;;  %7368 = vrot.lane.b32.xlu1 %v14002_v15, %s15544_s26 }
 0x7c5   : > { %7492 = vrot.lane.b32.xlu0 %v14051_v62, %s15539_s25  ;;  %7378 = vrot.lane.b32.xlu1 %v14002_v15, %s15551_s18 }
 0x7c7   : > { %v14057_v29 = vpop.permute.xlu0 %7832 }
 0x7c9   : > { %7502 = vrot.lane.b32.xlu0 %v14051_v62, %s15544_s26  ;;  %7388 = vrot.lane.b32.xlu1 %v14002_v15, %s15554_s10 }
 0x7cb   : > { %v14063_v50 = vpop.permute.xlu0 %7842 }
 0x7cd   : > { %7512 = vrot.lane.b32.xlu0 %v14051_v62, %s15551_s18  ;;  %7398 = vrot.lane.b32.xlu1 %v14002_v15, %s15549_s12 }
 0x7cf   : > { %v14069_v9 = vpop.permute.xlu0 %7852 }
 0x7d1   : > { %7522 = vrot.lane.b32.xlu0 %v14051_v62, %s15554_s10  ;;  %7408 = vrot.lane.b32.xlu1 %v14002_v15, %s15556_s13 }
 0x7d3   : > { %v14075_v51 = vpop.permute.xlu0 %7862 }
 0x7d5   : > { %7532 = vrot.lane.b32.xlu0 %v14051_v62, %s15549_s12  ;;  %7426 = vrot.lane.b32.xlu1 %v14077_v4, %s15539_s25 }
 0x7d7   : > { %v14083_v21 = vpop.permute.xlu0 %7872 }
 0x7d9   : > { %7542 = vrot.lane.b32.xlu0 %v14051_v62, %s15556_s13  ;;  %7436 = vrot.lane.b32.xlu1 %v14077_v4, %s15544_s26 }
 0x7db   : > { %v14089_v20 = vpop.permute.xlu0 %7882 }
 0x7dd   : > { %7560 = vrot.lane.b32.xlu0 %v14091_v56, %s15539_s25  ;;  %7446 = vrot.lane.b32.xlu1 %v14077_v4, %s15551_s18 }
 0x7df   : > { %v14097_v0 = vpop.permute.xlu0 %7900 }
 0x7e1   : > { %7570 = vrot.lane.b32.xlu0 %v14091_v56, %s15544_s26  ;;  %7456 = vrot.lane.b32.xlu1 %v14077_v4, %s15554_s10 }
 0x7e3   : > { %v14103_v49 = vpop.permute.xlu0 %7910 }
 0x7e5   : > { %7580 = vrot.lane.b32.xlu0 %v14091_v56, %s15551_s18  ;;  %7466 = vrot.lane.b32.xlu1 %v14077_v4, %s15549_s12 }
 0x7e7   : > { %v14109_v2 = vpop.permute.xlu1 %7834  ;;  %v14111_v39 = vpop.permute.xlu0 %7920 }
 0x7e9   : > { %7590 = vrot.lane.b32.xlu0 %v14091_v56, %s15554_s10  ;;  %7476 = vrot.lane.b32.xlu1 %v14077_v4, %s15556_s13 }
 0x7eb   : > { %v14117_v19 = vpop.permute.xlu1 %7844  ;;  %v14119_v26 = vpop.permute.xlu0 %7930 }
 0x7ed   : > { %7600 = vrot.lane.b32.xlu0 %v14091_v56, %s15549_s12  ;;  %7494 = vrot.lane.b32.xlu1 %v14121_v43, %s15539_s25 }
 0x7ef   : > { %v14127_v61 = vpop.permute.xlu1 %7854  ;;  %v14129_v13 = vpop.permute.xlu0 %7940 }
 0x7f0   : > { %15670 = vst [vmem:[#allocation54_spill] sm:$0xff] %v14127_v61  ;;  %v7564_v61 = vstv %s14438_s9  ;;  %s14719_s9 = sld [smem:[#allocation5 + $0x56]] }
 0x7f1   : > { %7610 = vrot.lane.b32.xlu0 %v14091_v56, %s15556_s13  ;;  %7504 = vrot.lane.b32.xlu1 %v14121_v43, %s15544_s26 }
 0x7f3   : > { %v14135_v10 = vpop.permute.xlu1 %7864  ;;  %v14137_v44 = vpop.permute.xlu0 %7950 }
 0x7f4   : > { %15671 = vst [vmem:[#allocation55_spill] sm:$0xff] %v14135_v10 }
 0x7f5   : > { %7628 = vrot.lane.b32.xlu0 %v14139_v63, %s15539_s25  ;;  %7514 = vrot.lane.b32.xlu1 %v14121_v43, %s15551_s18 }
 0x7f7   : > { %v14145_v58 = vpop.permute.xlu1 %7874  ;;  %v14147_v47 = vpop.permute.xlu0 %7968 }
 0x7f8   : > { %15672 = vst [vmem:[#allocation56_spill] sm:$0xff] %v14145_v58  ;;  %v15696_v58 = vstv %s14425_s15 }
 0x7f9   : > { %7638 = vrot.lane.b32.xlu0 %v14139_v63, %s15544_s26  ;;  %7524 = vrot.lane.b32.xlu1 %v14121_v43, %s15554_s10  ;;  %v7555_v10 = vmul.f32 %v15696_v58, %v14091_v56  ;;  %v15698_v58 = vstv %s14261_s24 }
 0x7fb   : > { %v14153_v11 = vpop.permute.xlu1 %7884  ;;  %v14155_v46 = vpop.permute.xlu0 %7978 }
 0x7fc   : > { %15673 = vst [vmem:[#allocation57_spill] sm:$0xff] %v14153_v11 }
 0x7fd   : > { %7648 = vrot.lane.b32.xlu0 %v14139_v63, %s15551_s18  ;;  %7534 = vrot.lane.b32.xlu1 %v14121_v43, %s15549_s12 }
 0x7ff   : > { %v14161_v54 = vpop.permute.xlu1 %7902  ;;  %v14163_v17 = vpop.permute.xlu0 %7988 }
 0x800   : > { %15674 = vst [vmem:[#allocation58_spill] sm:$0xff] %v14161_v54 }
 0x801   : > { %7658 = vrot.lane.b32.xlu0 %v14139_v63, %s15554_s10  ;;  %7544 = vrot.lane.b32.xlu1 %v14121_v43, %s15556_s13 }
 0x803   : > { %v14169_v5 = vpop.permute.xlu1 %7912  ;;  %v14171_v57 = vpop.permute.xlu0 %7998 }
 0x804   : > { %15675 = vst [vmem:[#allocation59_spill] sm:$0xff] %v14169_v5  ;;  %v15694_v5 = vstv %s14245_s20  ;;  %s14499_s20 = sld [smem:[#allocation5 + $0x34]] }
 0x805   : > { %7668 = vrot.lane.b32.xlu0 %v14139_v63, %s15549_s12  ;;  %7562 = vrot.lane.b32.xlu1 %v14173_v1, %s15539_s25 }
 0x807   : > { %v14179_v23 = vpop.permute.xlu1 %7922  ;;  %v14181_v53 = vpop.permute.xlu0 %8008 }
 0x808   : > { %15676 = vst [vmem:[#allocation60_spill] sm:$0xff] %v14179_v23 }
 0x809   : > { %7678 = vrot.lane.b32.xlu0 %v14139_v63, %s15556_s13  ;;  %7572 = vrot.lane.b32.xlu1 %v14173_v1, %s15544_s26 }
 0x80b   : > { %v14187_v16 = vpop.permute.xlu1 %7932  ;;  %v14189_v59 = vpop.permute.xlu0 %7358 }
 0x80c   : > { %15677 = vst [vmem:[#allocation61_spill] sm:$0xff] %v14187_v16 }
 0x80d   : > { %7696 = vrot.lane.b32.xlu0 %v14191_v8, %s15539_s25  ;;  %7582 = vrot.lane.b32.xlu1 %v14173_v1, %s15551_s18 }
 0x80f   : > { %v14197_v3 = vpop.permute.xlu1 %7942  ;;  %v7377_v60 = vpop.permute.xlu0 %7376 }
 0x810   : > { %15678 = vst [vmem:[#allocation62_spill] sm:$0xff] %v14197_v3  ;;  %v7381_v33 = vmul.f32 %v15559_v6, %v7377_v60 }
 0x811   : > { %7706 = vrot.lane.b32.xlu0 %v14191_v8, %s15544_s26  ;;  %7592 = vrot.lane.b32.xlu1 %v14173_v1, %s15554_s10 }
 0x813   : > { %v14203_v32 = vpop.permute.xlu1 %7952  ;;  %v7387_v25 = vpop.permute.xlu0 %7386 }
 0x814   : > { %15679 = vst [vmem:[#allocation63_spill] sm:$0xff] %v14203_v32 }
 0x815   : > { %7602 = vrot.lane.b32.xlu1 %v14173_v1, %s15549_s12  ;;  %7716 = vrot.lane.b32.xlu0 %v14191_v8, %s15551_s18 }
 0x817   : > { %v14209_v12 = vpop.permute.xlu1 %7970  ;;  %v7397_v34 = vpop.permute.xlu0 %7396 }
 0x818   : > { %15680 = vst [vmem:[#allocation64_spill] sm:$0xff] %v14209_v12  ;;  %v14300_v12 = vld [vmem:[#allocation4 + $0xd] sm:$0xff] }
 0x819   : > { %7612 = vrot.lane.b32.xlu1 %v14173_v1, %s15556_s13  ;;  %7726 = vrot.lane.b32.xlu0 %v14191_v8, %s15554_s10 }
 0x81b   : > { %v14215_v22 = vpop.permute.xlu1 %7980  ;;  %v7407_v52 = vpop.permute.xlu0 %7406 }
 0x81c   : > { %15681 = vst [vmem:[#allocation65_spill] sm:$0xff] %v14215_v22  ;;  %v15561_v22 = vstv %s14261_s24  ;;  %s14754_s24 = sld [smem:[#allocation5 + $0x5e]] }
 0x81d   : > { %7630 = vrot.lane.b32.xlu1 %v14217_v55, %s15539_s25  ;;  %7736 = vrot.lane.b32.xlu0 %v14191_v8, %s15549_s12 }
 0x81f   : > { %v14223_v45 = vpop.permute.xlu1 %7990  ;;  %v14225_v7 = vpop.permute.xlu0 %7424 }
 0x820   : > { %15682 = vst [vmem:[#allocation66_spill] sm:$0xff] %v14223_v45  ;;  %v15558_v45 = vstv %s14253_s23 }
 0x821   : > { %7640 = vrot.lane.b32.xlu1 %v14217_v55, %s15544_s26  ;;  %7746 = vrot.lane.b32.xlu0 %v14191_v8, %s15556_s13 }
 0x823   : > { %v14235_v24 = vpop.permute.xlu1 %8000  ;;  %v14237_v27 = vpop.permute.xlu0 %7434 }
 0x824   : > { %15683 = vst [vmem:[#allocation67_spill] sm:$0xff] %v14235_v24 }
 0x825   : > { %7650 = vrot.lane.b32.xlu1 %v14217_v55, %s15551_s18  ;;  %7764 = vrot.lane.b32.xlu0 %v14239_v31, %s15539_s25  ;;  %s14267_s25 = sld [smem:[#allocation5 + $0xc]] }
 0x827   : > { %v14249_v41 = vpop.permute.xlu1 %8010  ;;  %v14251_v38 = vpop.permute.xlu0 %7444 }
 0x828   : > { %15684 = vst [vmem:[#allocation68_spill] sm:$0xff] %v14249_v41 }
 0x829   : > { %7660 = vrot.lane.b32.xlu1 %v14217_v55, %s15554_s10  ;;  %7774 = vrot.lane.b32.xlu0 %v14239_v31, %s15544_s26  ;;  %s14277_s26 = sld [smem:[#allocation5 + $0xe]] }
 0x82b   : > { %v7357_v37 = vpop.permute.xlu1 %7356  ;;  %v14263_v36 = vpop.permute.xlu0 %7454  ;;  %v15560_v32 = vstv %s14267_s25 }
 0x82c   : > { %v7361_v18 = vmul.f32 %v15548_v28, %v7357_v37 }
 0x82d   : > { %7670 = vrot.lane.b32.xlu1 %v14217_v55, %s15549_s12  ;;  %7784 = vrot.lane.b32.xlu0 %v14239_v31, %s15551_s18  ;;  %s14285_s12 = sld [smem:[#allocation5 + $0x10]] }
 0x82e   : > { %v7363_v28 = vadd.f32 %v7361_v18, %v7351_v42  ;;  %s14294_s18 = sld [smem:[#allocation5 + $0x12]] }
 0x82f   : > { %v7367_v41 = vpop.permute.xlu1 %7366  ;;  %v14280_v37 = vpop.permute.xlu0 %7464  ;;  %v15563_v60 = vstv %s14277_s26 }
 0x830   : > { %v7371_v24 = vmul.f32 %v15553_v48, %v7367_v41  ;;  %v7391_v41 = vmul.f32 %v15558_v45, %v7387_v25 }
 0x831   : > { %7680 = vrot.lane.b32.xlu1 %v14217_v55, %s15556_s13  ;;  %7794 = vrot.lane.b32.xlu0 %v14239_v31, %s15554_s10  ;;  %s14303_s10 = sld [smem:[#allocation5 + $0x14]]  ;;  %s15686_s13 = smov 127  }
 0x832   : > { %v7373_v40 = vadd.f32 %v7371_v24, %v7363_v28  ;;  %v7401_v28 = vmul.f32 %v15561_v22, %v7397_v34 }
 0x833   : > { %v14296_v42 = vpop.permute.xlu1 %7368  ;;  %v7475_v18 = vpop.permute.xlu0 %7474  ;;  %v15562_v6 = vstv %s14285_s12 }
 0x834   : > { %v7383_v48 = vadd.f32 %v7381_v33, %v7373_v40  ;;  %v7411_v40 = vmul.f32 %v15560_v32, %v7407_v52  ;;  %v7372_v54 = vmul.f32 %v15694_v5, %v14296_v42 }
 0x835   : > { %7698 = vrot.lane.b32.xlu1 %v14300_v12, %s15686_s13  ;;  %7804 = vrot.lane.b32.xlu0 %v14239_v31, %s15687_s0 }
 0x836   : > { %v7393_v24 = vadd.f32 %v7391_v41, %v7383_v48  ;;  %v7419_v48 = vmul.f32 %v15563_v60, %v14025_v30  ;;  %v15568_v41 = vstv %s14294_s18  ;;  %v14354_v60 = vld [vmem:[#allocation4 + $0x1b] sm:$0xff] }
 0x837   : > { %v14314_v25 = vpop.permute.xlu1 %7378  ;;  %v7493_v33 = vpop.permute.xlu0 %7492  ;;  %v15567_v22 = vstv %s14303_s10 }
 0x838   : > { %v7403_v45 = vadd.f32 %v7401_v28, %v7393_v24  ;;  %v7429_v24 = vmul.f32 %v15562_v6, %v14225_v7 }
 0x839   : > { %7708 = vrot.lane.b32.xlu1 %v14300_v12, %s15688_s3  ;;  %7814 = vrot.lane.b32.xlu0 %v14239_v31, %s15689_s4 }
 0x83a   : > { %v7413_v34 = vadd.f32 %v7411_v40, %v7403_v45  ;;  %v7439_v45 = vmul.f32 %v15568_v41, %v14237_v27  ;;  %v15571_v40 = vstv %s14312_s1  ;;  %v15583_v41 = vstv %s14336_s6 }
 0x83b   : > { %v14331_v52 = vpop.permute.xlu1 %7388  ;;  %v7503_v28 = vpop.permute.xlu0 %7502  ;;  %v7459_v27 = vmul.f32 %v15571_v40, %v14263_v36  ;;  %v15576_v40 = vstv %s14357_s29 }
 0x83c   : > { %v7421_v32 = vadd.f32 %v7419_v48, %v7413_v34  ;;  %v7449_v34 = vmul.f32 %v15567_v22, %v14251_v38  ;;  %v15573_v38 = vstv %s14329_s5 }
 0x83d   : > { %7718 = vrot.lane.b32.xlu1 %v14300_v12, %s15690_s7  ;;  %8018 = vrot.lane.b32.xlu0 %v13985_v14, %s15689_s4  ;;  %v15570_v14 = vstv %s14319_s2  ;;  %v7479_v36 = vmul.f32 %v15573_v38, %v7475_v18 }
 0x83e   : > { %v7431_v30 = vadd.f32 %v7429_v24, %v7421_v32  ;;  %v7469_v22 = vmul.f32 %v15570_v14, %v14280_v37  ;;  %v7487_v37 = vmul.f32 %v15583_v41, %v14051_v62  ;;  %v7507_v62 = vmul.f32 %v15576_v40, %v7503_v28 }
 0x83f   : > { %v14349_v7 = vpop.permute.xlu1 %7398  ;;  %v7513_v48 = vpop.permute.xlu0 %7512  ;;  %v15581_v28 = vstv %s14388_s27 }
 0x840   : > { %v7441_v6 = vadd.f32 %v7439_v45, %v7431_v30 }
 0x841   : > { %7728 = vrot.lane.b32.xlu1 %v14300_v12, %s15691_s11  ;;  %8036 = vrot.lane.b32.xlu0 %v14354_v60, %s15686_s13 }
 0x842   : > { %v7451_v32 = vadd.f32 %v7449_v34, %v7441_v6  ;;  %v15577_v34 = vstv %s14347_s14 }
 0x843   : > { %v14367_v24 = vpop.permute.xlu1 %7408  ;;  %v7523_v45 = vpop.permute.xlu0 %7522  ;;  %v7497_v18 = vmul.f32 %v15577_v34, %v7493_v33  ;;  %v15584_v34 = vstv %s14403_s30 }
 0x844   : > { %v7461_v30 = vadd.f32 %v7459_v27, %v7451_v32 }
 0x845   : > { %7738 = vrot.lane.b32.xlu1 %v14300_v12, %s15687_s0  ;;  %8046 = vrot.lane.b32.xlu0 %v14354_v60, %s15688_s3 }
 0x846   : > { %v7471_v6 = vadd.f32 %v7469_v22, %v7461_v30 }
 0x847   : > { %v14382_v27 = vpop.permute.xlu1 %7426  ;;  %v7533_v32 = vpop.permute.xlu0 %7532 }
 0x848   : > { %v7481_v14 = vadd.f32 %v7479_v36, %v7471_v6  ;;  %v14400_v6 = vld [vmem:[#allocation4 + $0xe] sm:$0xff]  ;;  %v15580_v36 = vstv %s14373_s16 }
 0x849   : > { %7748 = vrot.lane.b32.xlu1 %v14300_v12, %s15689_s4  ;;  %8056 = vrot.lane.b32.xlu0 %v14354_v60, %s15690_s7 }
 0x84a   : > { %v7489_v22 = vadd.f32 %v7487_v37, %v7481_v14 }
 0x84b   : > { %v14396_v30 = vpop.permute.xlu1 %7436  ;;  %v7543_v38 = vpop.permute.xlu0 %7542 }
 0x84c   : > { %v7499_v3 = vadd.f32 %v7497_v18, %v7489_v22  ;;  %v7517_v22 = vmul.f32 %v15580_v36, %v7513_v48 }
 0x84d   : > { %7766 = vrot.lane.b32.xlu1 %v14400_v6, %s15686_s13  ;;  %8066 = vrot.lane.b32.xlu0 %v14354_v60, %s15691_s11 }
 0x84e   : > { %v7509_v33 = vadd.f32 %v7507_v62, %v7499_v3  ;;  %v7527_v62 = vmul.f32 %v15581_v28, %v7523_v45  ;;  %v14435_v45 = vld [vmem:[#allocation4 + $0x1c] sm:$0xff]  ;;  %v15587_v28 = vstv %s14414_s8 }
 0x84f   : > { %v14409_v14 = vpop.permute.xlu1 %7446  ;;  %v7561_v37 = vpop.permute.xlu0 %7560  ;;  %v7547_v16 = vmul.f32 %v15587_v28, %v7543_v38  ;;  %v15695_v28 = vstv %s14247_s21  ;;  %s14564_s21 = sld [smem:[#allocation5 + $0x3e]] }
 0x850   : > { %v7519_v18 = vadd.f32 %v7517_v22, %v7509_v33  ;;  %v7537_v22 = vmul.f32 %v15584_v34, %v7533_v32  ;;  %v15692_v32 = vstv %s14233_s19  ;;  %v7382_v23 = vmul.f32 %v15695_v28, %v14314_v25  ;;  %s14490_s19 = sld [smem:[#allocation5 + $0x32]] }
 0x851   : > { %7776 = vrot.lane.b32.xlu1 %v14400_v6, %s15688_s3  ;;  %8076 = vrot.lane.b32.xlu0 %v14354_v60, %s15687_s0  ;;  %v7362_v34 = vmul.f32 %v15692_v32, %v14189_v59  ;;  %v7402_v28 = vmul.f32 %v15698_v58, %v14349_v7 }
 0x852   : > { %v7529_v48 = vadd.f32 %v7527_v62, %v7519_v18 }
 0x853   : > { %v14420_v40 = vpop.permute.xlu1 %7456  ;;  %v7571_v3 = vpop.permute.xlu0 %7570 }
 0x854   : > { %v7539_v18 = vadd.f32 %v7537_v22, %v7529_v48  ;;  %v15693_v48 = vstv %s14231_s17  ;;  %s14473_s17 = sld [smem:[#allocation5 + $0x30]] }
 0x855   : > { %7786 = vrot.lane.b32.xlu1 %v14400_v6, %s15690_s7  ;;  %8086 = vrot.lane.b32.xlu0 %v14354_v60, %s15689_s4  ;;  %v7352_v22 = vmul.f32 %v15693_v48, %v14002_v15  ;;  %v7574_v48 = vstv %s14452_s22  ;;  %s14739_s22 = sld [smem:[#allocation5 + $0x5a]] }
 0x856   : > { %v7549_v11 = vadd.f32 %v7547_v16, %v7539_v18  ;;  %v15697_v16 = vstv %s14253_s23  ;;  %v7565_v18 = vmul.f32 %v7564_v61, %v7561_v37  ;;  %v15588_v58 = vstv %s14490_s19  ;;  %s14745_s23 = sld [smem:[#allocation5 + $0x5c]] }
 0x857   : > { %v14431_v36 = vpop.permute.xlu1 %7466  ;;  %v7581_v33 = vpop.permute.xlu0 %7580  ;;  %v7364_v32 = vadd.f32 %v7362_v34, %v7352_v22  ;;  %v7392_v15 = vmul.f32 %v15697_v16, %v14331_v52  ;;  %v14507_v22 = vld [vmem:[#allocation4 + $0x23] sm:$0xff] }
 0x858   : > { %v7557_v42 = vadd.f32 %v7555_v10, %v7549_v11  ;;  %v15699_v10 = vstv %s14267_s25  ;;  %s14510_s25 = sld [smem:[#allocation5 + $0x36]] }
 0x859   : > { %7796 = vrot.lane.b32.xlu1 %v14400_v6, %s15691_s11  ;;  %8104 = vrot.lane.b32.xlu0 %v14435_v45, %s15686_s13  ;;  %v7374_v5 = vadd.f32 %v7372_v54, %v7364_v32  ;;  %v7412_v11 = vmul.f32 %v15699_v10, %v14367_v24 }
 0x85a   : > { %v15589_v32 = vstv %s14473_s17 }
 0x85b   : > { %v14444_v62 = vpop.permute.xlu1 %7476  ;;  %v7591_v41 = vpop.permute.xlu0 %7590  ;;  %v7384_v56 = vadd.f32 %v7382_v23, %v7374_v5  ;;  %v7567_v23 = vadd.f32 %v7565_v18, %v7557_v42  ;;  %v15701_v18 = vstv %s14285_s12  ;;  %s14544_s12 = sld [smem:[#allocation5 + $0x3a]] }
 0x85d   : > { %7806 = vrot.lane.b32.xlu1 %v14400_v6, %s15687_s0  ;;  %8114 = vrot.lane.b32.xlu0 %v14435_v45, %s15688_s3  ;;  %v7394_v54 = vadd.f32 %v7392_v15, %v7384_v56  ;;  %v15700_v15 = vstv %s14277_s26  ;;  %v7585_v56 = vmul.f32 %v15589_v32, %v7581_v33  ;;  %s14532_s26 = sld [smem:[#allocation5 + $0x38]] }
 0x85e   : > { %v7420_v42 = vmul.f32 %v15700_v15, %v14077_v4  ;;  %v14541_v15 = vld [vmem:[#allocation4 + $0x1d] sm:$0xff] }
 0x85f   : > { %v14464_v59 = vpop.permute.xlu1 %7494  ;;  %v7601_v38 = vpop.permute.xlu0 %7600  ;;  %v7404_v37 = vadd.f32 %v7402_v28, %v7394_v54  ;;  %v7430_v54 = vmul.f32 %v15701_v18, %v14382_v27 }
 0x861   : > { %7816 = vrot.lane.b32.xlu1 %v14400_v6, %s15689_s4  ;;  %8124 = vrot.lane.b32.xlu0 %v14435_v45, %s15690_s7  ;;  %v7414_v24 = vadd.f32 %v7412_v11, %v7404_v37  ;;  %v7604_v11 = vstv %s14499_s20  ;;  %s14780_s20 = sld [smem:[#allocation5 + $0x3]] }
 0x863   : > { %v14482_v34 = vpop.permute.xlu1 %7504  ;;  %v7611_v25 = vpop.permute.xlu0 %7610  ;;  %v7422_v28 = vadd.f32 %v7420_v42, %v7414_v24  ;;  %v15590_v24 = vstv %s14510_s25 }
 0x865   : > { %8020 = vrot.lane.b32.xlu1 %v14015_v35, %s15689_s4  ;;  %8134 = vrot.lane.b32.xlu0 %v14435_v45, %s15691_s11  ;;  %v7575_v35 = vmul.f32 %v7574_v48, %v7571_v3  ;;  %v7432_v27 = vadd.f32 %v7430_v54, %v7422_v28  ;;  %v7615_v28 = vmul.f32 %v15590_v24, %v7611_v25  ;;  %v15593_v24 = vstv %s14544_s12 }
 0x867   : > { %v14501_v52 = vpop.permute.xlu1 %7514  ;;  %v14503_v7 = vpop.permute.xlu0 %7628  ;;  %v7577_v5 = vadd.f32 %v7575_v35, %v7567_v23  ;;  %v15702_v23 = vstv %s14294_s18  ;;  %v7595_v35 = vmul.f32 %v15588_v58, %v7591_v41  ;;  %v7605_v41 = vmul.f32 %v7604_v11, %v7601_v38  ;;  %s14555_s18 = sld [smem:[#allocation5 + $0x3c]] }
 0x868   : > { %v7440_v37 = vmul.f32 %v15702_v23, %v14396_v30  ;;  %v15704_v58 = vstv %s14312_s1  ;;  %v15705_v38 = vstv %s14319_s2  ;;  %s14574_s1 = sld [smem:[#allocation5 + $0x40]] }
 0x869   : > { %8038 = vrot.lane.b32.xlu1 %v14507_v22, %s15686_s13  ;;  %8144 = vrot.lane.b32.xlu0 %v14435_v45, %s15687_s0  ;;  %v7587_v10 = vadd.f32 %v7585_v56, %v7577_v5  ;;  %v15703_v5 = vstv %s14303_s10  ;;  %v7460_v32 = vmul.f32 %v15704_v58, %v14420_v40  ;;  %v7470_v54 = vmul.f32 %v15705_v38, %v14431_v36  ;;  %s14582_s10 = sld [smem:[#allocation5 + $0x42]] }
 0x86a   : > { %v7450_v30 = vmul.f32 %v15703_v5, %v14409_v14  ;;  %v7442_v23 = vadd.f32 %v7440_v37, %v7432_v27  ;;  %v7622_v37 = vstv %s14532_s26  ;;  %s14594_s2 = sld [smem:[#allocation5 + $0x44]] }
 0x86b   : > { %v14516_v16 = vpop.permute.xlu1 %7524  ;;  %v7639_v3 = vpop.permute.xlu0 %7638  ;;  %v7597_v42 = vadd.f32 %v7595_v35, %v7587_v10  ;;  %v15706_v35 = vstv %s14329_s5  ;;  %s14620_s5 = sld [smem:[#allocation5 + $0x46]] }
 0x86c   : > { %v7452_v14 = vadd.f32 %v7450_v30, %v7442_v23  ;;  %v7480_v27 = vmul.f32 %v15706_v35, %v14444_v62  ;;  %s14796_s26 = sld [smem:[#allocation5 + $0x7]] }
 0x86d   : > { %8048 = vrot.lane.b32.xlu1 %v14507_v22, %s15688_s3  ;;  %8154 = vrot.lane.b32.xlu0 %v14435_v45, %s15689_s4  ;;  %v7607_v10 = vadd.f32 %v7605_v41, %v7597_v42  ;;  %v15592_v30 = vstv %s14555_s18 }
 0x86e   : > { %v7462_v58 = vadd.f32 %v7460_v32, %v7452_v14  ;;  %v7623_v32 = vmul.f32 %v7622_v37, %v14139_v63  ;;  %v15591_v14 = vstv %s14564_s21  ;;  %v15707_v63 = vstv %s14336_s6  ;;  %s14632_s6 = sld [smem:[#allocation5 + $0x48]] }
 0x86f   : > { %v14534_v4 = vpop.permute.xlu1 %7534  ;;  %v7649_v33 = vpop.permute.xlu0 %7648  ;;  %v7617_v5 = vadd.f32 %v7615_v28, %v7607_v10  ;;  %v7633_v28 = vmul.f32 %v15593_v24, %v14503_v7  ;;  %v7488_v38 = vmul.f32 %v15707_v63, %v14121_v43  ;;  %v7662_v10 = vstv %s14574_s1  ;;  %s14830_s1 = sld [smem:[#allocation5 + $0xf]] }
 0x870   : > { %v7472_v36 = vadd.f32 %v7470_v54, %v7462_v58  ;;  %v7643_v54 = vmul.f32 %v15592_v30, %v7639_v3  ;;  %v7672_v43 = vstv %s14582_s10  ;;  %v15709_v3 = vstv %s14357_s29  ;;  %s14641_s29 = sld [smem:[#allocation5 + $0x4a]] }
 0x871   : > { %8058 = vrot.lane.b32.xlu1 %v14507_v22, %s15690_s7  ;;  %8172 = vrot.lane.b32.xlu0 %v14541_v15, %s15686_s13  ;;  %v7625_v23 = vadd.f32 %v7623_v32, %v7617_v5  ;;  %v14617_v32 = vld [vmem:[#allocation4 + $0x24] sm:$0xff]  ;;  %s14838_s10 = sld [smem:[#allocation5 + $0x11]] }
 0x872   : > { %v7482_v41 = vadd.f32 %v7480_v27, %v7472_v36  ;;  %v15708_v27 = vstv %s14347_s14  ;;  %v7653_v36 = vmul.f32 %v15591_v14, %v7649_v33  ;;  %s14654_s14 = sld [smem:[#allocation5 + $0x4c]] }
 0x873   : > { %v14557_v56 = vpop.permute.xlu1 %7544  ;;  %v7659_v18 = vpop.permute.xlu0 %7658  ;;  %v7498_v5 = vmul.f32 %v15708_v27, %v14464_v59  ;;  %v7508_v59 = vmul.f32 %v15709_v3, %v14482_v34  ;;  %v15710_v27 = vstv %s14373_s16  ;;  %s14726_s16 = sld [smem:[#allocation5 + $0x58]] }
 0x874   : > { %v7490_v7 = vadd.f32 %v7488_v38, %v7482_v41  ;;  %v7663_v33 = vmul.f32 %v7662_v10, %v7659_v18  ;;  %v7518_v14 = vmul.f32 %v15710_v27, %v14501_v52  ;;  %v15711_v18 = vstv %s14388_s27  ;;  %s14666_s27 = sld [smem:[#allocation5 + $0x4e]] }
 0x875   : > { %8068 = vrot.lane.b32.xlu1 %v14507_v22, %s15691_s11  ;;  %8182 = vrot.lane.b32.xlu0 %v14541_v15, %s15688_s3 }
 0x876   : > { %v7500_v38 = vadd.f32 %v7498_v5, %v7490_v7 }
 0x877   : > { %v14576_v40 = vpop.permute.xlu1 %7562  ;;  %v7669_v25 = vpop.permute.xlu0 %7668 }
 0x878   : > { %v7673_v24 = vmul.f32 %v7672_v43, %v7669_v25  ;;  %v7510_v34 = vadd.f32 %v7508_v59, %v7500_v38  ;;  %v7690_v38 = vstv %s14620_s5  ;;  %s14879_s5 = sld [smem:[#allocation5 + $0x19]] }
 0x879   : > { %8078 = vrot.lane.b32.xlu1 %v14507_v22, %s15687_s0  ;;  %8192 = vrot.lane.b32.xlu0 %v14541_v15, %s15690_s7 }
 0x87b   : > { %v14592_v62 = vpop.permute.xlu1 %7572  ;;  %v7679_v42 = vpop.permute.xlu0 %7678 }
 0x87d   : > { %8088 = vrot.lane.b32.xlu1 %v14507_v22, %s15689_s4  ;;  %8202 = vrot.lane.b32.xlu0 %v14541_v15, %s15691_s11  ;;  %v7635_v22 = vadd.f32 %v7633_v28, %v7625_v23  ;;  %v7682_v23 = vstv %s14594_s2  ;;  %s14859_s2 = sld [smem:[#allocation5 + $0x15]] }
 0x87e   : > { %v7683_v52 = vmul.f32 %v7682_v23, %v7679_v42 }
 0x87f   : > { %v14610_v58 = vpop.permute.xlu1 %7582  ;;  %v7697_v35 = vpop.permute.xlu0 %7696  ;;  %v7645_v41 = vadd.f32 %v7643_v54, %v7635_v22  ;;  %v7528_v54 = vmul.f32 %v15711_v18, %v14516_v16  ;;  %v7520_v22 = vadd.f32 %v7518_v14, %v7510_v34  ;;  %v7700_v14 = vstv %s14632_s6  ;;  %s14898_s6 = sld [smem:[#allocation5 + $0x1d]] }
 0x880   : > { %v7691_v34 = vmul.f32 %v7690_v38, %v14191_v8  ;;  %v7710_v18 = vstv %s14641_s29  ;;  %s14916_s29 = sld [smem:[#allocation5 + $0x21]] }
 0x881   : > { %8106 = vrot.lane.b32.xlu1 %v14617_v32, %s15686_s13  ;;  %8212 = vrot.lane.b32.xlu0 %v14541_v15, %s15687_s0  ;;  %v7655_v30 = vadd.f32 %v7653_v36, %v7645_v41  ;;  %v15712_v36 = vstv %s14403_s30  ;;  %v14659_v41 = vld [vmem:[#allocation4 + $0x1e] sm:$0xff]  ;;  %v7530_v16 = vadd.f32 %v7528_v54, %v7520_v22  ;;  %s14672_s30 = sld [smem:[#allocation5 + $0x50]] }
 0x882   : > { %v7538_v3 = vmul.f32 %v15712_v36, %v14534_v4  ;;  %v15714_v36 = vstv %s14425_s15  ;;  %s14707_s15 = sld [smem:[#allocation5 + $0x54]] }
 0x883   : > { %v14634_v28 = vpop.permute.xlu1 %7592  ;;  %v7707_v63 = vpop.permute.xlu0 %7706  ;;  %v7665_v7 = vadd.f32 %v7663_v33, %v7655_v30  ;;  %v15713_v30 = vstv %s14414_s8  ;;  %s14682_s8 = sld [smem:[#allocation5 + $0x52]] }
 0x884   : > { %v7548_v42 = vmul.f32 %v15713_v30, %v14557_v56  ;;  %v7540_v27 = vadd.f32 %v7538_v3, %v7530_v16  ;;  %v7556_v3 = vmul.f32 %v15714_v36, %v14173_v1  ;;  %v15594_v16 = vstv %s14666_s27 }
 0x885   : > { %8116 = vrot.lane.b32.xlu1 %v14617_v32, %s15688_s3  ;;  %8222 = vrot.lane.b32.xlu0 %v14541_v15, %s15689_s4  ;;  %v7675_v59 = vadd.f32 %v7673_v24, %v7665_v7  ;;  %v7701_v7 = vmul.f32 %v7700_v14, %v7697_v35  ;;  %v7566_v30 = vmul.f32 %v7564_v61, %v14576_v40  ;;  %v15715_v40 = vstv %s14473_s17  ;;  %s14765_s17 = sld [smem:[#allocation5 + $0x60]] }
 0x886   : > { %v7550_v56 = vadd.f32 %v7548_v42, %v7540_v27 }
 0x887   : > { %v14652_v5 = vpop.permute.xlu1 %7602  ;;  %v7717_v25 = vpop.permute.xlu0 %7716  ;;  %v7685_v4 = vadd.f32 %v7683_v52, %v7675_v59  ;;  %v7720_v52 = vstv %s14654_s14  ;;  %v7711_v59 = vmul.f32 %v7710_v18, %v7707_v63  ;;  %v7740_v1 = vstv %s14672_s30  ;;  %s14934_s14 = sld [smem:[#allocation5 + $0x25]] }
 0x888   : > { %v7558_v35 = vadd.f32 %v7556_v3, %v7550_v56  ;;  %s14962_s30 = sld [smem:[#allocation5 + $0x2b]] }
 0x889   : > { %8126 = vrot.lane.b32.xlu1 %v14617_v32, %s15690_s7  ;;  %8240 = vrot.lane.b32.xlu0 %v14659_v41, %s15686_s13  ;;  %v7693_v54 = vadd.f32 %v7691_v34, %v7685_v4  ;;  %v7721_v4 = vmul.f32 %v7720_v52, %v7717_v25  ;;  %v7576_v34 = vmul.f32 %v7574_v48, %v14592_v62  ;;  %v7750_v3 = vstv %s14682_s8  ;;  %s14970_s8 = sld [smem:[#allocation5 + $0x2d]] }
 0x88a   : > { %v7568_v61 = vadd.f32 %v7566_v30, %v7558_v35  ;;  %v7586_v25 = vmul.f32 %v15715_v40, %v14610_v58  ;;  %v14733_v30 = vld [vmem:[#allocation4 + $0x25] sm:$0xff] }
 0x88b   : > { %v7613_v24 = vpop.permute.xlu1 %7612  ;;  %v7727_v33 = vpop.permute.xlu0 %7726  ;;  %v7703_v42 = vadd.f32 %v7701_v7, %v7693_v54 }
 0x88c   : > { %v7731_v56 = vmul.f32 %v15594_v16, %v7727_v33  ;;  %v7578_v7 = vadd.f32 %v7576_v34, %v7568_v61 }
 0x88d   : > { %8136 = vrot.lane.b32.xlu1 %v14617_v32, %s15691_s11  ;;  %8250 = vrot.lane.b32.xlu0 %v14659_v41, %s15688_s3  ;;  %v7713_v36 = vadd.f32 %v7711_v59, %v7703_v42  ;;  %v15716_v59 = vstv %s14490_s19  ;;  %s14773_s19 = sld [smem:[#allocation5 + $0x1]] }
 0x88e   : > { %v7596_v42 = vmul.f32 %v15716_v59, %v14634_v28  ;;  %v7588_v58 = vadd.f32 %v7586_v25, %v7578_v7  ;;  %v7606_v28 = vmul.f32 %v7604_v11, %v14652_v5 }
 0x88f   : > { %v14687_v22 = vpop.permute.xlu1 %7630  ;;  %v7737_v8 = vpop.permute.xlu0 %7736  ;;  %v7723_v54 = vadd.f32 %v7721_v4, %v7713_v36  ;;  %v7758_v4 = vstv %s14707_s15  ;;  %s14980_s15 = sld [smem:[#allocation5 + $0x2f]] }
 0x890   : > { %v7741_v48 = vmul.f32 %v7740_v1, %v7737_v8  ;;  %v7598_v36 = vadd.f32 %v7596_v42, %v7588_v58  ;;  %v7759_v5 = vmul.f32 %v7758_v4, %v14239_v31  ;;  %v7788_v42 = vstv %s14739_s22  ;;  %s15004_s22 = sld [smem:[#allocation5 + $0x35]] }
 0x891   : > { %8146 = vrot.lane.b32.xlu1 %v14617_v32, %s15687_s0  ;;  %8260 = vrot.lane.b32.xlu0 %v14659_v41, %s15690_s7  ;;  %v7733_v16 = vadd.f32 %v7731_v56, %v7723_v54  ;;  %v15717_v56 = vstv %s14510_s25  ;;  %v7768_v54 = vstv %s14719_s9  ;;  %v7624_v31 = vmul.f32 %v7622_v37, %v14217_v55  ;;  %s14790_s25 = sld [smem:[#allocation5 + $0x5]] }
 0x892   : > { %v7616_v61 = vmul.f32 %v15717_v56, %v7613_v24  ;;  %v7608_v11 = vadd.f32 %v7606_v28, %v7598_v36  ;;  %v7798_v28 = vstv %s14745_s23  ;;  %v15718_v36 = vstv %s14544_s12  ;;  %s14803_s12 = sld [smem:[#allocation5 + $0x9]] }
 0x893   : > { %v14705_v27 = vpop.permute.xlu1 %7640  ;;  %v7747_v63 = vpop.permute.xlu0 %7746  ;;  %v7743_v8 = vadd.f32 %v7741_v48, %v7733_v16  ;;  %v7778_v16 = vstv %s14726_s16  ;;  %v7634_v56 = vmul.f32 %v15718_v36, %v14687_v22  ;;  %v7808_v55 = vstv %s14754_s24  ;;  %s14986_s9 = sld [smem:[#allocation5 + $0x31]] }
 0x894   : > { %v7751_v35 = vmul.f32 %v7750_v3, %v7747_v63  ;;  %v7618_v48 = vadd.f32 %v7616_v61, %v7608_v11  ;;  %v15719_v37 = vstv %s14555_s18  ;;  %s14811_s18 = sld [smem:[#allocation5 + $0xb]] }
 0x895   : > { %8156 = vrot.lane.b32.xlu1 %v14617_v32, %s15689_s4  ;;  %8270 = vrot.lane.b32.xlu0 %v14659_v41, %s15691_s11  ;;  %s14996_s16 = sld [smem:[#allocation5 + $0x33]] }
 0x896   : > { %v7753_v40 = vadd.f32 %v7751_v35, %v7743_v8  ;;  %s15017_s23 = sld [smem:[#allocation5 + $0x37]] }
 0x897   : > { %v7651_v62 = vpop.permute.xlu1 %7650  ;;  %v7765_v33 = vpop.permute.xlu0 %7764  ;;  %s15026_s24 = sld [smem:[#allocation5 + $0x39]] }
 0x898   : > { %v7761_v7 = vadd.f32 %v7759_v5, %v7753_v40  ;;  %v7769_v59 = vmul.f32 %v7768_v54, %v7765_v33  ;;  %v7626_v33 = vadd.f32 %v7624_v31, %v7618_v48 }
 0x899   : > { %8174 = vrot.lane.b32.xlu1 %v14733_v30, %s15686_s13  ;;  %8280 = vrot.lane.b32.xlu0 %v14659_v41, %s15687_s0 }
 0x89a   : > { %v7771_v61 = vadd.f32 %v7769_v59, %v7761_v7  ;;  %v15720_v7 = vstv %s14564_s21  ;;  %s14820_s21 = sld [smem:[#allocation5 + $0xd]] }
 0x89b   : > { %v7661_v34 = vpop.permute.xlu1 %7660  ;;  %v7775_v63 = vpop.permute.xlu0 %7774  ;;  %v7654_v59 = vmul.f32 %v15720_v7, %v7651_v62  ;;  %v7836_v7 = vstv %s14780_s20  ;;  %s15061_s20 = sld [smem:[#allocation5 + $0x3f]] }
 0x89c   : > { %v7779_v35 = vmul.f32 %v7778_v16, %v7775_v63  ;;  %v7644_v63 = vmul.f32 %v15719_v37, %v14705_v27  ;;  %v7818_v27 = vstv %s14765_s17  ;;  %s15039_s17 = sld [smem:[#allocation5 + $0x3b]] }
 0x89d   : > { %8184 = vrot.lane.b32.xlu1 %v14733_v30, %s15688_s3  ;;  %8290 = vrot.lane.b32.xlu0 %v14659_v41, %s15689_s4 }
 0x89e   : > { %v7781_v11 = vadd.f32 %v7779_v35, %v7771_v61 }
 0x89f   : > { %v7671_v24 = vpop.permute.xlu1 %7670  ;;  %v7785_v25 = vpop.permute.xlu0 %7784 }
 0x8a0   : > { %v7789_v40 = vmul.f32 %v7788_v42, %v7785_v25  ;;  %v7636_v25 = vadd.f32 %v7634_v56, %v7626_v33  ;;  %v7826_v33 = vstv %s14773_s19  ;;  %v7674_v37 = vmul.f32 %v7672_v43, %v7671_v24  ;;  %s15048_s19 = sld [smem:[#allocation5 + $0x3d]] }
 0x8a1   : > { %8194 = vrot.lane.b32.xlu1 %v14733_v30, %s15690_s7  ;;  %v7846_v43 = vstv %s14790_s25  ;;  %s15070_s25 = sld [smem:[#allocation5 + $0x41]] }
 0x8a2   : > { %v7791_v31 = vadd.f32 %v7789_v40, %v7781_v11  ;;  %v7646_v35 = vadd.f32 %v7644_v63, %v7636_v25  ;;  %v10746_v63 = vld [vmem:[#allocation4 + $0x18] sm:$0xff] }
 0x8a3   : > { %v7681_v58 = vpop.permute.xlu1 %7680  ;;  %v7795_v8 = vpop.permute.xlu0 %7794 }
 0x8a4   : > { %v7799_v5 = vmul.f32 %v7798_v28, %v7795_v8  ;;  %v7664_v8 = vmul.f32 %v7662_v10, %v7661_v34  ;;  %v7656_v40 = vadd.f32 %v7654_v59, %v7646_v35  ;;  %v7684_v34 = vmul.f32 %v7682_v23, %v7681_v58  ;;  %v14827_v23 = vld [vmem:[#allocation4 + $0x26] sm:$0xff] }
 0x8a5   : > { %8204 = vrot.lane.b32.xlu1 %v14733_v30, %s15691_s11  ;;  %v7856_v58 = vstv %s14796_s26  ;;  %s15082_s26 = sld [smem:[#allocation5 + $0x43]] }
 0x8a6   : > { %v7801_v61 = vadd.f32 %v7799_v5, %v7791_v31  ;;  %v7666_v10 = vadd.f32 %v7664_v8, %v7656_v40  ;;  %v7827_v5 = vmul.f32 %v10746_v63, %v7826_v33  ;;  %v7837_v31 = vmul.f32 %v7836_v7, %v14057_v29 }
 0x8a7   : > { %v7699_v22 = vpop.permute.xlu1 %7698  ;;  %v7805_v48 = vpop.permute.xlu0 %7804  ;;  %v7847_v8 = vmul.f32 %v7846_v43, %v14063_v50  ;;  %v7866_v29 = vstv %s14803_s12  ;;  %v7876_v50 = vstv %s14811_s18  ;;  %s15091_s12 = sld [smem:[#allocation5 + $0x45]] }
 0x8a8   : > { %v7809_v36 = vmul.f32 %v7808_v55, %v7805_v48  ;;  %s15102_s18 = sld [smem:[#allocation5 + $0x47]] }
 0x8a9   : > { %8214 = vrot.lane.b32.xlu1 %v14733_v30, %s15687_s0 }
 0x8aa   : > { %v7811_v11 = vadd.f32 %v7809_v36, %v7801_v61  ;;  %v7676_v36 = vadd.f32 %v7674_v37, %v7666_v10 }
 0x8ab   : > { %v7709_v62 = vpop.permute.xlu1 %7708  ;;  %v7815_v56 = vpop.permute.xlu0 %7814 }
 0x8ac   : > { %v7819_v48 = vmul.f32 %v7818_v27, %v7815_v56  ;;  %v7686_v61 = vadd.f32 %v7684_v34, %v7676_v36  ;;  %v7867_v34 = vmul.f32 %v7866_v29, %v14075_v51  ;;  %v7712_v36 = vmul.f32 %v7710_v18, %v7709_v62 }
 0x8ad   : > { %8224 = vrot.lane.b32.xlu1 %v14733_v30, %s15689_s4  ;;  %v7894_v51 = vstv %s14830_s1  ;;  %s15122_s1 = sld [smem:[#allocation5 + $0x4b]] }
 0x8ae   : > { %v7821_v25 = vadd.f32 %v7819_v48, %v7811_v11  ;;  %v7857_v11 = vmul.f32 %v7856_v58, %v14069_v9  ;;  %v7692_v48 = vmul.f32 %v7690_v38, %v14300_v12 }
 0x8af   : > { %v7719_v24 = vpop.permute.xlu1 %7718  ;;  %v14822_v59 = vpop.permute.xlu0 %8018 }
 0x8b0   : > { %v7829_v35 = vadd.f32 %v7827_v5, %v7821_v25  ;;  %v7694_v63 = vadd.f32 %v7692_v48, %v7686_v61  ;;  %v7702_v5 = vmul.f32 %v7700_v14, %v7699_v22  ;;  %v7886_v25 = vstv %s14820_s21  ;;  %s15111_s21 = sld [smem:[#allocation5 + $0x49]] }
 0x8b1   : > { %8242 = vrot.lane.b32.xlu1 %v14827_v23, %s15686_s13  ;;  %s14849_s13 = sld [smem:[#allocation5 + $0x13]]  ;;  %v7887_v14 = vmul.f32 %v7886_v25, %v14089_v20  ;;  %v7904_v61 = vstv %s14838_s10  ;;  %v15721_v20 = vstv %s14666_s27 }
 0x8b2   : > { %v7839_v56 = vadd.f32 %v7837_v31, %v7829_v35  ;;  %v7877_v31 = vmul.f32 %v7876_v50, %v14083_v21  ;;  %v7704_v22 = vadd.f32 %v7702_v5, %v7694_v63  ;;  %v7722_v21 = vmul.f32 %v7720_v52, %v7719_v24  ;;  %s14952_s27 = sld [smem:[#allocation5 + $0x29]] }
 0x8b3   : > { %v7729_v40 = vpop.permute.xlu1 %7728  ;;  %v14840_v37 = vpop.permute.xlu0 %8036  ;;  %v7905_v52 = vmul.f32 %v7904_v61, %v14097_v0  ;;  %s15131_s10 = sld [smem:[#allocation5 + $0x4d]] }
 0x8b4   : > { %v7849_v10 = vadd.f32 %v7847_v8, %v7839_v56  ;;  %v7714_v56 = vadd.f32 %v7712_v36, %v7704_v22 }
 0x8b5   : > { %8252 = vrot.lane.b32.xlu1 %v14827_v23, %s15688_s3  ;;  %s14868_s3 = sld [smem:[#allocation5 + $0x17]] }
 0x8b6   : > { %v7859_v9 = vadd.f32 %v7857_v11, %v7849_v10  ;;  %v10747_v11 = vld [vmem:[#allocation4 + $0x19] sm:$0xff]  ;;  %v7724_v5 = vadd.f32 %v7722_v21, %v7714_v56 }
 0x8b7   : > { %v7739_v12 = vpop.permute.xlu1 %7738  ;;  %v14861_v38 = vpop.permute.xlu0 %8046  ;;  %v7895_v48 = vmul.f32 %v10747_v11, %v7894_v51  ;;  %v7914_v63 = vstv %s14849_s13  ;;  %s15142_s13 = sld [smem:[#allocation5 + $0x4f]] }
 0x8b8   : > { %v7869_v35 = vadd.f32 %v7867_v34, %v7859_v9  ;;  %v7732_v34 = vmul.f32 %v15721_v20, %v7729_v40  ;;  %v7742_v9 = vmul.f32 %v7740_v1, %v7739_v12 }
 0x8b9   : > { %8262 = vrot.lane.b32.xlu1 %v14827_v23, %s15690_s7  ;;  %s14888_s7 = sld [smem:[#allocation5 + $0x1b]] }
 0x8ba   : > { %v7879_v8 = vadd.f32 %v7877_v31, %v7869_v35  ;;  %v7924_v31 = vstv %s14859_s2  ;;  %v7915_v35 = vmul.f32 %v7914_v63, %v14103_v49  ;;  %v7734_v22 = vadd.f32 %v7732_v34, %v7724_v5  ;;  %s15152_s2 = sld [smem:[#allocation5 + $0x51]] }
 0x8bb   : > { %v7749_v18 = vpop.permute.xlu1 %7748  ;;  %v14881_v62 = vpop.permute.xlu0 %8056  ;;  %v7925_v1 = vmul.f32 %v7924_v31, %v14111_v39  ;;  %v7944_v49 = vstv %s14879_s5  ;;  %v7962_v34 = vstv %s14898_s6  ;;  %s15172_s5 = sld [smem:[#allocation5 + $0x55]] }
 0x8bc   : > { %v7889_v10 = vadd.f32 %v7887_v14, %v7879_v8  ;;  %v7752_v0 = vmul.f32 %v7750_v3, %v7749_v18  ;;  %v7934_v8 = vstv %s14868_s3  ;;  %v7744_v21 = vadd.f32 %v7742_v9, %v7734_v22  ;;  %s15161_s3 = sld [smem:[#allocation5 + $0x53]] }
 0x8bd   : > { %8272 = vrot.lane.b32.xlu1 %v14827_v23, %s15691_s11  ;;  %s14908_s11 = sld [smem:[#allocation5 + $0x1f]]  ;;  %v7935_v18 = vmul.f32 %v7934_v8, %v14119_v26  ;;  %v7945_v39 = vmul.f32 %v7944_v49, %v14129_v13  ;;  %v7760_v26 = vmul.f32 %v7758_v4, %v14400_v6  ;;  %v10748_v4 = vld [vmem:[#allocation4 + $0x1a] sm:$0xff] }
 0x8be   : > { %v7897_v24 = vadd.f32 %v7895_v48, %v7889_v10  ;;  %v7754_v48 = vadd.f32 %v7752_v0, %v7744_v21  ;;  %v7963_v22 = vmul.f32 %v10748_v4, %v7962_v34  ;;  %s15190_s6 = sld [smem:[#allocation5 + $0x59]] }
 0x8bf   : > { %v7767_v40 = vpop.permute.xlu1 %7766  ;;  %v14900_v36 = vpop.permute.xlu0 %8066  ;;  %v7954_v10 = vstv %s14888_s7  ;;  %s15180_s7 = sld [smem:[#allocation5 + $0x57]] }
 0x8c0   : > { %v7907_v14 = vadd.f32 %v7905_v52, %v7897_v24  ;;  %v7955_v5 = vmul.f32 %v7954_v10, %v14137_v44  ;;  %v7770_v13 = vmul.f32 %v7768_v54, %v7767_v40 }
 0x8c1   : > { %8282 = vrot.lane.b32.xlu1 %v14827_v23, %s15687_s0  ;;  %s14924_s0 = sld [smem:[#allocation5 + $0x23]] }
 0x8c2   : > { %v7917_v12 = vadd.f32 %v7915_v35, %v7907_v14  ;;  %v7762_v35 = vadd.f32 %v7760_v26, %v7754_v48 }
 0x8c3   : > { %v7777_v56 = vpop.permute.xlu1 %7776  ;;  %v14918_v3 = vpop.permute.xlu0 %8076  ;;  %v7972_v14 = vstv %s14908_s11  ;;  %s15198_s11 = sld [smem:[#allocation5 + $0x5b]] }
 0x8c4   : > { %v7927_v11 = vadd.f32 %v7925_v1, %v7917_v12  ;;  %v7780_v0 = vmul.f32 %v7778_v16, %v7777_v56  ;;  %v7982_v1 = vstv %s14916_s29  ;;  %v7973_v54 = vmul.f32 %v7972_v14, %v14147_v47  ;;  %s15206_s29 = sld [smem:[#allocation5 + $0x5d]] }
 0x8c5   : > { %8292 = vrot.lane.b32.xlu1 %v14827_v23, %s15689_s4  ;;  %s14945_s4 = sld [smem:[#allocation5 + $0x27]]  ;;  %v7772_v21 = vadd.f32 %v7770_v13, %v7762_v35  ;;  %v7983_v16 = vmul.f32 %v7982_v1, %v14155_v46 }
 0x8c6   : > { %v7937_v20 = vadd.f32 %v7935_v18, %v7927_v11 }
 0x8c7   : > { %v7787_v52 = vpop.permute.xlu1 %7786  ;;  %v14937_v24 = vpop.permute.xlu0 %8086  ;;  %v7992_v11 = vstv %s14924_s0  ;;  %v7782_v48 = vadd.f32 %v7780_v0, %v7772_v21  ;;  %s15213_s0 = sld [smem:[#allocation5 + $0x5f]] }
 0x8c8   : > { %v7947_v9 = vadd.f32 %v7945_v39, %v7937_v20  ;;  %v7790_v18 = vmul.f32 %v7788_v42, %v7787_v52  ;;  %v8002_v20 = vstv %s14934_s14  ;;  %v7993_v42 = vmul.f32 %v7992_v11, %v14163_v17  ;;  %s15228_s14 = sld [smem:[#allocation5 + $0x61]] }
 0x8ca   : > { %v7957_v6 = vadd.f32 %v7955_v5, %v7947_v9  ;;  %v7792_v5 = vadd.f32 %v7790_v18, %v7782_v48  ;;  %v10749_v18 = vld [vmem:[#allocation4 + $0x20] sm:$0xff]  ;;  %v7838_v48 = vmul.f32 %v7836_v7, %v14109_v2  ;;  %v8060_v7 = vstv %s14986_s9 }
 0x8cb   : > { %v7797_v44 = vpop.permute.xlu1 %7796  ;;  %v14954_v12 = vpop.permute.xlu0 %8104  ;;  %v8012_v9 = vstv %s14945_s4  ;;  %s15739_s4 = sld [smem:[#allocation19_spill]] }
 0x8cc   : > { %v7965_v40 = vadd.f32 %v7963_v22, %v7957_v6  ;;  %v7800_v39 = vmul.f32 %v7798_v28, %v7797_v44  ;;  %v8003_v28 = vmul.f32 %v8002_v20, %v14171_v57  ;;  %v8022_v6 = vstv %s14952_s27  ;;  %s310_s27 = sand.u32 1, %s10824_s28  }
 0x8cd   : > { %v8030_v57 = vstv %s14962_s30  ;;  %s8741_s30 = sshll.u32 %s310_s27, 8 }
 0x8ce   : > { %v7975_v56 = vadd.f32 %v7973_v54, %v7965_v40  ;;  %v7802_v13 = vadd.f32 %v7800_v39, %v7792_v5  ;;  %v8023_v40 = vmul.f32 %v8022_v6, %v14822_v59  ;;  %v8031_v59 = vmul.f32 %v8030_v57, %v14354_v60 }
 0x8cf   : > { %v7807_v47 = vpop.permute.xlu1 %7806  ;;  %v14972_v26 = vpop.permute.xlu0 %8114 }
 0x8d0   : > { %v7985_v52 = vadd.f32 %v7983_v16, %v7975_v56  ;;  %v7810_v46 = vmul.f32 %v7808_v55, %v7807_v47  ;;  %v8013_v55 = vmul.f32 %v8012_v9, %v14181_v53  ;;  %v7828_v53 = vmul.f32 %v10749_v18, %v7826_v33 }
 0x8d1   : > { %v8040_v16 = vstv %s14970_s8  ;;  %v7848_v33 = vmul.f32 %v7846_v43, %v14117_v19  ;;  %s15323_s8 = scalar_lea.vmem [#allocation8], %s8741_s30 }
 0x8d2   : > { %v7995_v35 = vadd.f32 %v7993_v42, %v7985_v52  ;;  %v7812_v0 = vadd.f32 %v7810_v46, %v7802_v13  ;;  %v8050_v42 = vstv %s14980_s15  ;;  %v8041_v5 = vmul.f32 %v8040_v16, %v14840_v37  ;;  %s15768_s15 = sld [smem:[#allocation14_spill]] }
 0x8d3   : > { %v7817_v17 = vpop.permute.xlu1 %7816  ;;  %v14988_v4 = vpop.permute.xlu0 %8124  ;;  %v8051_v43 = vmul.f32 %v8050_v42, %v14861_v38  ;;  %v8070_v13 = vstv %s14996_s16 }
 0x8d4   : > { %v8005_v22 = vadd.f32 %v8003_v28, %v7995_v35  ;;  %v7820_v44 = vmul.f32 %v7818_v27, %v7817_v17  ;;  %v15722_v28 = vld [vmem:[#allocation54_spill] sm:$0xff]  ;;  %v15723_v17 = vld [vmem:[#allocation55_spill] sm:$0xff] }
 0x8d5   : > { %v7858_v35 = vmul.f32 %v7856_v58, %v15722_v28 }
 0x8d6   : > { %v8015_v54 = vadd.f32 %v8013_v55, %v8005_v22  ;;  %v7822_v21 = vadd.f32 %v7820_v44, %v7812_v0  ;;  %v7868_v55 = vmul.f32 %v7866_v29, %v15723_v17  ;;  %v8061_v0 = vmul.f32 %v8060_v7, %v14881_v62 }
 0x8d7   : > { %v15006_v56 = vpop.permute.xlu1 %8020  ;;  %v15008_v27 = vpop.permute.xlu0 %8134  ;;  %v8080_v44 = vstv %s15004_s22  ;;  %v8071_v29 = vmul.f32 %v8070_v13, %v14900_v36  ;;  %v8090_v62 = vstv %s15017_s23  ;;  %s8661_s22 = sshll.u32 %s15323_s8, 4  ;;  %s15448_s22 = int_to_ptr.vmem [resolvable:$true] %s8661_s22 }
 0x8d8   : > { %v8025_v39 = vadd.f32 %v8023_v40, %v8015_v54  ;;  %v7830_v47 = vadd.f32 %v7828_v53, %v7822_v21  ;;  %v15724_v40 = vld [vmem:[#allocation56_spill] sm:$0xff]  ;;  %s10171_s16 = sshll.u32 %s15768_s15, 12 }
 0x8d9   : > { %v7878_v21 = vmul.f32 %v7876_v50, %v15724_v40 }
 0x8da   : > { %v8033_v52 = vadd.f32 %v8031_v59, %v8025_v39  ;;  %v7840_v2 = vadd.f32 %v7838_v48, %v7830_v47  ;;  %v15725_v48 = vld [vmem:[#allocation57_spill] sm:$0xff]  ;;  %v8081_v47 = vmul.f32 %v8080_v44, %v14918_v3 }
 0x8db   : > { %v15028_v60 = vpop.permute.xlu1 %8038  ;;  %v15030_v46 = vpop.permute.xlu0 %8144  ;;  %v7888_v39 = vmul.f32 %v7886_v25, %v15725_v48  ;;  %v10750_v25 = vld [vmem:[#allocation4 + $0x21] sm:$0xff] }
 0x8dc   : > { %v8043_v19 = vadd.f32 %v8041_v5, %v8033_v52  ;;  %v7850_v37 = vadd.f32 %v7848_v33, %v7840_v2  ;;  %v8098_v33 = vstv %s15026_s24  ;;  %v8091_v2 = vmul.f32 %v8090_v62, %v14937_v24 }
 0x8dd   : > { %v7896_v28 = vmul.f32 %v10750_v25, %v7894_v51  ;;  %v8099_v17 = vmul.f32 %v8098_v33, %v14435_v45  ;;  %v8128_v45 = vstv %s15061_s20  ;;  %v15730_v25 = vld [vmem:[#allocation62_spill] sm:$0xff]  ;;  %s15456_s20 = scalar_lea.sflag [#allocation6], %s310_s27 }
 0x8de   : > { %v8053_v22 = vadd.f32 %v8051_v43, %v8043_v19  ;;  %v7860_v58 = vadd.f32 %v7858_v35, %v7850_v37  ;;  %v8108_v35 = vstv %s15039_s17  ;;  %v15726_v19 = vld [vmem:[#allocation58_spill] sm:$0xff]  ;;  %s15774_s17 = sld [smem:[#allocation77_spill]] }
 0x8df   : > { %v15050_v38 = vpop.permute.xlu1 %8048  ;;  %v15052_v54 = vpop.permute.xlu0 %8154  ;;  %v7906_v43 = vmul.f32 %v7904_v61, %v15726_v19  ;;  %v8109_v61 = vmul.f32 %v8108_v35, %v14954_v12 }
 0x8e0   : > { %v8063_v18 = vadd.f32 %v8061_v0, %v8053_v22  ;;  %v7870_v53 = vadd.f32 %v7868_v55, %v7860_v58  ;;  %v8118_v55 = vstv %s15048_s19  ;;  %v15727_v0 = vld [vmem:[#allocation59_spill] sm:$0xff] }
 0x8e1   : > { %v7916_v58 = vmul.f32 %v7914_v63, %v15727_v0  ;;  %v8119_v48 = vmul.f32 %v8118_v55, %v14972_v26  ;;  %v8148_v26 = vstv %s15082_s26  ;;  %s10846_s26 = smov [#allocation8]  }
 0x8e2   : > { %v8073_v59 = vadd.f32 %v8071_v29, %v8063_v18  ;;  %v7880_v50 = vadd.f32 %v7878_v21, %v7870_v53  ;;  %v15728_v18 = vld [vmem:[#allocation60_spill] sm:$0xff] }
 0x8e3   : > { %v15072_v36 = vpop.permute.xlu1 %8058  ;;  %v15074_v52 = vpop.permute.xlu0 %8172  ;;  %v7926_v29 = vmul.f32 %v7924_v31, %v15728_v18  ;;  %v8129_v31 = vmul.f32 %v8128_v45, %v14988_v4 }
 0x8e4   : > { %v8083_v5 = vadd.f32 %v8081_v47, %v8073_v59  ;;  %v7890_v3 = vadd.f32 %v7888_v39, %v7880_v50  ;;  %v8138_v39 = vstv %s15070_s25  ;;  %v15729_v47 = vld [vmem:[#allocation61_spill] sm:$0xff]  ;;  %s15446_s19 = scalar_lea.hbm %s15774_s17, %s10171_s16  ;;  %s10768_s25 = scalar_lea.vmem %s15448_s22, 4096 }
 0x8e5   : > { %v7936_v50 = vmul.f32 %v7934_v8, %v15729_v47  ;;  %v8139_v8 = vmul.f32 %v8138_v39, %v15008_v27  ;;  %v10751_v27 = vld [vmem:[#allocation4 + $0x22] sm:$0xff]  ;;  %p10769_p10 = scmp.ne.s32.totalorder %s15448_s22, %s10768_s25 }
 0x8e6   : > { %v8093_v37 = vadd.f32 %v8091_v2, %v8083_v5  ;;  %v7898_v24 = vadd.f32 %v7896_v28, %v7890_v3  ;;  %v7946_v28 = vmul.f32 %v7944_v49, %v15730_v25  ;;  %v8149_v49 = vmul.f32 %v8148_v26, %v15030_v46 }
 0x8e7   : > { %v15093_v51 = vpop.permute.xlu1 %8068  ;;  %v8183_v22 = vpop.permute.xlu0 %8182  ;;  %p10770_p11 = pnand %p10769_p10, %p10932_p5 }
 0x8e8   : > { %v8101_v40 = vadd.f32 %v8099_v17, %v8093_v37  ;;  %v7908_v21 = vadd.f32 %v7906_v43, %v7898_v24  ;;  %v8158_v43 = vstv %s15091_s12  ;;  %v15731_v17 = vld [vmem:[#allocation63_spill] sm:$0xff]  ;;  %s10772_s12 = sshll.u32 %s10846_s26, 4  ;;  %s10773_s12 = int_to_ptr.vmem [resolvable:$false] %s10772_s12 }
 0x8e9   : > { %v7956_v24 = vmul.f32 %v7954_v10, %v15731_v17  ;;  %v8159_v10 = vmul.f32 %v8158_v43, %v15052_v54  ;;  %v15733_v54 = vld [vmem:[#allocation65_spill] sm:$0xff]  ;;  %p10771_p12 = pneg %p10770_p11  ;;  %p10775_p13 = scmp.lt.s32.totalorder %s15448_s22, %s10773_s12 }
 0x8ea   : > { %v8111_v53 = vadd.f32 %v8109_v61, %v8101_v40  ;;  %v7918_v63 = vadd.f32 %v7916_v58, %v7908_v21  ;;  %v8166_v40 = vstv %s15102_s18  ;;  %v7964_v61 = vmul.f32 %v10751_v27, %v7962_v34  ;;  %s10774_s18 = scalar_lea.vmem %s10773_s12, 8192 }
 0x8eb   : > { %v15113_v12 = vpop.permute.xlu1 %8078  ;;  %v8193_v59 = vpop.permute.xlu0 %8192  ;;  %p10776_p0 = scmp.lt.s32.totalorder %s10774_s18, %s10768_s25 }
 0x8ec   : > { %v8121_v5 = vadd.f32 %v8119_v48, %v8111_v53  ;;  %v7928_v2 = vadd.f32 %v7926_v29, %v7918_v63  ;;  %v8176_v29 = vstv %s15111_s21  ;;  %v15732_v48 = vld [vmem:[#allocation64_spill] sm:$0xff] }
 0x8ed   : > { %v7974_v63 = vmul.f32 %v7972_v14, %v15732_v48  ;;  %v8177_v14 = vmul.f32 %v8176_v29, %v15074_v52  ;;  %v15735_v52 = vld [vmem:[#allocation67_spill] sm:$0xff]  ;;  %p10777_p1 = por %p10776_p0, %p10775_p13 }
 0x8ee   : > { %v8131_v3 = vadd.f32 %v8129_v31, %v8121_v5  ;;  %v7938_v19 = vadd.f32 %v7936_v50, %v7928_v2  ;;  %v8167_v50 = vmul.f32 %v8166_v40, %v14541_v15  ;;  %v8186_v5 = vstv %s15122_s1  ;;  %v15734_v15 = vld [vmem:[#allocation66_spill] sm:$0xff] }
 0x8ef   : > { %v15133_v4 = vpop.permute.xlu1 %8088  ;;  %v8203_v37 = vpop.permute.xlu0 %8202  ;;  %v7984_v31 = vmul.f32 %v7982_v1, %v15733_v54  ;;  %p10778_p2 = pnand %p10777_p1, %p10771_p12 }
 0x8f0   : > { %v7948_v0 = vadd.f32 %v7946_v28, %v7938_v19  ;;  %v8141_v58 = vadd.f32 %v8139_v8, %v8131_v3  ;;  %v8196_v28 = vstv %s15131_s10  ;;  %v7994_v8 = vmul.f32 %v7992_v11, %v15734_v15 }
 0x8f1   : > { %v8216_v11 = vstv %s15152_s2 }
 0x8f2   : > { %v7958_v21 = vadd.f32 %v7956_v24, %v7948_v0  ;;  %v8151_v18 = vadd.f32 %v8149_v49, %v8141_v58  ;;  %v8187_v24 = vmul.f32 %v8186_v5, %v8183_v22  ;;  %v8206_v0 = vstv %s15142_s13  ;;  %v15736_v22 = vld [vmem:[#allocation68_spill] sm:$0xff] }
 0x8f3   : > { %v15150_v53 = vpop.permute.xlu1 %8106  ;;  %v8213_v46 = vpop.permute.xlu0 %8212  ;;  %v8004_v58 = vmul.f32 %v8002_v20, %v15735_v52  ;;  %v8207_v20 = vmul.f32 %v8206_v0, %v8203_v37 }
 0x8f4   : > { %v7966_v47 = vadd.f32 %v7964_v61, %v7958_v21  ;;  %v8161_v34 = vadd.f32 %v8159_v10, %v8151_v18  ;;  %v8197_v61 = vmul.f32 %v8196_v28, %v8193_v59  ;;  %v8014_v10 = vmul.f32 %v8012_v9, %v15736_v22 }
 0x8f5   : > { %v8217_v54 = vmul.f32 %v8216_v11, %v8213_v46  ;;  %v8234_v9 = vstv %s15172_s5 }
 0x8f6   : > { %v7976_v2 = vadd.f32 %v7974_v63, %v7966_v47  ;;  %v8169_v25 = vadd.f32 %v8167_v50, %v8161_v34  ;;  %v8226_v47 = vstv %s15161_s3  ;;  %v8024_v34 = vmul.f32 %v8022_v6, %v15006_v56 }
 0x8f7   : > { %v15170_v3 = vpop.permute.xlu1 %8116  ;;  %v8223_v19 = vpop.permute.xlu0 %8222  ;;  %v8244_v56 = vstv %s15180_s7 }
 0x8f8   : > { %v7986_v17 = vadd.f32 %v7984_v31, %v7976_v2  ;;  %v8179_v1 = vadd.f32 %v8177_v14, %v8169_v25  ;;  %v10752_v25 = vld [vmem:[#allocation4 + $0x23] sm:$0xff]  ;;  %v8227_v6 = vmul.f32 %v8226_v47, %v8223_v19  ;;  %v8052_v19 = vmul.f32 %v8050_v42, %v15050_v38 }
 0x8f9   : > { %v8032_v14 = vmul.f32 %v10752_v25, %v8030_v57 }
 0x8fa   : > { %v7996_v49 = vadd.f32 %v7994_v8, %v7986_v17  ;;  %v8189_v27 = vadd.f32 %v8187_v24, %v8179_v1  ;;  %v8042_v8 = vmul.f32 %v8040_v16, %v15028_v60  ;;  %v8235_v1 = vmul.f32 %v8234_v9, %v14659_v41 }
 0x8fb   : > { %v15188_v21 = vpop.permute.xlu1 %8126  ;;  %v8241_v18 = vpop.permute.xlu0 %8240  ;;  %v8254_v24 = vstv %s15190_s6  ;;  %v8264_v16 = vstv %s15198_s11  ;;  %v8062_v41 = vmul.f32 %v8060_v7, %v15072_v36  ;;  %v8082_v7 = vmul.f32 %v8080_v44, %v15113_v12 }
 0x8fc   : > { %v8006_v48 = vadd.f32 %v8004_v58, %v7996_v49  ;;  %v8199_v63 = vadd.f32 %v8197_v61, %v8189_v27  ;;  %v8245_v27 = vmul.f32 %v8244_v56, %v8241_v18  ;;  %v8072_v18 = vmul.f32 %v8070_v13, %v15093_v51 }
 0x8fd   : > { %v8092_v13 = vmul.f32 %v8090_v62, %v15133_v4  ;;  %v8100_v44 = vmul.f32 %v8098_v33, %v14617_v32  ;;  %v8130_v33 = vmul.f32 %v8128_v45, %v15188_v21  ;;  %v8168_v45 = vmul.f32 %v8166_v40, %v14733_v30 }
 0x8fe   : > { %v8016_v59 = vadd.f32 %v8014_v10, %v8006_v48  ;;  %v8209_v50 = vadd.f32 %v8207_v20, %v8199_v63  ;;  %v8274_v48 = vstv %s15206_s29 }
 0x8ff   : > { %v8137_v31 = vpop.permute.xlu1 %8136  ;;  %v8251_v2 = vpop.permute.xlu0 %8250 }
 0x900   : > { %v8026_v37 = vadd.f32 %v8024_v34, %v8016_v59  ;;  %v8219_v15 = vadd.f32 %v8217_v54, %v8209_v50  ;;  %v8255_v22 = vmul.f32 %v8254_v24, %v8251_v2  ;;  %v8284_v59 = vstv %s15213_s0 }
 0x902   : > { %v8034_v46 = vadd.f32 %v8032_v14, %v8026_v37  ;;  %v8229_v17 = vadd.f32 %v8227_v6, %v8219_v15  ;;  %v8294_v14 = vstv %s15228_s14 }
 0x903   : > { %v8147_v57 = vpop.permute.xlu1 %8146  ;;  %v8261_v52 = vpop.permute.xlu0 %8260 }
 0x904   : > { %v8044_v58 = vadd.f32 %v8042_v8, %v8034_v46  ;;  %v8237_v49 = vadd.f32 %v8235_v1, %v8229_v17  ;;  %v8265_v20 = vmul.f32 %v8264_v16, %v8261_v52  ;;  %v8110_v8 = vmul.f32 %v8108_v35, %v15150_v53 }
 0x905   : > { %v8120_v1 = vmul.f32 %v8118_v55, %v15170_v3  ;;  %v8140_v35 = vmul.f32 %v8138_v39, %v8137_v31 }
 0x906   : > { %v8054_v60 = vadd.f32 %v8052_v19, %v8044_v58  ;;  %v8247_v61 = vadd.f32 %v8245_v27, %v8237_v49 }
 0x907   : > { %v8157_v10 = vpop.permute.xlu1 %8156  ;;  %v8271_v42 = vpop.permute.xlu0 %8270 }
 0x908   : > { %v8064_v38 = vadd.f32 %v8062_v41, %v8054_v60  ;;  %v8257_v63 = vadd.f32 %v8255_v22, %v8247_v61  ;;  %v8275_v50 = vmul.f32 %v8274_v48, %v8271_v42  ;;  %v8150_v60 = vmul.f32 %v8148_v26, %v8147_v57 }
 0x909   : > { %v8160_v3 = vmul.f32 %v8158_v43, %v8157_v10 }
 0x90a   : > { %v8074_v34 = vadd.f32 %v8072_v18, %v8064_v38  ;;  %v8267_v36 = vadd.f32 %v8265_v20, %v8257_v63 }
 0x90b   : > { %v8175_v54 = vpop.permute.xlu1 %8174  ;;  %v8281_v2 = vpop.permute.xlu0 %8280 }
 0x90c   : > { %v8084_v37 = vadd.f32 %v8082_v7, %v8074_v34  ;;  %v8277_v51 = vadd.f32 %v8275_v50, %v8267_v36  ;;  %v8285_v25 = vmul.f32 %v8284_v59, %v8281_v2  ;;  %v8178_v22 = vmul.f32 %v8176_v29, %v8175_v54 }
 0x90d   : > { %v8236_v34 = vmul.f32 %v8234_v9, %v14827_v23  ;;  %v15737_v9 = vld [vmem:[#allocation22_spill] sm:$0xff] }
 0x90e   : > { %v8094_v15 = vadd.f32 %v8092_v13, %v8084_v37  ;;  %v8287_v17 = vadd.f32 %v8285_v25, %v8277_v51 }
 0x90f   : > { %v8185_v12 = vpop.permute.xlu1 %8184  ;;  %v8291_v6 = vpop.permute.xlu0 %8290 }
 0x910   : > { %v8102_v46 = vadd.f32 %v8100_v44, %v8094_v15  ;;  %v8295_v62 = vmul.f32 %v8294_v14, %v8291_v6  ;;  %v8188_v42 = vmul.f32 %v8186_v5, %v8185_v12  ;;  %v15738_v12 = vld [vmem:[#allocation21_spill] sm:$0xff] }
 0x912   : > { %v8112_v4 = vadd.f32 %v8110_v8, %v8102_v46  ;;  %v8297_v52 = vadd.f32 %v8295_v62, %v8287_v17 }
 0x913   : > { %v8195_v58 = vpop.permute.xlu1 %8194 }
 0x914   : > { %v8122_v32 = vadd.f32 %v8120_v1, %v8112_v4  ;;  %v9587_v19 = vmul.f32 -1.442695, %v8297_v52  ;;  %v8198_v57 = vmul.f32 %v8196_v28, %v8195_v58  ;;  %v8357_v1 = vsub.s32 4, %v15738_v12 }
 0x916   : > { %v8132_v49 = vadd.f32 %v8130_v33, %v8122_v32  ;;  %10732 = vpow2.f32 %v9587_v19  ;;  %v8379_v32 = vsub.s32 6, %v15738_v12 }
 0x917   : > { %v8205_v53 = vpop.permute.xlu1 %8204 }
 0x918   : > { %v8142_v27 = vadd.f32 %v8140_v35, %v8132_v49  ;;  %v8208_v30 = vmul.f32 %v8206_v0, %v8205_v53  ;;  %v8390_v35 = vsub.s32 7, %v15738_v12 }
 0x91a   : > { %v8152_v55 = vadd.f32 %v8150_v60, %v8142_v27 }
 0x91b   : > { %v8215_v41 = vpop.permute.xlu1 %8214 }
 0x91c   : > { %v8162_v61 = vadd.f32 %v8160_v3, %v8152_v55  ;;  %v8218_v29 = vmul.f32 %v8216_v11, %v8215_v41 }
 0x91e   : > { %v8170_v21 = vadd.f32 %v8168_v45, %v8162_v61 }
 0x91f   : > { %v8225_v39 = vpop.permute.xlu1 %8224 }
 0x920   : > { %v8180_v31 = vadd.f32 %v8178_v22, %v8170_v21  ;;  %v8228_v5 = vmul.f32 %v8226_v47, %v8225_v39  ;;  %v8520_v39 = vld [vmem:[%s15739_s4 + $0x8] sm:$0xff] }
 0x922   : > { %v8190_v26 = vadd.f32 %v8188_v42, %v8180_v31  ;;  %v8519_v42 = vld [vmem:[%s15739_s4] sm:$0xff] }
 0x923   : > { %v10733_v43 = vpop.eup %10732  ;;  %v8243_v10 = vpop.permute.xlu1 %8242 }
 0x924   : > { %v8305_v38 = vadd.f32 1.0, %v10733_v43  ;;  %v8200_v18 = vadd.f32 %v8198_v57, %v8190_v26  ;;  %v8246_v50 = vmul.f32 %v8244_v56, %v8243_v10  ;;  %v8324_v56 = vsub.s32 1, %v15738_v12  ;;  %v15740_v57 = vld [vmem:[#allocation23_spill] sm:$0xff]  ;;  %v15741_v10 = vld [vmem:[#allocation20_spill] sm:$0xff] }
 0x926   : > { %10734 = vrcp.f32 %v8305_v38  ;;  %v8210_v40 = vadd.f32 %v8208_v30, %v8200_v18 }
 0x927   : > { %v8253_v63 = vpop.permute.xlu1 %8252 }
 0x928   : > { %v8220_v20 = vadd.f32 %v8218_v29, %v8210_v40  ;;  %v8256_v54 = vmul.f32 %v8254_v24, %v8253_v63  ;;  %v8522_v40 = vld [vmem:[%s15739_s4 + $0x18] sm:$0xff]  ;;  %v8521_v63 = vld [vmem:[%s15739_s4 + $0x10] sm:$0xff] }
 0x92a   : > { %v8230_v28 = vadd.f32 %v8228_v5, %v8220_v20 }
 0x92b   : > { %v8263_v7 = vpop.permute.xlu1 %8262 }
 0x92c   : > { %v8238_v36 = vadd.f32 %v8236_v34, %v8230_v28  ;;  %v8266_v11 = vmul.f32 %v8264_v16, %v8263_v7  ;;  %v8335_v16 = vsub.s32 2, %v15738_v12  ;;  %v15742_v34 = vld [vmem:[#allocation27_spill] sm:$0xff] }
 0x92e   : > { %v8248_v0 = vadd.f32 %v8246_v50, %v8238_v36  ;;  %v15743_v36 = vld [vmem:[#allocation25_spill] sm:$0xff] }
 0x92f   : > { %v8273_v2 = vpop.permute.xlu1 %8272 }
 0x930   : > { %v8258_v37 = vadd.f32 %v8256_v54, %v8248_v0  ;;  %v8276_v47 = vmul.f32 %v8274_v48, %v8273_v2  ;;  %v8524_v2 = vld [vmem:[%s15739_s4 + $0x28] sm:$0xff] }
 0x932   : > { %v8268_v13 = vadd.f32 %v8266_v11, %v8258_v37  ;;  %v8523_v11 = vld [vmem:[%s15739_s4 + $0x20] sm:$0xff] }
 0x933   : > { %v10735_v51 = vpop.eup %10734  ;;  %v8283_v25 = vpop.permute.xlu1 %8282 }
 0x934   : > { %v8278_v15 = vadd.f32 %v8276_v47, %v8268_v13  ;;  %v8286_v23 = vmul.f32 %v8284_v59, %v8283_v25  ;;  %v8314_v44 = vrot.slane %v10735_v51, %v15737_v9  ;;  %v8325_v8 = vrot.slane %v10735_v51, %v8324_v56  ;;  %v15744_v25 = vld [vmem:[#allocation29_spill] sm:$0xff] }
 0x935   : > { %v8336_v62 = vrot.slane %v10735_v51, %v8335_v16  ;;  %v8346_v59 = vsub.s32 3, %v15738_v12  ;;  %v8358_v52 = vrot.slane %v10735_v51, %v8357_v1  ;;  %v8380_v49 = vrot.slane %v10735_v51, %v8379_v32 }
 0x936   : > { %8320 = vbcast.lane.b32.xlu1 %v8314_v44, 264  ;;  %8316 = vbcast.lane.b32.xlu0 %v8314_v44, 256  ;;  %v8288_v6 = vadd.f32 %v8286_v23, %v8278_v15  ;;  %v8391_v53 = vrot.slane %v10735_v51, %v8390_v35  ;;  %v15745_v23 = vld [vmem:[#allocation24_spill] sm:$0xff] }
 0x937   : > { %v8293_v24 = vpop.permute.xlu1 %8292  ;;  %v8347_v4 = vrot.slane %v10735_v51, %v8346_v59 }
 0x938   : > { %v8296_v46 = vmul.f32 %v8294_v14, %v8293_v24  ;;  %v8368_v14 = vsub.s32 5, %v15738_v12 }
 0x93a   : > { %v8298_v17 = vadd.f32 %v8296_v46, %v8288_v6  ;;  %8331 = vbcast.lane.b32.xlu1 %v8325_v8, 264  ;;  %8327 = vbcast.lane.b32.xlu0 %v8325_v8, 256  ;;  %v8369_v58 = vrot.slane %v10735_v51, %v8368_v14  ;;  %v8525_v6 = vld [vmem:[%s15739_s4 + $0x30] sm:$0xff] }
 0x93c   : > { %v9588_v48 = vmul.f32 -1.442695, %v8298_v17  ;;  %v15746_v17 = vld [vmem:[#allocation31_spill] sm:$0xff] }
 0x93e   : > { %10736 = vpow2.f32 %v9588_v48  ;;  %8342 = vbcast.lane.b32.xlu1 %v8336_v62, 264  ;;  %8338 = vbcast.lane.b32.xlu0 %v8336_v62, 256  ;;  %v15747_v62 = vld [vmem:[#allocation26_spill] sm:$0xff] }
 0x942   : > { %8353 = vbcast.lane.b32.xlu1 %v8347_v4, 264  ;;  %8349 = vbcast.lane.b32.xlu0 %v8347_v4, 256 }
 0x946   : > { %8364 = vbcast.lane.b32.xlu1 %v8358_v52, 264  ;;  %8360 = vbcast.lane.b32.xlu0 %v8358_v52, 256  ;;  %v8528_v52 = vld [vmem:[%s15739_s4 + $0x48] sm:$0xff] }
 0x94a   : > { %8375 = vbcast.lane.b32.xlu1 %v8369_v58, 264  ;;  %8371 = vbcast.lane.b32.xlu0 %v8369_v58, 256  ;;  %v8527_v58 = vld [vmem:[%s15739_s4 + $0x40] sm:$0xff] }
 0x94b   : > { %v10737_v33 = vpop.eup %10736 }
 0x94c   : > { %v8306_v19 = vadd.f32 1.0, %v10737_v33 }
 0x94e   : > { %10738 = vrcp.f32 %v8306_v19  ;;  %8386 = vbcast.lane.b32.xlu1 %v8380_v49, 264  ;;  %8382 = vbcast.lane.b32.xlu0 %v8380_v49, 256  ;;  %v15748_v49 = vld [vmem:[#allocation33_spill] sm:$0xff] }
 0x952   : > { %8397 = vbcast.lane.b32.xlu1 %v8391_v53, 264  ;;  %8393 = vbcast.lane.b32.xlu0 %v8391_v53, 256  ;;  %v15749_v53 = vld [vmem:[#allocation28_spill] sm:$0xff] }
 0x95b   : > { %v10739_v27 = vpop.eup %10738 }
 0x95c   : > { %v8402_v60 = vrot.slane %v10739_v27, %v15737_v9  ;;  %v8413_v55 = vrot.slane %v10739_v27, %v8324_v56  ;;  %v8424_v3 = vrot.slane %v10739_v27, %v8335_v16  ;;  %v8435_v41 = vrot.slane %v10739_v27, %v8346_v59  ;;  %v8526_v56 = vld [vmem:[%s15739_s4 + $0x38] sm:$0xff] }
 0x95d   : > { %v8446_v61 = vrot.slane %v10739_v27, %v8357_v1  ;;  %v8457_v45 = vrot.slane %v10739_v27, %v8368_v14  ;;  %v8468_v21 = vrot.slane %v10739_v27, %v8379_v32  ;;  %v8479_v22 = vrot.slane %v10739_v27, %v8390_v35 }
 0x95e   : > { %8408 = vbcast.lane.b32.xlu1 %v8402_v60, 264  ;;  %8404 = vbcast.lane.b32.xlu0 %v8402_v60, 256 }
 0x962   : > { %8419 = vbcast.lane.b32.xlu1 %v8413_v55, 264  ;;  %8415 = vbcast.lane.b32.xlu0 %v8413_v55, 256 }
 0x966   : > { %8430 = vbcast.lane.b32.xlu1 %v8424_v3, 264  ;;  %8426 = vbcast.lane.b32.xlu0 %v8424_v3, 256  ;;  %v8530_v3 = vld [vmem:[%s15739_s4 + $0x58] sm:$0xff] }
 0x96a   : > { %8441 = vbcast.lane.b32.xlu1 %v8435_v41, 264  ;;  %8437 = vbcast.lane.b32.xlu0 %v8435_v41, 256 }
 0x96e   : > { %8452 = vbcast.lane.b32.xlu1 %v8446_v61, 264  ;;  %8448 = vbcast.lane.b32.xlu0 %v8446_v61, 256  ;;  %v8529_v61 = vld [vmem:[%s15739_s4 + $0x50] sm:$0xff] }
 0x972   : > { %8463 = vbcast.lane.b32.xlu1 %v8457_v45, 264  ;;  %8459 = vbcast.lane.b32.xlu0 %v8457_v45, 256 }
 0x976   : > { %8474 = vbcast.lane.b32.xlu1 %v8468_v21, 264  ;;  %8470 = vbcast.lane.b32.xlu0 %v8468_v21, 256 }
 0x97a   : > { %8485 = vbcast.lane.b32.xlu1 %v8479_v22, 264  ;;  %8481 = vbcast.lane.b32.xlu0 %v8479_v22, 256 }
 0x9a8   : > { %v8321_v31 = vpop.permute.xlu1 %8320  ;;  %v8317_v26 = vpop.permute.xlu0 %8316 }
 0x9a9   : > { %v8488_v43 = vmul.f32 %v8321_v31, %v15740_v57  ;;  %v8487_v38 = vmul.f32 %v8317_v26, %v15741_v10  ;;  %v8532_v10 = vld [vmem:[%s15739_s4 + $0x68] sm:$0xff] }
 0x9ab   : > { %v8552_v18 = vadd.f32 %v8520_v39, %v8488_v43  ;;  %v8551_v30 = vadd.f32 %v8519_v42, %v8487_v38  ;;  %v15750_v39 = vld [vmem:[#allocation35_spill] sm:$0xff]  ;;  %v15751_v42 = vld [vmem:[#allocation30_spill] sm:$0xff] }
 0x9ac   : > { %v8332_v29 = vpop.permute.xlu1 %8331  ;;  %v8328_v20 = vpop.permute.xlu0 %8327 }
 0x9ad   : > { %v8584_v5 = vmax.f32 %v8552_v18, 0.0  ;;  %v8583_v28 = vmax.f32 %v8551_v30, 0.0  ;;  %v8490_v7 = vmul.f32 %v8332_v29, %v15742_v34  ;;  %v8489_v50 = vmul.f32 %v8328_v20, %v15743_v36  ;;  %v8531_v18 = vld [vmem:[%s15739_s4 + $0x60] sm:$0xff]  ;;  %v8534_v36 = vld [vmem:[%s15739_s4 + $0x78] sm:$0xff] }
 0x9af   : > { %8616 = vst.msk [vmem:[%s15323_s8 + $0x8] sm:$0xff] %vm319_vm0, %v8584_v5  ;;  %8615 = vst.msk [vmem:[%s15323_s8] sm:$0xff] %vm319_vm0, %v8583_v28  ;;  %v8554_v0 = vadd.f32 %v8522_v40, %v8490_v7  ;;  %v8553_v54 = vadd.f32 %v8521_v63, %v8489_v50  ;;  %v15752_v63 = vld [vmem:[#allocation37_spill] sm:$0xff]  ;;  %v15753_v5 = vld [vmem:[#allocation32_spill] sm:$0xff] }
 0x9b0   : > { %v8343_v37 = vpop.permute.xlu1 %8342  ;;  %v8339_v13 = vpop.permute.xlu0 %8338 }
 0x9b1   : > { %v8586_v47 = vmax.f32 %v8554_v0, 0.0  ;;  %v8585_v51 = vmax.f32 %v8553_v54, 0.0  ;;  %v8492_v15 = vmul.f32 %v8343_v37, %v15744_v25  ;;  %v8491_v9 = vmul.f32 %v8339_v13, %v15745_v23  ;;  %v8533_v0 = vld [vmem:[%s15739_s4 + $0x70] sm:$0xff] }
 0x9b3   : > { %8618 = vst.msk [vmem:[%s15323_s8 + $0x18] sm:$0xff] %vm319_vm0, %v8586_v47  ;;  %8617 = vst.msk [vmem:[%s15323_s8 + $0x10] sm:$0xff] %vm319_vm0, %v8585_v51  ;;  %v8556_v44 = vadd.f32 %v8524_v2, %v8492_v15  ;;  %v8555_v12 = vadd.f32 %v8523_v11, %v8491_v9  ;;  %v15754_v11 = vld [vmem:[#allocation39_spill] sm:$0xff]  ;;  %v15755_v47 = vld [vmem:[#allocation34_spill] sm:$0xff] }
 0x9b4   : > { %v8354_v24 = vpop.permute.xlu1 %8353  ;;  %v8350_v46 = vpop.permute.xlu0 %8349 }
 0x9b5   : > { %v8588_v8 = vmax.f32 %v8556_v44, 0.0  ;;  %v8587_v16 = vmax.f32 %v8555_v12, 0.0  ;;  %v8494_v48 = vmul.f32 %v8354_v24, %v15746_v17  ;;  %v8493_v59 = vmul.f32 %v8350_v46, %v15747_v62  ;;  %v8536_v44 = vld [vmem:[%s15739_s4 + $0x88] sm:$0xff]  ;;  %v8538_v62 = vld [vmem:[%s15739_s4 + $0x98] sm:$0xff] }
 0x9b7   : > { %8620 = vst.msk [vmem:[%s15323_s8 + $0x28] sm:$0xff] %vm319_vm0, %v8588_v8  ;;  %8619 = vst.msk [vmem:[%s15323_s8 + $0x20] sm:$0xff] %vm319_vm0, %v8587_v16  ;;  %v8558_v4 = vadd.f32 %v8526_v56, %v8494_v48  ;;  %v8557_v1 = vadd.f32 %v8525_v6, %v8493_v59  ;;  %v8535_v56 = vld [vmem:[%s15739_s4 + $0x80] sm:$0xff]  ;;  %v15756_v6 = vld [vmem:[#allocation41_spill] sm:$0xff] }
 0x9b8   : > { %v8365_v14 = vpop.permute.xlu1 %8364  ;;  %v8361_v32 = vpop.permute.xlu0 %8360  ;;  %v15757_v8 = vld [vmem:[#allocation36_spill] sm:$0xff] }
 0x9b9   : > { %v8590_v33 = vmax.f32 %v8558_v4, 0.0  ;;  %v8589_v19 = vmax.f32 %v8557_v1, 0.0  ;;  %v8496_v35 = vmul.f32 %v8365_v14, %v15748_v49  ;;  %v8495_v27 = vmul.f32 %v8361_v32, %v15749_v53  ;;  %v8537_v4 = vld [vmem:[%s15739_s4 + $0x90] sm:$0xff]  ;;  %v8540_v53 = vld [vmem:[%s15739_s4 + $0xa8] sm:$0xff] }
 0x9bb   : > { %8622 = vst.msk [vmem:[%s15323_s8 + $0x38] sm:$0xff] %vm319_vm0, %v8590_v33  ;;  %8621 = vst.msk [vmem:[%s15323_s8 + $0x30] sm:$0xff] %vm319_vm0, %v8589_v19  ;;  %v8560_v60 = vadd.f32 %v8528_v52, %v8496_v35  ;;  %v8559_v55 = vadd.f32 %v8527_v58, %v8495_v27  ;;  %v15758_v58 = vld [vmem:[#allocation43_spill] sm:$0xff]  ;;  %v15759_v33 = vld [vmem:[#allocation38_spill] sm:$0xff] }
 0x9bc   : > { %v8376_v41 = vpop.permute.xlu1 %8375  ;;  %v8372_v45 = vpop.permute.xlu0 %8371 }
 0x9bd   : > { %v8592_v21 = vmax.f32 %v8560_v60, 0.0  ;;  %v8591_v22 = vmax.f32 %v8559_v55, 0.0  ;;  %v8498_v31 = vmul.f32 %v8376_v41, %v15750_v39  ;;  %v8497_v26 = vmul.f32 %v8372_v45, %v15751_v42  ;;  %v8539_v60 = vld [vmem:[%s15739_s4 + $0xa0] sm:$0xff]  ;;  %v8542_v42 = vld [vmem:[%s15739_s4 + $0xb8] sm:$0xff] }
 0x9bf   : > { %8624 = vst.msk [vmem:[%s15323_s8 + $0x48] sm:$0xff] %vm319_vm0, %v8592_v21  ;;  %8623 = vst.msk [vmem:[%s15323_s8 + $0x40] sm:$0xff] %vm319_vm0, %v8591_v22  ;;  %v8562_v57 = vadd.f32 %v8530_v3, %v8498_v31  ;;  %v8561_v43 = vadd.f32 %v8529_v61, %v8497_v26  ;;  %v15760_v61 = vld [vmem:[#allocation45_spill] sm:$0xff]  ;;  %v15761_v21 = vld [vmem:[#allocation40_spill] sm:$0xff] }
 0x9c0   : > { %v8387_v38 = vpop.permute.xlu1 %8386  ;;  %v8383_v30 = vpop.permute.xlu0 %8382 }
 0x9c1   : > { %v8594_v40 = vmax.f32 %v8562_v57, 0.0  ;;  %v8593_v29 = vmax.f32 %v8561_v43, 0.0  ;;  %v8500_v20 = vmul.f32 %v8387_v38, %v15752_v63  ;;  %v8499_v28 = vmul.f32 %v8383_v30, %v15753_v5  ;;  %v8541_v57 = vld [vmem:[%s15739_s4 + $0xb0] sm:$0xff]  ;;  %v8544_v5 = vld [vmem:[%s15739_s4 + $0xc8] sm:$0xff] }
 0x9c3   : > { %8626 = vst.msk [vmem:[%s15323_s8 + $0x58] sm:$0xff] %vm319_vm0, %v8594_v40  ;;  %8625 = vst.msk [vmem:[%s15323_s8 + $0x50] sm:$0xff] %vm319_vm0, %v8593_v29  ;;  %v8564_v34 = vadd.f32 %v8532_v10, %v8500_v20  ;;  %v8563_v7 = vadd.f32 %v8531_v18, %v8499_v28  ;;  %v15762_v18 = vld [vmem:[#allocation47_spill] sm:$0xff]  ;;  %v15763_v40 = vld [vmem:[#allocation42_spill] sm:$0xff] }
 0x9c4   : > { %v8398_v50 = vpop.permute.xlu1 %8397  ;;  %v8394_v54 = vpop.permute.xlu0 %8393 }
 0x9c5   : > { %v8596_v2 = vmax.f32 %v8564_v34, 0.0  ;;  %v8595_v37 = vmax.f32 %v8563_v7, 0.0  ;;  %v8502_v13 = vmul.f32 %v8398_v50, %v15754_v11  ;;  %v8501_v51 = vmul.f32 %v8394_v54, %v15755_v47  ;;  %v8543_v34 = vld [vmem:[%s15739_s4 + $0xc0] sm:$0xff]  ;;  %v8546_v47 = vld [vmem:[%s15739_s4 + $0xd8] sm:$0xff] }
 0x9c7   : > { %8628 = vst.msk [vmem:[%s15323_s8 + $0x68] sm:$0xff] %vm319_vm0, %v8596_v2  ;;  %8627 = vst.msk [vmem:[%s15323_s8 + $0x60] sm:$0xff] %vm319_vm0, %v8595_v37  ;;  %v8566_v25 = vadd.f32 %v8534_v36, %v8502_v13  ;;  %v8565_v15 = vadd.f32 %v8533_v0, %v8501_v51  ;;  %v15764_v0 = vld [vmem:[#allocation49_spill] sm:$0xff]  ;;  %v15765_v2 = vld [vmem:[#allocation44_spill] sm:$0xff] }
 0x9c9   : > { %v8598_v23 = vmax.f32 %v8566_v25, 0.0  ;;  %v8597_v9 = vmax.f32 %v8565_v15, 0.0  ;;  %v8545_v25 = vld [vmem:[%s15739_s4 + $0xd0] sm:$0xff] }
 0x9cb   : > { %8630 = vst.msk [vmem:[%s15323_s8 + $0x78] sm:$0xff] %vm319_vm0, %v8598_v23  ;;  %8629 = vst.msk [vmem:[%s15323_s8 + $0x70] sm:$0xff] %vm319_vm0, %v8597_v9 }
 0x9d0   : > { %v8409_v12 = vpop.permute.xlu1 %8408  ;;  %v8405_v24 = vpop.permute.xlu0 %8404 }
 0x9d1   : > { %v8504_v46 = vmul.f32 %v8409_v12, %v15756_v6  ;;  %v8503_v16 = vmul.f32 %v8405_v24, %v15757_v8  ;;  %v8548_v8 = vld [vmem:[%s15739_s4 + $0xe8] sm:$0xff] }
 0x9d3   : > { %v8568_v17 = vadd.f32 %v8536_v44, %v8504_v46  ;;  %v8567_v48 = vadd.f32 %v8535_v56, %v8503_v16  ;;  %v15766_v44 = vld [vmem:[#allocation51_spill] sm:$0xff]  ;;  %v15767_v56 = vld [vmem:[#allocation46_spill] sm:$0xff] }
 0x9d4   : > { %v8420_v59 = vpop.permute.xlu1 %8419  ;;  %v8416_v1 = vpop.permute.xlu0 %8415 }
 0x9d5   : > { %v8600_v52 = vmax.f32 %v8568_v17, 0.0  ;;  %v8599_v14 = vmax.f32 %v8567_v48, 0.0  ;;  %v8506_v32 = vmul.f32 %v8420_v59, %v15758_v58  ;;  %v8505_v19 = vmul.f32 %v8416_v1, %v15759_v33  ;;  %v8547_v17 = vld [vmem:[%s15739_s4 + $0xe0] sm:$0xff]  ;;  %v8550_v33 = vld [vmem:[%s15739_s4 + $0xf8] sm:$0xff] }
 0x9d7   : > { %8632 = vst.msk [vmem:[%s15323_s8 + $0x88] sm:$0xff] %vm319_vm0, %v8600_v52  ;;  %8631 = vst.msk [vmem:[%s15323_s8 + $0x80] sm:$0xff] %vm319_vm0, %v8599_v14  ;;  %v8570_v49 = vadd.f32 %v8538_v62, %v8506_v32  ;;  %v8569_v35 = vadd.f32 %v8537_v4, %v8505_v19  ;;  %v15769_v4 = vld [vmem:[#allocation52_spill] sm:$0xff] }
 0x9d8   : > { %v8431_v27 = vpop.permute.xlu1 %8430  ;;  %v8427_v55 = vpop.permute.xlu0 %8426  ;;  %v15770_v52 = vld [vmem:[#allocation48_spill] sm:$0xff] }
 0x9d9   : > { %v8602_v3 = vmax.f32 %v8570_v49, 0.0  ;;  %v8601_v41 = vmax.f32 %v8569_v35, 0.0  ;;  %v8508_v45 = vmul.f32 %v8431_v27, %v15760_v61  ;;  %v8507_v22 = vmul.f32 %v8427_v55, %v15761_v21  ;;  %v8549_v49 = vld [vmem:[%s15739_s4 + $0xf0] sm:$0xff] }
 0x9db   : > { %8634 = vst.msk [vmem:[%s15323_s8 + $0x98] sm:$0xff] %vm319_vm0, %v8602_v3  ;;  %8633 = vst.msk [vmem:[%s15323_s8 + $0x90] sm:$0xff] %vm319_vm0, %v8601_v41  ;;  %v8572_v39 = vadd.f32 %v8540_v53, %v8508_v45  ;;  %v8571_v31 = vadd.f32 %v8539_v60, %v8507_v22  ;;  %v15771_v60 = vld [vmem:[#allocation53_spill] sm:$0xff]  ;;  %v15772_v3 = vld [vmem:[#allocation50_spill] sm:$0xff] }
 0x9dc   : > { %v8442_v26 = vpop.permute.xlu1 %8441  ;;  %v8438_v43 = vpop.permute.xlu0 %8437 }
 0x9dd   : > { %v8604_v10 = vmax.f32 %v8572_v39, 0.0  ;;  %v8603_v38 = vmax.f32 %v8571_v31, 0.0  ;;  %v8510_v30 = vmul.f32 %v8442_v26, %v15762_v18  ;;  %v8509_v29 = vmul.f32 %v8438_v43, %v15763_v40 }
 0x9df   : > { %8636 = vst.msk [vmem:[%s15323_s8 + $0xa8] sm:$0xff] %vm319_vm0, %v8604_v10  ;;  %8635 = vst.msk [vmem:[%s15323_s8 + $0xa0] sm:$0xff] %vm319_vm0, %v8603_v38  ;;  %v8574_v63 = vadd.f32 %v8542_v42, %v8510_v30  ;;  %v8573_v20 = vadd.f32 %v8541_v57, %v8509_v29 }
 0x9e0   : > { %v8453_v28 = vpop.permute.xlu1 %8452  ;;  %v8449_v7 = vpop.permute.xlu0 %8448 }
 0x9e1   : > { %v8606_v36 = vmax.f32 %v8574_v63, 0.0  ;;  %v8605_v50 = vmax.f32 %v8573_v20, 0.0  ;;  %v8512_v54 = vmul.f32 %v8453_v28, %v15764_v0  ;;  %v8511_v37 = vmul.f32 %v8449_v7, %v15765_v2 }
 0x9e3   : > { %8638 = vst.msk [vmem:[%s15323_s8 + $0xb8] sm:$0xff] %vm319_vm0, %v8606_v36  ;;  %8637 = vst.msk [vmem:[%s15323_s8 + $0xb0] sm:$0xff] %vm319_vm0, %v8605_v50  ;;  %v8576_v11 = vadd.f32 %v8544_v5, %v8512_v54  ;;  %v8575_v13 = vadd.f32 %v8543_v34, %v8511_v37 }
 0x9e4   : > { %v8464_v51 = vpop.permute.xlu1 %8463  ;;  %v8460_v15 = vpop.permute.xlu0 %8459 }
 0x9e5   : > { %v8608_v23 = vmax.f32 %v8576_v11, 0.0  ;;  %v8607_v9 = vmax.f32 %v8575_v13, 0.0  ;;  %v8514_v12 = vmul.f32 %v8464_v51, %v15766_v44  ;;  %v8513_v24 = vmul.f32 %v8460_v15, %v15767_v56 }
 0x9e7   : > { %8640 = vst.msk [vmem:[%s15323_s8 + $0xc8] sm:$0xff] %vm319_vm0, %v8608_v23  ;;  %8639 = vst.msk [vmem:[%s15323_s8 + $0xc0] sm:$0xff] %vm319_vm0, %v8607_v9  ;;  %v8578_v6 = vadd.f32 %v8546_v47, %v8514_v12  ;;  %v8577_v46 = vadd.f32 %v8545_v25, %v8513_v24 }
 0x9e8   : > { %v8475_v16 = vpop.permute.xlu1 %8474  ;;  %v8471_v48 = vpop.permute.xlu0 %8470 }
 0x9e9   : > { %v8610_v62 = vmax.f32 %v8578_v6, 0.0  ;;  %v8609_v59 = vmax.f32 %v8577_v46, 0.0  ;;  %v8516_v1 = vmul.f32 %v8475_v16, %v15769_v4  ;;  %v8515_v14 = vmul.f32 %v8471_v48, %v15770_v52 }
 0x9eb   : > { %8642 = vst.msk [vmem:[%s15323_s8 + $0xd8] sm:$0xff] %vm319_vm0, %v8610_v62  ;;  %8641 = vst.msk [vmem:[%s15323_s8 + $0xd0] sm:$0xff] %vm319_vm0, %v8609_v59  ;;  %v8580_v58 = vadd.f32 %v8548_v8, %v8516_v1  ;;  %v8579_v32 = vadd.f32 %v8547_v17, %v8515_v14 }
 0x9ec   : > { %v8486_v19 = vpop.permute.xlu1 %8485  ;;  %v8482_v35 = vpop.permute.xlu0 %8481 }
 0x9ed   : > { %v8612_v53 = vmax.f32 %v8580_v58, 0.0  ;;  %v8611_v27 = vmax.f32 %v8579_v32, 0.0  ;;  %v8518_v55 = vmul.f32 %v8486_v19, %v15771_v60  ;;  %v8517_v41 = vmul.f32 %v8482_v35, %v15772_v3 }
 0x9ef   : > { %8644 = vst.msk [vmem:[%s15323_s8 + $0xe8] sm:$0xff] %vm319_vm0, %v8612_v53  ;;  %8643 = vst.msk [vmem:[%s15323_s8 + $0xe0] sm:$0xff] %vm319_vm0, %v8611_v27  ;;  %v8582_v61 = vadd.f32 %v8550_v33, %v8518_v55  ;;  %v8581_v45 = vadd.f32 %v8549_v49, %v8517_v41 }
 0x9f1   : > { %v8614_v21 = vmax.f32 %v8582_v61, 0.0  ;;  %v8613_v22 = vmax.f32 %v8581_v45, 0.0 }
 0x9f3   : > { %8646 = vst.msk [vmem:[%s15323_s8 + $0xf8] sm:$0xff] %vm319_vm0, %v8614_v21  ;;  %8645 = vst.msk [vmem:[%s15323_s8 + $0xf0] sm:$0xff] %vm319_vm0, %v8613_v22 }
 0x9f4   : > { %10781 = shalt.err (!%p10778_p2)
}
 0x9f5   : > { %s10782_s21 = scalar_lea.hbm %s15446_s19, 4096  ;;  %s10786_s13 = scalar_lea.hbm %s15774_s17, 8192 }
 0x9f6   : > { %p10783_p3 = scmp.ne.s32.totalorder %s15446_s19, %s10782_s21  ;;  %p10787_p8 = scmp.lt.s32.totalorder %s15446_s19, %s15774_s17 }
 0x9f7   : > { %p10788_p9 = scmp.lt.s32.totalorder %s10786_s13, %s10782_s21 }
 0x9f8   : > { %p10784_p4 = pnand %p10783_p3, %p10932_p5 }
 0x9f9   : > { %p10789_p10 = por %p10788_p9, %p10787_p8 }
 0x9fa   : > { %p10785_p7 = pneg %p10784_p4 }
 0x9fc   : > { %p10790_p11 = pnand %p10789_p10, %p10785_p7 }
 0x9fe   : > { %10793 = shalt.err (!%p10790_p11)
}
 0x9ff   : > { %s10847_s5 = smov 128   ;;  %s10848_s7 = smov 8  }
 0xa00   : > { %10535 = dma.vmem_to_hbm [thread:$0]  (%p10932_p5), %s15448_s22, 4096, %s15446_s19, %s15456_s20, %s10847_s5, %s10847_s5, %s10848_s7  }
 0xa01 PF: > { %s15775_s6 = sld [smem:[#allocation13_spill]] }
 0xa02   : > { %s15776_s11 = sld [smem:[#allocation11_spill]] }
 0xa07   : > { %p10547_p12 = scmp.ge.s32.totalorder %s15775_s6, 2 }
 0xa08   : > { %s8676_s0 = sand.u32 1, %s15776_s11  }
 0xa09   : > { %p10542_p13 = pnand %p10547_p12, %p10936_p6  ;;  %s8677_s14 = scalar_lea.sflag [#allocation6], %s8676_s0 }
 0xa0b   : > { %p10543_p0 = pneg %p10542_p13 }
 0xa0d   : > { %10815 = dma.done.wait (%p10543_p0), %s8677_s14, 4096  }
 0xa0e   : > { %10817 = vsyncadd (%p10543_p0), %s8677_s14, 4294963200  ;;  %s15778_s30 = sld [smem:[#allocation15_spill]]  ;;  %s15781_s27 = smov %s10824_s28 }
 0xa0f   : > { %s15779_s4 = sld [smem:[#allocation12_spill]] }
 0xa10   : > { %s15780_s29 = sld [smem:[#allocation16_spill]] }
 0xa14   : > { %p19_p1 = scmp.ge.s32.totalorder %s15778_s30, 4  }
 0xa15   : > { %s15782_s28 = smov %s15779_s4 }
 0xa16   :  { %21 = sbr.rel (!%p19_p1) target bundleno = 14 (0xe), region = 96 }
 0xa1b   :  { %8682 = vsyncpa [#allocation6], 1 }
 0xa1c   :  { %8684 = vsyncpa [#allocation6 + $0x1], 1 }
 0xa1d   :  { %8685 = vsyncpa [#allocation7], 1 }
 0xa1e   :  { %8687 = vsyncpa [#allocation7 + $0x1], 1 }

</bundles_post_ra>
